<compile_context>
chip_gen: v5e
topology: v5e:2x2
jax: 0.10.0
libtpu: 0.0.40
codegen_flags: <defaults>
</compile_context>

<pallas_src>
import jax
import jax.numpy as jnp
from jax.experimental import pallas as pl
from jax.experimental.pallas import tpu as pltpu

_BN_EPS = 1e-5

_VMEM_LIMIT_CACHE = None


def _vmem_limit():
    """Generation-aware scoped-VMEM limit (96 MiB on 128-MiB parts, 48 MiB on
    64-MiB v7x), with a conservative fallback if the query is unavailable."""
    global _VMEM_LIMIT_CACHE
    if _VMEM_LIMIT_CACHE is None:
        try:
            cap = int(pltpu.get_tpu_info().vmem_capacity_bytes)
            _VMEM_LIMIT_CACHE = min((cap * 3) // 4, 96 * 1024 * 1024)
        except Exception:
            _VMEM_LIMIT_CACHE = 48 * 1024 * 1024
    return _VMEM_LIMIT_CACHE


def _pick_tb(B, L, cin, cout, K):
    """Batch rows folded into one grid step: large enough to fill DMA tiles /
    the MXU M dimension, small enough to keep >= min(B,4) grid steps (v7x
    megacore) and a bounded per-step VMEM working set."""
    min_steps = min(B, 4)
    target_rows = 512
    # rough per-batch-row bytes: double-buffered bf16 in/out + f32 pad scratch
    row_bytes = 2 * L * (4 * cin + 4 * cout) + 4 * (L + K) * cin
    budget = 8 * 1024 * 1024
    best = 1
    for cand in range(1, B + 1):
        if B % cand:
            continue
        if B // cand < min_steps:
            break
        if cand * row_bytes > budget or cand * L > 4096:
            break
        best = cand
        if cand * L >= target_rows:
            break
    return best


# ----------------------------------------------------------------------------
# Conv (+stats, + optional fused pre-stage / shortcut) kernel
# ----------------------------------------------------------------------------
def _make_conv_stats_kernel(*, K, L, Cin, O, TB, left, pre_mode, res_bn,
                            shortcut, use_concat):
    """Conv1d('same') over a (TB, L, Cin) batch tile + per-tile BN partials.

    pre_mode:
      "none"     : raw input.
      "bn_relu"  : apply folded BN (scale, shift) + ReLU of the previous conv.
      "finalize" : apply the previous BLOCK's finalize: BN2 fold + residual add
                   (optionally BN-folded shortcut) + ReLU.
    shortcut     : also compute the 1x1 shortcut conv on the activated input.
    use_concat   : build a shifted-concat (TB*L, K*Cin) LHS and do ONE matmul
                   (small Cin); otherwise K shifted-tap matmuls with register
                   accumulation (Cin >= 128, MXU contraction already full).
    """
    right = K - 1 - left

    def kernel(*refs):
        i = 0
        x_ref = refs[i]; i += 1
        res_ref = sc_ref = sh_ref = rsc_ref = rsh_ref = None
        if pre_mode == "bn_relu":
            sc_ref, sh_ref = refs[i:i + 2]; i += 2
        elif pre_mode == "finalize":
            res_ref, sc_ref, sh_ref = refs[i:i + 3]; i += 3
            if res_bn:
                rsc_ref, rsh_ref = refs[i:i + 2]; i += 2
        w_ref, b_ref = refs[i:i + 2]; i += 2
        if shortcut:
            wsc_ref, bsc_ref = refs[i:i + 2]; i += 2
        y_ref, s_ref, q_ref = refs[i:i + 3]; i += 3
        if shortcut:
            ysc_ref, ssc_ref, qsc_ref = refs[i:i + 3]; i += 3
        pad_ref = refs[i]                                   # (TB, Lp, Cin) f32

        x_in = x_ref[...]                                   # (TB, L, Cin) bf16
        if pre_mode == "none":
            x_f32 = x_in.astype(jnp.float32)
            x_bf = x_in
        elif pre_mode == "bn_relu":
            x_f32 = jnp.maximum(
                x_in.astype(jnp.float32) * sc_ref[...] + sh_ref[...], 0.0)
            x_bf = x_f32.astype(jnp.bfloat16)
        else:  # "finalize": BN2 + residual(+BN) + ReLU of the previous block
            yprev = x_in.astype(jnp.float32) * sc_ref[...] + sh_ref[...]
            rprev = res_ref[...].astype(jnp.float32)
            if res_bn:
                rprev = rprev * rsc_ref[...] + rsh_ref[...]
            x_f32 = jnp.maximum(yprev + rprev, 0.0)
            x_bf = x_f32.astype(jnp.bfloat16)

        # 'same'-padded input in a persistent f32 VMEM scratch (unpacked dtype
        # keeps the halo-offset sublane stores/loads on the proven path).
        pad_ref[:, left:left + L, :] = x_f32
        if left > 0:
            pad_ref[:, 0:left, :] = jnp.zeros((TB, left, Cin), jnp.float32)
        if right > 0:
            pad_ref[:, left + L:left + L + right, :] = jnp.zeros(
                (TB, right, Cin), jnp.float32)

        if use_concat:
            # small Cin: shifted-concat -> ONE matmul, contraction K*Cin and
            # M = TB*L (batch rows folded into the MXU M dimension).
            taps = [pad_ref[:, k:k + L, :] for k in range(K)]
            xcat = jnp.concatenate(taps, axis=-1).astype(jnp.bfloat16)
            xcat = xcat.reshape(TB * L, K * Cin)
            yflat = jnp.dot(xcat, w_ref[...],
                            preferred_element_type=jnp.float32) + b_ref[...]
            y_ref[...] = yflat.reshape(TB, L, O).astype(jnp.bfloat16)
            s_ref[0] = jnp.sum(yflat, axis=0, keepdims=True)
            q_ref[0] = jnp.sum(yflat * yflat, axis=0, keepdims=True)
        else:
            # Cin >= 128: K shifted-tap matmuls, register (jnp value)
            # accumulation -- no VMEM accumulator round-trips.
            s_tot = q_tot = None
            for bi in range(TB):
                acc = jnp.dot(pad_ref[bi, 0:L, :].astype(jnp.bfloat16),
                              w_ref[0], preferred_element_type=jnp.float32)
                for k in range(1, K):
                    acc = acc + jnp.dot(
                        pad_ref[bi, k:k + L, :].astype(jnp.bfloat16), w_ref[k],
                        preferred_element_type=jnp.float32)
                yb = acc + b_ref[...]                       # (L, O) f32
                y_ref[bi] = yb.astype(jnp.bfloat16)
                sb = jnp.sum(yb, axis=0, keepdims=True)
                qb = jnp.sum(yb * yb, axis=0, keepdims=True)
                s_tot = sb if s_tot is None else s_tot + sb
                q_tot = qb if q_tot is None else q_tot + qb
            s_ref[0] = s_tot
            q_ref[0] = q_tot

        if shortcut:
            ysc = jnp.dot(x_bf.reshape(TB * L, Cin), wsc_ref[...],
                          preferred_element_type=jnp.float32) + bsc_ref[...]
            ysc_ref[...] = ysc.reshape(TB, L, O).astype(jnp.bfloat16)
            ssc_ref[0] = jnp.sum(ysc, axis=0, keepdims=True)
            qsc_ref[0] = jnp.sum(ysc * ysc, axis=0, keepdims=True)

    return kernel


def _conv_stage(x, w, b, *, wsc=None, bsc=None, pre=None):
    """One conv stage.  x:(B,L,Cin) bf16, w:(K,Cin,O) bf16, b:(1,O) f32."""
    B, L, Cin = x.shape
    K, _, O = w.shape
    left = (K - 1) // 2            # PyTorch padding='same' (asymmetric, even K)
    Lp = L + K - 1

    shortcut = wsc is not None
    pre_mode = "none" if pre is None else pre["mode"]
    res_bn = pre_mode == "finalize" and pre.get("rscale") is not None
    use_concat = Cin < 128         # block-1 conv1 / tiny contraction dim
    tb = _pick_tb(B, L, Cin, O, K)
    nb = B // tb

    act_in_spec = pl.BlockSpec((tb, L, Cin), lambda i: (i, 0, 0))
    cvec_spec = pl.BlockSpec((1, Cin), lambda i: (0, 0))
    ovec_spec = pl.BlockSpec((1, O), lambda i: (0, 0))
    wsc_spec = pl.BlockSpec((Cin, O), lambda i: (0, 0))
    y_spec = pl.BlockSpec((tb, L, O), lambda i: (i, 0, 0))
    stat_spec = pl.BlockSpec((1, 1, O), lambda i: (i, 0, 0))

    inputs, in_specs = [x], [act_in_spec]
    if pre_mode == "bn_relu":
        inputs += [pre["scale"], pre["shift"]]
        in_specs += [cvec_spec, cvec_spec]
    elif pre_mode == "finalize":
        inputs += [pre["res"], pre["scale"], pre["shift"]]
        in_specs += [act_in_spec, cvec_spec, cvec_spec]
        if res_bn:
            inputs += [pre["rscale"], pre["rshift"]]
            in_specs += [cvec_spec, cvec_spec]
    if use_concat:
        inputs += [w.reshape(K * Cin, O), b]
        in_specs += [pl.BlockSpec((K * Cin, O), lambda i: (0, 0)), ovec_spec]
    else:
        inputs += [w, b]
        in_specs += [pl.BlockSpec((K, Cin, O), lambda i: (0, 0, 0)), ovec_spec]
    if shortcut:
        inputs += [wsc, bsc]
        in_specs += [wsc_spec, ovec_spec]

    out_shape = [jax.ShapeDtypeStruct((B, L, O), jnp.bfloat16),
                 jax.ShapeDtypeStruct((nb, 1, O), jnp.float32),
                 jax.ShapeDtypeStruct((nb, 1, O), jnp.float32)]
    out_specs = [y_spec, stat_spec, stat_spec]
    if shortcut:
        out_shape += [jax.ShapeDtypeStruct((B, L, O), jnp.bfloat16),
                      jax.ShapeDtypeStruct((nb, 1, O), jnp.float32),
                      jax.ShapeDtypeStruct((nb, 1, O), jnp.float32)]
        out_specs += [y_spec, stat_spec, stat_spec]

    kernel = _make_conv_stats_kernel(
        K=K, L=L, Cin=Cin, O=O, TB=tb, left=left, pre_mode=pre_mode,
        res_bn=res_bn, shortcut=shortcut, use_concat=use_concat)

    return pl.pallas_call(
        kernel,
        grid=(nb,),
        in_specs=in_specs,
        out_specs=tuple(out_specs),
        out_shape=tuple(out_shape),
        scratch_shapes=[pltpu.VMEM((tb, Lp, Cin), jnp.float32)],
        compiler_params=pltpu.CompilerParams(
            dimension_semantics=("parallel",),
            vmem_limit_bytes=_vmem_limit()),
    )(*inputs)


# ----------------------------------------------------------------------------
# Finalize kernel (only needed standalone for the last block's pooled output,
# or as a rarely-used fallback for identity-shortcut blocks).
# ----------------------------------------------------------------------------
def _make_finalize_kernel(*, res_bn, pool):
    def kernel(*refs):
        y_ref, sc_ref, sh_ref, res_ref = refs[0:4]
        i = 4
        if res_bn:
            rsc_ref, rsh_ref = refs[i:i + 2]; i += 2
        out_ref = refs[i]

        y = y_ref[...].astype(jnp.float32) * sc_ref[...] + sh_ref[...]
        r = res_ref[...].astype(jnp.float32)
        if res_bn:
            r = r * rsc_ref[...] + rsh_ref[...]
        act = jnp.maximum(y + r, 0.0)                       # (TB, L, O) f32
        if pool:
            out_ref[...] = jnp.mean(act, axis=1, keepdims=True)
        else:
            out_ref[...] = act.astype(out_ref.dtype)

    return kernel


def _finalize(y, scale, shift, res, rscale=None, rshift=None, *, pool):
    B, L, O = y.shape
    res_bn = rscale is not None
    tb = _pick_tb(B, L, O, O, 1)
    nb = B // tb

    act_spec = pl.BlockSpec((tb, L, O), lambda i: (i, 0, 0))
    vec_spec = pl.BlockSpec((1, O), lambda i: (0, 0))

    inputs = [y, scale, shift, res]
    in_specs = [act_spec, vec_spec, vec_spec, act_spec]
    if res_bn:
        inputs += [rscale, rshift]
        in_specs += [vec_spec, vec_spec]

    if pool:
        out_shape = jax.ShapeDtypeStruct((B, 1, O), jnp.float32)
        out_spec = pl.BlockSpec((tb, 1, O), lambda i: (i, 0, 0))
    else:
        out_shape = jax.ShapeDtypeStruct((B, L, O), jnp.bfloat16)
        out_spec = act_spec

    return pl.pallas_call(
        _make_finalize_kernel(res_bn=res_bn, pool=pool),
        grid=(nb,),
        in_specs=in_specs,
        out_specs=out_spec,
        out_shape=out_shape,
        compiler_params=pltpu.CompilerParams(
            dimension_semantics=("parallel",),
            vmem_limit_bytes=_vmem_limit()),
    )(*inputs)


# ----------------------------------------------------------------------------
# Model glue (tiny per-channel folds + tiny FC stay in XLA)
# ----------------------------------------------------------------------------
def _bn_fold(psum, psumsq, count, gamma, beta):
    """Fold training-mode BatchNorm1d (biased var, eps=1e-5) into scale/shift."""
    s = jnp.sum(psum, axis=(0, 1))
    q = jnp.sum(psumsq, axis=(0, 1))
    mean = s / count
    var = jnp.maximum(q / count - mean * mean, 0.0)
    scale = gamma * jax.lax.rsqrt(var + _BN_EPS)
    shift = beta - mean * scale
    return scale.reshape(1, -1), shift.reshape(1, -1)


def model_forward(params, x_ncl):
    blocks, (fc_w_t, fc_b) = params
    x = jnp.transpose(x_ncl, (0, 2, 1)).astype(jnp.bfloat16)   # (B,C,L)->(B,L,C)
    B, L, _ = x.shape
    count = B * L

    pooled = None
    pending = None   # deferred finalize of the previous block (fused into conv1)
    for bi, p in enumerate(blocks):
        last = bi == len(blocks) - 1
        has_sc = "wsc" in p                                    # Cin != Cout

        if pending is not None and not has_sc:
            # identity shortcut needs the materialized block input; flush the
            # deferred finalize (cannot happen with the default channel plan).
            x = _finalize(pending["y2"], pending["scale"], pending["shift"],
                          pending["res"], pending["rscale"], pending["rshift"],
                          pool=False)
            pending = None

        if pending is None:
            conv1_out = _conv_stage(x, p["w1"], p["b1"],
                                    wsc=p.get("wsc"), bsc=p.get("bsc"))
        else:
            conv1_out = _conv_stage(
                pending["y2"], p["w1"], p["b1"],
                wsc=p.get("wsc"), bsc=p.get("bsc"),
                pre=dict(mode="finalize", res=pending["res"],
                         scale=pending["scale"], shift=pending["shift"],
                         rscale=pending["rscale"], rshift=pending["rshift"]))
            pending = None

        if has_sc:
            y1, s1, q1, ysc, ssc, qsc = conv1_out
        else:
            y1, s1, q1 = conv1_out

        scale1, shift1 = _bn_fold(s1, q1, count, p["g1"], p["be1"])
        # BN1 + ReLU fused into the conv2 kernel via (scale1, shift1)
        y2, s2, q2 = _conv_stage(y1, p["w2"], p["b2"],
                                 pre=dict(mode="bn_relu",
                                          scale=scale1, shift=shift1))
        scale2, shift2 = _bn_fold(s2, q2, count, p["g2"], p["be2"])

        if has_sc:
            scale_sc, shift_sc = _bn_fold(ssc, qsc, count, p["gsc"], p["besc"])
            res, rs, rsh = ysc, scale_sc, shift_sc
        else:
            res, rs, rsh = x, None, None

        if last:
            pooled = _finalize(y2, scale2, shift2, res, rs, rsh, pool=True)
        else:
            # defer the finalize; it is fused into the next block's conv1
            pending = dict(y2=y2, scale=scale2, shift=shift2,
                           res=res, rscale=rs, rshift=rsh)

    pooled = pooled.reshape(pooled.shape[0], pooled.shape[2])   # (B, 128) f32
    # TODO(synk): Linear(128 -> num_classes) stays in XLA -- a num_classes(<128)
    # lane-wide kernel output would only produce masked partial stores.
    return pooled @ fc_w_t + fc_b


# ----------------------------------------------------------------------------
# Deterministic parameter init (PyTorch-style), pre-transformed for the kernels
# ----------------------------------------------------------------------------
def _conv_init(key, out_c, in_c, k):
    kw, kb = jax.random.split(key)
    bound = 1.0 / float(in_c * k) ** 0.5
    w = jax.random.uniform(kw, (out_c, in_c, k), jnp.float32, -bound, bound)
    b = jax.random.uniform(kb, (out_c,), jnp.float32, -bound, bound)
    # tap-major (K, Cin, Cout) bf16; bias as lane-dense (1, Cout) f32
    return jnp.transpose(w, (2, 1, 0)).astype(jnp.bfloat16), b.reshape(1, out_c)


def init_model_params(key, channel_size, num_classes):
    specs = [(channel_size, 128, 8), (128, 256, 5), (256, 128, 3)]
    keys = jax.random.split(key, 3 * len(specs) + 2)
    ki = 0
    blocks = []
    for cin, cout, k in specs:
        p = {}
        p["w1"], p["b1"] = _conv_init(keys[ki], cout, cin, k); ki += 1
        p["w2"], p["b2"] = _conv_init(keys[ki], cout, cout, k); ki += 1
        p["g1"] = jnp.ones((cout,), jnp.float32)
        p["be1"] = jnp.zeros((cout,), jnp.float32)
        p["g2"] = jnp.ones((cout,), jnp.float32)
        p["be2"] = jnp.zeros((cout,), jnp.float32)
        if cin != cout:
            wsc, bsc = _conv_init(keys[ki], cout, cin, 1)
            p["wsc"], p["bsc"] = wsc[0], bsc          # (Cin, Cout), (1, Cout)
            p["gsc"] = jnp.ones((cout,), jnp.float32)
            p["besc"] = jnp.zeros((cout,), jnp.float32)
        ki += 1
        blocks.append(p)
    bound = 1.0 / float(128) ** 0.5
    fc_w = jax.random.uniform(keys[ki], (num_classes, 128), jnp.float32,
                              -bound, bound)
    fc_b = jax.random.uniform(keys[ki + 1], (num_classes,), jnp.float32,
                              -bound, bound)
    return blocks, (fc_w.T, fc_b)                      # FC weight pre-transposed


# ----------------------------------------------------------------------------
if __name__ == "__main__":
    B, L, channel_size, num_classes = 2, 16, 4, 5
    params = init_model_params(jax.random.PRNGKey(0), channel_size, num_classes)
    x = jax.random.normal(jax.random.PRNGKey(0), (B, channel_size, L),
                          jnp.float32)

    fwd = jax.jit(model_forward)
    out = fwd(params, x)
    jax.block_until_ready(out)
    assert out.shape == (B, num_classes), out.shape
    assert bool(jnp.all(jnp.isfinite(out)))
    print("KERNEL_OK")
</pallas_src>

<mosaic_0001>
module attributes {stable_mosaic.version = 11 : i64} {
  func.func @kernel(%arg0: i32, %arg1: memref<1x16x4xbf16, #tpu.memory_space<vmem>>, %arg2: memref<32x128xbf16, #tpu.memory_space<vmem>>, %arg3: memref<1x128xf32, #tpu.memory_space<vmem>>, %arg4: memref<4x128xbf16, #tpu.memory_space<vmem>>, %arg5: memref<1x128xf32, #tpu.memory_space<vmem>>, %arg6: memref<1x16x128xbf16, #tpu.memory_space<vmem>>, %arg7: memref<1x1x128xf32, #tpu.memory_space<vmem>>, %arg8: memref<1x1x128xf32, #tpu.memory_space<vmem>>, %arg9: memref<1x16x128xbf16, #tpu.memory_space<vmem>>, %arg10: memref<1x1x128xf32, #tpu.memory_space<vmem>>, %arg11: memref<1x1x128xf32, #tpu.memory_space<vmem>>, %arg12: memref<1x23x4xf32, #tpu.memory_space<vmem>>) attributes {dimension_semantics = [#tpu.dimension_semantics<parallel>], iteration_bounds = array<i64: 2>, scalar_prefetch = 0 : i64, scratch_operands = 1 : i64, tpu.core_type = #tpu.core_type<tc>, window_params = [{transform_indices = @transform_0, window_bounds = array<i64: 1, 16, 4>}, {pipeline_mode = #tpu.pipeline_mode<synchronous>, transform_indices = @transform_1, window_bounds = array<i64: 32, 128>}, {pipeline_mode = #tpu.pipeline_mode<synchronous>, transform_indices = @transform_2, window_bounds = array<i64: 1, 128>}, {pipeline_mode = #tpu.pipeline_mode<synchronous>, transform_indices = @transform_3, window_bounds = array<i64: 4, 128>}, {pipeline_mode = #tpu.pipeline_mode<synchronous>, transform_indices = @transform_4, window_bounds = array<i64: 1, 128>}, {transform_indices = @transform_5, window_bounds = array<i64: 1, 16, 128>}, {transform_indices = @transform_6, window_bounds = array<i64: 1, 1, 128>}, {transform_indices = @transform_7, window_bounds = array<i64: 1, 1, 128>}, {transform_indices = @transform_8, window_bounds = array<i64: 1, 16, 128>}, {transform_indices = @transform_9, window_bounds = array<i64: 1, 1, 128>}, {transform_indices = @transform_10, window_bounds = array<i64: 1, 1, 128>}]} {
    %c0 = arith.constant 0 : index
    %c0_0 = arith.constant 0 : index
    %c0_1 = arith.constant 0 : index
    %0 = vector.load %arg1[%c0, %c0_0, %c0_1] : memref<1x16x4xbf16, #tpu.memory_space<vmem>>, vector<1x16x4xbf16>
    %1 = arith.extf %0 : vector<1x16x4xbf16> to vector<1x16x4xf32>
    %c0_2 = arith.constant 0 : index
    %c3 = arith.constant 3 : index
    %c0_3 = arith.constant 0 : index
    %2 = vector.load %arg12[%c0_2, %c3, %c0_3] : memref<1x23x4xf32, #tpu.memory_space<vmem>>, vector<1x16x4xf32>
    tpu.vector_store %arg12[%c0_2, %c3, %c0_3], %1 {strides = array<i32>} : memref<1x23x4xf32, #tpu.memory_space<vmem>>, vector<1x16x4xf32>,
    %cst = arith.constant 0.000000e+00 : f32
    %3 = vector.broadcast %cst : f32 to vector<1x3x4xf32>
    %c0_4 = arith.constant 0 : index
    %c0_5 = arith.constant 0 : index
    %c0_6 = arith.constant 0 : index
    %4 = vector.load %arg12[%c0_4, %c0_5, %c0_6] : memref<1x23x4xf32, #tpu.memory_space<vmem>>, vector<1x3x4xf32>
    tpu.vector_store %arg12[%c0_4, %c0_5, %c0_6], %3 {strides = array<i32>} : memref<1x23x4xf32, #tpu.memory_space<vmem>>, vector<1x3x4xf32>,
    %cst_7 = arith.constant 0.000000e+00 : f32
    %5 = vector.broadcast %cst_7 : f32 to vector<1x4x4xf32>
    %c0_8 = arith.constant 0 : index
    %c19 = arith.constant 19 : index
    %c0_9 = arith.constant 0 : index
    %6 = vector.load %arg12[%c0_8, %c19, %c0_9] : memref<1x23x4xf32, #tpu.memory_space<vmem>>, vector<1x4x4xf32>
    tpu.vector_store %arg12[%c0_8, %c19, %c0_9], %5 {strides = array<i32>} : memref<1x23x4xf32, #tpu.memory_space<vmem>>, vector<1x4x4xf32>,
    %c0_10 = arith.constant 0 : index
    %c0_11 = arith.constant 0 : index
    %c0_12 = arith.constant 0 : index
    %7 = vector.load %arg12[%c0_10, %c0_11, %c0_12] : memref<1x23x4xf32, #tpu.memory_space<vmem>>, vector<1x16x4xf32>
    %c0_13 = arith.constant 0 : index
    %c1 = arith.constant 1 : index
    %c0_14 = arith.constant 0 : index
    %8 = vector.load %arg12[%c0_13, %c1, %c0_14] : memref<1x23x4xf32, #tpu.memory_space<vmem>>, vector<1x16x4xf32>
    %c0_15 = arith.constant 0 : index
    %c2 = arith.constant 2 : index
    %c0_16 = arith.constant 0 : index
    %9 = vector.load %arg12[%c0_15, %c2, %c0_16] : memref<1x23x4xf32, #tpu.memory_space<vmem>>, vector<1x16x4xf32>
    %c0_17 = arith.constant 0 : index
    %c3_18 = arith.constant 3 : index
    %c0_19 = arith.constant 0 : index
    %10 = vector.load %arg12[%c0_17, %c3_18, %c0_19] : memref<1x23x4xf32, #tpu.memory_space<vmem>>, vector<1x16x4xf32>
    %c0_20 = arith.constant 0 : index
    %c4 = arith.constant 4 : index
    %c0_21 = arith.constant 0 : index
    %11 = vector.load %arg12[%c0_20, %c4, %c0_21] : memref<1x23x4xf32, #tpu.memory_space<vmem>>, vector<1x16x4xf32>
    %c0_22 = arith.constant 0 : index
    %c5 = arith.constant 5 : index
    %c0_23 = arith.constant 0 : index
    %12 = vector.load %arg12[%c0_22, %c5, %c0_23] : memref<1x23x4xf32, #tpu.memory_space<vmem>>, vector<1x16x4xf32>
    %c0_24 = arith.constant 0 : index
    %c6 = arith.constant 6 : index
    %c0_25 = arith.constant 0 : index
    %13 = vector.load %arg12[%c0_24, %c6, %c0_25] : memref<1x23x4xf32, #tpu.memory_space<vmem>>, vector<1x16x4xf32>
    %c0_26 = arith.constant 0 : index
    %c7 = arith.constant 7 : index
    %c0_27 = arith.constant 0 : index
    %14 = vector.load %arg12[%c0_26, %c7, %c0_27] : memref<1x23x4xf32, #tpu.memory_space<vmem>>, vector<1x16x4xf32>
    %15 = tpu.concatenate %7, %8, %9, %10, %11, %12, %13, %14 in 2 : vector<1x16x4xf32>, vector<1x16x4xf32>, vector<1x16x4xf32>, vector<1x16x4xf32>, vector<1x16x4xf32>, vector<1x16x4xf32>, vector<1x16x4xf32>, vector<1x16x4xf32> -> vector<1x16x32xf32>
    %16 = arith.truncf %15 : vector<1x16x32xf32> to vector<1x16x32xbf16>
    %17 = vector.shape_cast %16 : vector<1x16x32xbf16> to vector<16x32xbf16>
    %c0_28 = arith.constant 0 : index
    %c0_29 = arith.constant 0 : index
    %18 = vector.load %arg2[%c0_28, %c0_29] : memref<32x128xbf16, #tpu.memory_space<vmem>>, vector<32x128xbf16>
    %cst_30 = arith.constant dense<0.000000e+00> : vector<16x128xf32>
    %19 = tpu.matmul %17, %18, %cst_30 {dimension_numbers = #tpu.dot_dimension_numbers<[1], [0], [0], [1], [0, 0, 1, 1], [], []>} : vector<16x32xbf16>, vector<32x128xbf16>, vector<16x128xf32> -> vector<16x128xf32>
    %c0_31 = arith.constant 0 : index
    %c0_32 = arith.constant 0 : index
    %20 = vector.load %arg3[%c0_31, %c0_32] : memref<1x128xf32, #tpu.memory_space<vmem>>, vector<1x128xf32>
    %21 = vector.broadcast %20 : vector<1x128xf32> to vector<16x128xf32>
    %22 = arith.addf %19, %21 : vector<16x128xf32>
    %23 = vector.shape_cast %22 : vector<16x128xf32> to vector<1x16x128xf32>
    %24 = arith.truncf %23 : vector<1x16x128xf32> to vector<1x16x128xbf16>
    %c0_33 = arith.constant 0 : index
    %c0_34 = arith.constant 0 : index
    %c0_35 = arith.constant 0 : index
    %25 = vector.load %arg6[%c0_33, %c0_34, %c0_35] : memref<1x16x128xbf16, #tpu.memory_space<vmem>>, vector<1x16x128xbf16>
    tpu.vector_store %arg6[%c0_33, %c0_34, %c0_35], %24 {strides = array<i32>} : memref<1x16x128xbf16, #tpu.memory_space<vmem>>, vector<1x16x128xbf16>,
    %cst_36 = arith.constant dense<0.000000e+00> : vector<128xf32>
    %26 = vector.multi_reduction <add>, %22, %cst_36 [0] : vector<16x128xf32> to vector<128xf32>
    %27 = vector.shape_cast %26 : vector<128xf32> to vector<1x128xf32>
    %c0_37 = arith.constant 0 : index
    %c0_38 = arith.constant 0 : index
    %c0_39 = arith.constant 0 : index
    %28 = vector.load %arg7[%c0_37, %c0_38, %c0_39] : memref<1x1x128xf32, #tpu.memory_space<vmem>>, vector<1x1x128xf32>
    %29 = vector.shape_cast %28 : vector<1x1x128xf32> to vector<1x128xf32>
    %30 = vector.shape_cast %27 : vector<1x128xf32> to vector<1x1x128xf32>
    tpu.vector_store %arg7[%c0_37, %c0_38, %c0_39], %30 {strides = array<i32>} : memref<1x1x128xf32, #tpu.memory_space<vmem>>, vector<1x1x128xf32>,
    %31 = arith.mulf %22, %22 : vector<16x128xf32>
    %cst_40 = arith.constant dense<0.000000e+00> : vector<128xf32>
    %32 = vector.multi_reduction <add>, %31, %cst_40 [0] : vector<16x128xf32> to vector<128xf32>
    %33 = vector.shape_cast %32 : vector<128xf32> to vector<1x128xf32>
    %c0_41 = arith.constant 0 : index
    %c0_42 = arith.constant 0 : index
    %c0_43 = arith.constant 0 : index
    %34 = vector.load %arg8[%c0_41, %c0_42, %c0_43] : memref<1x1x128xf32, #tpu.memory_space<vmem>>, vector<1x1x128xf32>
    %35 = vector.shape_cast %34 : vector<1x1x128xf32> to vector<1x128xf32>
    %36 = vector.shape_cast %33 : vector<1x128xf32> to vector<1x1x128xf32>
    tpu.vector_store %arg8[%c0_41, %c0_42, %c0_43], %36 {strides = array<i32>} : memref<1x1x128xf32, #tpu.memory_space<vmem>>, vector<1x1x128xf32>,
    %37 = vector.shape_cast %0 : vector<1x16x4xbf16> to vector<16x4xbf16>
    %c0_44 = arith.constant 0 : index
    %c0_45 = arith.constant 0 : index
    %38 = vector.load %arg4[%c0_44, %c0_45] : memref<4x128xbf16, #tpu.memory_space<vmem>>, vector<4x128xbf16>
    %cst_46 = arith.constant dense<0.000000e+00> : vector<16x128xf32>
    %39 = tpu.matmul %37, %38, %cst_46 {dimension_numbers = #tpu.dot_dimension_numbers<[1], [0], [0], [1], [0, 0, 1, 1], [], []>} : vector<16x4xbf16>, vector<4x128xbf16>, vector<16x128xf32> -> vector<16x128xf32>
    %c0_47 = arith.constant 0 : index
    %c0_48 = arith.constant 0 : index
    %40 = vector.load %arg5[%c0_47, %c0_48] : memref<1x128xf32, #tpu.memory_space<vmem>>, vector<1x128xf32>
    %41 = vector.broadcast %40 : vector<1x128xf32> to vector<16x128xf32>
    %42 = arith.addf %39, %41 : vector<16x128xf32>
    %43 = vector.shape_cast %42 : vector<16x128xf32> to vector<1x16x128xf32>
    %44 = arith.truncf %43 : vector<1x16x128xf32> to vector<1x16x128xbf16>
    %c0_49 = arith.constant 0 : index
    %c0_50 = arith.constant 0 : index
    %c0_51 = arith.constant 0 : index
    %45 = vector.load %arg9[%c0_49, %c0_50, %c0_51] : memref<1x16x128xbf16, #tpu.memory_space<vmem>>, vector<1x16x128xbf16>
    tpu.vector_store %arg9[%c0_49, %c0_50, %c0_51], %44 {strides = array<i32>} : memref<1x16x128xbf16, #tpu.memory_space<vmem>>, vector<1x16x128xbf16>,
    %cst_52 = arith.constant dense<0.000000e+00> : vector<128xf32>
    %46 = vector.multi_reduction <add>, %42, %cst_52 [0] : vector<16x128xf32> to vector<128xf32>
    %47 = vector.shape_cast %46 : vector<128xf32> to vector<1x128xf32>
    %c0_53 = arith.constant 0 : index
    %c0_54 = arith.constant 0 : index
    %c0_55 = arith.constant 0 : index
    %48 = vector.load %arg10[%c0_53, %c0_54, %c0_55] : memref<1x1x128xf32, #tpu.memory_space<vmem>>, vector<1x1x128xf32>
    %49 = vector.shape_cast %48 : vector<1x1x128xf32> to vector<1x128xf32>
    %50 = vector.shape_cast %47 : vector<1x128xf32> to vector<1x1x128xf32>
    tpu.vector_store %arg10[%c0_53, %c0_54, %c0_55], %50 {strides = array<i32>} : memref<1x1x128xf32, #tpu.memory_space<vmem>>, vector<1x1x128xf32>,
    %51 = arith.mulf %42, %42 : vector<16x128xf32>
    %cst_56 = arith.constant dense<0.000000e+00> : vector<128xf32>
    %52 = vector.multi_reduction <add>, %51, %cst_56 [0] : vector<16x128xf32> to vector<128xf32>
    %53 = vector.shape_cast %52 : vector<128xf32> to vector<1x128xf32>
    %c0_57 = arith.constant 0 : index
    %c0_58 = arith.constant 0 : index
    %c0_59 = arith.constant 0 : index
    %54 = vector.load %arg11[%c0_57, %c0_58, %c0_59] : memref<1x1x128xf32, #tpu.memory_space<vmem>>, vector<1x1x128xf32>
    %55 = vector.shape_cast %54 : vector<1x1x128xf32> to vector<1x128xf32>
    %56 = vector.shape_cast %53 : vector<1x128xf32> to vector<1x1x128xf32>
    tpu.vector_store %arg11[%c0_57, %c0_58, %c0_59], %56 {strides = array<i32>} : memref<1x1x128xf32, #tpu.memory_space<vmem>>, vector<1x1x128xf32>,
    return
  }
  func.func @transform_0(%arg0: i32) -> (i32, i32, i32) {
    %c0_i32 = arith.constant 0 : i32
    %c0_i32_0 = arith.constant 0 : i32
    %c0_i32_1 = arith.constant 0 : i32
    return %arg0, %c0_i32, %c0_i32_0 : i32, i32, i32
  }
  func.func @transform_1(%arg0: i32) -> (i32, i32) {
    %c0_i32 = arith.constant 0 : i32
    %c0_i32_0 = arith.constant 0 : i32
    %c0_i32_1 = arith.constant 0 : i32
    return %c0_i32, %c0_i32_0 : i32, i32
  }
  func.func @transform_2(%arg0: i32) -> (i32, i32) {
    %c0_i32 = arith.constant 0 : i32
    %c0_i32_0 = arith.constant 0 : i32
    %c0_i32_1 = arith.constant 0 : i32
    return %c0_i32, %c0_i32_0 : i32, i32
  }
  func.func @transform_3(%arg0: i32) -> (i32, i32) {
    %c0_i32 = arith.constant 0 : i32
    %c0_i32_0 = arith.constant 0 : i32
    %c0_i32_1 = arith.constant 0 : i32
    return %c0_i32, %c0_i32_0 : i32, i32
  }
  func.func @transform_4(%arg0: i32) -> (i32, i32) {
    %c0_i32 = arith.constant 0 : i32
    %c0_i32_0 = arith.constant 0 : i32
    %c0_i32_1 = arith.constant 0 : i32
    return %c0_i32, %c0_i32_0 : i32, i32
  }
  func.func @transform_5(%arg0: i32) -> (i32, i32, i32) {
    %c0_i32 = arith.constant 0 : i32
    %c0_i32_0 = arith.constant 0 : i32
    %c0_i32_1 = arith.constant 0 : i32
    return %arg0, %c0_i32, %c0_i32_0 : i32, i32, i32
  }
  func.func @transform_6(%arg0: i32) -> (i32, i32, i32) {
    %c0_i32 = arith.constant 0 : i32
    %c0_i32_0 = arith.constant 0 : i32
    %c0_i32_1 = arith.constant 0 : i32
    return %arg0, %c0_i32, %c0_i32_0 : i32, i32, i32
  }
  func.func @transform_7(%arg0: i32) -> (i32, i32, i32) {
    %c0_i32 = arith.constant 0 : i32
    %c0_i32_0 = arith.constant 0 : i32
    %c0_i32_1 = arith.constant 0 : i32
    return %arg0, %c0_i32, %c0_i32_0 : i32, i32, i32
  }
  func.func @transform_8(%arg0: i32) -> (i32, i32, i32) {
    %c0_i32 = arith.constant 0 : i32
    %c0_i32_0 = arith.constant 0 : i32
    %c0_i32_1 = arith.constant 0 : i32
    return %arg0, %c0_i32, %c0_i32_0 : i32, i32, i32
  }
  func.func @transform_9(%arg0: i32) -> (i32, i32, i32) {
    %c0_i32 = arith.constant 0 : i32
    %c0_i32_0 = arith.constant 0 : i32
    %c0_i32_1 = arith.constant 0 : i32
    return %arg0, %c0_i32, %c0_i32_0 : i32, i32, i32
  }
  func.func @transform_10(%arg0: i32) -> (i32, i32, i32) {
    %c0_i32 = arith.constant 0 : i32
    %c0_i32_0 = arith.constant 0 : i32
    %c0_i32_1 = arith.constant 0 : i32
    return %arg0, %c0_i32, %c0_i32_0 : i32, i32, i32
  }
}

module attributes {stable_mosaic.version = 11 : i64} {
  func.func @kernel(%arg0: i32, %arg1: memref<1x16x256xbf16, #tpu.memory_space<vmem>>, %arg2: memref<1x256xf32, #tpu.memory_space<vmem>>, %arg3: memref<1x256xf32, #tpu.memory_space<vmem>>, %arg4: memref<5x256x256xbf16, #tpu.memory_space<vmem>>, %arg5: memref<1x256xf32, #tpu.memory_space<vmem>>, %arg6: memref<1x16x256xbf16, #tpu.memory_space<vmem>>, %arg7: memref<1x1x256xf32, #tpu.memory_space<vmem>>, %arg8: memref<1x1x256xf32, #tpu.memory_space<vmem>>, %arg9: memref<1x20x256xf32, #tpu.memory_space<vmem>>) attributes {dimension_semantics = [#tpu.dimension_semantics<parallel>], iteration_bounds = array<i64: 2>, scalar_prefetch = 0 : i64, scratch_operands = 1 : i64, tpu.core_type = #tpu.core_type<tc>, window_params = [{transform_indices = @transform_0, window_bounds = array<i64: 1, 16, 256>}, {pipeline_mode = #tpu.pipeline_mode<synchronous>, transform_indices = @transform_1, window_bounds = array<i64: 1, 256>}, {pipeline_mode = #tpu.pipeline_mode<synchronous>, transform_indices = @transform_2, window_bounds = array<i64: 1, 256>}, {pipeline_mode = #tpu.pipeline_mode<synchronous>, transform_indices = @transform_3, window_bounds = array<i64: 5, 256, 256>}, {pipeline_mode = #tpu.pipeline_mode<synchronous>, transform_indices = @transform_4, window_bounds = array<i64: 1, 256>}, {transform_indices = @transform_5, window_bounds = array<i64: 1, 16, 256>}, {transform_indices = @transform_6, window_bounds = array<i64: 1, 1, 256>}, {transform_indices = @transform_7, window_bounds = array<i64: 1, 1, 256>}]} {
    %c0 = arith.constant 0 : index
    %c0_0 = arith.constant 0 : index
    %c0_1 = arith.constant 0 : index
    %0 = vector.load %arg1[%c0, %c0_0, %c0_1] : memref<1x16x256xbf16, #tpu.memory_space<vmem>>, vector<1x16x256xbf16>
    %1 = arith.extf %0 : vector<1x16x256xbf16> to vector<1x16x256xf32>
    %c0_2 = arith.constant 0 : index
    %c0_3 = arith.constant 0 : index
    %2 = vector.load %arg2[%c0_2, %c0_3] : memref<1x256xf32, #tpu.memory_space<vmem>>, vector<1x256xf32>
    %3 = vector.shape_cast %2 : vector<1x256xf32> to vector<1x1x256xf32>
    %4 = vector.broadcast %3 : vector<1x1x256xf32> to vector<1x16x256xf32>
    %5 = arith.mulf %1, %4 : vector<1x16x256xf32>
    %c0_4 = arith.constant 0 : index
    %c0_5 = arith.constant 0 : index
    %6 = vector.load %arg3[%c0_4, %c0_5] : memref<1x256xf32, #tpu.memory_space<vmem>>, vector<1x256xf32>
    %7 = vector.shape_cast %6 : vector<1x256xf32> to vector<1x1x256xf32>
    %8 = vector.broadcast %7 : vector<1x1x256xf32> to vector<1x16x256xf32>
    %9 = arith.addf %5, %8 : vector<1x16x256xf32>
    %cst = arith.constant 0.000000e+00 : f32
    %10 = vector.broadcast %cst : f32 to vector<1x16x256xf32>
    %11 = arith.maximumf %9, %10 : vector<1x16x256xf32>
    %c0_6 = arith.constant 0 : index
    %c2 = arith.constant 2 : index
    %c0_7 = arith.constant 0 : index
    %12 = vector.load %arg9[%c0_6, %c2, %c0_7] : memref<1x20x256xf32, #tpu.memory_space<vmem>>, vector<1x16x256xf32>
    tpu.vector_store %arg9[%c0_6, %c2, %c0_7], %11 {strides = array<i32>} : memref<1x20x256xf32, #tpu.memory_space<vmem>>, vector<1x16x256xf32>,
    %cst_8 = arith.constant 0.000000e+00 : f32
    %13 = vector.broadcast %cst_8 : f32 to vector<1x2x256xf32>
    %c0_9 = arith.constant 0 : index
    %c0_10 = arith.constant 0 : index
    %c0_11 = arith.constant 0 : index
    %14 = vector.load %arg9[%c0_9, %c0_10, %c0_11] : memref<1x20x256xf32, #tpu.memory_space<vmem>>, vector<1x2x256xf32>
    tpu.vector_store %arg9[%c0_9, %c0_10, %c0_11], %13 {strides = array<i32>} : memref<1x20x256xf32, #tpu.memory_space<vmem>>, vector<1x2x256xf32>,
    %cst_12 = arith.constant 0.000000e+00 : f32
    %15 = vector.broadcast %cst_12 : f32 to vector<1x2x256xf32>
    %c0_13 = arith.constant 0 : index
    %c18 = arith.constant 18 : index
    %c0_14 = arith.constant 0 : index
    %16 = vector.load %arg9[%c0_13, %c18, %c0_14] : memref<1x20x256xf32, #tpu.memory_space<vmem>>, vector<1x2x256xf32>
    tpu.vector_store %arg9[%c0_13, %c18, %c0_14], %15 {strides = array<i32>} : memref<1x20x256xf32, #tpu.memory_space<vmem>>, vector<1x2x256xf32>,
    %c0_15 = arith.constant 0 : index
    %c0_16 = arith.constant 0 : index
    %c0_17 = arith.constant 0 : index
    %17 = vector.load %arg9[%c0_15, %c0_16, %c0_17] : memref<1x20x256xf32, #tpu.memory_space<vmem>>, vector<1x16x256xf32>
    %18 = vector.shape_cast %17 : vector<1x16x256xf32> to vector<16x256xf32>
    %19 = arith.truncf %18 : vector<16x256xf32> to vector<16x256xbf16>
    %c0_18 = arith.constant 0 : index
    %c0_19 = arith.constant 0 : index
    %c0_20 = arith.constant 0 : index
    %20 = vector.load %arg4[%c0_18, %c0_19, %c0_20] : memref<5x256x256xbf16, #tpu.memory_space<vmem>>, vector<1x256x256xbf16>
    %21 = vector.shape_cast %20 : vector<1x256x256xbf16> to vector<256x256xbf16>
    %cst_21 = arith.constant dense<0.000000e+00> : vector<16x256xf32>
    %22 = tpu.matmul %19, %21, %cst_21 {dimension_numbers = #tpu.dot_dimension_numbers<[1], [0], [0], [1], [0, 0, 1, 1], [], []>} : vector<16x256xbf16>, vector<256x256xbf16>, vector<16x256xf32> -> vector<16x256xf32>
    %c0_22 = arith.constant 0 : index
    %c1 = arith.constant 1 : index
    %c0_23 = arith.constant 0 : index
    %23 = vector.load %arg9[%c0_22, %c1, %c0_23] : memref<1x20x256xf32, #tpu.memory_space<vmem>>, vector<1x16x256xf32>
    %24 = vector.shape_cast %23 : vector<1x16x256xf32> to vector<16x256xf32>
    %25 = arith.truncf %24 : vector<16x256xf32> to vector<16x256xbf16>
    %c1_24 = arith.constant 1 : index
    %c0_25 = arith.constant 0 : index
    %c0_26 = arith.constant 0 : index
    %26 = vector.load %arg4[%c1_24, %c0_25, %c0_26] : memref<5x256x256xbf16, #tpu.memory_space<vmem>>, vector<1x256x256xbf16>
    %27 = vector.shape_cast %26 : vector<1x256x256xbf16> to vector<256x256xbf16>
    %cst_27 = arith.constant dense<0.000000e+00> : vector<16x256xf32>
    %28 = tpu.matmul %25, %27, %cst_27 {dimension_numbers = #tpu.dot_dimension_numbers<[1], [0], [0], [1], [0, 0, 1, 1], [], []>} : vector<16x256xbf16>, vector<256x256xbf16>, vector<16x256xf32> -> vector<16x256xf32>
    %29 = arith.addf %22, %28 : vector<16x256xf32>
    %c0_28 = arith.constant 0 : index
    %c2_29 = arith.constant 2 : index
    %c0_30 = arith.constant 0 : index
    %30 = vector.load %arg9[%c0_28, %c2_29, %c0_30] : memref<1x20x256xf32, #tpu.memory_space<vmem>>, vector<1x16x256xf32>
    %31 = vector.shape_cast %30 : vector<1x16x256xf32> to vector<16x256xf32>
    %32 = arith.truncf %31 : vector<16x256xf32> to vector<16x256xbf16>
    %c2_31 = arith.constant 2 : index
    %c0_32 = arith.constant 0 : index
    %c0_33 = arith.constant 0 : index
    %33 = vector.load %arg4[%c2_31, %c0_32, %c0_33] : memref<5x256x256xbf16, #tpu.memory_space<vmem>>, vector<1x256x256xbf16>
    %34 = vector.shape_cast %33 : vector<1x256x256xbf16> to vector<256x256xbf16>
    %cst_34 = arith.constant dense<0.000000e+00> : vector<16x256xf32>
    %35 = tpu.matmul %32, %34, %cst_34 {dimension_numbers = #tpu.dot_dimension_numbers<[1], [0], [0], [1], [0, 0, 1, 1], [], []>} : vector<16x256xbf16>, vector<256x256xbf16>, vector<16x256xf32> -> vector<16x256xf32>
    %36 = arith.addf %29, %35 : vector<16x256xf32>
    %c0_35 = arith.constant 0 : index
    %c3 = arith.constant 3 : index
    %c0_36 = arith.constant 0 : index
    %37 = vector.load %arg9[%c0_35, %c3, %c0_36] : memref<1x20x256xf32, #tpu.memory_space<vmem>>, vector<1x16x256xf32>
    %38 = vector.shape_cast %37 : vector<1x16x256xf32> to vector<16x256xf32>
    %39 = arith.truncf %38 : vector<16x256xf32> to vector<16x256xbf16>
    %c3_37 = arith.constant 3 : index
    %c0_38 = arith.constant 0 : index
    %c0_39 = arith.constant 0 : index
    %40 = vector.load %arg4[%c3_37, %c0_38, %c0_39] : memref<5x256x256xbf16, #tpu.memory_space<vmem>>, vector<1x256x256xbf16>
    %41 = vector.shape_cast %40 : vector<1x256x256xbf16> to vector<256x256xbf16>
    %cst_40 = arith.constant dense<0.000000e+00> : vector<16x256xf32>
    %42 = tpu.matmul %39, %41, %cst_40 {dimension_numbers = #tpu.dot_dimension_numbers<[1], [0], [0], [1], [0, 0, 1, 1], [], []>} : vector<16x256xbf16>, vector<256x256xbf16>, vector<16x256xf32> -> vector<16x256xf32>
    %43 = arith.addf %36, %42 : vector<16x256xf32>
    %c0_41 = arith.constant 0 : index
    %c4 = arith.constant 4 : index
    %c0_42 = arith.constant 0 : index
    %44 = vector.load %arg9[%c0_41, %c4, %c0_42] : memref<1x20x256xf32, #tpu.memory_space<vmem>>, vector<1x16x256xf32>
    %45 = vector.shape_cast %44 : vector<1x16x256xf32> to vector<16x256xf32>
    %46 = arith.truncf %45 : vector<16x256xf32> to vector<16x256xbf16>
    %c4_43 = arith.constant 4 : index
    %c0_44 = arith.constant 0 : index
    %c0_45 = arith.constant 0 : index
    %47 = vector.load %arg4[%c4_43, %c0_44, %c0_45] : memref<5x256x256xbf16, #tpu.memory_space<vmem>>, vector<1x256x256xbf16>
    %48 = vector.shape_cast %47 : vector<1x256x256xbf16> to vector<256x256xbf16>
    %cst_46 = arith.constant dense<0.000000e+00> : vector<16x256xf32>
    %49 = tpu.matmul %46, %48, %cst_46 {dimension_numbers = #tpu.dot_dimension_numbers<[1], [0], [0], [1], [0, 0, 1, 1], [], []>} : vector<16x256xbf16>, vector<256x256xbf16>, vector<16x256xf32> -> vector<16x256xf32>
    %50 = arith.addf %43, %49 : vector<16x256xf32>
    %c0_47 = arith.constant 0 : index
    %c0_48 = arith.constant 0 : index
    %51 = vector.load %arg5[%c0_47, %c0_48] : memref<1x256xf32, #tpu.memory_space<vmem>>, vector<1x256xf32>
    %52 = vector.broadcast %51 : vector<1x256xf32> to vector<16x256xf32>
    %53 = arith.addf %50, %52 : vector<16x256xf32>
    %54 = arith.truncf %53 : vector<16x256xf32> to vector<16x256xbf16>
    %c0_49 = arith.constant 0 : index
    %c0_50 = arith.constant 0 : index
    %c0_51 = arith.constant 0 : index
    %55 = vector.load %arg6[%c0_49, %c0_50, %c0_51] : memref<1x16x256xbf16, #tpu.memory_space<vmem>>, vector<1x16x256xbf16>
    %56 = vector.shape_cast %55 : vector<1x16x256xbf16> to vector<16x256xbf16>
    %57 = vector.shape_cast %54 : vector<16x256xbf16> to vector<1x16x256xbf16>
    tpu.vector_store %arg6[%c0_49, %c0_50, %c0_51], %57 {strides = array<i32>} : memref<1x16x256xbf16, #tpu.memory_space<vmem>>, vector<1x16x256xbf16>,
    %cst_52 = arith.constant dense<0.000000e+00> : vector<256xf32>
    %58 = vector.multi_reduction <add>, %53, %cst_52 [0] : vector<16x256xf32> to vector<256xf32>
    %59 = vector.shape_cast %58 : vector<256xf32> to vector<1x256xf32>
    %60 = arith.mulf %53, %53 : vector<16x256xf32>
    %cst_53 = arith.constant dense<0.000000e+00> : vector<256xf32>
    %61 = vector.multi_reduction <add>, %60, %cst_53 [0] : vector<16x256xf32> to vector<256xf32>
    %62 = vector.shape_cast %61 : vector<256xf32> to vector<1x256xf32>
    %c0_54 = arith.constant 0 : index
    %c0_55 = arith.constant 0 : index
    %c0_56 = arith.constant 0 : index
    %63 = vector.load %arg7[%c0_54, %c0_55, %c0_56] : memref<1x1x256xf32, #tpu.memory_space<vmem>>, vector<1x1x256xf32>
    %64 = vector.shape_cast %63 : vector<1x1x256xf32> to vector<1x256xf32>
    %65 = vector.shape_cast %59 : vector<1x256xf32> to vector<1x1x256xf32>
    tpu.vector_store %arg7[%c0_54, %c0_55, %c0_56], %65 {strides = array<i32>} : memref<1x1x256xf32, #tpu.memory_space<vmem>>, vector<1x1x256xf32>,
    %c0_57 = arith.constant 0 : index
    %c0_58 = arith.constant 0 : index
    %c0_59 = arith.constant 0 : index
    %66 = vector.load %arg8[%c0_57, %c0_58, %c0_59] : memref<1x1x256xf32, #tpu.memory_space<vmem>>, vector<1x1x256xf32>
    %67 = vector.shape_cast %66 : vector<1x1x256xf32> to vector<1x256xf32>
    %68 = vector.shape_cast %62 : vector<1x256xf32> to vector<1x1x256xf32>
    tpu.vector_store %arg8[%c0_57, %c0_58, %c0_59], %68 {strides = array<i32>} : memref<1x1x256xf32, #tpu.memory_space<vmem>>, vector<1x1x256xf32>,
    return
  }
  func.func @transform_0(%arg0: i32) -> (i32, i32, i32) {
    %c0_i32 = arith.constant 0 : i32
    %c0_i32_0 = arith.constant 0 : i32
    %c0_i32_1 = arith.constant 0 : i32
    return %arg0, %c0_i32, %c0_i32_0 : i32, i32, i32
  }
  func.func @transform_1(%arg0: i32) -> (i32, i32) {
    %c0_i32 = arith.constant 0 : i32
    %c0_i32_0 = arith.constant 0 : i32
    %c0_i32_1 = arith.constant 0 : i32
    return %c0_i32, %c0_i32_0 : i32, i32
  }
  func.func @transform_2(%arg0: i32) -> (i32, i32) {
    %c0_i32 = arith.constant 0 : i32
    %c0_i32_0 = arith.constant 0 : i32
    %c0_i32_1 = arith.constant 0 : i32
    return %c0_i32, %c0_i32_0 : i32, i32
  }
  func.func @transform_3(%arg0: i32) -> (i32, i32, i32) {
    %c0_i32 = arith.constant 0 : i32
    %c0_i32_0 = arith.constant 0 : i32
    %c0_i32_1 = arith.constant 0 : i32
    %c0_i32_2 = arith.constant 0 : i32
    return %c0_i32, %c0_i32_0, %c0_i32_1 : i32, i32, i32
  }
  func.func @transform_4(%arg0: i32) -> (i32, i32) {
    %c0_i32 = arith.constant 0 : i32
    %c0_i32_0 = arith.constant 0 : i32
    %c0_i32_1 = arith.constant 0 : i32
    return %c0_i32, %c0_i32_0 : i32, i32
  }
  func.func @transform_5(%arg0: i32) -> (i32, i32, i32) {
    %c0_i32 = arith.constant 0 : i32
    %c0_i32_0 = arith.constant 0 : i32
    %c0_i32_1 = arith.constant 0 : i32
    return %arg0, %c0_i32, %c0_i32_0 : i32, i32, i32
  }
  func.func @transform_6(%arg0: i32) -> (i32, i32, i32) {
    %c0_i32 = arith.constant 0 : i32
    %c0_i32_0 = arith.constant 0 : i32
    %c0_i32_1 = arith.constant 0 : i32
    return %arg0, %c0_i32, %c0_i32_0 : i32, i32, i32
  }
  func.func @transform_7(%arg0: i32) -> (i32, i32, i32) {
    %c0_i32 = arith.constant 0 : i32
    %c0_i32_0 = arith.constant 0 : i32
    %c0_i32_1 = arith.constant 0 : i32
    return %arg0, %c0_i32, %c0_i32_0 : i32, i32, i32
  }
}

module attributes {stable_mosaic.version = 11 : i64} {
  func.func @kernel(%arg0: i32, %arg1: memref<1x16x128xbf16, #tpu.memory_space<vmem>>, %arg2: memref<1x128xf32, #tpu.memory_space<vmem>>, %arg3: memref<1x128xf32, #tpu.memory_space<vmem>>, %arg4: memref<8x128x128xbf16, #tpu.memory_space<vmem>>, %arg5: memref<1x128xf32, #tpu.memory_space<vmem>>, %arg6: memref<1x16x128xbf16, #tpu.memory_space<vmem>>, %arg7: memref<1x1x128xf32, #tpu.memory_space<vmem>>, %arg8: memref<1x1x128xf32, #tpu.memory_space<vmem>>, %arg9: memref<1x23x128xf32, #tpu.memory_space<vmem>>) attributes {dimension_semantics = [#tpu.dimension_semantics<parallel>], iteration_bounds = array<i64: 2>, scalar_prefetch = 0 : i64, scratch_operands = 1 : i64, tpu.core_type = #tpu.core_type<tc>, window_params = [{transform_indices = @transform_0, window_bounds = array<i64: 1, 16, 128>}, {pipeline_mode = #tpu.pipeline_mode<synchronous>, transform_indices = @transform_1, window_bounds = array<i64: 1, 128>}, {pipeline_mode = #tpu.pipeline_mode<synchronous>, transform_indices = @transform_2, window_bounds = array<i64: 1, 128>}, {pipeline_mode = #tpu.pipeline_mode<synchronous>, transform_indices = @transform_3, window_bounds = array<i64: 8, 128, 128>}, {pipeline_mode = #tpu.pipeline_mode<synchronous>, transform_indices = @transform_4, window_bounds = array<i64: 1, 128>}, {transform_indices = @transform_5, window_bounds = array<i64: 1, 16, 128>}, {transform_indices = @transform_6, window_bounds = array<i64: 1, 1, 128>}, {transform_indices = @transform_7, window_bounds = array<i64: 1, 1, 128>}]} {
    %c0 = arith.constant 0 : index
    %c0_0 = arith.constant 0 : index
    %c0_1 = arith.constant 0 : index
    %0 = vector.load %arg1[%c0, %c0_0, %c0_1] : memref<1x16x128xbf16, #tpu.memory_space<vmem>>, vector<1x16x128xbf16>
    %1 = arith.extf %0 : vector<1x16x128xbf16> to vector<1x16x128xf32>
    %c0_2 = arith.constant 0 : index
    %c0_3 = arith.constant 0 : index
    %2 = vector.load %arg2[%c0_2, %c0_3] : memref<1x128xf32, #tpu.memory_space<vmem>>, vector<1x128xf32>
    %3 = vector.shape_cast %2 : vector<1x128xf32> to vector<1x1x128xf32>
    %4 = vector.broadcast %3 : vector<1x1x128xf32> to vector<1x16x128xf32>
    %5 = arith.mulf %1, %4 : vector<1x16x128xf32>
    %c0_4 = arith.constant 0 : index
    %c0_5 = arith.constant 0 : index
    %6 = vector.load %arg3[%c0_4, %c0_5] : memref<1x128xf32, #tpu.memory_space<vmem>>, vector<1x128xf32>
    %7 = vector.shape_cast %6 : vector<1x128xf32> to vector<1x1x128xf32>
    %8 = vector.broadcast %7 : vector<1x1x128xf32> to vector<1x16x128xf32>
    %9 = arith.addf %5, %8 : vector<1x16x128xf32>
    %cst = arith.constant 0.000000e+00 : f32
    %10 = vector.broadcast %cst : f32 to vector<1x16x128xf32>
    %11 = arith.maximumf %9, %10 : vector<1x16x128xf32>
    %c0_6 = arith.constant 0 : index
    %c3 = arith.constant 3 : index
    %c0_7 = arith.constant 0 : index
    %12 = vector.load %arg9[%c0_6, %c3, %c0_7] : memref<1x23x128xf32, #tpu.memory_space<vmem>>, vector<1x16x128xf32>
    tpu.vector_store %arg9[%c0_6, %c3, %c0_7], %11 {strides = array<i32>} : memref<1x23x128xf32, #tpu.memory_space<vmem>>, vector<1x16x128xf32>,
    %cst_8 = arith.constant 0.000000e+00 : f32
    %13 = vector.broadcast %cst_8 : f32 to vector<1x3x128xf32>
    %c0_9 = arith.constant 0 : index
    %c0_10 = arith.constant 0 : index
    %c0_11 = arith.constant 0 : index
    %14 = vector.load %arg9[%c0_9, %c0_10, %c0_11] : memref<1x23x128xf32, #tpu.memory_space<vmem>>, vector<1x3x128xf32>
    tpu.vector_store %arg9[%c0_9, %c0_10, %c0_11], %13 {strides = array<i32>} : memref<1x23x128xf32, #tpu.memory_space<vmem>>, vector<1x3x128xf32>,
    %cst_12 = arith.constant 0.000000e+00 : f32
    %15 = vector.broadcast %cst_12 : f32 to vector<1x4x128xf32>
    %c0_13 = arith.constant 0 : index
    %c19 = arith.constant 19 : index
    %c0_14 = arith.constant 0 : index
    %16 = vector.load %arg9[%c0_13, %c19, %c0_14] : memref<1x23x128xf32, #tpu.memory_space<vmem>>, vector<1x4x128xf32>
    tpu.vector_store %arg9[%c0_13, %c19, %c0_14], %15 {strides = array<i32>} : memref<1x23x128xf32, #tpu.memory_space<vmem>>, vector<1x4x128xf32>,
    %c0_15 = arith.constant 0 : index
    %c0_16 = arith.constant 0 : index
    %c0_17 = arith.constant 0 : index
    %17 = vector.load %arg9[%c0_15, %c0_16, %c0_17] : memref<1x23x128xf32, #tpu.memory_space<vmem>>, vector<1x16x128xf32>
    %18 = vector.shape_cast %17 : vector<1x16x128xf32> to vector<16x128xf32>
    %19 = arith.truncf %18 : vector<16x128xf32> to vector<16x128xbf16>
    %c0_18 = arith.constant 0 : index
    %c0_19 = arith.constant 0 : index
    %c0_20 = arith.constant 0 : index
    %20 = vector.load %arg4[%c0_18, %c0_19, %c0_20] : memref<8x128x128xbf16, #tpu.memory_space<vmem>>, vector<1x128x128xbf16>
    %21 = vector.shape_cast %20 : vector<1x128x128xbf16> to vector<128x128xbf16>
    %cst_21 = arith.constant dense<0.000000e+00> : vector<16x128xf32>
    %22 = tpu.matmul %19, %21, %cst_21 {dimension_numbers = #tpu.dot_dimension_numbers<[1], [0], [0], [1], [0, 0, 1, 1], [], []>} : vector<16x128xbf16>, vector<128x128xbf16>, vector<16x128xf32> -> vector<16x128xf32>
    %c0_22 = arith.constant 0 : index
    %c1 = arith.constant 1 : index
    %c0_23 = arith.constant 0 : index
    %23 = vector.load %arg9[%c0_22, %c1, %c0_23] : memref<1x23x128xf32, #tpu.memory_space<vmem>>, vector<1x16x128xf32>
    %24 = vector.shape_cast %23 : vector<1x16x128xf32> to vector<16x128xf32>
    %25 = arith.truncf %24 : vector<16x128xf32> to vector<16x128xbf16>
    %c1_24 = arith.constant 1 : index
    %c0_25 = arith.constant 0 : index
    %c0_26 = arith.constant 0 : index
    %26 = vector.load %arg4[%c1_24, %c0_25, %c0_26] : memref<8x128x128xbf16, #tpu.memory_space<vmem>>, vector<1x128x128xbf16>
    %27 = vector.shape_cast %26 : vector<1x128x128xbf16> to vector<128x128xbf16>
    %cst_27 = arith.constant dense<0.000000e+00> : vector<16x128xf32>
    %28 = tpu.matmul %25, %27, %cst_27 {dimension_numbers = #tpu.dot_dimension_numbers<[1], [0], [0], [1], [0, 0, 1, 1], [], []>} : vector<16x128xbf16>, vector<128x128xbf16>, vector<16x128xf32> -> vector<16x128xf32>
    %29 = arith.addf %22, %28 : vector<16x128xf32>
    %c0_28 = arith.constant 0 : index
    %c2 = arith.constant 2 : index
    %c0_29 = arith.constant 0 : index
    %30 = vector.load %arg9[%c0_28, %c2, %c0_29] : memref<1x23x128xf32, #tpu.memory_space<vmem>>, vector<1x16x128xf32>
    %31 = vector.shape_cast %30 : vector<1x16x128xf32> to vector<16x128xf32>
    %32 = arith.truncf %31 : vector<16x128xf32> to vector<16x128xbf16>
    %c2_30 = arith.constant 2 : index
    %c0_31 = arith.constant 0 : index
    %c0_32 = arith.constant 0 : index
    %33 = vector.load %arg4[%c2_30, %c0_31, %c0_32] : memref<8x128x128xbf16, #tpu.memory_space<vmem>>, vector<1x128x128xbf16>
    %34 = vector.shape_cast %33 : vector<1x128x128xbf16> to vector<128x128xbf16>
    %cst_33 = arith.constant dense<0.000000e+00> : vector<16x128xf32>
    %35 = tpu.matmul %32, %34, %cst_33 {dimension_numbers = #tpu.dot_dimension_numbers<[1], [0], [0], [1], [0, 0, 1, 1], [], []>} : vector<16x128xbf16>, vector<128x128xbf16>, vector<16x128xf32> -> vector<16x128xf32>
    %36 = arith.addf %29, %35 : vector<16x128xf32>
    %c0_34 = arith.constant 0 : index
    %c3_35 = arith.constant 3 : index
    %c0_36 = arith.constant 0 : index
    %37 = vector.load %arg9[%c0_34, %c3_35, %c0_36] : memref<1x23x128xf32, #tpu.memory_space<vmem>>, vector<1x16x128xf32>
    %38 = vector.shape_cast %37 : vector<1x16x128xf32> to vector<16x128xf32>
    %39 = arith.truncf %38 : vector<16x128xf32> to vector<16x128xbf16>
    %c3_37 = arith.constant 3 : index
    %c0_38 = arith.constant 0 : index
    %c0_39 = arith.constant 0 : index
    %40 = vector.load %arg4[%c3_37, %c0_38, %c0_39] : memref<8x128x128xbf16, #tpu.memory_space<vmem>>, vector<1x128x128xbf16>
    %41 = vector.shape_cast %40 : vector<1x128x128xbf16> to vector<128x128xbf16>
    %cst_40 = arith.constant dense<0.000000e+00> : vector<16x128xf32>
    %42 = tpu.matmul %39, %41, %cst_40 {dimension_numbers = #tpu.dot_dimension_numbers<[1], [0], [0], [1], [0, 0, 1, 1], [], []>} : vector<16x128xbf16>, vector<128x128xbf16>, vector<16x128xf32> -> vector<16x128xf32>
    %43 = arith.addf %36, %42 : vector<16x128xf32>
    %c0_41 = arith.constant 0 : index
    %c4 = arith.constant 4 : index
    %c0_42 = arith.constant 0 : index
    %44 = vector.load %arg9[%c0_41, %c4, %c0_42] : memref<1x23x128xf32, #tpu.memory_space<vmem>>, vector<1x16x128xf32>
    %45 = vector.shape_cast %44 : vector<1x16x128xf32> to vector<16x128xf32>
    %46 = arith.truncf %45 : vector<16x128xf32> to vector<16x128xbf16>
    %c4_43 = arith.constant 4 : index
    %c0_44 = arith.constant 0 : index
    %c0_45 = arith.constant 0 : index
    %47 = vector.load %arg4[%c4_43, %c0_44, %c0_45] : memref<8x128x128xbf16, #tpu.memory_space<vmem>>, vector<1x128x128xbf16>
    %48 = vector.shape_cast %47 : vector<1x128x128xbf16> to vector<128x128xbf16>
    %cst_46 = arith.constant dense<0.000000e+00> : vector<16x128xf32>
    %49 = tpu.matmul %46, %48, %cst_46 {dimension_numbers = #tpu.dot_dimension_numbers<[1], [0], [0], [1], [0, 0, 1, 1], [], []>} : vector<16x128xbf16>, vector<128x128xbf16>, vector<16x128xf32> -> vector<16x128xf32>
    %50 = arith.addf %43, %49 : vector<16x128xf32>
    %c0_47 = arith.constant 0 : index
    %c5 = arith.constant 5 : index
    %c0_48 = arith.constant 0 : index
    %51 = vector.load %arg9[%c0_47, %c5, %c0_48] : memref<1x23x128xf32, #tpu.memory_space<vmem>>, vector<1x16x128xf32>
    %52 = vector.shape_cast %51 : vector<1x16x128xf32> to vector<16x128xf32>
    %53 = arith.truncf %52 : vector<16x128xf32> to vector<16x128xbf16>
    %c5_49 = arith.constant 5 : index
    %c0_50 = arith.constant 0 : index
    %c0_51 = arith.constant 0 : index
    %54 = vector.load %arg4[%c5_49, %c0_50, %c0_51] : memref<8x128x128xbf16, #tpu.memory_space<vmem>>, vector<1x128x128xbf16>
    %55 = vector.shape_cast %54 : vector<1x128x128xbf16> to vector<128x128xbf16>
    %cst_52 = arith.constant dense<0.000000e+00> : vector<16x128xf32>
    %56 = tpu.matmul %53, %55, %cst_52 {dimension_numbers = #tpu.dot_dimension_numbers<[1], [0], [0], [1], [0, 0, 1, 1], [], []>} : vector<16x128xbf16>, vector<128x128xbf16>, vector<16x128xf32> -> vector<16x128xf32>
    %57 = arith.addf %50, %56 : vector<16x128xf32>
    %c0_53 = arith.constant 0 : index
    %c6 = arith.constant 6 : index
    %c0_54 = arith.constant 0 : index
    %58 = vector.load %arg9[%c0_53, %c6, %c0_54] : memref<1x23x128xf32, #tpu.memory_space<vmem>>, vector<1x16x128xf32>
    %59 = vector.shape_cast %58 : vector<1x16x128xf32> to vector<16x128xf32>
    %60 = arith.truncf %59 : vector<16x128xf32> to vector<16x128xbf16>
    %c6_55 = arith.constant 6 : index
    %c0_56 = arith.constant 0 : index
    %c0_57 = arith.constant 0 : index
    %61 = vector.load %arg4[%c6_55, %c0_56, %c0_57] : memref<8x128x128xbf16, #tpu.memory_space<vmem>>, vector<1x128x128xbf16>
    %62 = vector.shape_cast %61 : vector<1x128x128xbf16> to vector<128x128xbf16>
    %cst_58 = arith.constant dense<0.000000e+00> : vector<16x128xf32>
    %63 = tpu.matmul %60, %62, %cst_58 {dimension_numbers = #tpu.dot_dimension_numbers<[1], [0], [0], [1], [0, 0, 1, 1], [], []>} : vector<16x128xbf16>, vector<128x128xbf16>, vector<16x128xf32> -> vector<16x128xf32>
    %64 = arith.addf %57, %63 : vector<16x128xf32>
    %c0_59 = arith.constant 0 : index
    %c7 = arith.constant 7 : index
    %c0_60 = arith.constant 0 : index
    %65 = vector.load %arg9[%c0_59, %c7, %c0_60] : memref<1x23x128xf32, #tpu.memory_space<vmem>>, vector<1x16x128xf32>
    %66 = vector.shape_cast %65 : vector<1x16x128xf32> to vector<16x128xf32>
    %67 = arith.truncf %66 : vector<16x128xf32> to vector<16x128xbf16>
    %c7_61 = arith.constant 7 : index
    %c0_62 = arith.constant 0 : index
    %c0_63 = arith.constant 0 : index
    %68 = vector.load %arg4[%c7_61, %c0_62, %c0_63] : memref<8x128x128xbf16, #tpu.memory_space<vmem>>, vector<1x128x128xbf16>
    %69 = vector.shape_cast %68 : vector<1x128x128xbf16> to vector<128x128xbf16>
    %cst_64 = arith.constant dense<0.000000e+00> : vector<16x128xf32>
    %70 = tpu.matmul %67, %69, %cst_64 {dimension_numbers = #tpu.dot_dimension_numbers<[1], [0], [0], [1], [0, 0, 1, 1], [], []>} : vector<16x128xbf16>, vector<128x128xbf16>, vector<16x128xf32> -> vector<16x128xf32>
    %71 = arith.addf %64, %70 : vector<16x128xf32>
    %c0_65 = arith.constant 0 : index
    %c0_66 = arith.constant 0 : index
    %72 = vector.load %arg5[%c0_65, %c0_66] : memref<1x128xf32, #tpu.memory_space<vmem>>, vector<1x128xf32>
    %73 = vector.broadcast %72 : vector<1x128xf32> to vector<16x128xf32>
    %74 = arith.addf %71, %73 : vector<16x128xf32>
    %75 = arith.truncf %74 : vector<16x128xf32> to vector<16x128xbf16>
    %c0_67 = arith.constant 0 : index
    %c0_68 = arith.constant 0 : index
    %c0_69 = arith.constant 0 : index
    %76 = vector.load %arg6[%c0_67, %c0_68, %c0_69] : memref<1x16x128xbf16, #tpu.memory_space<vmem>>, vector<1x16x128xbf16>
    %77 = vector.shape_cast %76 : vector<1x16x128xbf16> to vector<16x128xbf16>
    %78 = vector.shape_cast %75 : vector<16x128xbf16> to vector<1x16x128xbf16>
    tpu.vector_store %arg6[%c0_67, %c0_68, %c0_69], %78 {strides = array<i32>} : memref<1x16x128xbf16, #tpu.memory_space<vmem>>, vector<1x16x128xbf16>,
    %cst_70 = arith.constant dense<0.000000e+00> : vector<128xf32>
    %79 = vector.multi_reduction <add>, %74, %cst_70 [0] : vector<16x128xf32> to vector<128xf32>
    %80 = vector.shape_cast %79 : vector<128xf32> to vector<1x128xf32>
    %81 = arith.mulf %74, %74 : vector<16x128xf32>
    %cst_71 = arith.constant dense<0.000000e+00> : vector<128xf32>
    %82 = vector.multi_reduction <add>, %81, %cst_71 [0] : vector<16x128xf32> to vector<128xf32>
    %83 = vector.shape_cast %82 : vector<128xf32> to vector<1x128xf32>
    %c0_72 = arith.constant 0 : index
    %c0_73 = arith.constant 0 : index
    %c0_74 = arith.constant 0 : index
    %84 = vector.load %arg7[%c0_72, %c0_73, %c0_74] : memref<1x1x128xf32, #tpu.memory_space<vmem>>, vector<1x1x128xf32>
    %85 = vector.shape_cast %84 : vector<1x1x128xf32> to vector<1x128xf32>
    %86 = vector.shape_cast %80 : vector<1x128xf32> to vector<1x1x128xf32>
    tpu.vector_store %arg7[%c0_72, %c0_73, %c0_74], %86 {strides = array<i32>} : memref<1x1x128xf32, #tpu.memory_space<vmem>>, vector<1x1x128xf32>,
    %c0_75 = arith.constant 0 : index
    %c0_76 = arith.constant 0 : index
    %c0_77 = arith.constant 0 : index
    %87 = vector.load %arg8[%c0_75, %c0_76, %c0_77] : memref<1x1x128xf32, #tpu.memory_space<vmem>>, vector<1x1x128xf32>
    %88 = vector.shape_cast %87 : vector<1x1x128xf32> to vector<1x128xf32>
    %89 = vector.shape_cast %83 : vector<1x128xf32> to vector<1x1x128xf32>
    tpu.vector_store %arg8[%c0_75, %c0_76, %c0_77], %89 {strides = array<i32>} : memref<1x1x128xf32, #tpu.memory_space<vmem>>, vector<1x1x128xf32>,
    return
  }
  func.func @transform_0(%arg0: i32) -> (i32, i32, i32) {
    %c0_i32 = arith.constant 0 : i32
    %c0_i32_0 = arith.constant 0 : i32
    %c0_i32_1 = arith.constant 0 : i32
    return %arg0, %c0_i32, %c0_i32_0 : i32, i32, i32
  }
  func.func @transform_1(%arg0: i32) -> (i32, i32) {
    %c0_i32 = arith.constant 0 : i32
    %c0_i32_0 = arith.constant 0 : i32
    %c0_i32_1 = arith.constant 0 : i32
    return %c0_i32, %c0_i32_0 : i32, i32
  }
  func.func @transform_2(%arg0: i32) -> (i32, i32) {
    %c0_i32 = arith.constant 0 : i32
    %c0_i32_0 = arith.constant 0 : i32
    %c0_i32_1 = arith.constant 0 : i32
    return %c0_i32, %c0_i32_0 : i32, i32
  }
  func.func @transform_3(%arg0: i32) -> (i32, i32, i32) {
    %c0_i32 = arith.constant 0 : i32
    %c0_i32_0 = arith.constant 0 : i32
    %c0_i32_1 = arith.constant 0 : i32
    %c0_i32_2 = arith.constant 0 : i32
    return %c0_i32, %c0_i32_0, %c0_i32_1 : i32, i32, i32
  }
  func.func @transform_4(%arg0: i32) -> (i32, i32) {
    %c0_i32 = arith.constant 0 : i32
    %c0_i32_0 = arith.constant 0 : i32
    %c0_i32_1 = arith.constant 0 : i32
    return %c0_i32, %c0_i32_0 : i32, i32
  }
  func.func @transform_5(%arg0: i32) -> (i32, i32, i32) {
    %c0_i32 = arith.constant 0 : i32
    %c0_i32_0 = arith.constant 0 : i32
    %c0_i32_1 = arith.constant 0 : i32
    return %arg0, %c0_i32, %c0_i32_0 : i32, i32, i32
  }
  func.func @transform_6(%arg0: i32) -> (i32, i32, i32) {
    %c0_i32 = arith.constant 0 : i32
    %c0_i32_0 = arith.constant 0 : i32
    %c0_i32_1 = arith.constant 0 : i32
    return %arg0, %c0_i32, %c0_i32_0 : i32, i32, i32
  }
  func.func @transform_7(%arg0: i32) -> (i32, i32, i32) {
    %c0_i32 = arith.constant 0 : i32
    %c0_i32_0 = arith.constant 0 : i32
    %c0_i32_1 = arith.constant 0 : i32
    return %arg0, %c0_i32, %c0_i32_0 : i32, i32, i32
  }
}

module attributes {stable_mosaic.version = 11 : i64} {
  func.func @kernel(%arg0: i32, %arg1: memref<1x16x128xbf16, #tpu.memory_space<vmem>>, %arg2: memref<1x16x128xbf16, #tpu.memory_space<vmem>>, %arg3: memref<1x128xf32, #tpu.memory_space<vmem>>, %arg4: memref<1x128xf32, #tpu.memory_space<vmem>>, %arg5: memref<1x128xf32, #tpu.memory_space<vmem>>, %arg6: memref<1x128xf32, #tpu.memory_space<vmem>>, %arg7: memref<5x128x256xbf16, #tpu.memory_space<vmem>>, %arg8: memref<1x256xf32, #tpu.memory_space<vmem>>, %arg9: memref<128x256xbf16, #tpu.memory_space<vmem>>, %arg10: memref<1x256xf32, #tpu.memory_space<vmem>>, %arg11: memref<1x16x256xbf16, #tpu.memory_space<vmem>>, %arg12: memref<1x1x256xf32, #tpu.memory_space<vmem>>, %arg13: memref<1x1x256xf32, #tpu.memory_space<vmem>>, %arg14: memref<1x16x256xbf16, #tpu.memory_space<vmem>>, %arg15: memref<1x1x256xf32, #tpu.memory_space<vmem>>, %arg16: memref<1x1x256xf32, #tpu.memory_space<vmem>>, %arg17: memref<1x20x128xf32, #tpu.memory_space<vmem>>) attributes {dimension_semantics = [#tpu.dimension_semantics<parallel>], iteration_bounds = array<i64: 2>, scalar_prefetch = 0 : i64, scratch_operands = 1 : i64, tpu.core_type = #tpu.core_type<tc>, window_params = [{transform_indices = @transform_0, window_bounds = array<i64: 1, 16, 128>}, {transform_indices = @transform_1, window_bounds = array<i64: 1, 16, 128>}, {pipeline_mode = #tpu.pipeline_mode<synchronous>, transform_indices = @transform_2, window_bounds = array<i64: 1, 128>}, {pipeline_mode = #tpu.pipeline_mode<synchronous>, transform_indices = @transform_3, window_bounds = array<i64: 1, 128>}, {pipeline_mode = #tpu.pipeline_mode<synchronous>, transform_indices = @transform_4, window_bounds = array<i64: 1, 128>}, {pipeline_mode = #tpu.pipeline_mode<synchronous>, transform_indices = @transform_5, window_bounds = array<i64: 1, 128>}, {pipeline_mode = #tpu.pipeline_mode<synchronous>, transform_indices = @transform_6, window_bounds = array<i64: 5, 128, 256>}, {pipeline_mode = #tpu.pipeline_mode<synchronous>, transform_indices = @transform_7, window_bounds = array<i64: 1, 256>}, {pipeline_mode = #tpu.pipeline_mode<synchronous>, transform_indices = @transform_8, window_bounds = array<i64: 128, 256>}, {pipeline_mode = #tpu.pipeline_mode<synchronous>, transform_indices = @transform_9, window_bounds = array<i64: 1, 256>}, {transform_indices = @transform_10, window_bounds = array<i64: 1, 16, 256>}, {transform_indices = @transform_11, window_bounds = array<i64: 1, 1, 256>}, {transform_indices = @transform_12, window_bounds = array<i64: 1, 1, 256>}, {transform_indices = @transform_13, window_bounds = array<i64: 1, 16, 256>}, {transform_indices = @transform_14, window_bounds = array<i64: 1, 1, 256>}, {transform_indices = @transform_15, window_bounds = array<i64: 1, 1, 256>}]} {
    %c0 = arith.constant 0 : index
    %c0_0 = arith.constant 0 : index
    %c0_1 = arith.constant 0 : index
    %0 = vector.load %arg1[%c0, %c0_0, %c0_1] : memref<1x16x128xbf16, #tpu.memory_space<vmem>>, vector<1x16x128xbf16>
    %1 = arith.extf %0 : vector<1x16x128xbf16> to vector<1x16x128xf32>
    %c0_2 = arith.constant 0 : index
    %c0_3 = arith.constant 0 : index
    %2 = vector.load %arg3[%c0_2, %c0_3] : memref<1x128xf32, #tpu.memory_space<vmem>>, vector<1x128xf32>
    %3 = vector.shape_cast %2 : vector<1x128xf32> to vector<1x1x128xf32>
    %4 = vector.broadcast %3 : vector<1x1x128xf32> to vector<1x16x128xf32>
    %5 = arith.mulf %1, %4 : vector<1x16x128xf32>
    %c0_4 = arith.constant 0 : index
    %c0_5 = arith.constant 0 : index
    %6 = vector.load %arg4[%c0_4, %c0_5] : memref<1x128xf32, #tpu.memory_space<vmem>>, vector<1x128xf32>
    %7 = vector.shape_cast %6 : vector<1x128xf32> to vector<1x1x128xf32>
    %8 = vector.broadcast %7 : vector<1x1x128xf32> to vector<1x16x128xf32>
    %9 = arith.addf %5, %8 : vector<1x16x128xf32>
    %c0_6 = arith.constant 0 : index
    %c0_7 = arith.constant 0 : index
    %c0_8 = arith.constant 0 : index
    %10 = vector.load %arg2[%c0_6, %c0_7, %c0_8] : memref<1x16x128xbf16, #tpu.memory_space<vmem>>, vector<1x16x128xbf16>
    %11 = arith.extf %10 : vector<1x16x128xbf16> to vector<1x16x128xf32>
    %c0_9 = arith.constant 0 : index
    %c0_10 = arith.constant 0 : index
    %12 = vector.load %arg5[%c0_9, %c0_10] : memref<1x128xf32, #tpu.memory_space<vmem>>, vector<1x128xf32>
    %13 = vector.shape_cast %12 : vector<1x128xf32> to vector<1x1x128xf32>
    %14 = vector.broadcast %13 : vector<1x1x128xf32> to vector<1x16x128xf32>
    %15 = arith.mulf %11, %14 : vector<1x16x128xf32>
    %c0_11 = arith.constant 0 : index
    %c0_12 = arith.constant 0 : index
    %16 = vector.load %arg6[%c0_11, %c0_12] : memref<1x128xf32, #tpu.memory_space<vmem>>, vector<1x128xf32>
    %17 = vector.shape_cast %16 : vector<1x128xf32> to vector<1x1x128xf32>
    %18 = vector.broadcast %17 : vector<1x1x128xf32> to vector<1x16x128xf32>
    %19 = arith.addf %15, %18 : vector<1x16x128xf32>
    %20 = arith.addf %9, %19 : vector<1x16x128xf32>
    %cst = arith.constant 0.000000e+00 : f32
    %21 = vector.broadcast %cst : f32 to vector<1x16x128xf32>
    %22 = arith.maximumf %20, %21 : vector<1x16x128xf32>
    %23 = arith.truncf %22 : vector<1x16x128xf32> to vector<1x16x128xbf16>
    %c0_13 = arith.constant 0 : index
    %c2 = arith.constant 2 : index
    %c0_14 = arith.constant 0 : index
    %24 = vector.load %arg17[%c0_13, %c2, %c0_14] : memref<1x20x128xf32, #tpu.memory_space<vmem>>, vector<1x16x128xf32>
    tpu.vector_store %arg17[%c0_13, %c2, %c0_14], %22 {strides = array<i32>} : memref<1x20x128xf32, #tpu.memory_space<vmem>>, vector<1x16x128xf32>,
    %cst_15 = arith.constant 0.000000e+00 : f32
    %25 = vector.broadcast %cst_15 : f32 to vector<1x2x128xf32>
    %c0_16 = arith.constant 0 : index
    %c0_17 = arith.constant 0 : index
    %c0_18 = arith.constant 0 : index
    %26 = vector.load %arg17[%c0_16, %c0_17, %c0_18] : memref<1x20x128xf32, #tpu.memory_space<vmem>>, vector<1x2x128xf32>
    tpu.vector_store %arg17[%c0_16, %c0_17, %c0_18], %25 {strides = array<i32>} : memref<1x20x128xf32, #tpu.memory_space<vmem>>, vector<1x2x128xf32>,
    %cst_19 = arith.constant 0.000000e+00 : f32
    %27 = vector.broadcast %cst_19 : f32 to vector<1x2x128xf32>
    %c0_20 = arith.constant 0 : index
    %c18 = arith.constant 18 : index
    %c0_21 = arith.constant 0 : index
    %28 = vector.load %arg17[%c0_20, %c18, %c0_21] : memref<1x20x128xf32, #tpu.memory_space<vmem>>, vector<1x2x128xf32>
    tpu.vector_store %arg17[%c0_20, %c18, %c0_21], %27 {strides = array<i32>} : memref<1x20x128xf32, #tpu.memory_space<vmem>>, vector<1x2x128xf32>,
    %c0_22 = arith.constant 0 : index
    %c0_23 = arith.constant 0 : index
    %c0_24 = arith.constant 0 : index
    %29 = vector.load %arg17[%c0_22, %c0_23, %c0_24] : memref<1x20x128xf32, #tpu.memory_space<vmem>>, vector<1x16x128xf32>
    %30 = vector.shape_cast %29 : vector<1x16x128xf32> to vector<16x128xf32>
    %31 = arith.truncf %30 : vector<16x128xf32> to vector<16x128xbf16>
    %c0_25 = arith.constant 0 : index
    %c0_26 = arith.constant 0 : index
    %c0_27 = arith.constant 0 : index
    %32 = vector.load %arg7[%c0_25, %c0_26, %c0_27] : memref<5x128x256xbf16, #tpu.memory_space<vmem>>, vector<1x128x256xbf16>
    %33 = vector.shape_cast %32 : vector<1x128x256xbf16> to vector<128x256xbf16>
    %cst_28 = arith.constant dense<0.000000e+00> : vector<16x256xf32>
    %34 = tpu.matmul %31, %33, %cst_28 {dimension_numbers = #tpu.dot_dimension_numbers<[1], [0], [0], [1], [0, 0, 1, 1], [], []>} : vector<16x128xbf16>, vector<128x256xbf16>, vector<16x256xf32> -> vector<16x256xf32>
    %c0_29 = arith.constant 0 : index
    %c1 = arith.constant 1 : index
    %c0_30 = arith.constant 0 : index
    %35 = vector.load %arg17[%c0_29, %c1, %c0_30] : memref<1x20x128xf32, #tpu.memory_space<vmem>>, vector<1x16x128xf32>
    %36 = vector.shape_cast %35 : vector<1x16x128xf32> to vector<16x128xf32>
    %37 = arith.truncf %36 : vector<16x128xf32> to vector<16x128xbf16>
    %c1_31 = arith.constant 1 : index
    %c0_32 = arith.constant 0 : index
    %c0_33 = arith.constant 0 : index
    %38 = vector.load %arg7[%c1_31, %c0_32, %c0_33] : memref<5x128x256xbf16, #tpu.memory_space<vmem>>, vector<1x128x256xbf16>
    %39 = vector.shape_cast %38 : vector<1x128x256xbf16> to vector<128x256xbf16>
    %cst_34 = arith.constant dense<0.000000e+00> : vector<16x256xf32>
    %40 = tpu.matmul %37, %39, %cst_34 {dimension_numbers = #tpu.dot_dimension_numbers<[1], [0], [0], [1], [0, 0, 1, 1], [], []>} : vector<16x128xbf16>, vector<128x256xbf16>, vector<16x256xf32> -> vector<16x256xf32>
    %41 = arith.addf %34, %40 : vector<16x256xf32>
    %c0_35 = arith.constant 0 : index
    %c2_36 = arith.constant 2 : index
    %c0_37 = arith.constant 0 : index
    %42 = vector.load %arg17[%c0_35, %c2_36, %c0_37] : memref<1x20x128xf32, #tpu.memory_space<vmem>>, vector<1x16x128xf32>
    %43 = vector.shape_cast %42 : vector<1x16x128xf32> to vector<16x128xf32>
    %44 = arith.truncf %43 : vector<16x128xf32> to vector<16x128xbf16>
    %c2_38 = arith.constant 2 : index
    %c0_39 = arith.constant 0 : index
    %c0_40 = arith.constant 0 : index
    %45 = vector.load %arg7[%c2_38, %c0_39, %c0_40] : memref<5x128x256xbf16, #tpu.memory_space<vmem>>, vector<1x128x256xbf16>
    %46 = vector.shape_cast %45 : vector<1x128x256xbf16> to vector<128x256xbf16>
    %cst_41 = arith.constant dense<0.000000e+00> : vector<16x256xf32>
    %47 = tpu.matmul %44, %46, %cst_41 {dimension_numbers = #tpu.dot_dimension_numbers<[1], [0], [0], [1], [0, 0, 1, 1], [], []>} : vector<16x128xbf16>, vector<128x256xbf16>, vector<16x256xf32> -> vector<16x256xf32>
    %48 = arith.addf %41, %47 : vector<16x256xf32>
    %c0_42 = arith.constant 0 : index
    %c3 = arith.constant 3 : index
    %c0_43 = arith.constant 0 : index
    %49 = vector.load %arg17[%c0_42, %c3, %c0_43] : memref<1x20x128xf32, #tpu.memory_space<vmem>>, vector<1x16x128xf32>
    %50 = vector.shape_cast %49 : vector<1x16x128xf32> to vector<16x128xf32>
    %51 = arith.truncf %50 : vector<16x128xf32> to vector<16x128xbf16>
    %c3_44 = arith.constant 3 : index
    %c0_45 = arith.constant 0 : index
    %c0_46 = arith.constant 0 : index
    %52 = vector.load %arg7[%c3_44, %c0_45, %c0_46] : memref<5x128x256xbf16, #tpu.memory_space<vmem>>, vector<1x128x256xbf16>
    %53 = vector.shape_cast %52 : vector<1x128x256xbf16> to vector<128x256xbf16>
    %cst_47 = arith.constant dense<0.000000e+00> : vector<16x256xf32>
    %54 = tpu.matmul %51, %53, %cst_47 {dimension_numbers = #tpu.dot_dimension_numbers<[1], [0], [0], [1], [0, 0, 1, 1], [], []>} : vector<16x128xbf16>, vector<128x256xbf16>, vector<16x256xf32> -> vector<16x256xf32>
    %55 = arith.addf %48, %54 : vector<16x256xf32>
    %c0_48 = arith.constant 0 : index
    %c4 = arith.constant 4 : index
    %c0_49 = arith.constant 0 : index
    %56 = vector.load %arg17[%c0_48, %c4, %c0_49] : memref<1x20x128xf32, #tpu.memory_space<vmem>>, vector<1x16x128xf32>
    %57 = vector.shape_cast %56 : vector<1x16x128xf32> to vector<16x128xf32>
    %58 = arith.truncf %57 : vector<16x128xf32> to vector<16x128xbf16>
    %c4_50 = arith.constant 4 : index
    %c0_51 = arith.constant 0 : index
    %c0_52 = arith.constant 0 : index
    %59 = vector.load %arg7[%c4_50, %c0_51, %c0_52] : memref<5x128x256xbf16, #tpu.memory_space<vmem>>, vector<1x128x256xbf16>
    %60 = vector.shape_cast %59 : vector<1x128x256xbf16> to vector<128x256xbf16>
    %cst_53 = arith.constant dense<0.000000e+00> : vector<16x256xf32>
    %61 = tpu.matmul %58, %60, %cst_53 {dimension_numbers = #tpu.dot_dimension_numbers<[1], [0], [0], [1], [0, 0, 1, 1], [], []>} : vector<16x128xbf16>, vector<128x256xbf16>, vector<16x256xf32> -> vector<16x256xf32>
    %62 = arith.addf %55, %61 : vector<16x256xf32>
    %c0_54 = arith.constant 0 : index
    %c0_55 = arith.constant 0 : index
    %63 = vector.load %arg8[%c0_54, %c0_55] : memref<1x256xf32, #tpu.memory_space<vmem>>, vector<1x256xf32>
    %64 = vector.broadcast %63 : vector<1x256xf32> to vector<16x256xf32>
    %65 = arith.addf %62, %64 : vector<16x256xf32>
    %66 = arith.truncf %65 : vector<16x256xf32> to vector<16x256xbf16>
    %c0_56 = arith.constant 0 : index
    %c0_57 = arith.constant 0 : index
    %c0_58 = arith.constant 0 : index
    %67 = vector.load %arg11[%c0_56, %c0_57, %c0_58] : memref<1x16x256xbf16, #tpu.memory_space<vmem>>, vector<1x16x256xbf16>
    %68 = vector.shape_cast %67 : vector<1x16x256xbf16> to vector<16x256xbf16>
    %69 = vector.shape_cast %66 : vector<16x256xbf16> to vector<1x16x256xbf16>
    tpu.vector_store %arg11[%c0_56, %c0_57, %c0_58], %69 {strides = array<i32>} : memref<1x16x256xbf16, #tpu.memory_space<vmem>>, vector<1x16x256xbf16>,
    %cst_59 = arith.constant dense<0.000000e+00> : vector<256xf32>
    %70 = vector.multi_reduction <add>, %65, %cst_59 [0] : vector<16x256xf32> to vector<256xf32>
    %71 = vector.shape_cast %70 : vector<256xf32> to vector<1x256xf32>
    %72 = arith.mulf %65, %65 : vector<16x256xf32>
    %cst_60 = arith.constant dense<0.000000e+00> : vector<256xf32>
    %73 = vector.multi_reduction <add>, %72, %cst_60 [0] : vector<16x256xf32> to vector<256xf32>
    %74 = vector.shape_cast %73 : vector<256xf32> to vector<1x256xf32>
    %c0_61 = arith.constant 0 : index
    %c0_62 = arith.constant 0 : index
    %c0_63 = arith.constant 0 : index
    %75 = vector.load %arg12[%c0_61, %c0_62, %c0_63] : memref<1x1x256xf32, #tpu.memory_space<vmem>>, vector<1x1x256xf32>
    %76 = vector.shape_cast %75 : vector<1x1x256xf32> to vector<1x256xf32>
    %77 = vector.shape_cast %71 : vector<1x256xf32> to vector<1x1x256xf32>
    tpu.vector_store %arg12[%c0_61, %c0_62, %c0_63], %77 {strides = array<i32>} : memref<1x1x256xf32, #tpu.memory_space<vmem>>, vector<1x1x256xf32>,
    %c0_64 = arith.constant 0 : index
    %c0_65 = arith.constant 0 : index
    %c0_66 = arith.constant 0 : index
    %78 = vector.load %arg13[%c0_64, %c0_65, %c0_66] : memref<1x1x256xf32, #tpu.memory_space<vmem>>, vector<1x1x256xf32>
    %79 = vector.shape_cast %78 : vector<1x1x256xf32> to vector<1x256xf32>
    %80 = vector.shape_cast %74 : vector<1x256xf32> to vector<1x1x256xf32>
    tpu.vector_store %arg13[%c0_64, %c0_65, %c0_66], %80 {strides = array<i32>} : memref<1x1x256xf32, #tpu.memory_space<vmem>>, vector<1x1x256xf32>,
    %81 = vector.shape_cast %23 : vector<1x16x128xbf16> to vector<16x128xbf16>
    %c0_67 = arith.constant 0 : index
    %c0_68 = arith.constant 0 : index
    %82 = vector.load %arg9[%c0_67, %c0_68] : memref<128x256xbf16, #tpu.memory_space<vmem>>, vector<128x256xbf16>
    %cst_69 = arith.constant dense<0.000000e+00> : vector<16x256xf32>
    %83 = tpu.matmul %81, %82, %cst_69 {dimension_numbers = #tpu.dot_dimension_numbers<[1], [0], [0], [1], [0, 0, 1, 1], [], []>} : vector<16x128xbf16>, vector<128x256xbf16>, vector<16x256xf32> -> vector<16x256xf32>
    %c0_70 = arith.constant 0 : index
    %c0_71 = arith.constant 0 : index
    %84 = vector.load %arg10[%c0_70, %c0_71] : memref<1x256xf32, #tpu.memory_space<vmem>>, vector<1x256xf32>
    %85 = vector.broadcast %84 : vector<1x256xf32> to vector<16x256xf32>
    %86 = arith.addf %83, %85 : vector<16x256xf32>
    %87 = vector.shape_cast %86 : vector<16x256xf32> to vector<1x16x256xf32>
    %88 = arith.truncf %87 : vector<1x16x256xf32> to vector<1x16x256xbf16>
    %c0_72 = arith.constant 0 : index
    %c0_73 = arith.constant 0 : index
    %c0_74 = arith.constant 0 : index
    %89 = vector.load %arg14[%c0_72, %c0_73, %c0_74] : memref<1x16x256xbf16, #tpu.memory_space<vmem>>, vector<1x16x256xbf16>
    tpu.vector_store %arg14[%c0_72, %c0_73, %c0_74], %88 {strides = array<i32>} : memref<1x16x256xbf16, #tpu.memory_space<vmem>>, vector<1x16x256xbf16>,
    %cst_75 = arith.constant dense<0.000000e+00> : vector<256xf32>
    %90 = vector.multi_reduction <add>, %86, %cst_75 [0] : vector<16x256xf32> to vector<256xf32>
    %91 = vector.shape_cast %90 : vector<256xf32> to vector<1x256xf32>
    %c0_76 = arith.constant 0 : index
    %c0_77 = arith.constant 0 : index
    %c0_78 = arith.constant 0 : index
    %92 = vector.load %arg15[%c0_76, %c0_77, %c0_78] : memref<1x1x256xf32, #tpu.memory_space<vmem>>, vector<1x1x256xf32>
    %93 = vector.shape_cast %92 : vector<1x1x256xf32> to vector<1x256xf32>
    %94 = vector.shape_cast %91 : vector<1x256xf32> to vector<1x1x256xf32>
    tpu.vector_store %arg15[%c0_76, %c0_77, %c0_78], %94 {strides = array<i32>} : memref<1x1x256xf32, #tpu.memory_space<vmem>>, vector<1x1x256xf32>,
    %95 = arith.mulf %86, %86 : vector<16x256xf32>
    %cst_79 = arith.constant dense<0.000000e+00> : vector<256xf32>
    %96 = vector.multi_reduction <add>, %95, %cst_79 [0] : vector<16x256xf32> to vector<256xf32>
    %97 = vector.shape_cast %96 : vector<256xf32> to vector<1x256xf32>
    %c0_80 = arith.constant 0 : index
    %c0_81 = arith.constant 0 : index
    %c0_82 = arith.constant 0 : index
    %98 = vector.load %arg16[%c0_80, %c0_81, %c0_82] : memref<1x1x256xf32, #tpu.memory_space<vmem>>, vector<1x1x256xf32>
    %99 = vector.shape_cast %98 : vector<1x1x256xf32> to vector<1x256xf32>
    %100 = vector.shape_cast %97 : vector<1x256xf32> to vector<1x1x256xf32>
    tpu.vector_store %arg16[%c0_80, %c0_81, %c0_82], %100 {strides = array<i32>} : memref<1x1x256xf32, #tpu.memory_space<vmem>>, vector<1x1x256xf32>,
    return
  }
  func.func @transform_0(%arg0: i32) -> (i32, i32, i32) {
    %c0_i32 = arith.constant 0 : i32
    %c0_i32_0 = arith.constant 0 : i32
    %c0_i32_1 = arith.constant 0 : i32
    return %arg0, %c0_i32, %c0_i32_0 : i32, i32, i32
  }
  func.func @transform_1(%arg0: i32) -> (i32, i32, i32) {
    %c0_i32 = arith.constant 0 : i32
    %c0_i32_0 = arith.constant 0 : i32
    %c0_i32_1 = arith.constant 0 : i32
    return %arg0, %c0_i32, %c0_i32_0 : i32, i32, i32
  }
  func.func @transform_2(%arg0: i32) -> (i32, i32) {
    %c0_i32 = arith.constant 0 : i32
    %c0_i32_0 = arith.constant 0 : i32
    %c0_i32_1 = arith.constant 0 : i32
    return %c0_i32, %c0_i32_0 : i32, i32
  }
  func.func @transform_3(%arg0: i32) -> (i32, i32) {
    %c0_i32 = arith.constant 0 : i32
    %c0_i32_0 = arith.constant 0 : i32
    %c0_i32_1 = arith.constant 0 : i32
    return %c0_i32, %c0_i32_0 : i32, i32
  }
  func.func @transform_4(%arg0: i32) -> (i32, i32) {
    %c0_i32 = arith.constant 0 : i32
    %c0_i32_0 = arith.constant 0 : i32
    %c0_i32_1 = arith.constant 0 : i32
    return %c0_i32, %c0_i32_0 : i32, i32
  }
  func.func @transform_5(%arg0: i32) -> (i32, i32) {
    %c0_i32 = arith.constant 0 : i32
    %c0_i32_0 = arith.constant 0 : i32
    %c0_i32_1 = arith.constant 0 : i32
    return %c0_i32, %c0_i32_0 : i32, i32
  }
  func.func @transform_6(%arg0: i32) -> (i32, i32, i32) {
    %c0_i32 = arith.constant 0 : i32
    %c0_i32_0 = arith.constant 0 : i32
    %c0_i32_1 = arith.constant 0 : i32
    %c0_i32_2 = arith.constant 0 : i32
    return %c0_i32, %c0_i32_0, %c0_i32_1 : i32, i32, i32
  }
  func.func @transform_7(%arg0: i32) -> (i32, i32) {
    %c0_i32 = arith.constant 0 : i32
    %c0_i32_0 = arith.constant 0 : i32
    %c0_i32_1 = arith.constant 0 : i32
    return %c0_i32, %c0_i32_0 : i32, i32
  }
  func.func @transform_8(%arg0: i32) -> (i32, i32) {
    %c0_i32 = arith.constant 0 : i32
    %c0_i32_0 = arith.constant 0 : i32
    %c0_i32_1 = arith.constant 0 : i32
    return %c0_i32, %c0_i32_0 : i32, i32
  }
  func.func @transform_9(%arg0: i32) -> (i32, i32) {
    %c0_i32 = arith.constant 0 : i32
    %c0_i32_0 = arith.constant 0 : i32
    %c0_i32_1 = arith.constant 0 : i32
    return %c0_i32, %c0_i32_0 : i32, i32
  }
  func.func @transform_10(%arg0: i32) -> (i32, i32, i32) {
    %c0_i32 = arith.constant 0 : i32
    %c0_i32_0 = arith.constant 0 : i32
    %c0_i32_1 = arith.constant 0 : i32
    return %arg0, %c0_i32, %c0_i32_0 : i32, i32, i32
  }
  func.func @transform_11(%arg0: i32) -> (i32, i32, i32) {
    %c0_i32 = arith.constant 0 : i32
    %c0_i32_0 = arith.constant 0 : i32
    %c0_i32_1 = arith.constant 0 : i32
    return %arg0, %c0_i32, %c0_i32_0 : i32, i32, i32
  }
  func.func @transform_12(%arg0: i32) -> (i32, i32, i32) {
    %c0_i32 = arith.constant 0 : i32
    %c0_i32_0 = arith.constant 0 : i32
    %c0_i32_1 = arith.constant 0 : i32
    return %arg0, %c0_i32, %c0_i32_0 : i32, i32, i32
  }
  func.func @transform_13(%arg0: i32) -> (i32, i32, i32) {
    %c0_i32 = arith.constant 0 : i32
    %c0_i32_0 = arith.constant 0 : i32
    %c0_i32_1 = arith.constant 0 : i32
    return %arg0, %c0_i32, %c0_i32_0 : i32, i32, i32
  }
  func.func @transform_14(%arg0: i32) -> (i32, i32, i32) {
    %c0_i32 = arith.constant 0 : i32
    %c0_i32_0 = arith.constant 0 : i32
    %c0_i32_1 = arith.constant 0 : i32
    return %arg0, %c0_i32, %c0_i32_0 : i32, i32, i32
  }
  func.func @transform_15(%arg0: i32) -> (i32, i32, i32) {
    %c0_i32 = arith.constant 0 : i32
    %c0_i32_0 = arith.constant 0 : i32
    %c0_i32_1 = arith.constant 0 : i32
    return %arg0, %c0_i32, %c0_i32_0 : i32, i32, i32
  }
}

module attributes {stable_mosaic.version = 11 : i64} {
  func.func @kernel(%arg0: i32, %arg1: memref<1x16x256xbf16, #tpu.memory_space<vmem>>, %arg2: memref<1x16x256xbf16, #tpu.memory_space<vmem>>, %arg3: memref<1x256xf32, #tpu.memory_space<vmem>>, %arg4: memref<1x256xf32, #tpu.memory_space<vmem>>, %arg5: memref<1x256xf32, #tpu.memory_space<vmem>>, %arg6: memref<1x256xf32, #tpu.memory_space<vmem>>, %arg7: memref<3x256x128xbf16, #tpu.memory_space<vmem>>, %arg8: memref<1x128xf32, #tpu.memory_space<vmem>>, %arg9: memref<256x128xbf16, #tpu.memory_space<vmem>>, %arg10: memref<1x128xf32, #tpu.memory_space<vmem>>, %arg11: memref<1x16x128xbf16, #tpu.memory_space<vmem>>, %arg12: memref<1x1x128xf32, #tpu.memory_space<vmem>>, %arg13: memref<1x1x128xf32, #tpu.memory_space<vmem>>, %arg14: memref<1x16x128xbf16, #tpu.memory_space<vmem>>, %arg15: memref<1x1x128xf32, #tpu.memory_space<vmem>>, %arg16: memref<1x1x128xf32, #tpu.memory_space<vmem>>, %arg17: memref<1x18x256xf32, #tpu.memory_space<vmem>>) attributes {dimension_semantics = [#tpu.dimension_semantics<parallel>], iteration_bounds = array<i64: 2>, scalar_prefetch = 0 : i64, scratch_operands = 1 : i64, tpu.core_type = #tpu.core_type<tc>, window_params = [{transform_indices = @transform_0, window_bounds = array<i64: 1, 16, 256>}, {transform_indices = @transform_1, window_bounds = array<i64: 1, 16, 256>}, {pipeline_mode = #tpu.pipeline_mode<synchronous>, transform_indices = @transform_2, window_bounds = array<i64: 1, 256>}, {pipeline_mode = #tpu.pipeline_mode<synchronous>, transform_indices = @transform_3, window_bounds = array<i64: 1, 256>}, {pipeline_mode = #tpu.pipeline_mode<synchronous>, transform_indices = @transform_4, window_bounds = array<i64: 1, 256>}, {pipeline_mode = #tpu.pipeline_mode<synchronous>, transform_indices = @transform_5, window_bounds = array<i64: 1, 256>}, {pipeline_mode = #tpu.pipeline_mode<synchronous>, transform_indices = @transform_6, window_bounds = array<i64: 3, 256, 128>}, {pipeline_mode = #tpu.pipeline_mode<synchronous>, transform_indices = @transform_7, window_bounds = array<i64: 1, 128>}, {pipeline_mode = #tpu.pipeline_mode<synchronous>, transform_indices = @transform_8, window_bounds = array<i64: 256, 128>}, {pipeline_mode = #tpu.pipeline_mode<synchronous>, transform_indices = @transform_9, window_bounds = array<i64: 1, 128>}, {transform_indices = @transform_10, window_bounds = array<i64: 1, 16, 128>}, {transform_indices = @transform_11, window_bounds = array<i64: 1, 1, 128>}, {transform_indices = @transform_12, window_bounds = array<i64: 1, 1, 128>}, {transform_indices = @transform_13, window_bounds = array<i64: 1, 16, 128>}, {transform_indices = @transform_14, window_bounds = array<i64: 1, 1, 128>}, {transform_indices = @transform_15, window_bounds = array<i64: 1, 1, 128>}]} {
    %c0 = arith.constant 0 : index
    %c0_0 = arith.constant 0 : index
    %c0_1 = arith.constant 0 : index
    %0 = vector.load %arg1[%c0, %c0_0, %c0_1] : memref<1x16x256xbf16, #tpu.memory_space<vmem>>, vector<1x16x256xbf16>
    %1 = arith.extf %0 : vector<1x16x256xbf16> to vector<1x16x256xf32>
    %c0_2 = arith.constant 0 : index
    %c0_3 = arith.constant 0 : index
    %2 = vector.load %arg3[%c0_2, %c0_3] : memref<1x256xf32, #tpu.memory_space<vmem>>, vector<1x256xf32>
    %3 = vector.shape_cast %2 : vector<1x256xf32> to vector<1x1x256xf32>
    %4 = vector.broadcast %3 : vector<1x1x256xf32> to vector<1x16x256xf32>
    %5 = arith.mulf %1, %4 : vector<1x16x256xf32>
    %c0_4 = arith.constant 0 : index
    %c0_5 = arith.constant 0 : index
    %6 = vector.load %arg4[%c0_4, %c0_5] : memref<1x256xf32, #tpu.memory_space<vmem>>, vector<1x256xf32>
    %7 = vector.shape_cast %6 : vector<1x256xf32> to vector<1x1x256xf32>
    %8 = vector.broadcast %7 : vector<1x1x256xf32> to vector<1x16x256xf32>
    %9 = arith.addf %5, %8 : vector<1x16x256xf32>
    %c0_6 = arith.constant 0 : index
    %c0_7 = arith.constant 0 : index
    %c0_8 = arith.constant 0 : index
    %10 = vector.load %arg2[%c0_6, %c0_7, %c0_8] : memref<1x16x256xbf16, #tpu.memory_space<vmem>>, vector<1x16x256xbf16>
    %11 = arith.extf %10 : vector<1x16x256xbf16> to vector<1x16x256xf32>
    %c0_9 = arith.constant 0 : index
    %c0_10 = arith.constant 0 : index
    %12 = vector.load %arg5[%c0_9, %c0_10] : memref<1x256xf32, #tpu.memory_space<vmem>>, vector<1x256xf32>
    %13 = vector.shape_cast %12 : vector<1x256xf32> to vector<1x1x256xf32>
    %14 = vector.broadcast %13 : vector<1x1x256xf32> to vector<1x16x256xf32>
    %15 = arith.mulf %11, %14 : vector<1x16x256xf32>
    %c0_11 = arith.constant 0 : index
    %c0_12 = arith.constant 0 : index
    %16 = vector.load %arg6[%c0_11, %c0_12] : memref<1x256xf32, #tpu.memory_space<vmem>>, vector<1x256xf32>
    %17 = vector.shape_cast %16 : vector<1x256xf32> to vector<1x1x256xf32>
    %18 = vector.broadcast %17 : vector<1x1x256xf32> to vector<1x16x256xf32>
    %19 = arith.addf %15, %18 : vector<1x16x256xf32>
    %20 = arith.addf %9, %19 : vector<1x16x256xf32>
    %cst = arith.constant 0.000000e+00 : f32
    %21 = vector.broadcast %cst : f32 to vector<1x16x256xf32>
    %22 = arith.maximumf %20, %21 : vector<1x16x256xf32>
    %23 = arith.truncf %22 : vector<1x16x256xf32> to vector<1x16x256xbf16>
    %c0_13 = arith.constant 0 : index
    %c1 = arith.constant 1 : index
    %c0_14 = arith.constant 0 : index
    %24 = vector.load %arg17[%c0_13, %c1, %c0_14] : memref<1x18x256xf32, #tpu.memory_space<vmem>>, vector<1x16x256xf32>
    tpu.vector_store %arg17[%c0_13, %c1, %c0_14], %22 {strides = array<i32>} : memref<1x18x256xf32, #tpu.memory_space<vmem>>, vector<1x16x256xf32>,
    %cst_15 = arith.constant 0.000000e+00 : f32
    %25 = vector.broadcast %cst_15 : f32 to vector<1x1x256xf32>
    %c0_16 = arith.constant 0 : index
    %c0_17 = arith.constant 0 : index
    %c0_18 = arith.constant 0 : index
    %26 = vector.load %arg17[%c0_16, %c0_17, %c0_18] : memref<1x18x256xf32, #tpu.memory_space<vmem>>, vector<1x1x256xf32>
    tpu.vector_store %arg17[%c0_16, %c0_17, %c0_18], %25 {strides = array<i32>} : memref<1x18x256xf32, #tpu.memory_space<vmem>>, vector<1x1x256xf32>,
    %cst_19 = arith.constant 0.000000e+00 : f32
    %27 = vector.broadcast %cst_19 : f32 to vector<1x1x256xf32>
    %c0_20 = arith.constant 0 : index
    %c17 = arith.constant 17 : index
    %c0_21 = arith.constant 0 : index
    %28 = vector.load %arg17[%c0_20, %c17, %c0_21] : memref<1x18x256xf32, #tpu.memory_space<vmem>>, vector<1x1x256xf32>
    tpu.vector_store %arg17[%c0_20, %c17, %c0_21], %27 {strides = array<i32>} : memref<1x18x256xf32, #tpu.memory_space<vmem>>, vector<1x1x256xf32>,
    %c0_22 = arith.constant 0 : index
    %c0_23 = arith.constant 0 : index
    %c0_24 = arith.constant 0 : index
    %29 = vector.load %arg17[%c0_22, %c0_23, %c0_24] : memref<1x18x256xf32, #tpu.memory_space<vmem>>, vector<1x16x256xf32>
    %30 = vector.shape_cast %29 : vector<1x16x256xf32> to vector<16x256xf32>
    %31 = arith.truncf %30 : vector<16x256xf32> to vector<16x256xbf16>
    %c0_25 = arith.constant 0 : index
    %c0_26 = arith.constant 0 : index
    %c0_27 = arith.constant 0 : index
    %32 = vector.load %arg7[%c0_25, %c0_26, %c0_27] : memref<3x256x128xbf16, #tpu.memory_space<vmem>>, vector<1x256x128xbf16>
    %33 = vector.shape_cast %32 : vector<1x256x128xbf16> to vector<256x128xbf16>
    %cst_28 = arith.constant dense<0.000000e+00> : vector<16x128xf32>
    %34 = tpu.matmul %31, %33, %cst_28 {dimension_numbers = #tpu.dot_dimension_numbers<[1], [0], [0], [1], [0, 0, 1, 1], [], []>} : vector<16x256xbf16>, vector<256x128xbf16>, vector<16x128xf32> -> vector<16x128xf32>
    %c0_29 = arith.constant 0 : index
    %c1_30 = arith.constant 1 : index
    %c0_31 = arith.constant 0 : index
    %35 = vector.load %arg17[%c0_29, %c1_30, %c0_31] : memref<1x18x256xf32, #tpu.memory_space<vmem>>, vector<1x16x256xf32>
    %36 = vector.shape_cast %35 : vector<1x16x256xf32> to vector<16x256xf32>
    %37 = arith.truncf %36 : vector<16x256xf32> to vector<16x256xbf16>
    %c1_32 = arith.constant 1 : index
    %c0_33 = arith.constant 0 : index
    %c0_34 = arith.constant 0 : index
    %38 = vector.load %arg7[%c1_32, %c0_33, %c0_34] : memref<3x256x128xbf16, #tpu.memory_space<vmem>>, vector<1x256x128xbf16>
    %39 = vector.shape_cast %38 : vector<1x256x128xbf16> to vector<256x128xbf16>
    %cst_35 = arith.constant dense<0.000000e+00> : vector<16x128xf32>
    %40 = tpu.matmul %37, %39, %cst_35 {dimension_numbers = #tpu.dot_dimension_numbers<[1], [0], [0], [1], [0, 0, 1, 1], [], []>} : vector<16x256xbf16>, vector<256x128xbf16>, vector<16x128xf32> -> vector<16x128xf32>
    %41 = arith.addf %34, %40 : vector<16x128xf32>
    %c0_36 = arith.constant 0 : index
    %c2 = arith.constant 2 : index
    %c0_37 = arith.constant 0 : index
    %42 = vector.load %arg17[%c0_36, %c2, %c0_37] : memref<1x18x256xf32, #tpu.memory_space<vmem>>, vector<1x16x256xf32>
    %43 = vector.shape_cast %42 : vector<1x16x256xf32> to vector<16x256xf32>
    %44 = arith.truncf %43 : vector<16x256xf32> to vector<16x256xbf16>
    %c2_38 = arith.constant 2 : index
    %c0_39 = arith.constant 0 : index
    %c0_40 = arith.constant 0 : index
    %45 = vector.load %arg7[%c2_38, %c0_39, %c0_40] : memref<3x256x128xbf16, #tpu.memory_space<vmem>>, vector<1x256x128xbf16>
    %46 = vector.shape_cast %45 : vector<1x256x128xbf16> to vector<256x128xbf16>
    %cst_41 = arith.constant dense<0.000000e+00> : vector<16x128xf32>
    %47 = tpu.matmul %44, %46, %cst_41 {dimension_numbers = #tpu.dot_dimension_numbers<[1], [0], [0], [1], [0, 0, 1, 1], [], []>} : vector<16x256xbf16>, vector<256x128xbf16>, vector<16x128xf32> -> vector<16x128xf32>
    %48 = arith.addf %41, %47 : vector<16x128xf32>
    %c0_42 = arith.constant 0 : index
    %c0_43 = arith.constant 0 : index
    %49 = vector.load %arg8[%c0_42, %c0_43] : memref<1x128xf32, #tpu.memory_space<vmem>>, vector<1x128xf32>
    %50 = vector.broadcast %49 : vector<1x128xf32> to vector<16x128xf32>
    %51 = arith.addf %48, %50 : vector<16x128xf32>
    %52 = arith.truncf %51 : vector<16x128xf32> to vector<16x128xbf16>
    %c0_44 = arith.constant 0 : index
    %c0_45 = arith.constant 0 : index
    %c0_46 = arith.constant 0 : index
    %53 = vector.load %arg11[%c0_44, %c0_45, %c0_46] : memref<1x16x128xbf16, #tpu.memory_space<vmem>>, vector<1x16x128xbf16>
    %54 = vector.shape_cast %53 : vector<1x16x128xbf16> to vector<16x128xbf16>
    %55 = vector.shape_cast %52 : vector<16x128xbf16> to vector<1x16x128xbf16>
    tpu.vector_store %arg11[%c0_44, %c0_45, %c0_46], %55 {strides = array<i32>} : memref<1x16x128xbf16, #tpu.memory_space<vmem>>, vector<1x16x128xbf16>,
    %cst_47 = arith.constant dense<0.000000e+00> : vector<128xf32>
    %56 = vector.multi_reduction <add>, %51, %cst_47 [0] : vector<16x128xf32> to vector<128xf32>
    %57 = vector.shape_cast %56 : vector<128xf32> to vector<1x128xf32>
    %58 = arith.mulf %51, %51 : vector<16x128xf32>
    %cst_48 = arith.constant dense<0.000000e+00> : vector<128xf32>
    %59 = vector.multi_reduction <add>, %58, %cst_48 [0] : vector<16x128xf32> to vector<128xf32>
    %60 = vector.shape_cast %59 : vector<128xf32> to vector<1x128xf32>
    %c0_49 = arith.constant 0 : index
    %c0_50 = arith.constant 0 : index
    %c0_51 = arith.constant 0 : index
    %61 = vector.load %arg12[%c0_49, %c0_50, %c0_51] : memref<1x1x128xf32, #tpu.memory_space<vmem>>, vector<1x1x128xf32>
    %62 = vector.shape_cast %61 : vector<1x1x128xf32> to vector<1x128xf32>
    %63 = vector.shape_cast %57 : vector<1x128xf32> to vector<1x1x128xf32>
    tpu.vector_store %arg12[%c0_49, %c0_50, %c0_51], %63 {strides = array<i32>} : memref<1x1x128xf32, #tpu.memory_space<vmem>>, vector<1x1x128xf32>,
    %c0_52 = arith.constant 0 : index
    %c0_53 = arith.constant 0 : index
    %c0_54 = arith.constant 0 : index
    %64 = vector.load %arg13[%c0_52, %c0_53, %c0_54] : memref<1x1x128xf32, #tpu.memory_space<vmem>>, vector<1x1x128xf32>
    %65 = vector.shape_cast %64 : vector<1x1x128xf32> to vector<1x128xf32>
    %66 = vector.shape_cast %60 : vector<1x128xf32> to vector<1x1x128xf32>
    tpu.vector_store %arg13[%c0_52, %c0_53, %c0_54], %66 {strides = array<i32>} : memref<1x1x128xf32, #tpu.memory_space<vmem>>, vector<1x1x128xf32>,
    %67 = vector.shape_cast %23 : vector<1x16x256xbf16> to vector<16x256xbf16>
    %c0_55 = arith.constant 0 : index
    %c0_56 = arith.constant 0 : index
    %68 = vector.load %arg9[%c0_55, %c0_56] : memref<256x128xbf16, #tpu.memory_space<vmem>>, vector<256x128xbf16>
    %cst_57 = arith.constant dense<0.000000e+00> : vector<16x128xf32>
    %69 = tpu.matmul %67, %68, %cst_57 {dimension_numbers = #tpu.dot_dimension_numbers<[1], [0], [0], [1], [0, 0, 1, 1], [], []>} : vector<16x256xbf16>, vector<256x128xbf16>, vector<16x128xf32> -> vector<16x128xf32>
    %c0_58 = arith.constant 0 : index
    %c0_59 = arith.constant 0 : index
    %70 = vector.load %arg10[%c0_58, %c0_59] : memref<1x128xf32, #tpu.memory_space<vmem>>, vector<1x128xf32>
    %71 = vector.broadcast %70 : vector<1x128xf32> to vector<16x128xf32>
    %72 = arith.addf %69, %71 : vector<16x128xf32>
    %73 = vector.shape_cast %72 : vector<16x128xf32> to vector<1x16x128xf32>
    %74 = arith.truncf %73 : vector<1x16x128xf32> to vector<1x16x128xbf16>
    %c0_60 = arith.constant 0 : index
    %c0_61 = arith.constant 0 : index
    %c0_62 = arith.constant 0 : index
    %75 = vector.load %arg14[%c0_60, %c0_61, %c0_62] : memref<1x16x128xbf16, #tpu.memory_space<vmem>>, vector<1x16x128xbf16>
    tpu.vector_store %arg14[%c0_60, %c0_61, %c0_62], %74 {strides = array<i32>} : memref<1x16x128xbf16, #tpu.memory_space<vmem>>, vector<1x16x128xbf16>,
    %cst_63 = arith.constant dense<0.000000e+00> : vector<128xf32>
    %76 = vector.multi_reduction <add>, %72, %cst_63 [0] : vector<16x128xf32> to vector<128xf32>
    %77 = vector.shape_cast %76 : vector<128xf32> to vector<1x128xf32>
    %c0_64 = arith.constant 0 : index
    %c0_65 = arith.constant 0 : index
    %c0_66 = arith.constant 0 : index
    %78 = vector.load %arg15[%c0_64, %c0_65, %c0_66] : memref<1x1x128xf32, #tpu.memory_space<vmem>>, vector<1x1x128xf32>
    %79 = vector.shape_cast %78 : vector<1x1x128xf32> to vector<1x128xf32>
    %80 = vector.shape_cast %77 : vector<1x128xf32> to vector<1x1x128xf32>
    tpu.vector_store %arg15[%c0_64, %c0_65, %c0_66], %80 {strides = array<i32>} : memref<1x1x128xf32, #tpu.memory_space<vmem>>, vector<1x1x128xf32>,
    %81 = arith.mulf %72, %72 : vector<16x128xf32>
    %cst_67 = arith.constant dense<0.000000e+00> : vector<128xf32>
    %82 = vector.multi_reduction <add>, %81, %cst_67 [0] : vector<16x128xf32> to vector<128xf32>
    %83 = vector.shape_cast %82 : vector<128xf32> to vector<1x128xf32>
    %c0_68 = arith.constant 0 : index
    %c0_69 = arith.constant 0 : index
    %c0_70 = arith.constant 0 : index
    %84 = vector.load %arg16[%c0_68, %c0_69, %c0_70] : memref<1x1x128xf32, #tpu.memory_space<vmem>>, vector<1x1x128xf32>
    %85 = vector.shape_cast %84 : vector<1x1x128xf32> to vector<1x128xf32>
    %86 = vector.shape_cast %83 : vector<1x128xf32> to vector<1x1x128xf32>
    tpu.vector_store %arg16[%c0_68, %c0_69, %c0_70], %86 {strides = array<i32>} : memref<1x1x128xf32, #tpu.memory_space<vmem>>, vector<1x1x128xf32>,
    return
  }
  func.func @transform_0(%arg0: i32) -> (i32, i32, i32) {
    %c0_i32 = arith.constant 0 : i32
    %c0_i32_0 = arith.constant 0 : i32
    %c0_i32_1 = arith.constant 0 : i32
    return %arg0, %c0_i32, %c0_i32_0 : i32, i32, i32
  }
  func.func @transform_1(%arg0: i32) -> (i32, i32, i32) {
    %c0_i32 = arith.constant 0 : i32
    %c0_i32_0 = arith.constant 0 : i32
    %c0_i32_1 = arith.constant 0 : i32
    return %arg0, %c0_i32, %c0_i32_0 : i32, i32, i32
  }
  func.func @transform_2(%arg0: i32) -> (i32, i32) {
    %c0_i32 = arith.constant 0 : i32
    %c0_i32_0 = arith.constant 0 : i32
    %c0_i32_1 = arith.constant 0 : i32
    return %c0_i32, %c0_i32_0 : i32, i32
  }
  func.func @transform_3(%arg0: i32) -> (i32, i32) {
    %c0_i32 = arith.constant 0 : i32
    %c0_i32_0 = arith.constant 0 : i32
    %c0_i32_1 = arith.constant 0 : i32
    return %c0_i32, %c0_i32_0 : i32, i32
  }
  func.func @transform_4(%arg0: i32) -> (i32, i32) {
    %c0_i32 = arith.constant 0 : i32
    %c0_i32_0 = arith.constant 0 : i32
    %c0_i32_1 = arith.constant 0 : i32
    return %c0_i32, %c0_i32_0 : i32, i32
  }
  func.func @transform_5(%arg0: i32) -> (i32, i32) {
    %c0_i32 = arith.constant 0 : i32
    %c0_i32_0 = arith.constant 0 : i32
    %c0_i32_1 = arith.constant 0 : i32
    return %c0_i32, %c0_i32_0 : i32, i32
  }
  func.func @transform_6(%arg0: i32) -> (i32, i32, i32) {
    %c0_i32 = arith.constant 0 : i32
    %c0_i32_0 = arith.constant 0 : i32
    %c0_i32_1 = arith.constant 0 : i32
    %c0_i32_2 = arith.constant 0 : i32
    return %c0_i32, %c0_i32_0, %c0_i32_1 : i32, i32, i32
  }
  func.func @transform_7(%arg0: i32) -> (i32, i32) {
    %c0_i32 = arith.constant 0 : i32
    %c0_i32_0 = arith.constant 0 : i32
    %c0_i32_1 = arith.constant 0 : i32
    return %c0_i32, %c0_i32_0 : i32, i32
  }
  func.func @transform_8(%arg0: i32) -> (i32, i32) {
    %c0_i32 = arith.constant 0 : i32
    %c0_i32_0 = arith.constant 0 : i32
    %c0_i32_1 = arith.constant 0 : i32
    return %c0_i32, %c0_i32_0 : i32, i32
  }
  func.func @transform_9(%arg0: i32) -> (i32, i32) {
    %c0_i32 = arith.constant 0 : i32
    %c0_i32_0 = arith.constant 0 : i32
    %c0_i32_1 = arith.constant 0 : i32
    return %c0_i32, %c0_i32_0 : i32, i32
  }
  func.func @transform_10(%arg0: i32) -> (i32, i32, i32) {
    %c0_i32 = arith.constant 0 : i32
    %c0_i32_0 = arith.constant 0 : i32
    %c0_i32_1 = arith.constant 0 : i32
    return %arg0, %c0_i32, %c0_i32_0 : i32, i32, i32
  }
  func.func @transform_11(%arg0: i32) -> (i32, i32, i32) {
    %c0_i32 = arith.constant 0 : i32
    %c0_i32_0 = arith.constant 0 : i32
    %c0_i32_1 = arith.constant 0 : i32
    return %arg0, %c0_i32, %c0_i32_0 : i32, i32, i32
  }
  func.func @transform_12(%arg0: i32) -> (i32, i32, i32) {
    %c0_i32 = arith.constant 0 : i32
    %c0_i32_0 = arith.constant 0 : i32
    %c0_i32_1 = arith.constant 0 : i32
    return %arg0, %c0_i32, %c0_i32_0 : i32, i32, i32
  }
  func.func @transform_13(%arg0: i32) -> (i32, i32, i32) {
    %c0_i32 = arith.constant 0 : i32
    %c0_i32_0 = arith.constant 0 : i32
    %c0_i32_1 = arith.constant 0 : i32
    return %arg0, %c0_i32, %c0_i32_0 : i32, i32, i32
  }
  func.func @transform_14(%arg0: i32) -> (i32, i32, i32) {
    %c0_i32 = arith.constant 0 : i32
    %c0_i32_0 = arith.constant 0 : i32
    %c0_i32_1 = arith.constant 0 : i32
    return %arg0, %c0_i32, %c0_i32_0 : i32, i32, i32
  }
  func.func @transform_15(%arg0: i32) -> (i32, i32, i32) {
    %c0_i32 = arith.constant 0 : i32
    %c0_i32_0 = arith.constant 0 : i32
    %c0_i32_1 = arith.constant 0 : i32
    return %arg0, %c0_i32, %c0_i32_0 : i32, i32, i32
  }
}

module attributes {stable_mosaic.version = 11 : i64} {
  func.func @kernel(%arg0: i32, %arg1: memref<1x16x128xbf16, #tpu.memory_space<vmem>>, %arg2: memref<1x128xf32, #tpu.memory_space<vmem>>, %arg3: memref<1x128xf32, #tpu.memory_space<vmem>>, %arg4: memref<3x128x128xbf16, #tpu.memory_space<vmem>>, %arg5: memref<1x128xf32, #tpu.memory_space<vmem>>, %arg6: memref<1x16x128xbf16, #tpu.memory_space<vmem>>, %arg7: memref<1x1x128xf32, #tpu.memory_space<vmem>>, %arg8: memref<1x1x128xf32, #tpu.memory_space<vmem>>, %arg9: memref<1x18x128xf32, #tpu.memory_space<vmem>>) attributes {dimension_semantics = [#tpu.dimension_semantics<parallel>], iteration_bounds = array<i64: 2>, scalar_prefetch = 0 : i64, scratch_operands = 1 : i64, tpu.core_type = #tpu.core_type<tc>, window_params = [{transform_indices = @transform_0, window_bounds = array<i64: 1, 16, 128>}, {pipeline_mode = #tpu.pipeline_mode<synchronous>, transform_indices = @transform_1, window_bounds = array<i64: 1, 128>}, {pipeline_mode = #tpu.pipeline_mode<synchronous>, transform_indices = @transform_2, window_bounds = array<i64: 1, 128>}, {pipeline_mode = #tpu.pipeline_mode<synchronous>, transform_indices = @transform_3, window_bounds = array<i64: 3, 128, 128>}, {pipeline_mode = #tpu.pipeline_mode<synchronous>, transform_indices = @transform_4, window_bounds = array<i64: 1, 128>}, {transform_indices = @transform_5, window_bounds = array<i64: 1, 16, 128>}, {transform_indices = @transform_6, window_bounds = array<i64: 1, 1, 128>}, {transform_indices = @transform_7, window_bounds = array<i64: 1, 1, 128>}]} {
    %c0 = arith.constant 0 : index
    %c0_0 = arith.constant 0 : index
    %c0_1 = arith.constant 0 : index
    %0 = vector.load %arg1[%c0, %c0_0, %c0_1] : memref<1x16x128xbf16, #tpu.memory_space<vmem>>, vector<1x16x128xbf16>
    %1 = arith.extf %0 : vector<1x16x128xbf16> to vector<1x16x128xf32>
    %c0_2 = arith.constant 0 : index
    %c0_3 = arith.constant 0 : index
    %2 = vector.load %arg2[%c0_2, %c0_3] : memref<1x128xf32, #tpu.memory_space<vmem>>, vector<1x128xf32>
    %3 = vector.shape_cast %2 : vector<1x128xf32> to vector<1x1x128xf32>
    %4 = vector.broadcast %3 : vector<1x1x128xf32> to vector<1x16x128xf32>
    %5 = arith.mulf %1, %4 : vector<1x16x128xf32>
    %c0_4 = arith.constant 0 : index
    %c0_5 = arith.constant 0 : index
    %6 = vector.load %arg3[%c0_4, %c0_5] : memref<1x128xf32, #tpu.memory_space<vmem>>, vector<1x128xf32>
    %7 = vector.shape_cast %6 : vector<1x128xf32> to vector<1x1x128xf32>
    %8 = vector.broadcast %7 : vector<1x1x128xf32> to vector<1x16x128xf32>
    %9 = arith.addf %5, %8 : vector<1x16x128xf32>
    %cst = arith.constant 0.000000e+00 : f32
    %10 = vector.broadcast %cst : f32 to vector<1x16x128xf32>
    %11 = arith.maximumf %9, %10 : vector<1x16x128xf32>
    %c0_6 = arith.constant 0 : index
    %c1 = arith.constant 1 : index
    %c0_7 = arith.constant 0 : index
    %12 = vector.load %arg9[%c0_6, %c1, %c0_7] : memref<1x18x128xf32, #tpu.memory_space<vmem>>, vector<1x16x128xf32>
    tpu.vector_store %arg9[%c0_6, %c1, %c0_7], %11 {strides = array<i32>} : memref<1x18x128xf32, #tpu.memory_space<vmem>>, vector<1x16x128xf32>,
    %cst_8 = arith.constant 0.000000e+00 : f32
    %13 = vector.broadcast %cst_8 : f32 to vector<1x1x128xf32>
    %c0_9 = arith.constant 0 : index
    %c0_10 = arith.constant 0 : index
    %c0_11 = arith.constant 0 : index
    %14 = vector.load %arg9[%c0_9, %c0_10, %c0_11] : memref<1x18x128xf32, #tpu.memory_space<vmem>>, vector<1x1x128xf32>
    tpu.vector_store %arg9[%c0_9, %c0_10, %c0_11], %13 {strides = array<i32>} : memref<1x18x128xf32, #tpu.memory_space<vmem>>, vector<1x1x128xf32>,
    %cst_12 = arith.constant 0.000000e+00 : f32
    %15 = vector.broadcast %cst_12 : f32 to vector<1x1x128xf32>
    %c0_13 = arith.constant 0 : index
    %c17 = arith.constant 17 : index
    %c0_14 = arith.constant 0 : index
    %16 = vector.load %arg9[%c0_13, %c17, %c0_14] : memref<1x18x128xf32, #tpu.memory_space<vmem>>, vector<1x1x128xf32>
    tpu.vector_store %arg9[%c0_13, %c17, %c0_14], %15 {strides = array<i32>} : memref<1x18x128xf32, #tpu.memory_space<vmem>>, vector<1x1x128xf32>,
    %c0_15 = arith.constant 0 : index
    %c0_16 = arith.constant 0 : index
    %c0_17 = arith.constant 0 : index
    %17 = vector.load %arg9[%c0_15, %c0_16, %c0_17] : memref<1x18x128xf32, #tpu.memory_space<vmem>>, vector<1x16x128xf32>
    %18 = vector.shape_cast %17 : vector<1x16x128xf32> to vector<16x128xf32>
    %19 = arith.truncf %18 : vector<16x128xf32> to vector<16x128xbf16>
    %c0_18 = arith.constant 0 : index
    %c0_19 = arith.constant 0 : index
    %c0_20 = arith.constant 0 : index
    %20 = vector.load %arg4[%c0_18, %c0_19, %c0_20] : memref<3x128x128xbf16, #tpu.memory_space<vmem>>, vector<1x128x128xbf16>
    %21 = vector.shape_cast %20 : vector<1x128x128xbf16> to vector<128x128xbf16>
    %cst_21 = arith.constant dense<0.000000e+00> : vector<16x128xf32>
    %22 = tpu.matmul %19, %21, %cst_21 {dimension_numbers = #tpu.dot_dimension_numbers<[1], [0], [0], [1], [0, 0, 1, 1], [], []>} : vector<16x128xbf16>, vector<128x128xbf16>, vector<16x128xf32> -> vector<16x128xf32>
    %c0_22 = arith.constant 0 : index
    %c1_23 = arith.constant 1 : index
    %c0_24 = arith.constant 0 : index
    %23 = vector.load %arg9[%c0_22, %c1_23, %c0_24] : memref<1x18x128xf32, #tpu.memory_space<vmem>>, vector<1x16x128xf32>
    %24 = vector.shape_cast %23 : vector<1x16x128xf32> to vector<16x128xf32>
    %25 = arith.truncf %24 : vector<16x128xf32> to vector<16x128xbf16>
    %c1_25 = arith.constant 1 : index
    %c0_26 = arith.constant 0 : index
    %c0_27 = arith.constant 0 : index
    %26 = vector.load %arg4[%c1_25, %c0_26, %c0_27] : memref<3x128x128xbf16, #tpu.memory_space<vmem>>, vector<1x128x128xbf16>
    %27 = vector.shape_cast %26 : vector<1x128x128xbf16> to vector<128x128xbf16>
    %cst_28 = arith.constant dense<0.000000e+00> : vector<16x128xf32>
    %28 = tpu.matmul %25, %27, %cst_28 {dimension_numbers = #tpu.dot_dimension_numbers<[1], [0], [0], [1], [0, 0, 1, 1], [], []>} : vector<16x128xbf16>, vector<128x128xbf16>, vector<16x128xf32> -> vector<16x128xf32>
    %29 = arith.addf %22, %28 : vector<16x128xf32>
    %c0_29 = arith.constant 0 : index
    %c2 = arith.constant 2 : index
    %c0_30 = arith.constant 0 : index
    %30 = vector.load %arg9[%c0_29, %c2, %c0_30] : memref<1x18x128xf32, #tpu.memory_space<vmem>>, vector<1x16x128xf32>
    %31 = vector.shape_cast %30 : vector<1x16x128xf32> to vector<16x128xf32>
    %32 = arith.truncf %31 : vector<16x128xf32> to vector<16x128xbf16>
    %c2_31 = arith.constant 2 : index
    %c0_32 = arith.constant 0 : index
    %c0_33 = arith.constant 0 : index
    %33 = vector.load %arg4[%c2_31, %c0_32, %c0_33] : memref<3x128x128xbf16, #tpu.memory_space<vmem>>, vector<1x128x128xbf16>
    %34 = vector.shape_cast %33 : vector<1x128x128xbf16> to vector<128x128xbf16>
    %cst_34 = arith.constant dense<0.000000e+00> : vector<16x128xf32>
    %35 = tpu.matmul %32, %34, %cst_34 {dimension_numbers = #tpu.dot_dimension_numbers<[1], [0], [0], [1], [0, 0, 1, 1], [], []>} : vector<16x128xbf16>, vector<128x128xbf16>, vector<16x128xf32> -> vector<16x128xf32>
    %36 = arith.addf %29, %35 : vector<16x128xf32>
    %c0_35 = arith.constant 0 : index
    %c0_36 = arith.constant 0 : index
    %37 = vector.load %arg5[%c0_35, %c0_36] : memref<1x128xf32, #tpu.memory_space<vmem>>, vector<1x128xf32>
    %38 = vector.broadcast %37 : vector<1x128xf32> to vector<16x128xf32>
    %39 = arith.addf %36, %38 : vector<16x128xf32>
    %40 = arith.truncf %39 : vector<16x128xf32> to vector<16x128xbf16>
    %c0_37 = arith.constant 0 : index
    %c0_38 = arith.constant 0 : index
    %c0_39 = arith.constant 0 : index
    %41 = vector.load %arg6[%c0_37, %c0_38, %c0_39] : memref<1x16x128xbf16, #tpu.memory_space<vmem>>, vector<1x16x128xbf16>
    %42 = vector.shape_cast %41 : vector<1x16x128xbf16> to vector<16x128xbf16>
    %43 = vector.shape_cast %40 : vector<16x128xbf16> to vector<1x16x128xbf16>
    tpu.vector_store %arg6[%c0_37, %c0_38, %c0_39], %43 {strides = array<i32>} : memref<1x16x128xbf16, #tpu.memory_space<vmem>>, vector<1x16x128xbf16>,
    %cst_40 = arith.constant dense<0.000000e+00> : vector<128xf32>
    %44 = vector.multi_reduction <add>, %39, %cst_40 [0] : vector<16x128xf32> to vector<128xf32>
    %45 = vector.shape_cast %44 : vector<128xf32> to vector<1x128xf32>
    %46 = arith.mulf %39, %39 : vector<16x128xf32>
    %cst_41 = arith.constant dense<0.000000e+00> : vector<128xf32>
    %47 = vector.multi_reduction <add>, %46, %cst_41 [0] : vector<16x128xf32> to vector<128xf32>
    %48 = vector.shape_cast %47 : vector<128xf32> to vector<1x128xf32>
    %c0_42 = arith.constant 0 : index
    %c0_43 = arith.constant 0 : index
    %c0_44 = arith.constant 0 : index
    %49 = vector.load %arg7[%c0_42, %c0_43, %c0_44] : memref<1x1x128xf32, #tpu.memory_space<vmem>>, vector<1x1x128xf32>
    %50 = vector.shape_cast %49 : vector<1x1x128xf32> to vector<1x128xf32>
    %51 = vector.shape_cast %45 : vector<1x128xf32> to vector<1x1x128xf32>
    tpu.vector_store %arg7[%c0_42, %c0_43, %c0_44], %51 {strides = array<i32>} : memref<1x1x128xf32, #tpu.memory_space<vmem>>, vector<1x1x128xf32>,
    %c0_45 = arith.constant 0 : index
    %c0_46 = arith.constant 0 : index
    %c0_47 = arith.constant 0 : index
    %52 = vector.load %arg8[%c0_45, %c0_46, %c0_47] : memref<1x1x128xf32, #tpu.memory_space<vmem>>, vector<1x1x128xf32>
    %53 = vector.shape_cast %52 : vector<1x1x128xf32> to vector<1x128xf32>
    %54 = vector.shape_cast %48 : vector<1x128xf32> to vector<1x1x128xf32>
    tpu.vector_store %arg8[%c0_45, %c0_46, %c0_47], %54 {strides = array<i32>} : memref<1x1x128xf32, #tpu.memory_space<vmem>>, vector<1x1x128xf32>,
    return
  }
  func.func @transform_0(%arg0: i32) -> (i32, i32, i32) {
    %c0_i32 = arith.constant 0 : i32
    %c0_i32_0 = arith.constant 0 : i32
    %c0_i32_1 = arith.constant 0 : i32
    return %arg0, %c0_i32, %c0_i32_0 : i32, i32, i32
  }
  func.func @transform_1(%arg0: i32) -> (i32, i32) {
    %c0_i32 = arith.constant 0 : i32
    %c0_i32_0 = arith.constant 0 : i32
    %c0_i32_1 = arith.constant 0 : i32
    return %c0_i32, %c0_i32_0 : i32, i32
  }
  func.func @transform_2(%arg0: i32) -> (i32, i32) {
    %c0_i32 = arith.constant 0 : i32
    %c0_i32_0 = arith.constant 0 : i32
    %c0_i32_1 = arith.constant 0 : i32
    return %c0_i32, %c0_i32_0 : i32, i32
  }
  func.func @transform_3(%arg0: i32) -> (i32, i32, i32) {
    %c0_i32 = arith.constant 0 : i32
    %c0_i32_0 = arith.constant 0 : i32
    %c0_i32_1 = arith.constant 0 : i32
    %c0_i32_2 = arith.constant 0 : i32
    return %c0_i32, %c0_i32_0, %c0_i32_1 : i32, i32, i32
  }
  func.func @transform_4(%arg0: i32) -> (i32, i32) {
    %c0_i32 = arith.constant 0 : i32
    %c0_i32_0 = arith.constant 0 : i32
    %c0_i32_1 = arith.constant 0 : i32
    return %c0_i32, %c0_i32_0 : i32, i32
  }
  func.func @transform_5(%arg0: i32) -> (i32, i32, i32) {
    %c0_i32 = arith.constant 0 : i32
    %c0_i32_0 = arith.constant 0 : i32
    %c0_i32_1 = arith.constant 0 : i32
    return %arg0, %c0_i32, %c0_i32_0 : i32, i32, i32
  }
  func.func @transform_6(%arg0: i32) -> (i32, i32, i32) {
    %c0_i32 = arith.constant 0 : i32
    %c0_i32_0 = arith.constant 0 : i32
    %c0_i32_1 = arith.constant 0 : i32
    return %arg0, %c0_i32, %c0_i32_0 : i32, i32, i32
  }
  func.func @transform_7(%arg0: i32) -> (i32, i32, i32) {
    %c0_i32 = arith.constant 0 : i32
    %c0_i32_0 = arith.constant 0 : i32
    %c0_i32_1 = arith.constant 0 : i32
    return %arg0, %c0_i32, %c0_i32_0 : i32, i32, i32
  }
}

module attributes {stable_mosaic.version = 11 : i64} {
  func.func @kernel(%arg0: i32, %arg1: memref<1x16x128xbf16, #tpu.memory_space<vmem>>, %arg2: memref<1x128xf32, #tpu.memory_space<vmem>>, %arg3: memref<1x128xf32, #tpu.memory_space<vmem>>, %arg4: memref<1x16x128xbf16, #tpu.memory_space<vmem>>, %arg5: memref<1x128xf32, #tpu.memory_space<vmem>>, %arg6: memref<1x128xf32, #tpu.memory_space<vmem>>, %arg7: memref<1x1x128xf32, #tpu.memory_space<vmem>>) attributes {dimension_semantics = [#tpu.dimension_semantics<parallel>], iteration_bounds = array<i64: 2>, scalar_prefetch = 0 : i64, scratch_operands = 0 : i64, tpu.core_type = #tpu.core_type<tc>, window_params = [{transform_indices = @transform_0, window_bounds = array<i64: 1, 16, 128>}, {pipeline_mode = #tpu.pipeline_mode<synchronous>, transform_indices = @transform_1, window_bounds = array<i64: 1, 128>}, {pipeline_mode = #tpu.pipeline_mode<synchronous>, transform_indices = @transform_2, window_bounds = array<i64: 1, 128>}, {transform_indices = @transform_3, window_bounds = array<i64: 1, 16, 128>}, {pipeline_mode = #tpu.pipeline_mode<synchronous>, transform_indices = @transform_4, window_bounds = array<i64: 1, 128>}, {pipeline_mode = #tpu.pipeline_mode<synchronous>, transform_indices = @transform_5, window_bounds = array<i64: 1, 128>}, {transform_indices = @transform_6, window_bounds = array<i64: 1, 1, 128>}]} {
    %c0 = arith.constant 0 : index
    %c0_0 = arith.constant 0 : index
    %c0_1 = arith.constant 0 : index
    %0 = vector.load %arg1[%c0, %c0_0, %c0_1] : memref<1x16x128xbf16, #tpu.memory_space<vmem>>, vector<1x16x128xbf16>
    %1 = arith.extf %0 : vector<1x16x128xbf16> to vector<1x16x128xf32>
    %c0_2 = arith.constant 0 : index
    %c0_3 = arith.constant 0 : index
    %2 = vector.load %arg2[%c0_2, %c0_3] : memref<1x128xf32, #tpu.memory_space<vmem>>, vector<1x128xf32>
    %3 = vector.shape_cast %2 : vector<1x128xf32> to vector<1x1x128xf32>
    %4 = vector.broadcast %3 : vector<1x1x128xf32> to vector<1x16x128xf32>
    %5 = arith.mulf %1, %4 : vector<1x16x128xf32>
    %c0_4 = arith.constant 0 : index
    %c0_5 = arith.constant 0 : index
    %6 = vector.load %arg3[%c0_4, %c0_5] : memref<1x128xf32, #tpu.memory_space<vmem>>, vector<1x128xf32>
    %7 = vector.shape_cast %6 : vector<1x128xf32> to vector<1x1x128xf32>
    %8 = vector.broadcast %7 : vector<1x1x128xf32> to vector<1x16x128xf32>
    %9 = arith.addf %5, %8 : vector<1x16x128xf32>
    %c0_6 = arith.constant 0 : index
    %c0_7 = arith.constant 0 : index
    %c0_8 = arith.constant 0 : index
    %10 = vector.load %arg4[%c0_6, %c0_7, %c0_8] : memref<1x16x128xbf16, #tpu.memory_space<vmem>>, vector<1x16x128xbf16>
    %11 = arith.extf %10 : vector<1x16x128xbf16> to vector<1x16x128xf32>
    %c0_9 = arith.constant 0 : index
    %c0_10 = arith.constant 0 : index
    %12 = vector.load %arg5[%c0_9, %c0_10] : memref<1x128xf32, #tpu.memory_space<vmem>>, vector<1x128xf32>
    %13 = vector.shape_cast %12 : vector<1x128xf32> to vector<1x1x128xf32>
    %14 = vector.broadcast %13 : vector<1x1x128xf32> to vector<1x16x128xf32>
    %15 = arith.mulf %11, %14 : vector<1x16x128xf32>
    %c0_11 = arith.constant 0 : index
    %c0_12 = arith.constant 0 : index
    %16 = vector.load %arg6[%c0_11, %c0_12] : memref<1x128xf32, #tpu.memory_space<vmem>>, vector<1x128xf32>
    %17 = vector.shape_cast %16 : vector<1x128xf32> to vector<1x1x128xf32>
    %18 = vector.broadcast %17 : vector<1x1x128xf32> to vector<1x16x128xf32>
    %19 = arith.addf %15, %18 : vector<1x16x128xf32>
    %20 = arith.addf %9, %19 : vector<1x16x128xf32>
    %cst = arith.constant 0.000000e+00 : f32
    %21 = vector.broadcast %cst : f32 to vector<1x16x128xf32>
    %22 = arith.maximumf %20, %21 : vector<1x16x128xf32>
    %cst_13 = arith.constant dense<0.000000e+00> : vector<1x128xf32>
    %23 = vector.multi_reduction <add>, %22, %cst_13 [1] : vector<1x16x128xf32> to vector<1x128xf32>
    %24 = vector.shape_cast %23 : vector<1x128xf32> to vector<1x1x128xf32>
    %cst_14 = arith.constant 1.600000e+01 : f32
    %25 = vector.broadcast %cst_14 : f32 to vector<1x1x128xf32>
    %26 = arith.divf %24, %25 : vector<1x1x128xf32>
    %c0_15 = arith.constant 0 : index
    %c0_16 = arith.constant 0 : index
    %c0_17 = arith.constant 0 : index
    %27 = vector.load %arg7[%c0_15, %c0_16, %c0_17] : memref<1x1x128xf32, #tpu.memory_space<vmem>>, vector<1x1x128xf32>
    tpu.vector_store %arg7[%c0_15, %c0_16, %c0_17], %26 {strides = array<i32>} : memref<1x1x128xf32, #tpu.memory_space<vmem>>, vector<1x1x128xf32>,
    return
  }
  func.func @transform_0(%arg0: i32) -> (i32, i32, i32) {
    %c0_i32 = arith.constant 0 : i32
    %c0_i32_0 = arith.constant 0 : i32
    %c0_i32_1 = arith.constant 0 : i32
    return %arg0, %c0_i32, %c0_i32_0 : i32, i32, i32
  }
  func.func @transform_1(%arg0: i32) -> (i32, i32) {
    %c0_i32 = arith.constant 0 : i32
    %c0_i32_0 = arith.constant 0 : i32
    %c0_i32_1 = arith.constant 0 : i32
    return %c0_i32, %c0_i32_0 : i32, i32
  }
  func.func @transform_2(%arg0: i32) -> (i32, i32) {
    %c0_i32 = arith.constant 0 : i32
    %c0_i32_0 = arith.constant 0 : i32
    %c0_i32_1 = arith.constant 0 : i32
    return %c0_i32, %c0_i32_0 : i32, i32
  }
  func.func @transform_3(%arg0: i32) -> (i32, i32, i32) {
    %c0_i32 = arith.constant 0 : i32
    %c0_i32_0 = arith.constant 0 : i32
    %c0_i32_1 = arith.constant 0 : i32
    return %arg0, %c0_i32, %c0_i32_0 : i32, i32, i32
  }
  func.func @transform_4(%arg0: i32) -> (i32, i32) {
    %c0_i32 = arith.constant 0 : i32
    %c0_i32_0 = arith.constant 0 : i32
    %c0_i32_1 = arith.constant 0 : i32
    return %c0_i32, %c0_i32_0 : i32, i32
  }
  func.func @transform_5(%arg0: i32) -> (i32, i32) {
    %c0_i32 = arith.constant 0 : i32
    %c0_i32_0 = arith.constant 0 : i32
    %c0_i32_1 = arith.constant 0 : i32
    return %c0_i32, %c0_i32_0 : i32, i32
  }
  func.func @transform_6(%arg0: i32) -> (i32, i32, i32) {
    %c0_i32 = arith.constant 0 : i32
    %c0_i32_0 = arith.constant 0 : i32
    %c0_i32_1 = arith.constant 0 : i32
    return %arg0, %c0_i32, %c0_i32_0 : i32, i32, i32
  }
}

</mosaic_0001>

<bundles_post_ra>
// kernel: model_forward.7
= control target key start
LH: loop header
LB: loop body
LE: loop exit
PB: predicated region body
PF: predicated region fallthrough
CT: control target
= control target key end

     0   :  { %s984_s13 = smov 0   ;;  %s1054_s0 = inlined_call_operand.vmem [shape: bf16[2,16,4], index: 0, kind: input, shape index: {}]   ;;  %s1055_s1 = inlined_call_operand.vmem [shape: bf16[32,128], index: 1, kind: input, shape index: {}]   ;;  %s1056_s2 = inlined_call_operand.vmem [shape: f32[1,128], index: 2, kind: input, shape index: {}]   ;;  %s1057_s3 = inlined_call_operand.vmem [shape: bf16[4,128], index: 3, kind: input, shape index: {}]   ;;  %s1058_s4 = inlined_call_operand.vmem [shape: f32[1,128], index: 4, kind: input, shape index: {}]   ;;  %s1059_s5 = inlined_call_operand.vmem [shape: bf16[2,16,128], index: 5, kind: output, shape index: {0}]   ;;  %s1060_s6 = inlined_call_operand.vmem [shape: f32[2,1,128], index: 6, kind: output, shape index: {1}]   ;;  %s1061_s7 = inlined_call_operand.vmem [shape: f32[2,1,128], index: 7, kind: output, shape index: {2}]   ;;  %s1062_s8 = inlined_call_operand.vmem [shape: bf16[2,16,128], index: 8, kind: output, shape index: {3}]   ;;  %s1063_s9 = inlined_call_operand.vmem [shape: f32[2,1,128], index: 9, kind: output, shape index: {4}]   ;;  %s1064_s10 = inlined_call_operand.vmem [shape: f32[2,1,128], index: 10, kind: output, shape index: {5}]  }
   0x1 LB: > { %s817_s14 = sadd.s32 4294967295, %s919_s13   ;;  %p821_p0 = scmp.ge.s32.totalorder %s919_s13, 1  ;;  %s919_s13 = sphi %s984_s13, %s21_s13  }
   0x2   : > { %p323_p1 = scmp.lt.s32.totalorder %s919_s13, 3 }
   0x4   : > { %p324_p2 = pnand %p821_p0, %p323_p1 }
   0x5   : > { %p378_p3 = scmp.lt.s32.totalorder (!%p324_p2), %s817_s14, 1  ;;  %s922_s19 = smov (!%p324_p2), 4  }
   0x6   : > { %327 = sbr.rel (%p324_p2) target bundleno = 322 (0x142), region = 40  ;;  %s923_s20 = smov (!%p324_p2), 12  }
   0x7   : > { %s924_s21 = smov (!%p324_p2), 20   ;;  %s925_s22 = smov (!%p324_p2), 8  }
   0x8   : > { %s926_s23 = smov (!%p324_p2), 16   ;;  %s927_s24 = smov (!%p324_p2), 24  }
   0x9   : > { %s928_s25 = smov (!%p324_p2), 28  }
   0xb   : > { %vm413_vm0 = vcmask 26624   ;;  %vm415_vm1 = vcmask 27648   ;;  %v921_v0 = vmov 0.0   ;;  %s1066_s14 = smov (!%p378_p3, %s817_s14), 1  ;;  %vm410_vm2 = vcmask 31744   ;;  %v849_v28 = vld [vmem:[%s1055_s1 + $0x8] sm:$0xff] }
   0xc   : > { %414 = vst.msk [vmem:[#allocation2] sm:$0x7] %vm413_vm0, %v921_v0  ;;  %s995_s15 = sshll.u32 %s1066_s14, 3  ;;  %v576_v25 = vld [vmem:[%s1057_s3] sm:$0x3]  ;;  %vm589_vm3 = vcmask 1041408   ;;  %546 = vmatpush.bf16.msra.mxu0 %v849_v28 }
   0xd   : > { %416 = vst.msk [vmem:[#allocation2 + $0x13] sm:$0xf] %vm415_vm1, %v921_v0  ;;  %s1001_s18 = scalar_lea.vmem %s1054_s0, %s995_s15  ;;  %v591_v26 = vsel %vm589_vm3, %v576_v25, 0  ;;  %v848_v29 = vld [vmem:[%s1055_s1] sm:$0xff]  ;;  %vm491_vm4 = vcmask 64512   ;;  %vm494_vm5 = vcmask 97280   ;;  %s387_s30 = scalar_lea.vmem %s1059_s5, %s995_s15 }
   0xe   : > { %v406_v1 = vld [vmem:[%s1001_s18] sm:$0xff]   ;;  %600 = vmatpush.bf16.msra.mxu1 %v591_v26  ;;  %vm497_vm6 = vcmask 130048   ;;  %vm500_vm7 = vcmask 162816   ;;  %vm503_vm8 = vcmask 195584   ;;  %vm506_vm9 = vcmask 228352  }
   0xf   : > { %v408_v2 = vunpack.c.l.bf16 %v406_v1  ;;  %v409_v3 = vunpack.c.h.bf16 %v406_v1  ;;  %v847_v27 = vld [vmem:[%s1001_s18] sm:$0xff]  ;;  %vm536_vm10 = vcmask 261120   ;;  %s393_s18 = scalar_lea.vmem %s1061_s7, %s1066_s14 }
  0x10   : > { %547 = vmatpush.bf16.msra.mxu0 %v848_v29 }
  0x11   : > { %411 = vst.msk [vmem:[#allocation2 + $0x3] sm:$0xff] %vm410_vm2, %v408_v2  ;;  %841 = vmatmul.msk.bf16.vlgmr.msra.gmra.mxu1 %vm410_vm2, %v847_v27 }
  0x12   : > { %412 = vst.msk [vmem:[#allocation2 + $0xb] sm:$0xff] %vm410_vm2, %v409_v3 }
  0x18   : > { %v419_v4 = vld [vmem:[#allocation2 + $0x1] sm:$0xff] }
  0x19   : > { %v423_v5 = vld [vmem:[#allocation2 + $0x3] sm:$0xff]  ;;  %v424_v7 = vld [vmem:[#allocation2 + $0xb] sm:$0xff] }
  0x1a   : > { %v420_v6 = vld [vmem:[#allocation2 + $0x9] sm:$0xff]  ;;  %v886_v9 = vpack.i.bf16 %v424_v7, %v423_v5  ;;  %v417_v35 = vld [vmem:[#allocation2] sm:$0xff] }
  0x1b   : > { %v876_v8 = vpack.i.bf16 %v420_v6, %v419_v4  ;;  %v427_v10 = vld [vmem:[#allocation2 + $0x5] sm:$0xff]  ;;  %v428_v11 = vld [vmem:[#allocation2 + $0xd] sm:$0xff] }
  0x1c   : > { %887 = vrot.lane.b32.xlu1 %v886_v9, %s923_s20  ;;  %v421_v12 = vld [vmem:[#allocation2 + $0x2] sm:$0xff]  ;;  %v896_v13 = vpack.i.bf16 %v428_v11, %v427_v10  ;;  %v422_v14 = vld [vmem:[#allocation2 + $0xa] sm:$0xff]  ;;  %v911_v9 = vld [vmem:[%s1058_s4] ss:$0 sm:$0xff] }
  0x1d   : > { %877 = vrot.lane.b32.xlu0 %v876_v8, %s922_s19  ;;  %v425_v15 = vld [vmem:[#allocation2 + $0x4] sm:$0xff]  ;;  %v426_v16 = vld [vmem:[#allocation2 + $0xc] sm:$0xff]  ;;  %v881_v19 = vpack.i.bf16 %v422_v14, %v421_v12  ;;  %s398_s19 = scalar_lea.vmem %s1062_s8, %s995_s15  ;;  %s390_s15 = scalar_lea.vmem %s1060_s6, %s1066_s14 }
  0x1e   : > { %897 = vrot.lane.b32.xlu2 %v896_v13, %s924_s21  ;;  %v429_v17 = vld [vmem:[#allocation2 + $0x6] sm:$0xff]  ;;  %v430_v18 = vld [vmem:[#allocation2 + $0xe] sm:$0xff]  ;;  %v891_v20 = vpack.i.bf16 %v426_v16, %v425_v15 }
  0x1f   : > { %v901_v21 = vpack.i.bf16 %v430_v18, %v429_v17  ;;  %v431_v22 = vld [vmem:[#allocation2 + $0x7] sm:$0xff]  ;;  %v432_v23 = vld [vmem:[#allocation2 + $0xf] sm:$0xff] }
  0x20   : > { %v906_v24 = vpack.i.bf16 %v432_v23, %v431_v22  ;;  %v418_v36 = vld [vmem:[#allocation2 + $0x8] sm:$0xff] }
  0x24   : > { %892 = vrot.lane.b32.xlu1 %v891_v20, %s926_s23 }
  0x25   : > { %882 = vrot.lane.b32.xlu0 %v881_v19, %s925_s22  ;;  %s401_s22 = scalar_lea.vmem %s1063_s9, %s1066_s14 }
  0x26   : > { %902 = vrot.lane.b32.xlu2 %v901_v21, %s927_s24 }
  0x2d   : > { %907 = vrot.lane.b32.xlu0 %v906_v24, %s928_s25  ;;  %s404_s25 = scalar_lea.vmem %s1064_s10, %s1066_s14 }
  0x78   : > { %v898_v32 = vpop.permute.xlu2 %897 }
  0x79   : > { %v900_v52 = vunpack.i.h.bf16 %v898_v32  ;;  %v899_v53 = vunpack.i.l.bf16 %v898_v32 }
  0x80   : > { %v903_v49 = vpop.permute.xlu2 %902 }
  0x81   : > { %v905_v56 = vunpack.i.h.bf16 %v903_v49  ;;  %v904_v57 = vunpack.i.l.bf16 %v903_v49 }
  0x8e   : > { %v888_v31 = vpop.permute.xlu1 %887  ;;  %v602_v8 = vpop.f32.mrf.mxu1 }
  0x8f   : > { %v878_v30 = vpop.permute.xlu0 %877  ;;  %v890_v45 = vunpack.i.h.bf16 %v888_v31  ;;  %v889_v46 = vunpack.i.l.bf16 %v888_v31  ;;  %v603_v10 = vadd.f32 %v911_v9, %v602_v8  ;;  %v912_v31 = vld [vmem:[%s1056_s2] ss:$0 sm:$0xff] }
  0x90   : > { %v880_v33 = vunpack.i.h.bf16 %v878_v30  ;;  %v879_v34 = vunpack.i.l.bf16 %v878_v30 }
  0x91   : > { %v619_v12 = vmul.f32 %v603_v10, %v603_v10 }
  0x92   : > { %v489_v43 = vsel %vm410_vm2, %v417_v35, %v879_v34  ;;  %v490_v44 = vsel %vm410_vm2, %v418_v36, %v880_v33 }
  0x96   : > { %v893_v38 = vpop.permute.xlu1 %892  ;;  %v604_v11 = vpop.f32.mrf.mxu1 }
  0x97   : > { %v883_v37 = vpop.permute.xlu0 %882  ;;  %v895_v41 = vunpack.i.h.bf16 %v893_v38  ;;  %v894_v42 = vunpack.i.l.bf16 %v893_v38  ;;  %v605_v13 = vadd.f32 %v911_v9, %v604_v11 }
  0x98   : > { %v885_v39 = vunpack.i.h.bf16 %v883_v37  ;;  %v884_v40 = vunpack.i.l.bf16 %v883_v37 }
  0x99   : > { %v858_v14 = vpack.c.bf16 %v605_v13, %v603_v10  ;;  %v611_v15 = vadd.f32 %v605_v13, %v603_v10  ;;  %v620_v16 = vmul.f32 %v605_v13, %v605_v13 }
  0x9a   : > { %v492_v47 = vsel %vm491_vm4, %v489_v43, %v884_v40  ;;  %v493_v48 = vsel %vm491_vm4, %v490_v44, %v885_v39 }
  0x9b   : > { %v495_v50 = vsel %vm494_vm5, %v492_v47, %v889_v46  ;;  %v496_v51 = vsel %vm494_vm5, %v493_v48, %v890_v45  ;;  %859 = vst [vmem:[%s398_s19] sm:$0xff] %v858_v14   ;;  %v612_v17 = vrot.slane %v611_v15, 4  ;;  %v621_v18 = vadd.f32 %v620_v16, %v619_v12 }
  0x9c   : > { %v498_v54 = vsel %vm497_vm6, %v495_v50, %v894_v42  ;;  %v499_v55 = vsel %vm497_vm6, %v496_v51, %v895_v41 }
  0x9d   : > { %v501_v58 = vsel %vm500_vm7, %v498_v54, %v899_v53  ;;  %v502_v59 = vsel %vm500_vm7, %v499_v55, %v900_v52  ;;  %v613_v19 = vadd.f32 %v612_v17, %v611_v15  ;;  %v622_v20 = vrot.slane %v621_v18, 4 }
  0x9e   : > { %v504_v63 = vsel %vm503_vm8, %v501_v58, %v904_v57  ;;  %v505_v0 = vsel %vm503_vm8, %v502_v59, %v905_v56 }
  0x9f   : > { %v908_v60 = vpop.permute.xlu0 %907  ;;  %v614_v21 = vrot.slane %v613_v19, 2  ;;  %v623_v22 = vadd.f32 %v622_v20, %v621_v18 }
  0xa0   : > { %v910_v61 = vunpack.i.h.bf16 %v908_v60  ;;  %v909_v62 = vunpack.i.l.bf16 %v908_v60 }
  0xa1   : > { %v615_v23 = vadd.f32 %v614_v21, %v613_v19  ;;  %v624_v24 = vrot.slane %v623_v22, 2 }
  0xa2   : > { %v507_v1 = vsel %vm506_vm9, %v504_v63, %v909_v62  ;;  %v508_v2 = vsel %vm506_vm9, %v505_v0, %v910_v61 }
  0xa3   : > { %v509_v3 = vpack.c.bf16 %v507_v1, %v507_v1  ;;  %v510_v4 = vpack.c.bf16 %v508_v2, %v508_v2  ;;  %v616_v25 = vrot.slane %v615_v23, 1  ;;  %v625_v26 = vadd.f32 %v624_v24, %v623_v22 }
  0xa5   : > { %v521_v5 = vunpack.c.l.b16 %v509_v3  ;;  %v522_v6 = vunpack.c.l.b16 %v510_v4  ;;  %v617_v27 = vadd.f32 %v616_v25, %v615_v23  ;;  %v626_v28 = vrot.slane %v625_v26, 1 }
  0xa7   : > { %v523_v7 = vpack.c.b16 %v522_v6, %v521_v5  ;;  %618 = vst [vmem:[%s401_s22] sm:$0x1] %v617_v27  ;;  %v627_v29 = vadd.f32 %v626_v28, %v625_v26 }
  0xa9   : > { %836 = vmatmul.msk.bf16.vlgmr.msra.gmra.mxu0 %vm536_vm10, %v523_v7  ;;  %628 = vst [vmem:[%s404_s25] sm:$0x1] %v627_v29 }
 0x126   : > { %v549_v30 = vpop.f32.mrf.mxu0 }
 0x127   : > { %v550_v32 = vadd.f32 %v912_v31, %v549_v30 }
 0x129   : > { %v566_v35 = vmul.f32 %v550_v32, %v550_v32 }
 0x12e   : > { %v551_v33 = vpop.f32.mrf.mxu0 }
 0x12f   : > { %v552_v34 = vadd.f32 %v912_v31, %v551_v33 }
 0x131   : > { %v853_v36 = vpack.c.bf16 %v552_v34, %v550_v32  ;;  %v558_v37 = vadd.f32 %v552_v34, %v550_v32  ;;  %v567_v38 = vmul.f32 %v552_v34, %v552_v34 }
 0x133   : > { %854 = vst [vmem:[%s387_s30] sm:$0xff] %v853_v36   ;;  %v559_v39 = vrot.slane %v558_v37, 4  ;;  %v568_v40 = vadd.f32 %v567_v38, %v566_v35 }
 0x135   : > { %v560_v41 = vadd.f32 %v559_v39, %v558_v37  ;;  %v569_v42 = vrot.slane %v568_v40, 4 }
 0x137   : > { %v561_v43 = vrot.slane %v560_v41, 2  ;;  %v570_v44 = vadd.f32 %v569_v42, %v568_v40 }
 0x139   : > { %v562_v45 = vadd.f32 %v561_v43, %v560_v41  ;;  %v571_v46 = vrot.slane %v570_v44, 2 }
 0x13b   : > { %v563_v47 = vrot.slane %v562_v45, 1  ;;  %v572_v48 = vadd.f32 %v571_v46, %v570_v44 }
 0x13d   : > { %v564_v49 = vadd.f32 %v563_v47, %v562_v45  ;;  %v573_v50 = vrot.slane %v572_v48, 1 }
 0x13f   : > { %565 = vst [vmem:[%s390_s15] sm:$0x1] %v564_v49  ;;  %v574_v51 = vadd.f32 %v573_v50, %v572_v48 }
 0x141   : > { %575 = vst [vmem:[%s393_s18] sm:$0x1] %v574_v51 }
 0x142 PF: > { %s21_s13 = sadd.s32 1, %s919_s13  }
 0x143   : > { %p18_p4 = scmp.ge.s32.totalorder %s21_s13, 4  }
 0x145   :  { %20 = sbr.rel (!%p18_p4) target bundleno = 1 (0x1), region = 130 }

// kernel: model_forward.8
= control target key start
LH: loop header
LB: loop body
LE: loop exit
PB: predicated region body
PF: predicated region fallthrough
CT: control target
= control target key end

     0   :  { %13 = vsyncpa [#allocation4], 0  ;;  %s1602_s24 = smov 0   ;;  %s1651_s0 = inlined_call_operand.vmem [shape: bf16[2,16,128], index: 0, kind: input, shape index: {}]   ;;  %s1652_s1 = inlined_call_operand.vmem [shape: f32[1,128], index: 1, kind: input, shape index: {}]   ;;  %s1653_s2 = inlined_call_operand.vmem [shape: f32[1,128], index: 2, kind: input, shape index: {}]   ;;  %s1654_s3 = inlined_call_operand.hbm [shape: bf16[8,128,128], index: 3, kind: input, shape index: {}]   ;;  %s1655_s4 = inlined_call_operand.vmem [shape: f32[1,128], index: 4, kind: input, shape index: {}]   ;;  %s1656_s5 = inlined_call_operand.vmem [shape: bf16[2,16,128], index: 5, kind: output, shape index: {0}]   ;;  %s1657_s6 = inlined_call_operand.vmem [shape: f32[2,1,128], index: 6, kind: output, shape index: {1}]   ;;  %s1658_s7 = inlined_call_operand.vmem [shape: f32[2,1,128], index: 7, kind: output, shape index: {2}]  }
   0x1 LB: > { %s229_s27 = sshll.u32 %s1654_s3, 4  ;;  %s1611_s28 = sadd.s32 4294967295, %s1556_s24   ;;  %s1556_s24 = sphi %s1602_s24, %s19_s24   ;;  %s230_s27 = int_to_ptr.hbm [resolvable:$true] %s229_s27 }
   0x2   : > { %p1149_p0 = scmp.ge.s32.totalorder %s1556_s24, 1  ;;  %p212_p1 = scmp.lt.s32.totalorder %s1556_s24, 3 }
   0x3   : > { %p1499_p2 = scmp.eq.s32.totalorder %s1611_s28, 0  ;;  %s1558_s29 = smov [#allocation3]  }
   0x4   : > { %p213_p3 = pnand %p1149_p0, %p212_p1  ;;  %s231_s30 = sshll.u32 %s1558_s29, 4  ;;  %s232_s30 = int_to_ptr.vmem [resolvable:$true] %s231_s30 }
   0x5   : > { %s1559_s8 = smov 64   ;;  %s1560_s9 = smov 4  }
   0x6   : > { %p1495_p4 = pneg %p213_p3  ;;  %258 = sbr.rel (%p213_p3) target bundleno = 241 (0xf1), region = 40 }
   0x8   : > { %p1496_p5 = pnand %p1499_p2, %p1495_p4 }
   0xa   : > { %1498 = dma.hbm_to_vmem [thread:$0]  (!%p1496_p5), %s230_s27, 8192, %s232_s30, [#allocation4], %s1559_s8, %s1559_s8, %s1560_s9  }
   0xb   : > { %1551 = dma.done.wait (%p1499_p2), [#allocation4], 8192  }
   0xc   : > { %1553 = vsyncadd (%p1499_p2), [#allocation4], 4294959104  ;;  %v1561_v0 = vmov 0.0   ;;  %p297_p6 = scmp.lt.s32.totalorder %s1611_s28, 1  ;;  %v1433_v1 = vld [vmem:[#allocation3 + $0x78] sm:$0xff]  ;;  %v1432_v5 = vld [vmem:[#allocation3 + $0x70] sm:$0xff] }
   0xd   : > { %333 = vst [vmem:[#allocation2] sm:$0x7] %v1561_v0  ;;  %v1425_v2 = vld [vmem:[#allocation3 + $0x38] sm:$0xff]  ;;  %422 = vmatpush.bf16.msra.mxu0 %v1433_v1  ;;  %v1424_v6 = vld [vmem:[#allocation3 + $0x30] sm:$0xff]  ;;  %v1431_v9 = vld [vmem:[#allocation3 + $0x68] sm:$0xff] }
   0xe   : > { %334 = vst [vmem:[#allocation2 + $0x13] sm:$0xf] %v1561_v0  ;;  %v1441_v3 = vld [vmem:[#allocation3 + $0xb8] sm:$0xff]  ;;  %484 = vmatpush.bf16.msra.mxu1 %v1425_v2  ;;  %v1440_v7 = vld [vmem:[#allocation3 + $0xb0] sm:$0xff]  ;;  %s1660_s28 = smov (!%p297_p6, %s1611_s28), 1  ;;  %v1423_v10 = vld [vmem:[#allocation3 + $0x28] sm:$0xff] }
   0xf   : > { %v1449_v4 = vld [vmem:[#allocation3 + $0xf8] sm:$0xff]  ;;  %566 = vmatpush.bf16.msra.mxu2 %v1441_v3  ;;  %v1448_v8 = vld [vmem:[#allocation3 + $0xf0] sm:$0xff]  ;;  %v1439_v11 = vld [vmem:[#allocation3 + $0xa8] sm:$0xff]  ;;  %s1416_s10 = sshll.u32 %s1660_s28, 3  ;;  %s309_s26 = scalar_lea.vmem %s1657_s6, %s1660_s28 }
  0x10   : > { %650 = vmatpush.bf16.msra.mxu3 %v1449_v4  ;;  %v1447_v12 = vld [vmem:[#allocation3 + $0xe8] sm:$0xff]  ;;  %v1430_v13 = vld [vmem:[#allocation3 + $0x60] sm:$0xff]  ;;  %s301_s13 = scalar_lea.vmem %s1651_s0, %s1416_s10  ;;  %v1429_v17 = vld [vmem:[#allocation3 + $0x58] sm:$0xff]  ;;  %s306_s22 = scalar_lea.vmem %s1656_s5, %s1416_s10 }
  0x11   : > { %423 = vmatpush.bf16.msra.mxu0 %v1432_v5  ;;  %v1422_v14 = vld [vmem:[#allocation3 + $0x20] sm:$0xff]  ;;  %v1421_v18 = vld [vmem:[#allocation3 + $0x18] sm:$0xff]  ;;  %v1483_v19 = vld [vmem:[%s301_s13] sm:$0xff]   ;;  %s312_s30 = scalar_lea.vmem %s1658_s7, %s1660_s28 }
  0x12   : > { %485 = vmatpush.bf16.msra.mxu1 %v1424_v6  ;;  %v1438_v15 = vld [vmem:[#allocation3 + $0xa0] sm:$0xff]  ;;  %v1484_v20 = vunpack.c.l.bf16 %v1483_v19  ;;  %v1485_v21 = vunpack.c.h.bf16 %v1483_v19  ;;  %v1513_v22 = vld [vmem:[%s1652_s1] ss:$0 sm:$0xff]  ;;  %v1437_v24 = vld [vmem:[#allocation3 + $0x98] sm:$0xff] }
  0x13   : > { %567 = vmatpush.bf16.msra.mxu2 %v1440_v7  ;;  %v1446_v16 = vld [vmem:[#allocation3 + $0xe0] sm:$0xff]  ;;  %v1514_v23 = vld [vmem:[%s1653_s2] ss:$0 sm:$0xff]  ;;  %v1445_v25 = vld [vmem:[#allocation3 + $0xd8] sm:$0xff] }
  0x14   : > { %651 = vmatpush.bf16.msra.mxu3 %v1448_v8  ;;  %v321_v26 = vmul.f32 %v1513_v22, %v1484_v20  ;;  %v322_v27 = vmul.f32 %v1513_v22, %v1485_v21  ;;  %v1428_v28 = vld [vmem:[#allocation3 + $0x50] sm:$0xff]  ;;  %v1427_v36 = vld [vmem:[#allocation3 + $0x48] sm:$0xff]  ;;  %v1426_v40 = vld [vmem:[#allocation3 + $0x40] sm:$0xff] }
  0x15   : > { %424 = vmatpush.bf16.msra.mxu0 %v1431_v9  ;;  %v1420_v29 = vld [vmem:[#allocation3 + $0x10] sm:$0xff]  ;;  %v1419_v37 = vld [vmem:[#allocation3 + $0x8] sm:$0xff]  ;;  %v1418_v41 = vld [vmem:[#allocation3] sm:$0xff] }
  0x16   : > { %486 = vmatpush.bf16.msra.mxu1 %v1423_v10  ;;  %v327_v30 = vadd.f32 %v1514_v23, %v321_v26  ;;  %v328_v31 = vadd.f32 %v1514_v23, %v322_v27  ;;  %v1436_v32 = vld [vmem:[#allocation3 + $0x90] sm:$0xff]  ;;  %v1435_v38 = vld [vmem:[#allocation3 + $0x88] sm:$0xff]  ;;  %v1434_v42 = vld [vmem:[#allocation3 + $0x80] sm:$0xff] }
  0x17   : > { %568 = vmatpush.bf16.msra.mxu2 %v1439_v11  ;;  %v1444_v33 = vld [vmem:[#allocation3 + $0xd0] sm:$0xff]  ;;  %v1443_v39 = vld [vmem:[#allocation3 + $0xc8] sm:$0xff]  ;;  %v1442_v43 = vld [vmem:[#allocation3 + $0xc0] sm:$0xff] }
  0x18   : > { %652 = vmatpush.bf16.msra.mxu3 %v1447_v12  ;;  %v329_v34 = vmax.f32 %v327_v30, 0.0  ;;  %v330_v35 = vmax.f32 %v328_v31, 0.0  ;;  %v1457_v44 = vld [vmem:[#allocation3 + $0x138] sm:$0xff]  ;;  %v1456_v58 = vld [vmem:[#allocation3 + $0x130] sm:$0xff]  ;;  %v1455_v62 = vld [vmem:[#allocation3 + $0x128] sm:$0xff] }
  0x19   : > { %425 = vmatpush.bf16.msra.mxu0 %v1430_v13  ;;  %v1465_v45 = vld [vmem:[#allocation3 + $0x178] sm:$0xff]  ;;  %v1464_v59 = vld [vmem:[#allocation3 + $0x170] sm:$0xff]  ;;  %v1463_v63 = vld [vmem:[#allocation3 + $0x168] sm:$0xff] }
  0x1a   : > { %487 = vmatpush.bf16.msra.mxu1 %v1422_v14  ;;  %331 = vst [vmem:[#allocation2 + $0x3] sm:$0xff] %v329_v34  ;;  %v1473_v46 = vld [vmem:[#allocation3 + $0x1b8] sm:$0xff]  ;;  %v584_v52 = vpack.c.bf16 %v330_v35, %v329_v34  ;;  %v1472_v60 = vld [vmem:[#allocation3 + $0x1b0] sm:$0xff]  ;;  %v1471_v0 = vld [vmem:[#allocation3 + $0x1a8] sm:$0xff] }
  0x1b   : > { %569 = vmatpush.bf16.msra.mxu2 %v1438_v15  ;;  %332 = vst [vmem:[#allocation2 + $0xb] sm:$0xff] %v330_v35  ;;  %v1481_v47 = vld [vmem:[#allocation3 + $0x1f8] sm:$0xff]  ;;  %v1480_v61 = vld [vmem:[#allocation3 + $0x1f0] sm:$0xff]  ;;  %v1479_v1 = vld [vmem:[#allocation3 + $0x1e8] sm:$0xff] }
  0x1c   : > { %653 = vmatpush.bf16.msra.mxu3 %v1446_v16  ;;  %v1454_v2 = vld [vmem:[#allocation3 + $0x120] sm:$0xff]  ;;  %v1453_v6 = vld [vmem:[#allocation3 + $0x118] sm:$0xff]  ;;  %v1452_v10 = vld [vmem:[#allocation3 + $0x110] sm:$0xff] }
  0x1d   : > { %426 = vmatpush.bf16.msra.mxu0 %v1429_v17  ;;  %v1462_v3 = vld [vmem:[#allocation3 + $0x160] sm:$0xff]  ;;  %v1461_v7 = vld [vmem:[#allocation3 + $0x158] sm:$0xff]  ;;  %v1460_v11 = vld [vmem:[#allocation3 + $0x150] sm:$0xff] }
  0x1e   : > { %488 = vmatpush.bf16.msra.mxu1 %v1421_v18  ;;  %v1470_v4 = vld [vmem:[#allocation3 + $0x1a0] sm:$0xff]  ;;  %v1469_v8 = vld [vmem:[#allocation3 + $0x198] sm:$0xff]  ;;  %v1468_v12 = vld [vmem:[#allocation3 + $0x190] sm:$0xff] }
  0x1f   : > { %570 = vmatpush.bf16.msra.mxu2 %v1437_v24  ;;  %v1478_v5 = vld [vmem:[#allocation3 + $0x1e0] sm:$0xff]  ;;  %v1477_v9 = vld [vmem:[#allocation3 + $0x1d8] sm:$0xff]  ;;  %v1476_v13 = vld [vmem:[#allocation3 + $0x1d0] sm:$0xff] }
  0x20   : > { %654 = vmatpush.bf16.msra.mxu3 %v1445_v25  ;;  %v1451_v14 = vld [vmem:[#allocation3 + $0x108] sm:$0xff]  ;;  %v1450_v18 = vld [vmem:[#allocation3 + $0x100] sm:$0xff] }
  0x21   : > { %427 = vmatpush.bf16.msra.mxu0 %v1428_v28  ;;  %v498_v48 = vld [vmem:[#allocation2 + $0x2] sm:$0xff]  ;;  %v1458_v19 = vld [vmem:[#allocation3 + $0x140] sm:$0xff] }
  0x22   : > { %489 = vmatpush.bf16.msra.mxu1 %v1420_v29  ;;  %v354_v49 = vld [vmem:[#allocation2 + $0x1] sm:$0xff]  ;;  %v499_v51 = vld [vmem:[#allocation2 + $0xa] sm:$0xff]  ;;  %v1466_v20 = vld [vmem:[#allocation3 + $0x180] sm:$0xff] }
  0x23   : > { %571 = vmatpush.bf16.msra.mxu2 %v1436_v32  ;;  %v335_v50 = vld [vmem:[#allocation2] sm:$0xff]  ;;  %v355_v53 = vld [vmem:[#allocation2 + $0x9] sm:$0xff]  ;;  %v500_v55 = vpack.c.bf16 %v499_v51, %v498_v48  ;;  %v1474_v21 = vld [vmem:[#allocation3 + $0x1c0] sm:$0xff] }
  0x24   : > { %655 = vmatpush.bf16.msra.mxu3 %v1444_v33  ;;  %v336_v54 = vld [vmem:[#allocation2 + $0x8] sm:$0xff]  ;;  %v356_v56 = vpack.c.bf16 %v355_v53, %v354_v49  ;;  %v1459_v15 = vld [vmem:[#allocation3 + $0x148] sm:$0xff] }
  0x25   : > { %428 = vmatpush.bf16.msra.mxu0 %v1427_v36  ;;  %v337_v57 = vpack.c.bf16 %v336_v54, %v335_v50  ;;  %v1467_v16 = vld [vmem:[#allocation3 + $0x188] sm:$0xff]  ;;  %v667_v23 = vld [vmem:[#allocation2 + $0xc] sm:$0xff] }
  0x26   : > { %490 = vmatpush.bf16.msra.mxu1 %v1419_v37  ;;  %v1475_v17 = vld [vmem:[#allocation3 + $0x1c8] sm:$0xff]  ;;  %v751_v25 = vld [vmem:[#allocation2 + $0xd] sm:$0xff] }
  0x27   : > { %572 = vmatpush.bf16.msra.mxu2 %v1435_v38  ;;  %v666_v22 = vld [vmem:[#allocation2 + $0x4] sm:$0xff]  ;;  %v835_v27 = vld [vmem:[#allocation2 + $0xe] sm:$0xff] }
  0x28   : > { %656 = vmatpush.bf16.msra.mxu3 %v1443_v39  ;;  %v750_v24 = vld [vmem:[#allocation2 + $0x5] sm:$0xff]  ;;  %v919_v29 = vld [vmem:[#allocation2 + $0xf] sm:$0xff]  ;;  %v668_v30 = vpack.c.bf16 %v667_v23, %v666_v22 }
  0x29   : > { %429 = vmatpush.bf16.msra.mxu0 %v1426_v40  ;;  %v834_v26 = vld [vmem:[#allocation2 + $0x6] sm:$0xff]  ;;  %v752_v31 = vpack.c.bf16 %v751_v25, %v750_v24 }
  0x2a   : > { %491 = vmatpush.bf16.msra.mxu1 %v1418_v41  ;;  %v918_v28 = vld [vmem:[#allocation2 + $0x7] sm:$0xff]  ;;  %v836_v32 = vpack.c.bf16 %v835_v27, %v834_v26 }
  0x2b   : > { %573 = vmatpush.bf16.msra.mxu2 %v1434_v42  ;;  %v920_v33 = vpack.c.bf16 %v919_v29, %v918_v28 }
  0x2c   : > { %657 = vmatpush.bf16.msra.mxu3 %v1442_v43  ;;  %430 = vmatmul.bf16.vlgmr.msra.gmra.mxu0 %v356_v56 }
  0x2d   : > { %734 = vmatpush.bf16.msrb.mxu0 %v1457_v44  ;;  %492 = vmatmul.bf16.vlgmr.msra.gmra.mxu1 %v337_v57 }
  0x2e   : > { %818 = vmatpush.bf16.msrb.mxu1 %v1465_v45  ;;  %574 = vmatmul.bf16.vlgmr.msra.gmra.mxu2 %v500_v55 }
  0x2f   : > { %902 = vmatpush.bf16.msrb.mxu2 %v1473_v46  ;;  %658 = vmatmul.bf16.vlgmr.msra.gmra.mxu3 %v584_v52 }
  0x30   : > { %986 = vmatpush.bf16.msrb.mxu3 %v1481_v47 }
  0x31   : > { %735 = vmatpush.bf16.msrb.mxu0 %v1456_v58 }
  0x32   : > { %819 = vmatpush.bf16.msrb.mxu1 %v1464_v59  ;;  %v1515_v59 = vld [vmem:[%s1655_s4] ss:$0 sm:$0xff] }
  0x33   : > { %903 = vmatpush.bf16.msrb.mxu2 %v1472_v60 }
  0x34   : > { %987 = vmatpush.bf16.msrb.mxu3 %v1480_v61 }
  0x35   : > { %736 = vmatpush.bf16.msrb.mxu0 %v1455_v62 }
  0x36   : > { %820 = vmatpush.bf16.msrb.mxu1 %v1463_v63 }
  0x37   : > { %904 = vmatpush.bf16.msrb.mxu2 %v1471_v0 }
  0x38   : > { %988 = vmatpush.bf16.msrb.mxu3 %v1479_v1 }
  0x39   : > { %737 = vmatpush.bf16.msrb.mxu0 %v1454_v2 }
  0x3a   : > { %821 = vmatpush.bf16.msrb.mxu1 %v1462_v3 }
  0x3b   : > { %905 = vmatpush.bf16.msrb.mxu2 %v1470_v4 }
  0x3c   : > { %989 = vmatpush.bf16.msrb.mxu3 %v1478_v5 }
  0x3d   : > { %738 = vmatpush.bf16.msrb.mxu0 %v1453_v6 }
  0x3e   : > { %822 = vmatpush.bf16.msrb.mxu1 %v1461_v7 }
  0x3f   : > { %906 = vmatpush.bf16.msrb.mxu2 %v1469_v8 }
  0x40   : > { %990 = vmatpush.bf16.msrb.mxu3 %v1477_v9 }
  0x41   : > { %739 = vmatpush.bf16.msrb.mxu0 %v1452_v10 }
  0x42   : > { %823 = vmatpush.bf16.msrb.mxu1 %v1460_v11 }
  0x43   : > { %907 = vmatpush.bf16.msrb.mxu2 %v1468_v12 }
  0x44   : > { %991 = vmatpush.bf16.msrb.mxu3 %v1476_v13 }
  0x45   : > { %740 = vmatpush.bf16.msrb.mxu0 %v1451_v14 }
  0x46   : > { %824 = vmatpush.bf16.msrb.mxu1 %v1459_v15 }
  0x47   : > { %908 = vmatpush.bf16.msrb.mxu2 %v1467_v16 }
  0x48   : > { %992 = vmatpush.bf16.msrb.mxu3 %v1475_v17 }
  0x49   : > { %741 = vmatpush.bf16.msrb.mxu0 %v1450_v18 }
  0x4a   : > { %825 = vmatpush.bf16.msrb.mxu1 %v1458_v19 }
  0x4b   : > { %909 = vmatpush.bf16.msrb.mxu2 %v1466_v20 }
  0x4c   : > { %993 = vmatpush.bf16.msrb.mxu3 %v1474_v21  ;;  %742 = vmatmul.bf16.vlgmr.msrb.gmra.mxu0 %v668_v30 }
  0x4d   : > { %826 = vmatmul.bf16.vlgmr.msrb.gmra.mxu1 %v752_v31 }
  0x4e   : > { %910 = vmatmul.bf16.vlgmr.msrb.gmra.mxu2 %v836_v32 }
  0x4f   : > { %994 = vmatmul.bf16.vlgmr.msrb.gmra.mxu3 %v920_v33 }
  0xa9   : > { %v431_v34 = vpop.f32.mrf.mxu0 }
  0xaa   : > { %v493_v35 = vpop.f32.mrf.mxu1 }
  0xab   : > { %v494_v39 = vadd.f32 %v493_v35, %v431_v34 }
  0xb1   : > { %v575_v36 = vpop.f32.mrf.mxu2  ;;  %v433_v38 = vpop.f32.mrf.mxu0 }
  0xb2   : > { %v659_v37 = vpop.f32.mrf.mxu3  ;;  %v495_v40 = vpop.f32.mrf.mxu1  ;;  %v580_v41 = vadd.f32 %v575_v36, %v494_v39 }
  0xb3   : > { %v496_v44 = vadd.f32 %v495_v40, %v433_v38 }
  0xb4   : > { %v664_v46 = vadd.f32 %v659_v37, %v580_v41 }
  0xb9   : > { %v577_v42 = vpop.f32.mrf.mxu2 }
  0xba   : > { %v661_v43 = vpop.f32.mrf.mxu3  ;;  %v581_v48 = vadd.f32 %v577_v42, %v496_v44 }
  0xbc   : > { %v665_v52 = vadd.f32 %v661_v43, %v581_v48 }
  0xc9   : > { %v743_v45 = vpop.f32.mrf.mxu0 }
  0xca   : > { %v827_v47 = vpop.f32.mrf.mxu1  ;;  %v748_v49 = vadd.f32 %v743_v45, %v664_v46 }
  0xcc   : > { %v832_v53 = vadd.f32 %v827_v47, %v748_v49 }
  0xd1   : > { %v911_v50 = vpop.f32.mrf.mxu2  ;;  %v745_v54 = vpop.f32.mrf.mxu0 }
  0xd2   : > { %v995_v51 = vpop.f32.mrf.mxu3  ;;  %v916_v55 = vadd.f32 %v911_v50, %v832_v53  ;;  %v749_v56 = vadd.f32 %v745_v54, %v665_v52  ;;  %v829_v57 = vpop.f32.mrf.mxu1 }
  0xd4   : > { %v1000_v58 = vadd.f32 %v995_v51, %v916_v55  ;;  %v833_v60 = vadd.f32 %v829_v57, %v749_v56 }
  0xd6   : > { %v1006_v0 = vadd.f32 %v1515_v59, %v1000_v58 }
  0xd8   : > { %v1019_v3 = vmul.f32 %v1006_v0, %v1006_v0 }
  0xd9   : > { %v913_v61 = vpop.f32.mrf.mxu2 }
  0xda   : > { %v917_v62 = vadd.f32 %v913_v61, %v833_v60  ;;  %v997_v63 = vpop.f32.mrf.mxu3 }
  0xdc   : > { %v1001_v1 = vadd.f32 %v997_v63, %v917_v62 }
  0xde   : > { %v1007_v2 = vadd.f32 %v1515_v59, %v1001_v1 }
  0xe0   : > { %v1489_v4 = vpack.c.bf16 %v1007_v2, %v1006_v0  ;;  %v1012_v5 = vadd.f32 %v1007_v2, %v1006_v0  ;;  %v1020_v6 = vmul.f32 %v1007_v2, %v1007_v2 }
  0xe2   : > { %1490 = vst [vmem:[%s306_s22] sm:$0xff] %v1489_v4   ;;  %v1013_v7 = vrot.slane %v1012_v5, 4  ;;  %v1021_v8 = vadd.f32 %v1020_v6, %v1019_v3 }
  0xe4   : > { %v1014_v9 = vadd.f32 %v1013_v7, %v1012_v5  ;;  %v1022_v10 = vrot.slane %v1021_v8, 4 }
  0xe6   : > { %v1015_v11 = vrot.slane %v1014_v9, 2  ;;  %v1023_v12 = vadd.f32 %v1022_v10, %v1021_v8 }
  0xe8   : > { %v1016_v13 = vadd.f32 %v1015_v11, %v1014_v9  ;;  %v1024_v14 = vrot.slane %v1023_v12, 2 }
  0xea   : > { %v1017_v15 = vrot.slane %v1016_v13, 1  ;;  %v1025_v16 = vadd.f32 %v1024_v14, %v1023_v12 }
  0xec   : > { %v1018_v17 = vadd.f32 %v1017_v15, %v1016_v13  ;;  %v1026_v18 = vrot.slane %v1025_v16, 1 }
  0xee   : > { %v1027_v19 = vadd.f32 %v1026_v18, %v1025_v16  ;;  %1028 = vst [vmem:[%s309_s26] sm:$0x1] %v1018_v17 }
  0xf0   : > { %1029 = vst [vmem:[%s312_s30] sm:$0x1] %v1027_v19 }
  0xf1 PF: > { %s19_s24 = sadd.s32 1, %s1556_s24  }
  0xf2   : > { %p16_p7 = scmp.ge.s32.totalorder %s19_s24, 4  }
  0xf4   :  { %18 = sbr.rel (!%p16_p7) target bundleno = 1 (0x1), region = 106 }
  0xf9   :  { %1075 = vsyncpa [#allocation4], 1 }
  0xfa   :  { %1077 = vsyncpa [#allocation4 + $0x1], 1 }

// kernel: model_forward.10
= control target key start
LH: loop header
LB: loop body
LE: loop exit
PB: predicated region body
PF: predicated region fallthrough
CT: control target
= control target key end

     0   :  { %13 = vsyncpa [#allocation4], 0  ;;  %s2876_s24 = smov 0   ;;  %s2948_s0 = inlined_call_operand.vmem [shape: bf16[2,16,256], index: 0, kind: input, shape index: {}]   ;;  %s2949_s1 = inlined_call_operand.vmem [shape: f32[1,256], index: 1, kind: input, shape index: {}]   ;;  %s2950_s2 = inlined_call_operand.vmem [shape: f32[1,256], index: 2, kind: input, shape index: {}]   ;;  %s2951_s3 = inlined_call_operand.hbm [shape: bf16[5,256,256], index: 3, kind: input, shape index: {}]   ;;  %s2952_s4 = inlined_call_operand.vmem [shape: f32[1,256], index: 4, kind: input, shape index: {}]   ;;  %s2953_s5 = inlined_call_operand.vmem [shape: bf16[2,16,256], index: 5, kind: output, shape index: {0}]   ;;  %s2954_s6 = inlined_call_operand.vmem [shape: f32[2,1,256], index: 6, kind: output, shape index: {1}]   ;;  %s2955_s7 = inlined_call_operand.vmem [shape: f32[2,1,256], index: 7, kind: output, shape index: {2}]  }
   0x1 LB: > { %s229_s27 = sshll.u32 %s2951_s3, 4  ;;  %s2885_s28 = sadd.s32 4294967295, %s2830_s24   ;;  %s2830_s24 = sphi %s2876_s24, %s19_s24   ;;  %s230_s27 = int_to_ptr.hbm [resolvable:$true] %s229_s27 }
   0x2   : > { %p1952_p0 = scmp.ge.s32.totalorder %s2830_s24, 1  ;;  %p212_p1 = scmp.lt.s32.totalorder %s2830_s24, 3 }
   0x3   : > { %p2775_p2 = scmp.eq.s32.totalorder %s2885_s28, 0  ;;  %s2832_s29 = smov [#allocation3]  }
   0x4   : > { %p213_p3 = pnand %p1952_p0, %p212_p1  ;;  %s231_s30 = sshll.u32 %s2832_s29, 4  ;;  %s232_s30 = int_to_ptr.vmem [resolvable:$true] %s231_s30 }
   0x5   : > { %s2833_s8 = smov 128   ;;  %s2834_s9 = smov 8  }
   0x6   : > { %p2771_p4 = pneg %p213_p3  ;;  %258 = sbr.rel (%p213_p3) target bundleno = 343 (0x157), region = 40 }
   0x8   : > { %p2772_p5 = pnand %p2775_p2, %p2771_p4 }
   0xa   : > { %2774 = dma.hbm_to_vmem [thread:$0]  (!%p2772_p5), %s230_s27, 20480, %s232_s30, [#allocation4], %s2833_s8, %s2833_s8, %s2834_s9  }
   0xb   : > { %2825 = dma.done.wait (%p2775_p2), [#allocation4], 20480  }
   0xc   : > { %2827 = vsyncadd (%p2775_p2), [#allocation4], 4294946816  ;;  %v2021_v0 = vld [vmem:[#allocation3 + $0x170] sm:$0xf]  ;;  %v2654_v1 = vld [vmem:[#allocation3 + $0x174] sm:$0xf0] }
   0xd   : > { %v2085_v2 = vld [vmem:[#allocation3 + $0x1f0] sm:$0xf]  ;;  %v2022_v3 = vor.u32 %v2654_v1, %v2021_v0  ;;  %v2670_v4 = vld [vmem:[#allocation3 + $0x1f4] sm:$0xf0]  ;;  %v2653_v5 = vld [vmem:[#allocation3 + $0x174] sm:$0xf] }
   0xe   : > { %v2023_v6 = vld [vmem:[#allocation3 + $0x178] sm:$0xf0]  ;;  %v2086_v7 = vor.u32 %v2670_v4, %v2085_v2  ;;  %v2669_v9 = vld [vmem:[#allocation3 + $0x1f4] sm:$0xf]  ;;  %v2013_v11 = vld [vmem:[#allocation3 + $0x160] sm:$0xf] }
   0xf   : > { %v2026_v8 = vor.u32 %v2653_v5, %v2023_v6  ;;  %v2087_v10 = vld [vmem:[#allocation3 + $0x1f8] sm:$0xf0]  ;;  %640 = vmatpush.bf16.msra.mxu0 %v2022_v3  ;;  %v2652_v13 = vld [vmem:[#allocation3 + $0x164] sm:$0xf0]  ;;  %v2077_v14 = vld [vmem:[#allocation3 + $0x1e0] sm:$0xf] }
  0x10   : > { %v2090_v12 = vor.u32 %v2669_v9, %v2087_v10  ;;  %v2668_v15 = vld [vmem:[#allocation3 + $0x1e4] sm:$0xf0]  ;;  %654 = vmatpush.bf16.msra.mxu1 %v2086_v7  ;;  %v2014_v16 = vor.u32 %v2652_v13, %v2013_v11  ;;  %v2651_v18 = vld [vmem:[#allocation3 + $0x164] sm:$0xf]  ;;  %v2015_v19 = vld [vmem:[#allocation3 + $0x168] sm:$0xf0] }
  0x11   : > { %668 = vmatpush.bf16.msra.mxu2 %v2026_v8  ;;  %v2078_v17 = vor.u32 %v2668_v15, %v2077_v14  ;;  %v2667_v20 = vld [vmem:[#allocation3 + $0x1e4] sm:$0xf]  ;;  %v2018_v21 = vor.u32 %v2651_v18, %v2015_v19  ;;  %v2079_v22 = vld [vmem:[#allocation3 + $0x1e8] sm:$0xf0]  ;;  %v2005_v23 = vld [vmem:[#allocation3 + $0x150] sm:$0xf] }
  0x12   : > { %682 = vmatpush.bf16.msra.mxu3 %v2090_v12  ;;  %v2650_v24 = vld [vmem:[#allocation3 + $0x154] sm:$0xf0]  ;;  %v2082_v25 = vor.u32 %v2667_v20, %v2079_v22  ;;  %v2069_v26 = vld [vmem:[#allocation3 + $0x1d0] sm:$0xf]  ;;  %v2649_v28 = vld [vmem:[#allocation3 + $0x154] sm:$0xf] }
  0x13   : > { %v2666_v27 = vld [vmem:[#allocation3 + $0x1d4] sm:$0xf0]  ;;  %641 = vmatpush.bf16.msra.mxu0 %v2014_v16  ;;  %v2006_v29 = vor.u32 %v2650_v24, %v2005_v23  ;;  %v2007_v30 = vld [vmem:[#allocation3 + $0x158] sm:$0xf0]  ;;  %v2665_v31 = vld [vmem:[#allocation3 + $0x1d4] sm:$0xf] }
  0x14   : > { %v2071_v32 = vld [vmem:[#allocation3 + $0x1d8] sm:$0xf0]  ;;  %655 = vmatpush.bf16.msra.mxu1 %v2078_v17  ;;  %v2070_v33 = vor.u32 %v2666_v27, %v2069_v26  ;;  %v2010_v34 = vor.u32 %v2649_v28, %v2007_v30  ;;  %v1997_v35 = vld [vmem:[#allocation3 + $0x140] sm:$0xf]  ;;  %v2648_v36 = vld [vmem:[#allocation3 + $0x144] sm:$0xf0] }
  0x15   : > { %669 = vmatpush.bf16.msra.mxu2 %v2018_v21  ;;  %v2061_v37 = vld [vmem:[#allocation3 + $0x1c0] sm:$0xf]  ;;  %v2074_v38 = vor.u32 %v2665_v31, %v2071_v32  ;;  %v2664_v39 = vld [vmem:[#allocation3 + $0x1c4] sm:$0xf0]  ;;  %v2647_v40 = vld [vmem:[#allocation3 + $0x144] sm:$0xf]  ;;  %v1998_v44 = vor.u32 %v2648_v36, %v1997_v35 }
  0x16   : > { %683 = vmatpush.bf16.msra.mxu3 %v2082_v25  ;;  %v1999_v41 = vld [vmem:[#allocation3 + $0x148] sm:$0xf0]  ;;  %v2663_v42 = vld [vmem:[#allocation3 + $0x1c4] sm:$0xf]  ;;  %v2062_v45 = vor.u32 %v2664_v39, %v2061_v37  ;;  %v1989_v47 = vld [vmem:[#allocation3 + $0x130] sm:$0xf] }
  0x17   : > { %v2063_v43 = vld [vmem:[#allocation3 + $0x1c8] sm:$0xf0]  ;;  %642 = vmatpush.bf16.msra.mxu0 %v2006_v29  ;;  %v2002_v46 = vor.u32 %v2647_v40, %v1999_v41  ;;  %v2646_v48 = vld [vmem:[#allocation3 + $0x134] sm:$0xf0]  ;;  %v2053_v49 = vld [vmem:[#allocation3 + $0x1b0] sm:$0xf] }
  0x18   : > { %656 = vmatpush.bf16.msra.mxu1 %v2070_v33  ;;  %v2066_v50 = vor.u32 %v2663_v42, %v2063_v43  ;;  %v2662_v51 = vld [vmem:[#allocation3 + $0x1b4] sm:$0xf0]  ;;  %v2645_v52 = vld [vmem:[#allocation3 + $0x134] sm:$0xf]  ;;  %v1991_v53 = vld [vmem:[#allocation3 + $0x138] sm:$0xf0]  ;;  %v1990_v56 = vor.u32 %v2646_v48, %v1989_v47 }
  0x19   : > { %670 = vmatpush.bf16.msra.mxu2 %v2010_v34  ;;  %v2661_v54 = vld [vmem:[#allocation3 + $0x1b4] sm:$0xf]  ;;  %v2055_v55 = vld [vmem:[#allocation3 + $0x1b8] sm:$0xf0]  ;;  %p299_p6 = scmp.lt.s32.totalorder %s2885_s28, 1  ;;  %v2054_v57 = vor.u32 %v2662_v51, %v2053_v49  ;;  %v1994_v58 = vor.u32 %v2645_v52, %v1991_v53  ;;  %vm351_vm0 = vcmask 1041408  }
  0x1a   : > { %684 = vmatpush.bf16.msra.mxu3 %v2074_v38  ;;  %v1981_v59 = vld [vmem:[#allocation3 + $0x120] sm:$0xf]  ;;  %v2644_v60 = vld [vmem:[#allocation3 + $0x124] sm:$0xf0]  ;;  %v2058_v62 = vor.u32 %v2661_v54, %v2055_v55  ;;  %v2643_v0 = vld [vmem:[#allocation3 + $0x124] sm:$0xf] }
  0x1b   : > { %643 = vmatpush.bf16.msra.mxu0 %v1998_v44  ;;  %v2045_v61 = vld [vmem:[#allocation3 + $0x1a0] sm:$0xf]  ;;  %v2660_v63 = vld [vmem:[#allocation3 + $0x1a4] sm:$0xf0]  ;;  %v1983_v1 = vld [vmem:[#allocation3 + $0x128] sm:$0xf0]  ;;  %v1982_v4 = vor.u32 %v2644_v60, %v1981_v59 }
  0x1c   : > { %657 = vmatpush.bf16.msra.mxu1 %v2062_v45  ;;  %v2659_v2 = vld [vmem:[#allocation3 + $0x1a4] sm:$0xf]  ;;  %v2047_v3 = vld [vmem:[#allocation3 + $0x1a8] sm:$0xf0]  ;;  %s2957_s28 = smov (!%p299_p6, %s2885_s28), 1  ;;  %v2046_v5 = vor.u32 %v2660_v63, %v2045_v61  ;;  %v1986_v6 = vor.u32 %v2643_v0, %v1983_v1  ;;  %v2835_v0 = vmov 0.0  }
  0x1d   : > { %671 = vmatpush.bf16.msra.mxu2 %v2002_v46  ;;  %v1973_v7 = vld [vmem:[#allocation3 + $0x110] sm:$0xf]  ;;  %v2642_v8 = vld [vmem:[#allocation3 + $0x114] sm:$0xf0]  ;;  %v2050_v10 = vor.u32 %v2659_v2, %v2047_v3  ;;  %v2641_v12 = vld [vmem:[#allocation3 + $0x114] sm:$0xf] }
  0x1e   : > { %685 = vmatpush.bf16.msra.mxu3 %v2066_v50  ;;  %v2037_v9 = vld [vmem:[#allocation3 + $0x190] sm:$0xf]  ;;  %v2658_v11 = vld [vmem:[#allocation3 + $0x194] sm:$0xf0]  ;;  %v1975_v13 = vld [vmem:[#allocation3 + $0x118] sm:$0xf0]  ;;  %v1974_v16 = vor.u32 %v2642_v8, %v1973_v7 }
  0x1f   : > { %644 = vmatpush.bf16.msra.mxu0 %v1990_v56  ;;  %v2657_v14 = vld [vmem:[#allocation3 + $0x194] sm:$0xf]  ;;  %v2039_v15 = vld [vmem:[#allocation3 + $0x198] sm:$0xf0]  ;;  %v1965_v17 = vld [vmem:[#allocation3 + $0x100] sm:$0xf]  ;;  %v2038_v19 = vor.u32 %v2658_v11, %v2037_v9  ;;  %v1978_v20 = vor.u32 %v2641_v12, %v1975_v13 }
  0x20   : > { %658 = vmatpush.bf16.msra.mxu1 %v2054_v57  ;;  %v2640_v18 = vld [vmem:[#allocation3 + $0x104] sm:$0xf0]  ;;  %s2605_s10 = sshll.u32 %s2957_s28, 4  ;;  %v2029_v21 = vld [vmem:[#allocation3 + $0x180] sm:$0xf]  ;;  %v2042_v24 = vor.u32 %v2657_v14, %v2039_v15  ;;  %vm957_vm2 = vcmask 1046528  }
  0x21   : > { %672 = vmatpush.bf16.msra.mxu2 %v1994_v58  ;;  %v2656_v22 = vld [vmem:[#allocation3 + $0x184] sm:$0xf0]  ;;  %v2639_v23 = vld [vmem:[#allocation3 + $0x104] sm:$0xf]  ;;  %v1967_v25 = vld [vmem:[#allocation3 + $0x108] sm:$0xf0]  ;;  %v1966_v31 = vor.u32 %v2640_v18, %v1965_v17  ;;  %s303_s13 = scalar_lea.vmem %s2948_s0, %s2605_s10  ;;  %s308_s22 = scalar_lea.vmem %s2953_s5, %s2605_s10 }
  0x22   : > { %686 = vmatpush.bf16.msra.mxu3 %v2058_v62  ;;  %v2655_v26 = vld [vmem:[#allocation3 + $0x184] sm:$0xf]  ;;  %v2031_v27 = vld [vmem:[#allocation3 + $0x188] sm:$0xf0]  ;;  %v2149_v28 = vld [vmem:[#allocation3 + $0x70] sm:$0xf]  ;;  %v2030_v35 = vor.u32 %v2656_v22, %v2029_v21  ;;  %v1970_v36 = vor.u32 %v2639_v23, %v1967_v25 }
  0x23   : > { %645 = vmatpush.bf16.msra.mxu0 %v1982_v4  ;;  %v2622_v29 = vld [vmem:[#allocation3 + $0x74] sm:$0xf0]  ;;  %v2213_v30 = vld [vmem:[#allocation3 + $0xf0] sm:$0xf]  ;;  %v2621_v33 = vld [vmem:[#allocation3 + $0x74] sm:$0xf]  ;;  %v2034_v40 = vor.u32 %v2655_v26, %v2031_v27 }
  0x24   : > { %659 = vmatpush.bf16.msra.mxu1 %v2046_v5  ;;  %v2638_v32 = vld [vmem:[#allocation3 + $0xf4] sm:$0xf0]  ;;  %v2151_v34 = vld [vmem:[#allocation3 + $0x78] sm:$0xf0]  ;;  %v2637_v37 = vld [vmem:[#allocation3 + $0xf4] sm:$0xf]  ;;  %v2150_v41 = vor.u32 %v2622_v29, %v2149_v28 }
  0x25   : > { %673 = vmatpush.bf16.msra.mxu2 %v1986_v6  ;;  %v2215_v38 = vld [vmem:[#allocation3 + $0xf8] sm:$0xf0]  ;;  %v2141_v39 = vld [vmem:[#allocation3 + $0x60] sm:$0xf]  ;;  %v2620_v42 = vld [vmem:[#allocation3 + $0x64] sm:$0xf0]  ;;  %v2214_v45 = vor.u32 %v2638_v32, %v2213_v30  ;;  %v2154_v46 = vor.u32 %v2621_v33, %v2151_v34 }
  0x26   : > { %687 = vmatpush.bf16.msra.mxu3 %v2050_v10  ;;  %v2205_v43 = vld [vmem:[#allocation3 + $0xe0] sm:$0xf]  ;;  %v2636_v44 = vld [vmem:[#allocation3 + $0xe4] sm:$0xf0]  ;;  %v2619_v47 = vld [vmem:[#allocation3 + $0x64] sm:$0xf]  ;;  %v2218_v48 = vor.u32 %v2637_v37, %v2215_v38  ;;  %v2142_v52 = vor.u32 %v2620_v42, %v2141_v39 }
  0x27   : > { %646 = vmatpush.bf16.msra.mxu0 %v1974_v16  ;;  %v2143_v49 = vld [vmem:[#allocation3 + $0x68] sm:$0xf0]  ;;  %v2635_v50 = vld [vmem:[#allocation3 + $0xe4] sm:$0xf]  ;;  %v2206_v53 = vor.u32 %v2636_v44, %v2205_v43  ;;  %v2133_v54 = vld [vmem:[#allocation3 + $0x50] sm:$0xf] }
  0x28   : > { %660 = vmatpush.bf16.msra.mxu1 %v2038_v19  ;;  %v2207_v51 = vld [vmem:[#allocation3 + $0xe8] sm:$0xf0]  ;;  %v2618_v55 = vld [vmem:[#allocation3 + $0x54] sm:$0xf0]  ;;  %v317_v56 = vld [vmem:[%s303_s13] sm:$0xff]  ;;  %v2146_v2 = vor.u32 %v2619_v47, %v2143_v49  ;;  %vm1529_vm4 = vcmask 1045504  }
  0x29   : > { %674 = vmatpush.bf16.msra.mxu2 %v1978_v20  ;;  %v318_v57 = vld [vmem:[%s303_s13 + $0x8] sm:$0xff]  ;;  %v323_v58 = vld [vmem:[%s2949_s1] sm:$0x3]  ;;  %v319_v60 = vunpack.c.l.bf16 %v317_v56  ;;  %370 = vst [vmem:[#allocation2 + $0x28] sm:$0x3] %v2835_v0  ;;  %v320_v1 = vunpack.c.h.bf16 %v317_v56  ;;  %v2210_v7 = vor.u32 %v2635_v50, %v2207_v51  ;;  %v2134_v16 = vor.u32 %v2618_v55, %v2133_v54  ;;  %s1961_s23 = sshll.u32 %s2957_s28, 1 }
  0x2a   : > { %688 = vmatpush.bf16.msra.mxu3 %v2042_v24  ;;  %v2197_v59 = vld [vmem:[#allocation3 + $0xd0] sm:$0xf]  ;;  %v321_v61 = vunpack.c.l.bf16 %v318_v57  ;;  %v325_v62 = vperm.slane %v323_v58, 0  ;;  %v2634_v3 = vld [vmem:[#allocation3 + $0xd4] sm:$0xf0]  ;;  %v322_v5 = vunpack.c.h.bf16 %v318_v57  ;;  %v326_v6 = vperm.slane %v323_v58, 1  ;;  %s312_s27 = scalar_lea.vmem %s2954_s6, %s1961_s23  ;;  %s316_s8 = scalar_lea.vmem %s2955_s7, %s1961_s23 }
  0x2b   : > { %647 = vmatpush.bf16.msra.mxu0 %v1966_v31  ;;  %v333_v63 = vld [vmem:[%s2950_s2] sm:$0x3]  ;;  %371 = vst [vmem:[#allocation2 + $0x10] sm:$0x3] %v2835_v0  ;;  %v2617_v8 = vld [vmem:[#allocation3 + $0x54] sm:$0xf]  ;;  %v2198_v22 = vor.u32 %v2634_v3, %v2197_v59 }
  0x2c   : > { %661 = vmatpush.bf16.msra.mxu1 %v2030_v35  ;;  %v335_v4 = vperm.slane %v333_v63, 0  ;;  %v2135_v9 = vld [vmem:[#allocation3 + $0x58] sm:$0xf0]  ;;  %v329_v10 = vmul.f32 %v325_v62, %v319_v60  ;;  %v331_v11 = vmul.f32 %v325_v62, %v321_v61  ;;  %372 = vst [vmem:[#allocation2 + $0x18] sm:$0xc] %v2835_v0  ;;  %v330_v14 = vmul.f32 %v326_v6, %v320_v1 }
  0x2d   : > { %675 = vmatpush.bf16.msra.mxu2 %v1970_v36  ;;  %v2633_v12 = vld [vmem:[#allocation3 + $0xd4] sm:$0xf]  ;;  %v2199_v13 = vld [vmem:[#allocation3 + $0xd8] sm:$0xf0]  ;;  %373 = vst [vmem:[#allocation2 + $0x20] sm:$0xc] %v2835_v0  ;;  %v332_v15 = vmul.f32 %v326_v6, %v322_v5  ;;  %v2138_v23 = vor.u32 %v2617_v8, %v2135_v9 }
  0x2e   : > { %689 = vmatpush.bf16.msra.mxu3 %v2034_v40  ;;  %v2125_v17 = vld [vmem:[#allocation3 + $0x40] sm:$0xf]  ;;  %v2616_v18 = vld [vmem:[#allocation3 + $0x44] sm:$0xf0]  ;;  %v339_v20 = vadd.f32 %v335_v4, %v329_v10  ;;  %v341_v21 = vadd.f32 %v335_v4, %v331_v11  ;;  %v2615_v25 = vld [vmem:[#allocation3 + $0x44] sm:$0xf]  ;;  %v2202_v27 = vor.u32 %v2633_v12, %v2199_v13 }
  0x2f   : > { %856 = vmatpush.bf16.msrb.mxu0 %v2150_v41  ;;  %v2189_v19 = vld [vmem:[#allocation3 + $0xc0] sm:$0xf]  ;;  %v2632_v24 = vld [vmem:[#allocation3 + $0xc4] sm:$0xf0]  ;;  %v336_v26 = vperm.slane %v333_v63, 1  ;;  %v2126_v36 = vor.u32 %v2616_v18, %v2125_v17  ;;  %vm1807_vm5 = vcmask 1040384  }
  0x30   : > { %870 = vmatpush.bf16.msrb.mxu1 %v2214_v45  ;;  %v2127_v28 = vld [vmem:[#allocation3 + $0x48] sm:$0xf0]  ;;  %v2631_v29 = vld [vmem:[#allocation3 + $0xc4] sm:$0xf]  ;;  %v343_v30 = vmax.f32 %v339_v20, 0.0  ;;  %v345_v31 = vmax.f32 %v341_v21, 0.0  ;;  %v2190_v41 = vor.u32 %v2632_v24, %v2189_v19 }
  0x31   : > { %884 = vmatpush.bf16.msrb.mxu2 %v2154_v46  ;;  %v2191_v32 = vld [vmem:[#allocation3 + $0xc8] sm:$0xf0]  ;;  %v2117_v33 = vld [vmem:[#allocation3 + $0x30] sm:$0xf]  ;;  %v340_v34 = vadd.f32 %v336_v26, %v330_v14  ;;  %v342_v35 = vadd.f32 %v336_v26, %v332_v15  ;;  %v2614_v39 = vld [vmem:[#allocation3 + $0x34] sm:$0xf0]  ;;  %v2130_v42 = vor.u32 %v2615_v25, %v2127_v28 }
  0x32   : > { %898 = vmatpush.bf16.msrb.mxu3 %v2218_v48  ;;  %v352_v37 = vrot.slane %v343_v30, 6  ;;  %v354_v38 = vrot.slane %v345_v31, 6  ;;  %v2181_v40 = vld [vmem:[#allocation3 + $0xb0] sm:$0xf]  ;;  %v2630_v43 = vld [vmem:[#allocation3 + $0xb4] sm:$0xf0]  ;;  %v2194_v47 = vor.u32 %v2631_v29, %v2191_v32  ;;  %v2118_v54 = vor.u32 %v2614_v39, %v2117_v33 }
  0x33   : > { %857 = vmatpush.bf16.msrb.mxu0 %v2142_v52  ;;  %v2613_v44 = vld [vmem:[#allocation3 + $0x34] sm:$0xf]  ;;  %v344_v45 = vmax.f32 %v340_v34, 0.0  ;;  %v346_v46 = vmax.f32 %v342_v35, 0.0  ;;  %v2119_v49 = vld [vmem:[#allocation3 + $0x38] sm:$0xf0]  ;;  %v2182_v57 = vor.u32 %v2630_v43, %v2181_v40 }
  0x34   : > { %871 = vmatpush.bf16.msrb.mxu1 %v2206_v53  ;;  %v2909_v48 = vsel %vm351_vm0, %v352_v37, %v354_v38  ;;  %364 = vst [vmem:[#allocation2 + $0x28] sm:$0xfc] %v352_v37  ;;  %v2629_v50 = vld [vmem:[#allocation3 + $0xb4] sm:$0xf]  ;;  %v2183_v51 = vld [vmem:[#allocation3 + $0xb8] sm:$0xf0]  ;;  %v2122_v58 = vor.u32 %v2613_v44, %v2119_v49 }
  0x35   : > { %885 = vmatpush.bf16.msrb.mxu2 %v2146_v2  ;;  %366 = vst [vmem:[#allocation2 + $0x8] sm:$0xff] %v2909_v48  ;;  %v353_v52 = vrot.slane %v344_v45, 6  ;;  %v356_v53 = vrot.slane %v346_v46, 6  ;;  %v2109_v55 = vld [vmem:[#allocation3 + $0x20] sm:$0xf]  ;;  %v2186_v62 = vor.u32 %v2629_v50, %v2183_v51 }
  0x36   : > { %899 = vmatpush.bf16.msrb.mxu3 %v2210_v7  ;;  %368 = vst [vmem:[#allocation2 + $0x18] sm:$0x3] %v354_v38  ;;  %v2612_v56 = vld [vmem:[#allocation3 + $0x24] sm:$0xf0]  ;;  %v2173_v60 = vld [vmem:[#allocation3 + $0xa0] sm:$0xf] }
  0x37   : > { %858 = vmatpush.bf16.msrb.mxu0 %v2134_v16  ;;  %v2913_v59 = vsel %vm351_vm0, %v353_v52, %v356_v53  ;;  %365 = vst [vmem:[#allocation2 + $0x10] sm:$0xfc] %v353_v52  ;;  %v2628_v61 = vld [vmem:[#allocation3 + $0xa4] sm:$0xf0]  ;;  %v2611_v63 = vld [vmem:[#allocation3 + $0x24] sm:$0xf]  ;;  %v2110_v3 = vor.u32 %v2612_v56, %v2109_v55 }
  0x38   : > { %872 = vmatpush.bf16.msrb.mxu1 %v2198_v22  ;;  %v2111_v0 = vld [vmem:[#allocation3 + $0x28] sm:$0xf0]  ;;  %vm453_vm1 = vsmask.f32 7424  ;;  %369 = vst [vmem:[#allocation2 + $0x20] sm:$0x3] %v356_v53  ;;  %v2174_v8 = vor.u32 %v2628_v61, %v2173_v60 }
  0x39   : > { %886 = vmatpush.bf16.msrb.mxu2 %v2138_v23  ;;  %v2627_v1 = vld [vmem:[#allocation3 + $0xa4] sm:$0xf]  ;;  %v2175_v2 = vld [vmem:[#allocation3 + $0xa8] sm:$0xf0]  ;;  %v2101_v4 = vld [vmem:[#allocation3 + $0x10] sm:$0xf]  ;;  %v2114_v9 = vor.u32 %v2611_v63, %v2111_v0 }
  0x3a   : > { %900 = vmatpush.bf16.msrb.mxu3 %v2202_v27  ;;  %v2610_v5 = vld [vmem:[#allocation3 + $0x14] sm:$0xf0]  ;;  %v2165_v6 = vld [vmem:[#allocation3 + $0x90] sm:$0xf]  ;;  %v2609_v11 = vld [vmem:[#allocation3 + $0x14] sm:$0xf]  ;;  %v2178_v13 = vor.u32 %v2627_v1, %v2175_v2 }
  0x3b   : > { %859 = vmatpush.bf16.msrb.mxu0 %v2126_v36  ;;  %v412_v7 = vld [vmem:[#allocation2 + $0x28] sm:$0xfe]  ;;  %v2625_v15 = vld [vmem:[#allocation3 + $0x94] sm:$0xf]  ;;  %v2093_v18 = vld [vmem:[#allocation3] sm:$0xf]  ;;  %v2102_v24 = vor.u32 %v2610_v5, %v2101_v4 }
  0x3c   : > { %873 = vmatpush.bf16.msrb.mxu1 %v2190_v41  ;;  %v2626_v10 = vld [vmem:[#allocation3 + $0x94] sm:$0xf0]  ;;  %v416_v12 = vpack.c.bf16 %v2909_v48, %v412_v7  ;;  %v2103_v14 = vld [vmem:[#allocation3 + $0x18] sm:$0xf0]  ;;  %v2608_v19 = vld [vmem:[#allocation3 + $0x4] sm:$0xf0] }
  0x3d   : > { %887 = vmatpush.bf16.msrb.mxu2 %v2130_v42  ;;  %v2167_v16 = vld [vmem:[#allocation3 + $0x98] sm:$0xf0]  ;;  %v414_v17 = vld [vmem:[#allocation2 + $0x18] sm:$0x1]  ;;  %v2157_v25 = vld [vmem:[#allocation3 + $0x80] sm:$0xf]  ;;  %v2166_v27 = vor.u32 %v2626_v10, %v2165_v6  ;;  %v2106_v28 = vor.u32 %v2609_v11, %v2103_v14  ;;  %v2094_v45 = vor.u32 %v2608_v19, %v2093_v18 }
  0x3e   : > { %901 = vmatpush.bf16.msrb.mxu3 %v2194_v47  ;;  %v418_v20 = vpack.c.bf16 %v414_v17, %v414_v17  ;;  %v455_v21 = vshrl.u32 %v416_v12, 16  ;;  %v457_v22 = vshll.u32 %v416_v12, 16  ;;  %v413_v23 = vld [vmem:[#allocation2 + $0x10] sm:$0xfe]  ;;  %v2624_v29 = vld [vmem:[#allocation3 + $0x84] sm:$0xf0]  ;;  %v2170_v35 = vor.u32 %v2625_v15, %v2167_v16 }
  0x3f   : > { %860 = vmatpush.bf16.msrb.mxu0 %v2118_v54  ;;  %v417_v26 = vpack.c.bf16 %v2913_v59, %v413_v23  ;;  %v2607_v30 = vld [vmem:[#allocation3 + $0x4] sm:$0xf]  ;;  %v2095_v31 = vld [vmem:[#allocation3 + $0x8] sm:$0xf0]  ;;  %v415_v34 = vld [vmem:[#allocation2 + $0x20] sm:$0x1]  ;;  %v2158_v51 = vor.u32 %v2624_v29, %v2157_v25 }
  0x40   : > { %874 = vmatpush.bf16.msrb.mxu1 %v2182_v57  ;;  %v459_v32 = vrot.slane %v457_v22, 1  ;;  %v462_v33 = vshll.u32 %v418_v20, 16  ;;  %v2623_v36 = vld [vmem:[#allocation3 + $0x84] sm:$0xf]  ;;  %v2159_v37 = vld [vmem:[#allocation3 + $0x88] sm:$0xf0]  ;;  %v419_v38 = vpack.c.bf16 %v415_v34, %v415_v34  ;;  %v2098_v52 = vor.u32 %v2607_v30, %v2095_v31 }
  0x41   : > { %888 = vmatpush.bf16.msrb.mxu2 %v2122_v58  ;;  %v467_v39 = vshrl.u32 %v417_v26, 16  ;;  %v469_v40 = vshll.u32 %v417_v26, 16  ;;  %v2277_v41 = vld [vmem:[#allocation3 + $0x270] sm:$0xf]  ;;  %v2686_v42 = vld [vmem:[#allocation3 + $0x274] sm:$0xf0]  ;;  %v2162_v61 = vor.u32 %v2623_v36, %v2159_v37 }
  0x42   : > { %902 = vmatpush.bf16.msrb.mxu3 %v2186_v62  ;;  %v460_v43 = vor.u32 %v459_v32, %v455_v21  ;;  %v464_v44 = vrot.slane %v462_v33, 1  ;;  %v2341_v46 = vld [vmem:[#allocation3 + $0x2f0] sm:$0xf]  ;;  %v2702_v47 = vld [vmem:[#allocation3 + $0x2f4] sm:$0xf0]  ;;  %v474_v50 = vshll.u32 %v419_v38, 16  ;;  %v2278_v62 = vor.u32 %v2686_v42, %v2277_v41 }
  0x43   : > { %861 = vmatpush.bf16.msrb.mxu0 %v2110_v3  ;;  %v471_v49 = vrot.slane %v469_v40, 1  ;;  %v2685_v53 = vld [vmem:[#allocation3 + $0x274] sm:$0xf]  ;;  %v2279_v54 = vld [vmem:[#allocation3 + $0x278] sm:$0xf0]  ;;  %v2342_v63 = vor.u32 %v2702_v47, %v2341_v46  ;;  %v375_v37 = vld [vmem:[#allocation2 + $0x10] sm:$0xff] }
  0x44   : > { %875 = vmatpush.bf16.msrb.mxu1 %v2174_v8  ;;  %v465_v55 = vsel %vm453_vm1, %v460_v43, %v464_v44  ;;  %v2701_v56 = vld [vmem:[#allocation3 + $0x2f4] sm:$0xf]  ;;  %v2343_v57 = vld [vmem:[#allocation3 + $0x2f8] sm:$0xf0]  ;;  %v476_v60 = vrot.slane %v474_v50, 1  ;;  %v2282_v0 = vor.u32 %v2685_v53, %v2279_v54  ;;  %v379_v47 = vpack.c.bf16 %v2913_v59, %v375_v37 }
  0x45   : > { %889 = vmatpush.bf16.msrb.mxu2 %v2114_v9  ;;  %648 = vmatmul.bf16.vlgmr.msra.gmra.mxu0 %v465_v55  ;;  %v472_v58 = vor.u32 %v471_v49, %v467_v39  ;;  %v2269_v1 = vld [vmem:[#allocation3 + $0x260] sm:$0xf]  ;;  %v2684_v2 = vld [vmem:[#allocation3 + $0x264] sm:$0xf0]  ;;  %v2346_v5 = vor.u32 %v2701_v56, %v2343_v57  ;;  %v2683_v7 = vld [vmem:[#allocation3 + $0x264] sm:$0xf] }
  0x46   : > { %903 = vmatpush.bf16.msrb.mxu3 %v2178_v13  ;;  %676 = vmatmul.bf16.vlgmr.msra.gmra.mxu2 %v465_v55  ;;  %v2333_v3 = vld [vmem:[#allocation3 + $0x2e0] sm:$0xf]  ;;  %v2700_v6 = vld [vmem:[#allocation3 + $0x2e4] sm:$0xf0]  ;;  %v2271_v8 = vld [vmem:[#allocation3 + $0x268] sm:$0xf0]  ;;  %v2270_v11 = vor.u32 %v2684_v2, %v2269_v1 }
  0x47   : > { %862 = vmatpush.bf16.msrb.mxu0 %v2102_v24  ;;  %v477_v4 = vsel %vm453_vm1, %v472_v58, %v476_v60  ;;  %v2699_v9 = vld [vmem:[#allocation3 + $0x2e4] sm:$0xf]  ;;  %v2335_v10 = vld [vmem:[#allocation3 + $0x2e8] sm:$0xf0]  ;;  %v2334_v12 = vor.u32 %v2700_v6, %v2333_v3  ;;  %v2274_v13 = vor.u32 %v2683_v7, %v2271_v8  ;;  %v2261_v14 = vld [vmem:[#allocation3 + $0x250] sm:$0xf] }
  0x48   : > { %876 = vmatpush.bf16.msrb.mxu1 %v2166_v27  ;;  %690 = vmatmul.bf16.vlgmr.msra.gmra.mxu3 %v477_v4  ;;  %v2682_v15 = vld [vmem:[#allocation3 + $0x254] sm:$0xf0]  ;;  %v2325_v16 = vld [vmem:[#allocation3 + $0x2d0] sm:$0xf]  ;;  %v2338_v17 = vor.u32 %v2699_v9, %v2335_v10  ;;  %v2681_v19 = vld [vmem:[#allocation3 + $0x254] sm:$0xf] }
  0x49   : > { %890 = vmatpush.bf16.msrb.mxu2 %v2106_v28  ;;  %662 = vmatmul.bf16.vlgmr.msra.gmra.mxu1 %v477_v4  ;;  %v2698_v18 = vld [vmem:[#allocation3 + $0x2d4] sm:$0xf0]  ;;  %v2263_v20 = vld [vmem:[#allocation3 + $0x258] sm:$0xf0]  ;;  %v2697_v21 = vld [vmem:[#allocation3 + $0x2d4] sm:$0xf]  ;;  %v2262_v23 = vor.u32 %v2682_v15, %v2261_v14 }
  0x4a   : > { %904 = vmatpush.bf16.msrb.mxu3 %v2170_v35  ;;  %v2327_v22 = vld [vmem:[#allocation3 + $0x2d8] sm:$0xf0]  ;;  %v2326_v25 = vor.u32 %v2698_v18, %v2325_v16  ;;  %v2266_v26 = vor.u32 %v2681_v19, %v2263_v20  ;;  %v2253_v27 = vld [vmem:[#allocation3 + $0x240] sm:$0xf]  ;;  %v2680_v28 = vld [vmem:[#allocation3 + $0x244] sm:$0xf0] }
  0x4b   : > { %863 = vmatpush.bf16.msrb.mxu0 %v2094_v45  ;;  %v374_v24 = vld [vmem:[#allocation2 + $0x28] sm:$0xff]  ;;  %v2330_v29 = vor.u32 %v2697_v21, %v2327_v22  ;;  %v2317_v30 = vld [vmem:[#allocation3 + $0x2c0] sm:$0xf]  ;;  %v2696_v31 = vld [vmem:[#allocation3 + $0x2c4] sm:$0xf0]  ;;  %v2254_v38 = vor.u32 %v2680_v28, %v2253_v27 }
  0x4c   : > { %877 = vmatpush.bf16.msrb.mxu1 %v2158_v51  ;;  %v2679_v32 = vld [vmem:[#allocation3 + $0x244] sm:$0xf]  ;;  %v2255_v33 = vld [vmem:[#allocation3 + $0x248] sm:$0xf0]  ;;  %v378_v36 = vpack.c.bf16 %v2909_v48, %v374_v24  ;;  %v2318_v39 = vor.u32 %v2696_v31, %v2317_v30  ;;  %v2245_v40 = vld [vmem:[#allocation3 + $0x230] sm:$0xf] }
  0x4d   : > { %891 = vmatpush.bf16.msrb.mxu2 %v2098_v52  ;;  %v2695_v34 = vld [vmem:[#allocation3 + $0x2c4] sm:$0xf]  ;;  %v2319_v35 = vld [vmem:[#allocation3 + $0x2c8] sm:$0xf0]  ;;  %v2678_v41 = vld [vmem:[#allocation3 + $0x234] sm:$0xf0]  ;;  %v2258_v42 = vor.u32 %v2679_v32, %v2255_v33 }
  0x4e   : > { %905 = vmatpush.bf16.msrb.mxu3 %v2162_v61  ;;  %v2322_v43 = vor.u32 %v2695_v34, %v2319_v35  ;;  %v2309_v44 = vld [vmem:[#allocation3 + $0x2b0] sm:$0xf]  ;;  %v2694_v45 = vld [vmem:[#allocation3 + $0x2b4] sm:$0xf0]  ;;  %v2677_v46 = vld [vmem:[#allocation3 + $0x234] sm:$0xf]  ;;  %v2246_v52 = vor.u32 %v2678_v41, %v2245_v40 }
  0x4f   : > { %1126 = vmatpush.bf16.msra.mxu0 %v2278_v62  ;;  %v2247_v49 = vld [vmem:[#allocation3 + $0x238] sm:$0xf0]  ;;  %v2693_v50 = vld [vmem:[#allocation3 + $0x2b4] sm:$0xf]  ;;  %v2310_v53 = vor.u32 %v2694_v45, %v2309_v44  ;;  %v2237_v54 = vld [vmem:[#allocation3 + $0x220] sm:$0xf] }
  0x50   : > { %1140 = vmatpush.bf16.msra.mxu1 %v2342_v63  ;;  %v2311_v51 = vld [vmem:[#allocation3 + $0x2b8] sm:$0xf0]  ;;  %v2676_v55 = vld [vmem:[#allocation3 + $0x224] sm:$0xf0]  ;;  %v2250_v56 = vor.u32 %v2677_v46, %v2247_v49  ;;  %v2301_v58 = vld [vmem:[#allocation3 + $0x2a0] sm:$0xf] }
  0x51   : > { %1154 = vmatpush.bf16.msra.mxu2 %v2282_v0  ;;  %v2314_v57 = vor.u32 %v2693_v50, %v2311_v51  ;;  %v2692_v60 = vld [vmem:[#allocation3 + $0x2a4] sm:$0xf0]  ;;  %v2675_v61 = vld [vmem:[#allocation3 + $0x224] sm:$0xf]  ;;  %v2239_v62 = vld [vmem:[#allocation3 + $0x228] sm:$0xf0]  ;;  %v2238_v4 = vor.u32 %v2676_v55, %v2237_v54 }
  0x52   : > { %1168 = vmatpush.bf16.msra.mxu3 %v2346_v5  ;;  %v2691_v63 = vld [vmem:[#allocation3 + $0x2a4] sm:$0xf]  ;;  %v2303_v0 = vld [vmem:[#allocation3 + $0x2a8] sm:$0xf0]  ;;  %v2229_v1 = vld [vmem:[#allocation3 + $0x210] sm:$0xf]  ;;  %v2302_v5 = vor.u32 %v2692_v60, %v2301_v58  ;;  %v2242_v9 = vor.u32 %v2675_v61, %v2239_v62 }
  0x53   : > { %1127 = vmatpush.bf16.msra.mxu0 %v2270_v11  ;;  %v2674_v2 = vld [vmem:[#allocation3 + $0x214] sm:$0xf0]  ;;  %v2293_v3 = vld [vmem:[#allocation3 + $0x290] sm:$0xf]  ;;  %v2673_v7 = vld [vmem:[#allocation3 + $0x214] sm:$0xf]  ;;  %v2306_v10 = vor.u32 %v2691_v63, %v2303_v0 }
  0x54   : > { %1141 = vmatpush.bf16.msra.mxu1 %v2334_v12  ;;  %v2690_v6 = vld [vmem:[#allocation3 + $0x294] sm:$0xf0]  ;;  %v2231_v8 = vld [vmem:[#allocation3 + $0x218] sm:$0xf0]  ;;  %v2689_v11 = vld [vmem:[#allocation3 + $0x294] sm:$0xf] }
  0x55   : > { %1155 = vmatpush.bf16.msra.mxu2 %v2274_v13  ;;  %864 = vmatmul.bf16.vlgmr.msrb.gmra.mxu0 %v378_v36  ;;  %v2295_v12 = vld [vmem:[#allocation3 + $0x298] sm:$0xf0]  ;;  %v914_v14 = vld [vmem:[#allocation2 + $0x18] sm:$0x3]  ;;  %v913_v15 = vld [vmem:[#allocation2 + $0x10] sm:$0xfc]  ;;  %v2294_v18 = vor.u32 %v2690_v6, %v2293_v3  ;;  %v2234_v21 = vor.u32 %v2673_v7, %v2231_v8 }
  0x56   : > { %1169 = vmatpush.bf16.msra.mxu3 %v2338_v17  ;;  %892 = vmatmul.bf16.vlgmr.msrb.gmra.mxu2 %v378_v36  ;;  %v912_v13 = vld [vmem:[#allocation2 + $0x28] sm:$0xfc]  ;;  %v915_v16 = vld [vmem:[#allocation2 + $0x20] sm:$0x3]  ;;  %v2230_v17 = vor.u32 %v2674_v2, %v2229_v1  ;;  %v2221_v19 = vld [vmem:[#allocation3 + $0x200] sm:$0xf]  ;;  %v2298_v22 = vor.u32 %v2689_v11, %v2295_v12  ;;  %v918_v30 = vpack.c.bf16 %v914_v14, %v914_v14 }
  0x57   : > { %1128 = vmatpush.bf16.msra.mxu0 %v2262_v23  ;;  %v2672_v20 = vld [vmem:[#allocation3 + $0x204] sm:$0xf0]  ;;  %v2285_v23 = vld [vmem:[#allocation3 + $0x280] sm:$0xf]  ;;  %v2223_v27 = vld [vmem:[#allocation3 + $0x208] sm:$0xf0]  ;;  %v917_v31 = vpack.c.bf16 %v2913_v59, %v913_v15  ;;  %v919_v32 = vpack.c.bf16 %v915_v16, %v915_v16 }
  0x58   : > { %1142 = vmatpush.bf16.msra.mxu1 %v2326_v25  ;;  %906 = vmatmul.bf16.vlgmr.msrb.gmra.mxu3 %v379_v47  ;;  %v2688_v24 = vld [vmem:[#allocation3 + $0x284] sm:$0xf0]  ;;  %v2671_v25 = vld [vmem:[#allocation3 + $0x204] sm:$0xf]  ;;  %v2405_v33 = vld [vmem:[#allocation3 + $0x370] sm:$0xf]  ;;  %v2222_v35 = vor.u32 %v2672_v20, %v2221_v19 }
  0x59   : > { %1156 = vmatpush.bf16.msra.mxu2 %v2266_v26  ;;  %878 = vmatmul.bf16.vlgmr.msrb.gmra.mxu1 %v379_v47  ;;  %v916_v26 = vpack.c.bf16 %v2909_v48, %v912_v13  ;;  %v2687_v28 = vld [vmem:[#allocation3 + $0x284] sm:$0xf]  ;;  %v2718_v34 = vld [vmem:[#allocation3 + $0x374] sm:$0xf0]  ;;  %v2469_v36 = vld [vmem:[#allocation3 + $0x3f0] sm:$0xf]  ;;  %v2226_v40 = vor.u32 %v2671_v25, %v2223_v27 }
  0x5a   : > { %1170 = vmatpush.bf16.msra.mxu3 %v2330_v29  ;;  %v2287_v29 = vld [vmem:[#allocation3 + $0x288] sm:$0xf0]  ;;  %v2734_v37 = vld [vmem:[#allocation3 + $0x3f4] sm:$0xf0]  ;;  %v2471_v44 = vld [vmem:[#allocation3 + $0x3f8] sm:$0xf0]  ;;  %v2406_v50 = vor.u32 %v2718_v34, %v2405_v33 }
  0x5b   : > { %1129 = vmatpush.bf16.msra.mxu0 %v2254_v38  ;;  %v2717_v38 = vld [vmem:[#allocation3 + $0x374] sm:$0xf]  ;;  %v2290_v41 = vor.u32 %v2687_v28, %v2287_v29  ;;  %v958_v45 = vrot.slane %v916_v26, 1  ;;  %v959_v46 = vrot.slane %v918_v30, 1  ;;  %v961_v47 = vrot.slane %v917_v31, 1 }
  0x5c   : > { %1143 = vmatpush.bf16.msra.mxu1 %v2318_v39  ;;  %v2286_v39 = vor.u32 %v2688_v24, %v2285_v23  ;;  %v962_v49 = vrot.slane %v919_v32, 1  ;;  %v2470_v51 = vor.u32 %v2734_v37, %v2469_v36  ;;  %v2715_v58 = vld [vmem:[#allocation3 + $0x364] sm:$0xf]  ;;  %v2399_v60 = vld [vmem:[#allocation3 + $0x368] sm:$0xf0] }
  0x5d   : > { %1157 = vmatpush.bf16.msra.mxu2 %v2258_v42  ;;  %v2407_v42 = vld [vmem:[#allocation3 + $0x378] sm:$0xf0]  ;;  %v2731_v61 = vld [vmem:[#allocation3 + $0x3e4] sm:$0xf]  ;;  %v2463_v62 = vld [vmem:[#allocation3 + $0x3e8] sm:$0xf0]  ;;  %v960_v63 = vsel %vm957_vm2, %v958_v45, %v959_v46 }
  0x5e   : > { %1171 = vmatpush.bf16.msra.mxu3 %v2322_v43  ;;  %v2733_v43 = vld [vmem:[#allocation3 + $0x3f4] sm:$0xf]  ;;  %v2410_v54 = vor.u32 %v2717_v38, %v2407_v42  ;;  %v963_v0 = vsel %vm957_vm2, %v961_v47, %v962_v49  ;;  %v2389_v3 = vld [vmem:[#allocation3 + $0x350] sm:$0xf]  ;;  %v2466_v6 = vor.u32 %v2731_v61, %v2463_v62  ;;  %v2730_v8 = vld [vmem:[#allocation3 + $0x3d4] sm:$0xf0] }
  0x5f   : > { %1130 = vmatpush.bf16.msra.mxu0 %v2246_v52  ;;  %v2397_v52 = vld [vmem:[#allocation3 + $0x360] sm:$0xf]  ;;  %v2474_v55 = vor.u32 %v2733_v43, %v2471_v44  ;;  %v2453_v7 = vld [vmem:[#allocation3 + $0x3d0] sm:$0xf]  ;;  %v2729_v11 = vld [vmem:[#allocation3 + $0x3d4] sm:$0xf] }
  0x60   : > { %1144 = vmatpush.bf16.msra.mxu1 %v2310_v53  ;;  %v2716_v53 = vld [vmem:[#allocation3 + $0x364] sm:$0xf0]  ;;  %v2455_v12 = vld [vmem:[#allocation3 + $0x3d8] sm:$0xf0]  ;;  %v2454_v14 = vor.u32 %v2730_v8, %v2453_v7  ;;  %v2381_v15 = vld [vmem:[#allocation3 + $0x340] sm:$0xf] }
  0x61   : > { %1158 = vmatpush.bf16.msra.mxu2 %v2250_v56  ;;  %v2461_v56 = vld [vmem:[#allocation3 + $0x3e0] sm:$0xf]  ;;  %v2398_v1 = vor.u32 %v2716_v53, %v2397_v52  ;;  %v2712_v16 = vld [vmem:[#allocation3 + $0x344] sm:$0xf0]  ;;  %v2458_v19 = vor.u32 %v2729_v11, %v2455_v12  ;;  %v2727_v23 = vld [vmem:[#allocation3 + $0x3c4] sm:$0xf] }
  0x62   : > { %1172 = vmatpush.bf16.msra.mxu3 %v2314_v57  ;;  %v2732_v57 = vld [vmem:[#allocation3 + $0x3e4] sm:$0xf0]  ;;  %v2447_v24 = vld [vmem:[#allocation3 + $0x3c8] sm:$0xf0]  ;;  %v2373_v25 = vld [vmem:[#allocation3 + $0x330] sm:$0xf]  ;;  %v2382_v29 = vor.u32 %v2712_v16, %v2381_v15 }
  0x63   : > { %1131 = vmatpush.bf16.msra.mxu0 %v2238_v4  ;;  %v2462_v2 = vor.u32 %v2732_v57, %v2461_v56  ;;  %v2714_v4 = vld [vmem:[#allocation3 + $0x354] sm:$0xf0]  ;;  %v2728_v20 = vld [vmem:[#allocation3 + $0x3c4] sm:$0xf0]  ;;  %v2437_v27 = vld [vmem:[#allocation3 + $0x3b0] sm:$0xf] }
  0x64   : > { %1145 = vmatpush.bf16.msra.mxu1 %v2302_v5  ;;  %v2402_v5 = vor.u32 %v2715_v58, %v2399_v60  ;;  %v2390_v13 = vor.u32 %v2714_v4, %v2389_v3  ;;  %v2710_v26 = vld [vmem:[#allocation3 + $0x334] sm:$0xf0]  ;;  %v2709_v31 = vld [vmem:[#allocation3 + $0x334] sm:$0xf]  ;;  %v2375_v32 = vld [vmem:[#allocation3 + $0x338] sm:$0xf0] }
  0x65   : > { %1159 = vmatpush.bf16.msra.mxu2 %v2242_v9  ;;  %v2713_v9 = vld [vmem:[#allocation3 + $0x354] sm:$0xf]  ;;  %v2726_v28 = vld [vmem:[#allocation3 + $0x3b4] sm:$0xf0]  ;;  %v2439_v36 = vld [vmem:[#allocation3 + $0x3b8] sm:$0xf0]  ;;  %v2374_v43 = vor.u32 %v2710_v26, %v2373_v25  ;;  %v2378_v49 = vor.u32 %v2709_v31, %v2375_v32 }
  0x66   : > { %1173 = vmatpush.bf16.msra.mxu3 %v2306_v10  ;;  %v2391_v10 = vld [vmem:[#allocation3 + $0x358] sm:$0xf0]  ;;  %v2725_v33 = vld [vmem:[#allocation3 + $0x3b4] sm:$0xf]  ;;  %v1188_v38 = vld [vmem:[#allocation2 + $0x18] sm:$0x7]  ;;  %v2438_v44 = vor.u32 %v2726_v28, %v2437_v27 }
  0x67   : > { %1132 = vmatpush.bf16.msra.mxu0 %v2230_v17  ;;  %v2445_v17 = vld [vmem:[#allocation3 + $0x3c0] sm:$0xf]  ;;  %v1186_v37 = vld [vmem:[#allocation2 + $0x28] sm:$0xf8]  ;;  %v1189_v42 = vld [vmem:[#allocation2 + $0x20] sm:$0x7] }
  0x68   : > { %1146 = vmatpush.bf16.msra.mxu1 %v2294_v18  ;;  %v2394_v18 = vor.u32 %v2713_v9, %v2391_v10  ;;  %v2446_v30 = vor.u32 %v2728_v20, %v2445_v17  ;;  %v2429_v45 = vld [vmem:[#allocation3 + $0x3a0] sm:$0xf]  ;;  %v2724_v46 = vld [vmem:[#allocation3 + $0x3a4] sm:$0xf0]  ;;  %v2707_v47 = vld [vmem:[#allocation3 + $0x324] sm:$0xf]  ;;  %v1190_v53 = vpack.c.bf16 %v2909_v48, %v1186_v37  ;;  %v1193_v57 = vpack.c.bf16 %v1189_v42, %v1189_v42 }
  0x69   : > { %1160 = vmatpush.bf16.msra.mxu2 %v2234_v21  ;;  %v2711_v21 = vld [vmem:[#allocation3 + $0x344] sm:$0xf]  ;;  %v2431_v52 = vld [vmem:[#allocation3 + $0x3a8] sm:$0xf0]  ;;  %v2357_v58 = vld [vmem:[#allocation3 + $0x310] sm:$0xf] }
  0x6a   : > { %1174 = vmatpush.bf16.msra.mxu3 %v2298_v22  ;;  %v2383_v22 = vld [vmem:[#allocation3 + $0x348] sm:$0xf0]  ;;  %v2706_v60 = vld [vmem:[#allocation3 + $0x314] sm:$0xf0]  ;;  %v2421_v61 = vld [vmem:[#allocation3 + $0x390] sm:$0xf] }
  0x6b   : > { %1133 = vmatpush.bf16.msra.mxu0 %v2222_v35  ;;  %v2386_v34 = vor.u32 %v2711_v21, %v2383_v22  ;;  %v2450_v35 = vor.u32 %v2727_v23, %v2447_v24  ;;  %v2722_v62 = vld [vmem:[#allocation3 + $0x394] sm:$0xf0]  ;;  %v2705_v3 = vld [vmem:[#allocation3 + $0x314] sm:$0xf]  ;;  %v2359_v4 = vld [vmem:[#allocation3 + $0x318] sm:$0xf0]  ;;  %v2358_v17 = vor.u32 %v2706_v60, %v2357_v58 }
  0x6c   : > { %1147 = vmatpush.bf16.msra.mxu1 %v2286_v39  ;;  %v2365_v39 = vld [vmem:[#allocation3 + $0x320] sm:$0xf]  ;;  %v2423_v48 = vld [vmem:[#allocation3 + $0x398] sm:$0xf0]  ;;  %v1232_v7 = vshll.u32 %v1190_v53, 16  ;;  %v1254_v12 = vshrl.u32 %v1193_v57, 16 }
  0x6d   : > { %1161 = vmatpush.bf16.msra.mxu2 %v2226_v40  ;;  %v2708_v40 = vld [vmem:[#allocation3 + $0x324] sm:$0xf0]  ;;  %v2413_v16 = vld [vmem:[#allocation3 + $0x380] sm:$0xf]  ;;  %v2703_v22 = vld [vmem:[#allocation3 + $0x304] sm:$0xf] }
  0x6e   : > { %1175 = vmatpush.bf16.msra.mxu3 %v2290_v41  ;;  %1134 = vmatmul.bf16.vlgmr.msra.gmra.mxu0 %v960_v63  ;;  %v1187_v41 = vld [vmem:[#allocation2 + $0x10] sm:$0xf8]  ;;  %v2704_v15 = vld [vmem:[#allocation3 + $0x304] sm:$0xf0]  ;;  %v2351_v23 = vld [vmem:[#allocation3 + $0x308] sm:$0xf0] }
  0x6f   : > { %1424 = vmatpush.bf16.msrb.mxu0 %v2406_v50  ;;  %1148 = vmatmul.bf16.vlgmr.msra.gmra.mxu1 %v963_v0  ;;  %v2367_v50 = vld [vmem:[#allocation3 + $0x328] sm:$0xf0]  ;;  %v1191_v56 = vpack.c.bf16 %v2913_v59, %v1187_v41  ;;  %v2720_v21 = vld [vmem:[#allocation3 + $0x384] sm:$0xf0]  ;;  %v2719_v24 = vld [vmem:[#allocation3 + $0x384] sm:$0xf]  ;;  %v2354_v41 = vor.u32 %v2703_v22, %v2351_v23 }
  0x70   : > { %1438 = vmatpush.bf16.msrb.mxu1 %v2470_v51  ;;  %1162 = vmatmul.bf16.vlgmr.msra.gmra.mxu2 %v960_v63  ;;  %v2723_v51 = vld [vmem:[#allocation3 + $0x3a4] sm:$0xf]  ;;  %v2366_v63 = vor.u32 %v2708_v40, %v2365_v39  ;;  %v1234_v26 = vrot.slane %v1232_v7, 2  ;;  %v1256_v32 = vrot.slane %v1254_v12, 1  ;;  %v2414_v37 = vor.u32 %v2720_v21, %v2413_v16  ;;  %v2766_v39 = vld [vmem:[#allocation3 + $0x4f4] sm:$0xf0] }
  0x71   : > { %1452 = vmatpush.bf16.msrb.mxu2 %v2410_v54  ;;  %1176 = vmatmul.bf16.vlgmr.msra.gmra.mxu3 %v963_v0  ;;  %v1192_v54 = vpack.c.bf16 %v1188_v38, %v1188_v38  ;;  %v2430_v0 = vor.u32 %v2724_v46, %v2429_v45  ;;  %v1246_v10 = vshrl.u32 %v1191_v56, 16  ;;  %v1249_v11 = vshll.u32 %v1191_v56, 16  ;;  %v2597_v38 = vld [vmem:[#allocation3 + $0x4f0] sm:$0xf]  ;;  %v2749_v40 = vld [vmem:[#allocation3 + $0x474] sm:$0xf] }
  0x72   : > { %1466 = vmatpush.bf16.msrb.mxu3 %v2474_v55  ;;  %v2442_v55 = vor.u32 %v2725_v33, %v2439_v36  ;;  %v2599_v45 = vld [vmem:[#allocation3 + $0x4f8] sm:$0xf0]  ;;  %vm1227_vm3 = vsmask.f32 6400  ;;  %v2764_v58 = vld [vmem:[#allocation3 + $0x4e4] sm:$0xf0] }
  0x73   : > { %1425 = vmatpush.bf16.msrb.mxu0 %v2398_v1  ;;  %v2370_v1 = vor.u32 %v2707_v47, %v2367_v50  ;;  %v1237_v8 = vshrl.u32 %v1192_v54, 16  ;;  %v1240_v9 = vshll.u32 %v1192_v54, 16  ;;  %v1251_v31 = vrot.slane %v1249_v11, 2  ;;  %v2748_v54 = vld [vmem:[#allocation3 + $0x464] sm:$0xf0] }
  0x74   : > { %1439 = vmatpush.bf16.msrb.mxu1 %v2462_v2  ;;  %v2434_v2 = vor.u32 %v2723_v51, %v2431_v52  ;;  %v2598_v52 = vor.u32 %v2766_v39, %v2597_v38  ;;  %v2747_v60 = vld [vmem:[#allocation3 + $0x464] sm:$0xf]  ;;  %v2581_v7 = vld [vmem:[#allocation3 + $0x4d0] sm:$0xf]  ;;  %v2761_v11 = vld [vmem:[#allocation3 + $0x4d4] sm:$0xf] }
  0x75   : > { %1453 = vmatpush.bf16.msrb.mxu2 %v2402_v5  ;;  %v2721_v5 = vld [vmem:[#allocation3 + $0x394] sm:$0xf]  ;;  %v1239_v27 = vrot.slane %v1237_v8, 1  ;;  %v1242_v28 = vrot.slane %v1240_v9, 2  ;;  %v2762_v8 = vld [vmem:[#allocation3 + $0x4d4] sm:$0xf0] }
  0x76   : > { %1467 = vmatpush.bf16.msrb.mxu3 %v2466_v6  ;;  %v1229_v6 = vshrl.u32 %v1190_v53, 16  ;;  %v2426_v20 = vor.u32 %v2721_v5, %v2423_v48  ;;  %v2525_v53 = vld [vmem:[#allocation3 + $0x460] sm:$0xf]  ;;  %v2746_v5 = vld [vmem:[#allocation3 + $0x454] sm:$0xf0] }
  0x77   : > { %1426 = vmatpush.bf16.msrb.mxu0 %v2390_v13  ;;  %v1257_v13 = vshll.u32 %v1193_v57, 16  ;;  %v1243_v47 = vor.u32 %v1242_v28, %v1239_v27  ;;  %v2589_v57 = vld [vmem:[#allocation3 + $0x4e0] sm:$0xf]  ;;  %v2745_v9 = vld [vmem:[#allocation3 + $0x454] sm:$0xf] }
  0x78   : > { %1440 = vmatpush.bf16.msrb.mxu1 %v2454_v14  ;;  %v2349_v14 = vld [vmem:[#allocation3 + $0x300] sm:$0xf]  ;;  %v1231_v25 = vrot.slane %v1229_v6, 1  ;;  %v2583_v12 = vld [vmem:[#allocation3 + $0x4d8] sm:$0xf0] }
  0x79   : > { %1454 = vmatpush.bf16.msrb.mxu2 %v2394_v18  ;;  %v2422_v18 = vor.u32 %v2722_v62, %v2421_v61  ;;  %v1259_v33 = vrot.slane %v1257_v13, 2  ;;  %v2350_v36 = vor.u32 %v2704_v15, %v2349_v14  ;;  %v2527_v61 = vld [vmem:[#allocation3 + $0x468] sm:$0xf0]  ;;  %v2763_v62 = vld [vmem:[#allocation3 + $0x4e4] sm:$0xf]  ;;  %v2582_v14 = vor.u32 %v2762_v8, %v2581_v7 }
  0x7a   : > { %1468 = vmatpush.bf16.msrb.mxu3 %v2458_v19  ;;  %v2362_v19 = vor.u32 %v2705_v3, %v2359_v4  ;;  %v1235_v46 = vor.u32 %v1234_v26, %v1231_v25  ;;  %v2590_v3 = vor.u32 %v2764_v58, %v2589_v57  ;;  %v2517_v4 = vld [vmem:[#allocation3 + $0x450] sm:$0xf]  ;;  %v2530_v48 = vor.u32 %v2747_v60, %v2527_v61  ;;  %v2509_v15 = vld [vmem:[#allocation3 + $0x440] sm:$0xf]  ;;  %v2744_v16 = vld [vmem:[#allocation3 + $0x444] sm:$0xf0] }
  0x7b   : > { %1427 = vmatpush.bf16.msrb.mxu0 %v2382_v29  ;;  %v2415_v29 = vld [vmem:[#allocation3 + $0x388] sm:$0xf0]  ;;  %v1260_v50 = vor.u32 %v1259_v33, %v1256_v32  ;;  %v2518_v13 = vor.u32 %v2746_v5, %v2517_v4  ;;  %v2743_v21 = vld [vmem:[#allocation3 + $0x444] sm:$0xf]  ;;  %v2510_v25 = vor.u32 %v2744_v16, %v2509_v15  ;;  %v2501_v27 = vld [vmem:[#allocation3 + $0x430] sm:$0xf] }
  0x7c   : > { %1441 = vmatpush.bf16.msrb.mxu1 %v2446_v30  ;;  %v1248_v30 = vrot.slane %v1246_v10, 1  ;;  %v2418_v42 = vor.u32 %v2719_v24, %v2415_v29  ;;  %v2519_v10 = vld [vmem:[#allocation3 + $0x458] sm:$0xf0]  ;;  %v2511_v22 = vld [vmem:[#allocation3 + $0x448] sm:$0xf0] }
  0x7d   : > { %1455 = vmatpush.bf16.msrb.mxu2 %v2386_v34  ;;  %v2533_v34 = vld [vmem:[#allocation3 + $0x470] sm:$0xf]  ;;  %v2759_v23 = vld [vmem:[#allocation3 + $0x4c4] sm:$0xf]  ;;  %v2575_v24 = vld [vmem:[#allocation3 + $0x4c8] sm:$0xf0]  ;;  %v2514_v29 = vor.u32 %v2743_v21, %v2511_v22 }
  0x7e   : > { %1469 = vmatpush.bf16.msrb.mxu3 %v2450_v35  ;;  %v2750_v35 = vld [vmem:[#allocation3 + $0x474] sm:$0xf0]  ;;  %v2741_v33 = vld [vmem:[#allocation3 + $0x434] sm:$0xf]  ;;  %v2493_v39 = vld [vmem:[#allocation3 + $0x420] sm:$0xf] }
  0x7f   : > { %1428 = vmatpush.bf16.msrb.mxu0 %v2374_v43  ;;  %v2535_v43 = vld [vmem:[#allocation3 + $0x478] sm:$0xf0]  ;;  %v2534_v51 = vor.u32 %v2750_v35, %v2533_v34  ;;  %v2742_v28 = vld [vmem:[#allocation3 + $0x434] sm:$0xf0]  ;;  %v2757_v35 = vld [vmem:[#allocation3 + $0x4b4] sm:$0xf] }
  0x80   : > { %1442 = vmatpush.bf16.msrb.mxu1 %v2438_v44  ;;  %v2765_v44 = vld [vmem:[#allocation3 + $0x4f4] sm:$0xf]  ;;  %v2758_v32 = vld [vmem:[#allocation3 + $0x4b4] sm:$0xf0]  ;;  %v2503_v34 = vld [vmem:[#allocation3 + $0x438] sm:$0xf0] }
  0x81   : > { %1456 = vmatpush.bf16.msrb.mxu2 %v2378_v49  ;;  %v1252_v49 = vor.u32 %v1251_v31, %v1248_v30  ;;  %v2602_v56 = vor.u32 %v2765_v44, %v2599_v45  ;;  %v2578_v30 = vor.u32 %v2759_v23, %v2575_v24  ;;  %v2565_v31 = vld [vmem:[#allocation3 + $0x4b0] sm:$0xf]  ;;  %v2756_v44 = vld [vmem:[#allocation3 + $0x4a4] sm:$0xf0]  ;;  %v2739_v45 = vld [vmem:[#allocation3 + $0x424] sm:$0xf] }
  0x82   : > { %1470 = vmatpush.bf16.msrb.mxu3 %v2442_v55  ;;  %v2538_v55 = vor.u32 %v2749_v40, %v2535_v43  ;;  %v2566_v38 = vor.u32 %v2758_v32, %v2565_v31  ;;  %v2740_v40 = vld [vmem:[#allocation3 + $0x424] sm:$0xf0]  ;;  %v2557_v43 = vld [vmem:[#allocation3 + $0x4a0] sm:$0xf]  ;;  %v1484_v57 = vld [vmem:[#allocation2 + $0x28] sm:$0xf0] }
  0x83   : > { %1429 = vmatpush.bf16.msrb.mxu0 %v2366_v63  ;;  %v2591_v63 = vld [vmem:[#allocation3 + $0x4e8] sm:$0xf0]  ;;  %v1486_v61 = vld [vmem:[#allocation2 + $0x18] sm:$0xf]  ;;  %v2477_v5 = vld [vmem:[#allocation3 + $0x400] sm:$0xf] }
  0x84   : > { %1443 = vmatpush.bf16.msrb.mxu1 %v2430_v0  ;;  %v1244_v0 = vsel %vm1227_vm3, %v1235_v46, %v1243_v47  ;;  %v2594_v6 = vor.u32 %v2763_v62, %v2591_v63  ;;  %v2495_v46 = vld [vmem:[#allocation3 + $0x428] sm:$0xf0]  ;;  %v2755_v47 = vld [vmem:[#allocation3 + $0x4a4] sm:$0xf]  ;;  %v1487_v63 = vld [vmem:[#allocation2 + $0x20] sm:$0xf] }
  0x85   : > { %1457 = vmatpush.bf16.msrb.mxu2 %v2370_v1  ;;  %v1261_v1 = vsel %vm1227_vm3, %v1252_v49, %v1260_v50  ;;  %v2559_v49 = vld [vmem:[#allocation3 + $0x4a8] sm:$0xf0]  ;;  %v2485_v50 = vld [vmem:[#allocation3 + $0x410] sm:$0xf]  ;;  %v2498_v58 = vor.u32 %v2739_v45, %v2495_v46  ;;  %v1485_v62 = vld [vmem:[#allocation2 + $0x10] sm:$0xf0] }
  0x86   : > { %1471 = vmatpush.bf16.msrb.mxu3 %v2434_v2  ;;  %v2526_v2 = vor.u32 %v2748_v54, %v2525_v53  ;;  %v2494_v53 = vor.u32 %v2740_v40, %v2493_v39  ;;  %v2558_v54 = vor.u32 %v2756_v44, %v2557_v43  ;;  %v2562_v60 = vor.u32 %v2755_v47, %v2559_v49  ;;  %v2736_v7 = vld [vmem:[#allocation3 + $0x404] sm:$0xf0]  ;;  %v2541_v8 = vld [vmem:[#allocation3 + $0x480] sm:$0xf]  ;;  %v2735_v15 = vld [vmem:[#allocation3 + $0x404] sm:$0xf] }
  0x87   : > { %1430 = vmatpush.bf16.msrb.mxu0 %v2358_v17  ;;  %v2522_v17 = vor.u32 %v2745_v9, %v2519_v10  ;;  %v2752_v9 = vld [vmem:[#allocation3 + $0x484] sm:$0xf0]  ;;  %v1490_v10 = vpack.c.bf16 %v1486_v61, %v1486_v61  ;;  %v2479_v16 = vld [vmem:[#allocation3 + $0x408] sm:$0xf0] }
  0x88   : > { %1444 = vmatpush.bf16.msrb.mxu1 %v2422_v18  ;;  %v2586_v18 = vor.u32 %v2761_v11, %v2583_v12  ;;  %v1489_v11 = vpack.c.bf16 %v2913_v59, %v1485_v62  ;;  %v1491_v12 = vpack.c.bf16 %v1487_v63, %v1487_v63  ;;  %v2482_v59 = vor.u32 %v2735_v15, %v2479_v16 }
  0x89   : > { %1458 = vmatpush.bf16.msrb.mxu2 %v2362_v19  ;;  %v2573_v19 = vld [vmem:[#allocation3 + $0x4c0] sm:$0xf]  ;;  %v1531_v22 = vrot.slane %v1490_v10, 2 }
  0x8a   : > { %1472 = vmatpush.bf16.msrb.mxu3 %v2426_v20  ;;  %v2760_v20 = vld [vmem:[#allocation3 + $0x4c4] sm:$0xf0]  ;;  %v1533_v23 = vrot.slane %v1489_v11, 2  ;;  %v1534_v24 = vrot.slane %v1491_v12, 2 }
  0x8b   : > { %1431 = vmatpush.bf16.msrb.mxu0 %v2350_v36  ;;  %v2574_v26 = vor.u32 %v2760_v20, %v2573_v19  ;;  %v2567_v36 = vld [vmem:[#allocation3 + $0x4b8] sm:$0xf0]  ;;  %v2478_v19 = vor.u32 %v2736_v7, %v2477_v5  ;;  %v2542_v20 = vor.u32 %v2752_v9, %v2541_v8 }
  0x8c   : > { %1445 = vmatpush.bf16.msrb.mxu1 %v2414_v37  ;;  %v2502_v37 = vor.u32 %v2742_v28, %v2501_v27  ;;  %v1535_v27 = vsel %vm1529_vm4, %v1533_v23, %v1534_v24 }
  0x8d   : > { %1459 = vmatpush.bf16.msrb.mxu2 %v2354_v41  ;;  %v2506_v41 = vor.u32 %v2741_v33, %v2503_v34 }
  0x8e   : > { %1473 = vmatpush.bf16.msrb.mxu3 %v2418_v42  ;;  %1432 = vmatmul.bf16.vlgmr.msrb.gmra.mxu0 %v1244_v0  ;;  %v2570_v42 = vor.u32 %v2757_v35, %v2567_v36 }
  0x8f   : > { %1698 = vmatpush.bf16.msra.mxu0 %v2534_v51  ;;  %1446 = vmatmul.bf16.vlgmr.msrb.gmra.mxu1 %v1261_v1  ;;  %v2738_v51 = vld [vmem:[#allocation3 + $0x414] sm:$0xf0] }
  0x90   : > { %1712 = vmatpush.bf16.msra.mxu1 %v2598_v52  ;;  %1460 = vmatmul.bf16.vlgmr.msrb.gmra.mxu2 %v1244_v0  ;;  %v2549_v52 = vld [vmem:[#allocation3 + $0x490] sm:$0xf]  ;;  %v2487_v0 = vld [vmem:[#allocation3 + $0x418] sm:$0xf0] }
  0x91   : > { %1726 = vmatpush.bf16.msra.mxu2 %v2538_v55  ;;  %1474 = vmatmul.bf16.vlgmr.msrb.gmra.mxu3 %v1261_v1  ;;  %v2754_v55 = vld [vmem:[#allocation3 + $0x494] sm:$0xf0]  ;;  %v2753_v1 = vld [vmem:[#allocation3 + $0x494] sm:$0xf] }
  0x92   : > { %1740 = vmatpush.bf16.msra.mxu3 %v2602_v56  ;;  %v2737_v56 = vld [vmem:[#allocation3 + $0x414] sm:$0xf]  ;;  %v2550_v4 = vor.u32 %v2754_v55, %v2549_v52 }
  0x93   : > { %1699 = vmatpush.bf16.msra.mxu0 %v2526_v2  ;;  %v2551_v2 = vld [vmem:[#allocation3 + $0x498] sm:$0xf0] }
  0x94   : > { %1713 = vmatpush.bf16.msra.mxu1 %v2590_v3  ;;  %v2486_v3 = vor.u32 %v2738_v51, %v2485_v50 }
  0x95   : > { %1727 = vmatpush.bf16.msra.mxu2 %v2530_v48  ;;  %v2789_v48 = vld [vmem:[#allocation2 + $0x8] sm:$0xff] }
  0x96   : > { %1741 = vmatpush.bf16.msra.mxu3 %v2594_v6  ;;  %v1488_v6 = vpack.c.bf16 %v2789_v48, %v1484_v57 }
  0x97   : > { %1700 = vmatpush.bf16.msra.mxu0 %v2518_v13  ;;  %v2490_v13 = vor.u32 %v2737_v56, %v2487_v0 }
  0x98   : > { %1714 = vmatpush.bf16.msra.mxu1 %v2582_v14  ;;  %v2554_v14 = vor.u32 %v2753_v1, %v2551_v2  ;;  %v1530_v21 = vrot.slane %v1488_v6, 2 }
  0x99   : > { %1728 = vmatpush.bf16.msra.mxu2 %v2522_v17  ;;  %v2751_v17 = vld [vmem:[#allocation3 + $0x484] sm:$0xf] }
  0x9a   : > { %1742 = vmatpush.bf16.msra.mxu3 %v2586_v18  ;;  %v2543_v18 = vld [vmem:[#allocation3 + $0x488] sm:$0xf0] }
  0x9b   : > { %1701 = vmatpush.bf16.msra.mxu0 %v2510_v25  ;;  %v2546_v25 = vor.u32 %v2751_v17, %v2543_v18 }
  0x9c   : > { %1715 = vmatpush.bf16.msra.mxu1 %v2574_v26  ;;  %v1532_v26 = vsel %vm1529_vm4, %v1530_v21, %v1531_v22 }
  0x9d   : > { %1729 = vmatpush.bf16.msra.mxu2 %v2514_v29 }
  0x9e   : > { %1743 = vmatpush.bf16.msra.mxu3 %v2578_v30 }
  0x9f   : > { %1702 = vmatpush.bf16.msra.mxu0 %v2502_v37 }
  0xa0   : > { %1716 = vmatpush.bf16.msra.mxu1 %v2566_v38 }
  0xa1   : > { %1730 = vmatpush.bf16.msra.mxu2 %v2506_v41 }
  0xa2   : > { %1744 = vmatpush.bf16.msra.mxu3 %v2570_v42 }
  0xa3   : > { %1703 = vmatpush.bf16.msra.mxu0 %v2494_v53 }
  0xa4   : > { %1717 = vmatpush.bf16.msra.mxu1 %v2558_v54 }
  0xa5   : > { %1731 = vmatpush.bf16.msra.mxu2 %v2498_v58 }
  0xa6   : > { %1745 = vmatpush.bf16.msra.mxu3 %v2562_v60 }
  0xa7   : > { %1704 = vmatpush.bf16.msra.mxu0 %v2486_v3 }
  0xa8   : > { %1718 = vmatpush.bf16.msra.mxu1 %v2550_v4 }
  0xa9   : > { %1732 = vmatpush.bf16.msra.mxu2 %v2490_v13 }
  0xaa   : > { %1746 = vmatpush.bf16.msra.mxu3 %v2554_v14  ;;  %v1758_v14 = vld [vmem:[%s2952_s4] sm:$0x3] }
  0xab   : > { %1705 = vmatpush.bf16.msra.mxu0 %v2478_v19  ;;  %v1760_v22 = vperm.slane %v1758_v14, 0 }
  0xac   : > { %1719 = vmatpush.bf16.msra.mxu1 %v2542_v20 }
  0xad   : > { %1733 = vmatpush.bf16.msra.mxu2 %v2482_v59 }
  0xae   : > { %1747 = vmatpush.bf16.msra.mxu3 %v2546_v25  ;;  %1706 = vmatmul.bf16.vlgmr.msra.gmra.mxu0 %v1532_v26 }
  0xaf   : > { %1720 = vmatmul.bf16.vlgmr.msra.gmra.mxu1 %v1535_v27 }
  0xb0   : > { %1734 = vmatmul.bf16.vlgmr.msra.gmra.mxu2 %v1532_v26 }
  0xb1   : > { %1748 = vmatmul.bf16.vlgmr.msra.gmra.mxu3 %v1535_v27  ;;  %v1761_v27 = vperm.slane %v1758_v14, 1 }
  0xc2   : > { %v649_v28 = vpop.f32.mrf.mxu0 }
  0xc6   : > { %v663_v29 = vpop.f32.mrf.mxu1 }
  0xc7   : > { %v664_v60 = vadd.f32 %v663_v29, %v649_v28 }
  0xc9   : > { %v677_v30 = vpop.f32.mrf.mxu2 }
  0xca   : > { %v651_v32 = vpop.f32.mrf.mxu0 }
  0xcb   : > { %v691_v31 = vpop.f32.mrf.mxu3 }
  0xcc   : > { %v692_v61 = vadd.f32 %v691_v31, %v677_v30 }
  0xce   : > { %v665_v33 = vpop.f32.mrf.mxu1 }
  0xcf   : > { %v666_v62 = vadd.f32 %v665_v33, %v651_v32 }
  0xd1   : > { %v679_v34 = vpop.f32.mrf.mxu2 }
  0xd2   : > { %v865_v36 = vpop.f32.mrf.mxu0 }
  0xd3   : > { %v693_v35 = vpop.f32.mrf.mxu3  ;;  %v866_v63 = vadd.f32 %v865_v36, %v664_v60 }
  0xd4   : > { %v694_v18 = vadd.f32 %v693_v35, %v679_v34 }
  0xd6   : > { %v879_v37 = vpop.f32.mrf.mxu1 }
  0xd7   : > { %v880_v48 = vadd.f32 %v879_v37, %v866_v63 }
  0xd9   : > { %v893_v38 = vpop.f32.mrf.mxu2 }
  0xda   : > { %v867_v40 = vpop.f32.mrf.mxu0  ;;  %v894_v3 = vadd.f32 %v893_v38, %v692_v61 }
  0xdb   : > { %v907_v39 = vpop.f32.mrf.mxu3  ;;  %v868_v6 = vadd.f32 %v867_v40, %v666_v62 }
  0xdc   : > { %v908_v12 = vadd.f32 %v907_v39, %v894_v3 }
  0xde   : > { %v881_v41 = vpop.f32.mrf.mxu1 }
  0xdf   : > { %v882_v15 = vadd.f32 %v881_v41, %v868_v6 }
  0xe1   : > { %v895_v42 = vpop.f32.mrf.mxu2 }
  0xe2   : > { %v896_v59 = vadd.f32 %v895_v42, %v694_v18 }
  0xe3   : > { %v909_v43 = vpop.f32.mrf.mxu3 }
  0xe4   : > { %v910_v34 = vadd.f32 %v909_v43, %v896_v59 }
  0xeb   : > { %v1135_v44 = vpop.f32.mrf.mxu0 }
  0xec   : > { %v1149_v45 = vpop.f32.mrf.mxu1 }
  0xed   : > { %v1150_v0 = vadd.f32 %v1149_v45, %v1135_v44 }
  0xef   : > { %v1182_v9 = vadd.f32 %v1150_v0, %v880_v48 }
  0xf3   : > { %v1163_v46 = vpop.f32.mrf.mxu2  ;;  %v1137_v49 = vpop.f32.mrf.mxu0 }
  0xf4   : > { %v1177_v47 = vpop.f32.mrf.mxu3  ;;  %v1151_v50 = vpop.f32.mrf.mxu1 }
  0xf5   : > { %v1178_v8 = vadd.f32 %v1177_v47, %v1163_v46  ;;  %v1152_v10 = vadd.f32 %v1151_v50, %v1137_v49 }
  0xf7   : > { %v1183_v19 = vadd.f32 %v1178_v8, %v908_v12  ;;  %v1184_v20 = vadd.f32 %v1152_v10, %v882_v15  ;;  %v1810_v12 = vlaneseq }
  0xf9   : > { %vm1812_vm6 = vcmp.lt.s32.totalorder %v1810_v12, 256 }
  0xfb   : > { %v1165_v51 = vpop.f32.mrf.mxu2 }
  0xfc   : > { %v1179_v52 = vpop.f32.mrf.mxu3 }
  0xfd   : > { %v1180_v32 = vadd.f32 %v1179_v52, %v1165_v51 }
  0xff   : > { %v1185_v40 = vadd.f32 %v1180_v32, %v910_v34 }
 0x10b   : > { %v1433_v53 = vpop.f32.mrf.mxu0 }
 0x10c   : > { %v1447_v54 = vpop.f32.mrf.mxu1 }
 0x10d   : > { %v1448_v7 = vadd.f32 %v1447_v54, %v1433_v53 }
 0x10f   : > { %v1480_v16 = vadd.f32 %v1448_v7, %v1182_v9 }
 0x113   : > { %v1461_v55 = vpop.f32.mrf.mxu2  ;;  %v1435_v57 = vpop.f32.mrf.mxu0 }
 0x114   : > { %v1475_v56 = vpop.f32.mrf.mxu3  ;;  %v1449_v58 = vpop.f32.mrf.mxu1 }
 0x115   : > { %v1476_v13 = vadd.f32 %v1475_v56, %v1461_v55  ;;  %v1450_v17 = vadd.f32 %v1449_v58, %v1435_v57 }
 0x117   : > { %v1481_v25 = vadd.f32 %v1476_v13, %v1183_v19  ;;  %v1482_v30 = vadd.f32 %v1450_v17, %v1184_v20 }
 0x11b   : > { %v1463_v1 = vpop.f32.mrf.mxu2 }
 0x11c   : > { %v1477_v2 = vpop.f32.mrf.mxu3 }
 0x11d   : > { %v1478_v35 = vadd.f32 %v1477_v2, %v1463_v1 }
 0x11f   : > { %v1483_v49 = vadd.f32 %v1478_v35, %v1185_v40 }
 0x12b   : > { %v1707_v4 = vpop.f32.mrf.mxu0 }
 0x12c   : > { %v1721_v5 = vpop.f32.mrf.mxu1 }
 0x12d   : > { %v1722_v11 = vadd.f32 %v1721_v5, %v1707_v4 }
 0x12f   : > { %v1754_v21 = vadd.f32 %v1722_v11, %v1480_v16 }
 0x131   : > { %v1764_v36 = vadd.f32 %v1760_v22, %v1754_v21 }
 0x133   : > { %v1735_v23 = vpop.f32.mrf.mxu2  ;;  %v1709_v28 = vpop.f32.mrf.mxu0  ;;  %v1786_v42 = vmul.f32 %v1764_v36, %v1764_v36 }
 0x134   : > { %v1749_v24 = vpop.f32.mrf.mxu3  ;;  %v1723_v29 = vpop.f32.mrf.mxu1 }
 0x135   : > { %v1750_v26 = vadd.f32 %v1749_v24, %v1735_v23  ;;  %v1724_v31 = vadd.f32 %v1723_v29, %v1709_v28 }
 0x137   : > { %v1755_v33 = vadd.f32 %v1750_v26, %v1481_v25  ;;  %v1756_v37 = vadd.f32 %v1724_v31, %v1482_v30 }
 0x139   : > { %v1765_v38 = vadd.f32 %v1761_v27, %v1755_v33  ;;  %v1766_v39 = vadd.f32 %v1760_v22, %v1756_v37 }
 0x13b   : > { %v1768_v41 = vpack.c.bf16 %v1765_v38, %v1764_v36  ;;  %v1772_v44 = vadd.f32 %v1766_v39, %v1764_v36  ;;  %v1788_v45 = vmul.f32 %v1766_v39, %v1766_v39  ;;  %v1737_v46 = vpop.f32.mrf.mxu2  ;;  %v1787_v56 = vmul.f32 %v1765_v38, %v1765_v38 }
 0x13c   : > { %v1751_v47 = vpop.f32.mrf.mxu3 }
 0x13d   : > { %1770 = vst [vmem:[%s308_s22] sm:$0xff] %v1768_v41  ;;  %v1752_v50 = vadd.f32 %v1751_v47, %v1737_v46  ;;  %v1773_v51 = vrot.slane %v1772_v44, 4  ;;  %v1790_v43 = vadd.f32 %v1788_v45, %v1786_v42 }
 0x13f   : > { %v1757_v52 = vadd.f32 %v1752_v50, %v1483_v49  ;;  %v1791_v53 = vrot.slane %v1790_v43, 4  ;;  %v1774_v54 = vadd.f32 %v1773_v51, %v1772_v44 }
 0x141   : > { %v1767_v55 = vadd.f32 %v1761_v27, %v1757_v52  ;;  %v1792_v57 = vadd.f32 %v1791_v53, %v1790_v43  ;;  %v1775_v62 = vrot.slane %v1774_v54, 2 }
 0x143   : > { %v1769_v58 = vpack.c.bf16 %v1767_v55, %v1766_v39  ;;  %v1779_v60 = vadd.f32 %v1767_v55, %v1765_v38  ;;  %v1789_v61 = vmul.f32 %v1767_v55, %v1767_v55  ;;  %v1793_v1 = vrot.slane %v1792_v57, 2 }
 0x144   : > { %v1776_v4 = vadd.f32 %v1775_v62, %v1774_v54 }
 0x145   : > { %1771 = vst [vmem:[%s308_s22 + $0x8] sm:$0xff] %v1769_v58  ;;  %v1780_v63 = vrot.slane %v1779_v60, 4  ;;  %v1797_v0 = vadd.f32 %v1789_v61, %v1787_v56  ;;  %v1794_v6 = vadd.f32 %v1793_v1, %v1792_v57 }
 0x146   : > { %v1777_v9 = vrot.slane %v1776_v4, 1 }
 0x147   : > { %v1781_v2 = vadd.f32 %v1780_v63, %v1779_v60  ;;  %v1798_v3 = vrot.slane %v1797_v0, 4  ;;  %v1795_v13 = vrot.slane %v1794_v6, 1 }
 0x148   : > { %v1778_v16 = vadd.f32 %v1777_v9, %v1776_v4 }
 0x149   : > { %v1782_v5 = vrot.slane %v1781_v2, 2  ;;  %v1799_v48 = vadd.f32 %v1798_v3, %v1797_v0  ;;  %v1796_v19 = vadd.f32 %v1795_v13, %v1794_v6 }
 0x14b   : > { %v1783_v7 = vadd.f32 %v1782_v5, %v1781_v2  ;;  %v1800_v8 = vrot.slane %v1799_v48, 2 }
 0x14d   : > { %v1784_v10 = vrot.slane %v1783_v7, 1  ;;  %v1801_v11 = vadd.f32 %v1800_v8, %v1799_v48 }
 0x14f   : > { %v1785_v14 = vadd.f32 %v1784_v10, %v1783_v7  ;;  %v1802_v15 = vrot.slane %v1801_v11, 1 }
 0x151   : > { %v1803_v17 = vadd.f32 %v1802_v15, %v1801_v11  ;;  %v1806_v18 = vrot.slane %v1785_v14, 7 }
 0x153   : > { %v1808_v20 = vsel %vm1807_vm5, %v1778_v16, %v1806_v18  ;;  %v1817_v21 = vrot.slane %v1803_v17, 7 }
 0x154   : > { %1814 = vst.msk [vmem:[%s312_s27] sm:$0x3] %vm1812_vm6, %v1808_v20 }
 0x155   : > { %v1818_v22 = vsel %vm1807_vm5, %v1796_v19, %v1817_v21 }
 0x156   : > { %1820 = vst.msk [vmem:[%s316_s8] sm:$0x3] %vm1812_vm6, %v1818_v22 }
 0x157 PF: > { %s19_s24 = sadd.s32 1, %s2830_s24  }
 0x158   : > { %p16_p7 = scmp.ge.s32.totalorder %s19_s24, 4  }
 0x15a   :  { %18 = sbr.rel (!%p16_p7) target bundleno = 1 (0x1), region = 103 }
 0x15f   :  { %1870 = vsyncpa [#allocation4], 1 }
 0x160   :  { %1872 = vsyncpa [#allocation4 + $0x1], 1 }

// kernel: model_forward.9
= control target key start
LH: loop header
LB: loop body
LE: loop exit
PB: predicated region body
PF: predicated region fallthrough
CT: control target
= control target key end

     0   :  { %21 = vsyncpa [#allocation4], 0  ;;  %s2635_s0 = inlined_call_operand.vmem [shape: bf16[2,16,128], index: 0, kind: input, shape index: {}]   ;;  %s2636_s1 = inlined_call_operand.vmem [shape: bf16[2,16,128], index: 1, kind: input, shape index: {}]   ;;  %s2637_s2 = inlined_call_operand.vmem [shape: f32[1,128], index: 2, kind: input, shape index: {}]   ;;  %s2638_s3 = inlined_call_operand.vmem [shape: f32[1,128], index: 3, kind: input, shape index: {}]   ;;  %s2639_s4 = inlined_call_operand.vmem [shape: f32[1,128], index: 4, kind: input, shape index: {}]   ;;  %s2640_s5 = inlined_call_operand.vmem [shape: f32[1,128], index: 5, kind: input, shape index: {}]   ;;  %s2641_s6 = inlined_call_operand.hbm [shape: bf16[5,128,256], index: 6, kind: input, shape index: {}]   ;;  %s2642_s7 = inlined_call_operand.vmem [shape: f32[1,256], index: 7, kind: input, shape index: {}]   ;;  %s2643_s8 = inlined_call_operand.hbm [shape: bf16[128,256], index: 8, kind: input, shape index: {}]   ;;  %s2644_s9 = inlined_call_operand.vmem [shape: f32[1,256], index: 9, kind: input, shape index: {}]   ;;  %s2645_s10 = inlined_call_operand.vmem [shape: bf16[2,16,256], index: 10, kind: output, shape index: {0}]   ;;  %s2646_s11 = inlined_call_operand.vmem [shape: f32[2,1,256], index: 11, kind: output, shape index: {1}]   ;;  %s2647_s12 = inlined_call_operand.vmem [shape: f32[2,1,256], index: 12, kind: output, shape index: {2}]   ;;  %s2648_s13 = inlined_call_operand.vmem [shape: bf16[2,16,256], index: 13, kind: output, shape index: {3}]   ;;  %s2649_s14 = inlined_call_operand.vmem [shape: f32[2,1,256], index: 14, kind: output, shape index: {4}]   ;;  %s2650_s15 = inlined_call_operand.vmem [shape: f32[2,1,256], index: 15, kind: output, shape index: {5}]  }
   0x1   :  { %22 = vsyncpa [#allocation6], 0  ;;  %s2500_s18 = smov 0  }
   0x2 LB: > { %s432_s21 = sshll.u32 %s2641_s6, 4  ;;  %s2509_s22 = sadd.s32 4294967295, %s2413_s18   ;;  %s2413_s18 = sphi %s2500_s18, %s28_s18   ;;  %s433_s21 = int_to_ptr.hbm [resolvable:$true] %s432_s21 }
   0x3   : > { %p1790_p0 = scmp.ge.s32.totalorder %s2413_s18, 1  ;;  %p409_p1 = scmp.lt.s32.totalorder %s2413_s18, 3 }
   0x4   : > { %p2318_p2 = scmp.eq.s32.totalorder %s2509_s22, 0  ;;  %s2415_s24 = smov [#allocation3]  }
   0x5   : > { %p2514_p3 = pnand %p1790_p0, %p409_p1  ;;  %s434_s25 = sshll.u32 %s2415_s24, 4  ;;  %s435_s25 = int_to_ptr.vmem [resolvable:$true] %s434_s25 }
   0x6   : > { %s449_s28 = sshll.u32 %s2643_s8, 4  ;;  %s2416_s29 = smov [#allocation5]   ;;  %s450_s28 = int_to_ptr.hbm [resolvable:$true] %s449_s28 }
   0x7   : > { %p2311_p4 = pneg %p2514_p3  ;;  %s451_s30 = sshll.u32 %s2416_s29, 4  ;;  %s452_s30 = int_to_ptr.vmem [resolvable:$true] %s451_s30 }
   0x8   : > { %s2417_s16 = smov 128   ;;  %s2418_s17 = smov 8  }
   0x9   : > { %p2312_p5 = pnand %p2318_p2, %p2311_p4  ;;  %486 = sbr.rel (%p2514_p3) target bundleno = 281 (0x119), region = 60 }
   0xb   : > { %2314 = dma.hbm_to_vmem [thread:$0]  (!%p2312_p5), %s433_s21, 10240, %s435_s25, [#allocation4], %s2417_s16, %s2417_s16, %s2418_s17  }
   0xc   : > { %2317 = dma.hbm_to_vmem [thread:$0]  (!%p2312_p5), %s450_s28, 2048, %s452_s30, [#allocation6], %s2417_s16, %s2417_s16, %s2418_s17  }
   0xe   : > { %2404 = dma.done.wait (%p2318_p2), [#allocation4], 10240  }
   0xf   : > { %2406 = vsyncadd (%p2318_p2), [#allocation4], 4294957056 }
  0x10   : > { %2408 = dma.done.wait (%p2318_p2), [#allocation6], 2048  }
  0x11   : > { %2410 = vsyncadd (%p2318_p2), [#allocation6], 4294965248  ;;  %v1867_v0 = vld [vmem:[#allocation3 + $0xf0] sm:$0xf]  ;;  %v2230_v1 = vld [vmem:[#allocation3 + $0xf4] sm:$0xf0] }
  0x12   : > { %v2229_v2 = vld [vmem:[#allocation3 + $0xf4] sm:$0xf]  ;;  %v1868_v3 = vor.u32 %v2230_v1, %v1867_v0  ;;  %v1869_v4 = vld [vmem:[#allocation3 + $0xf8] sm:$0xf0]  ;;  %v1931_v5 = vld [vmem:[#allocation3 + $0x70] sm:$0xf] }
  0x13   : > { %v2214_v6 = vld [vmem:[#allocation3 + $0x74] sm:$0xf0]  ;;  %v1872_v7 = vor.u32 %v2229_v2, %v1869_v4  ;;  %v2213_v9 = vld [vmem:[#allocation3 + $0x74] sm:$0xf]  ;;  %v1933_v10 = vld [vmem:[#allocation3 + $0x78] sm:$0xf0] }
  0x14   : > { %v1932_v8 = vor.u32 %v2214_v6, %v1931_v5  ;;  %v1859_v11 = vld [vmem:[#allocation3 + $0xe0] sm:$0xf]  ;;  %763 = vmatpush.bf16.msra.mxu0 %v1868_v3  ;;  %v1936_v12 = vor.u32 %v2213_v9, %v1933_v10  ;;  %v2228_v13 = vld [vmem:[#allocation3 + $0xe4] sm:$0xf0]  ;;  %v2227_v14 = vld [vmem:[#allocation3 + $0xe4] sm:$0xf] }
  0x15   : > { %v1861_v15 = vld [vmem:[#allocation3 + $0xe8] sm:$0xf0]  ;;  %777 = vmatpush.bf16.msra.mxu1 %v1872_v7  ;;  %v1860_v16 = vor.u32 %v2228_v13, %v1859_v11  ;;  %v1923_v18 = vld [vmem:[#allocation3 + $0x60] sm:$0xf]  ;;  %v2212_v19 = vld [vmem:[#allocation3 + $0x64] sm:$0xf0] }
  0x16   : > { %871 = vmatpush.bf16.msra.mxu2 %v1932_v8  ;;  %v1864_v17 = vor.u32 %v2227_v14, %v1861_v15  ;;  %v2211_v20 = vld [vmem:[#allocation3 + $0x64] sm:$0xf]  ;;  %885 = vmatpush.bf16.msra.mxu3 %v1936_v12  ;;  %v1924_v21 = vor.u32 %v2212_v19, %v1923_v18  ;;  %v1925_v22 = vld [vmem:[#allocation3 + $0x68] sm:$0xf0]  ;;  %v1851_v23 = vld [vmem:[#allocation3 + $0xd0] sm:$0xf] }
  0x17   : > { %v2226_v24 = vld [vmem:[#allocation3 + $0xd4] sm:$0xf0]  ;;  %v1928_v25 = vor.u32 %v2211_v20, %v1925_v22  ;;  %v2225_v26 = vld [vmem:[#allocation3 + $0xd4] sm:$0xf]  ;;  %v1853_v27 = vld [vmem:[#allocation3 + $0xd8] sm:$0xf0] }
  0x18   : > { %v1915_v28 = vld [vmem:[#allocation3 + $0x50] sm:$0xf]  ;;  %764 = vmatpush.bf16.msra.mxu0 %v1860_v16  ;;  %v1852_v29 = vor.u32 %v2226_v24, %v1851_v23  ;;  %v2210_v30 = vld [vmem:[#allocation3 + $0x54] sm:$0xf0]  ;;  %v2209_v31 = vld [vmem:[#allocation3 + $0x54] sm:$0xf]  ;;  %v1856_v33 = vor.u32 %v2225_v26, %v1853_v27 }
  0x19   : > { %v1917_v32 = vld [vmem:[#allocation3 + $0x58] sm:$0xf0]  ;;  %778 = vmatpush.bf16.msra.mxu1 %v1864_v17  ;;  %v1916_v34 = vor.u32 %v2210_v30, %v1915_v28  ;;  %v1843_v35 = vld [vmem:[#allocation3 + $0xc0] sm:$0xf]  ;;  %v2224_v36 = vld [vmem:[#allocation3 + $0xc4] sm:$0xf0] }
  0x1a   : > { %872 = vmatpush.bf16.msra.mxu2 %v1924_v21  ;;  %v2223_v37 = vld [vmem:[#allocation3 + $0xc4] sm:$0xf]  ;;  %886 = vmatpush.bf16.msra.mxu3 %v1928_v25  ;;  %v1920_v38 = vor.u32 %v2209_v31, %v1917_v32  ;;  %v1845_v39 = vld [vmem:[#allocation3 + $0xc8] sm:$0xf0]  ;;  %v1907_v40 = vld [vmem:[#allocation3 + $0x40] sm:$0xf]  ;;  %v1844_v44 = vor.u32 %v2224_v36, %v1843_v35 }
  0x1b   : > { %v2208_v41 = vld [vmem:[#allocation3 + $0x44] sm:$0xf0]  ;;  %v2207_v42 = vld [vmem:[#allocation3 + $0x44] sm:$0xf]  ;;  %v1909_v43 = vld [vmem:[#allocation3 + $0x48] sm:$0xf0]  ;;  %v1848_v45 = vor.u32 %v2223_v37, %v1845_v39 }
  0x1c   : > { %765 = vmatpush.bf16.msra.mxu0 %v1852_v29  ;;  %v1908_v46 = vor.u32 %v2208_v41, %v1907_v40  ;;  %v1835_v47 = vld [vmem:[#allocation3 + $0xb0] sm:$0xf]  ;;  %v2222_v48 = vld [vmem:[#allocation3 + $0xb4] sm:$0xf0]  ;;  %v2221_v49 = vld [vmem:[#allocation3 + $0xb4] sm:$0xf]  ;;  %v1912_v50 = vor.u32 %v2207_v42, %v1909_v43 }
  0x1d   : > { %779 = vmatpush.bf16.msra.mxu1 %v1856_v33  ;;  %v1837_v51 = vld [vmem:[#allocation3 + $0xb8] sm:$0xf0]  ;;  %v1899_v52 = vld [vmem:[#allocation3 + $0x30] sm:$0xf]  ;;  %v2206_v53 = vld [vmem:[#allocation3 + $0x34] sm:$0xf0]  ;;  %v1836_v56 = vor.u32 %v2222_v48, %v1835_v47 }
  0x1e   : > { %873 = vmatpush.bf16.msra.mxu2 %v1916_v34  ;;  %887 = vmatpush.bf16.msra.mxu3 %v1920_v38  ;;  %v2205_v54 = vld [vmem:[#allocation3 + $0x34] sm:$0xf]  ;;  %v1901_v55 = vld [vmem:[#allocation3 + $0x38] sm:$0xf0]  ;;  %p566_p6 = scmp.lt.s32.totalorder %s2509_s22, 1  ;;  %v1840_v57 = vor.u32 %v2221_v49, %v1837_v51  ;;  %v1900_v58 = vor.u32 %v2206_v53, %v1899_v52  ;;  %vm1344_vm0 = vcmask 1040384  }
  0x1f   : > { %v1827_v59 = vld [vmem:[#allocation3 + $0xa0] sm:$0xf]  ;;  %v2220_v60 = vld [vmem:[#allocation3 + $0xa4] sm:$0xf0]  ;;  %v2219_v61 = vld [vmem:[#allocation3 + $0xa4] sm:$0xf]  ;;  %v1904_v62 = vor.u32 %v2205_v54, %v1901_v55 }
  0x20   : > { %766 = vmatpush.bf16.msra.mxu0 %v1844_v44  ;;  %v1829_v63 = vld [vmem:[#allocation3 + $0xa8] sm:$0xf0]  ;;  %v1891_v0 = vld [vmem:[#allocation3 + $0x20] sm:$0xf]  ;;  %v2204_v1 = vld [vmem:[#allocation3 + $0x24] sm:$0xf0]  ;;  %v1828_v4 = vor.u32 %v2220_v60, %v1827_v59 }
  0x21   : > { %780 = vmatpush.bf16.msra.mxu1 %v1848_v45  ;;  %v2203_v2 = vld [vmem:[#allocation3 + $0x24] sm:$0xf]  ;;  %v1893_v3 = vld [vmem:[#allocation3 + $0x28] sm:$0xf0]  ;;  %s2655_s22 = smov (!%p566_p6, %s2509_s22), 1  ;;  %v1832_v5 = vor.u32 %v2219_v61, %v1829_v63  ;;  %v1892_v6 = vor.u32 %v2204_v1, %v1891_v0 }
  0x22   : > { %874 = vmatpush.bf16.msra.mxu2 %v1908_v46  ;;  %888 = vmatpush.bf16.msra.mxu3 %v1912_v50  ;;  %v1819_v7 = vld [vmem:[#allocation3 + $0x90] sm:$0xf]  ;;  %v2218_v8 = vld [vmem:[#allocation3 + $0x94] sm:$0xf0]  ;;  %v2217_v9 = vld [vmem:[#allocation3 + $0x94] sm:$0xf]  ;;  %v1896_v10 = vor.u32 %v2203_v2, %v1893_v3 }
  0x23   : > { %v1821_v11 = vld [vmem:[#allocation3 + $0x98] sm:$0xf0]  ;;  %v1883_v12 = vld [vmem:[#allocation3 + $0x10] sm:$0xf]  ;;  %v2202_v13 = vld [vmem:[#allocation3 + $0x14] sm:$0xf0]  ;;  %v1820_v16 = vor.u32 %v2218_v8, %v1819_v7 }
  0x24   : > { %767 = vmatpush.bf16.msra.mxu0 %v1836_v56  ;;  %v2201_v14 = vld [vmem:[#allocation3 + $0x14] sm:$0xf]  ;;  %v1885_v15 = vld [vmem:[#allocation3 + $0x18] sm:$0xf0]  ;;  %v1811_v17 = vld [vmem:[#allocation3 + $0x80] sm:$0xf]  ;;  %v1824_v19 = vor.u32 %v2217_v9, %v1821_v11  ;;  %v1884_v20 = vor.u32 %v2202_v13, %v1883_v12 }
  0x25   : > { %781 = vmatpush.bf16.msra.mxu1 %v1840_v57  ;;  %v2216_v18 = vld [vmem:[#allocation3 + $0x84] sm:$0xf0]  ;;  %s2195_s19 = sshll.u32 %s2655_s22, 3  ;;  %v2215_v21 = vld [vmem:[#allocation3 + $0x84] sm:$0xf]  ;;  %v1888_v24 = vor.u32 %v2201_v14, %v1885_v15  ;;  %s2197_s24 = sshll.u32 %s2655_s22, 4 }
  0x26   : > { %875 = vmatpush.bf16.msra.mxu2 %v1900_v58  ;;  %889 = vmatpush.bf16.msra.mxu3 %v1904_v62  ;;  %v1813_v22 = vld [vmem:[#allocation3 + $0x88] sm:$0xf0]  ;;  %v1875_v23 = vld [vmem:[#allocation3] sm:$0xf]  ;;  %v2200_v25 = vld [vmem:[#allocation3 + $0x4] sm:$0xf0]  ;;  %v1812_v31 = vor.u32 %v2216_v18, %v1811_v17  ;;  %s570_s23 = scalar_lea.vmem %s2635_s0, %s2195_s19  ;;  %s575_s26 = scalar_lea.vmem %s2636_s1, %s2195_s19 }
  0x27   : > { %v2199_v26 = vld [vmem:[#allocation3 + $0x4] sm:$0xf]  ;;  %v1877_v27 = vld [vmem:[#allocation3 + $0x8] sm:$0xf0]  ;;  %v1995_v28 = vld [vmem:[#allocation3 + $0x170] sm:$0xf]  ;;  %v1816_v35 = vor.u32 %v2215_v21, %v1813_v22  ;;  %v1876_v36 = vor.u32 %v2200_v25, %v1875_v23  ;;  %s2586_s29 = scalar_lea.vmem %s2645_s10, %s2197_s24  ;;  %s2592_s17 = scalar_lea.vmem %s2648_s13, %s2197_s24 }
  0x28   : > { %768 = vmatpush.bf16.msra.mxu0 %v1828_v4  ;;  %v2246_v29 = vld [vmem:[#allocation3 + $0x174] sm:$0xf0]  ;;  %v2245_v30 = vld [vmem:[#allocation3 + $0x174] sm:$0xf]  ;;  %v1997_v32 = vld [vmem:[#allocation3 + $0x178] sm:$0xf0]  ;;  %v1880_v39 = vor.u32 %v2199_v26, %v1877_v27 }
  0x29   : > { %782 = vmatpush.bf16.msra.mxu1 %v1832_v5  ;;  %v2059_v33 = vld [vmem:[#allocation3 + $0x1f0] sm:$0xf]  ;;  %v2262_v34 = vld [vmem:[#allocation3 + $0x1f4] sm:$0xf0]  ;;  %v2261_v37 = vld [vmem:[#allocation3 + $0x1f4] sm:$0xf]  ;;  %v1996_v40 = vor.u32 %v2246_v29, %v1995_v28  ;;  %v2000_v43 = vor.u32 %v2245_v30, %v1997_v32 }
  0x2a   : > { %876 = vmatpush.bf16.msra.mxu2 %v1892_v6  ;;  %890 = vmatpush.bf16.msra.mxu3 %v1896_v10  ;;  %v2061_v38 = vld [vmem:[#allocation3 + $0x1f8] sm:$0xf0]  ;;  %v1987_v41 = vld [vmem:[#allocation3 + $0x160] sm:$0xf]  ;;  %v2244_v42 = vld [vmem:[#allocation3 + $0x164] sm:$0xf0]  ;;  %v2060_v44 = vor.u32 %v2262_v34, %v2059_v33 }
  0x2b   : > { %v2243_v45 = vld [vmem:[#allocation3 + $0x164] sm:$0xf]  ;;  %v1989_v46 = vld [vmem:[#allocation3 + $0x168] sm:$0xf0]  ;;  %v2051_v47 = vld [vmem:[#allocation3 + $0x1e0] sm:$0xf]  ;;  %v2064_v48 = vor.u32 %v2261_v37, %v2061_v38  ;;  %v1988_v58 = vor.u32 %v2244_v42, %v1987_v41 }
  0x2c   : > { %769 = vmatpush.bf16.msra.mxu0 %v1820_v16  ;;  %v2260_v49 = vld [vmem:[#allocation3 + $0x1e4] sm:$0xf0]  ;;  %v2259_v50 = vld [vmem:[#allocation3 + $0x1e4] sm:$0xf]  ;;  %v2053_v51 = vld [vmem:[#allocation3 + $0x1e8] sm:$0xf0]  ;;  %v1992_v0 = vor.u32 %v2243_v45, %v1989_v46 }
  0x2d   : > { %783 = vmatpush.bf16.msra.mxu1 %v1824_v19  ;;  %v1979_v52 = vld [vmem:[#allocation3 + $0x150] sm:$0xf]  ;;  %v2242_v53 = vld [vmem:[#allocation3 + $0x154] sm:$0xf0]  ;;  %v2241_v54 = vld [vmem:[#allocation3 + $0x154] sm:$0xf]  ;;  %v2052_v1 = vor.u32 %v2260_v49, %v2051_v47  ;;  %v2056_v5 = vor.u32 %v2259_v50, %v2053_v51 }
  0x2e   : > { %877 = vmatpush.bf16.msra.mxu2 %v1884_v20  ;;  %891 = vmatpush.bf16.msra.mxu3 %v1888_v24  ;;  %v1981_v55 = vld [vmem:[#allocation3 + $0x158] sm:$0xf0]  ;;  %v2296_v56 = vld [vmem:[%s570_s23] sm:$0xff]   ;;  %v2043_v59 = vld [vmem:[#allocation3 + $0x1d0] sm:$0xf]  ;;  %v2419_v10 = vmov 0.0   ;;  %v1980_v15 = vor.u32 %v2242_v53, %v1979_v52 }
  0x2f   : > { %v2335_v57 = vld [vmem:[%s2637_s2] ss:$0 sm:$0xff]  ;;  %v2297_v60 = vunpack.c.l.bf16 %v2296_v56  ;;  %v2298_v61 = vunpack.c.h.bf16 %v2296_v56  ;;  %v2258_v6 = vld [vmem:[#allocation3 + $0x1d4] sm:$0xf0]  ;;  %642 = vst [vmem:[#allocation2] sm:$0x3] %v2419_v10  ;;  %v1984_v16 = vor.u32 %v2241_v54, %v1981_v55 }
  0x30   : > { %770 = vmatpush.bf16.msra.mxu0 %v1812_v31  ;;  %v2336_v62 = vld [vmem:[%s2638_s3] ss:$0 sm:$0xff]  ;;  %v2257_v11 = vld [vmem:[#allocation3 + $0x1d4] sm:$0xf]  ;;  %v2045_v12 = vld [vmem:[#allocation3 + $0x1d8] sm:$0xf0]  ;;  %v2044_v19 = vor.u32 %v2258_v6, %v2043_v59 }
  0x31   : > { %784 = vmatpush.bf16.msra.mxu1 %v1816_v35  ;;  %v2300_v63 = vld [vmem:[%s575_s26] sm:$0xff]   ;;  %v610_v7 = vmul.f32 %v2335_v57, %v2297_v60  ;;  %v611_v8 = vmul.f32 %v2335_v57, %v2298_v61  ;;  %643 = vst [vmem:[#allocation2 + $0x12] sm:$0x3] %v2419_v10  ;;  %v1971_v20 = vld [vmem:[#allocation3 + $0x140] sm:$0xf]  ;;  %v2048_v25 = vor.u32 %v2257_v11, %v2045_v12  ;;  %s2598_s19 = sshll.u32 %s2655_s22, 1 }
  0x32   : > { %878 = vmatpush.bf16.msra.mxu2 %v1876_v36  ;;  %892 = vmatpush.bf16.msra.mxu3 %v1880_v39  ;;  %v2301_v2 = vunpack.c.l.bf16 %v2300_v63  ;;  %v2302_v3 = vunpack.c.h.bf16 %v2300_v63  ;;  %v2337_v4 = vld [vmem:[%s2639_s4] ss:$0 sm:$0xff]  ;;  %v2239_v22 = vld [vmem:[#allocation3 + $0x144] sm:$0xf]  ;;  %v1973_v26 = vld [vmem:[#allocation3 + $0x148] sm:$0xf0]  ;;  %s584_s22 = scalar_lea.vmem %s2646_s11, %s2598_s19  ;;  %s588_s25 = scalar_lea.vmem %s2647_s12, %s2598_s19 }
  0x33   : > { %v2338_v9 = vld [vmem:[%s2640_s5] ss:$0 sm:$0xff]  ;;  %v616_v17 = vadd.f32 %v2336_v62, %v610_v7  ;;  %v617_v18 = vadd.f32 %v2336_v62, %v611_v8  ;;  %v2035_v27 = vld [vmem:[#allocation3 + $0x1c0] sm:$0xf]  ;;  %v2255_v29 = vld [vmem:[#allocation3 + $0x1c4] sm:$0xf]  ;;  %v1976_v35 = vor.u32 %v2239_v22, %v1973_v26  ;;  %s597_s28 = scalar_lea.vmem %s2649_s14, %s2598_s19  ;;  %s601_s16 = scalar_lea.vmem %s2650_s15, %s2598_s19 }
  0x34   : > { %999 = vmatpush.bf16.msrb.mxu0 %v1996_v40  ;;  %v626_v13 = vmul.f32 %v2337_v4, %v2301_v2  ;;  %v627_v14 = vmul.f32 %v2337_v4, %v2302_v3  ;;  %v2240_v21 = vld [vmem:[#allocation3 + $0x144] sm:$0xf0]  ;;  %v2037_v30 = vld [vmem:[#allocation3 + $0x1c8] sm:$0xf0]  ;;  %v1963_v34 = vld [vmem:[#allocation3 + $0x130] sm:$0xf] }
  0x35   : > { %1013 = vmatpush.bf16.msrb.mxu1 %v2000_v43  ;;  %v2256_v28 = vld [vmem:[#allocation3 + $0x1c4] sm:$0xf0]  ;;  %v1972_v33 = vor.u32 %v2240_v21, %v1971_v20  ;;  %v2238_v39 = vld [vmem:[#allocation3 + $0x134] sm:$0xf0]  ;;  %v2237_v40 = vld [vmem:[#allocation3 + $0x134] sm:$0xf]  ;;  %v2040_v41 = vor.u32 %v2255_v29, %v2037_v30 }
  0x36   : > { %1131 = vmatpush.bf16.msrb.mxu2 %v2060_v44  ;;  %1145 = vmatpush.bf16.msrb.mxu3 %v2064_v48  ;;  %v632_v23 = vadd.f32 %v2338_v9, %v626_v13  ;;  %v633_v24 = vadd.f32 %v2338_v9, %v627_v14  ;;  %v2036_v36 = vor.u32 %v2256_v28, %v2035_v27  ;;  %v1965_v42 = vld [vmem:[#allocation3 + $0x138] sm:$0xf0]  ;;  %v2027_v43 = vld [vmem:[#allocation3 + $0x1b0] sm:$0xf]  ;;  %v2254_v44 = vld [vmem:[#allocation3 + $0x1b4] sm:$0xf0] }
  0x37   : > { %v2253_v45 = vld [vmem:[#allocation3 + $0x1b4] sm:$0xf]  ;;  %v2029_v46 = vld [vmem:[#allocation3 + $0x1b8] sm:$0xf0]  ;;  %v1964_v47 = vor.u32 %v2238_v39, %v1963_v34  ;;  %v1968_v48 = vor.u32 %v2237_v40, %v1965_v42  ;;  %v2028_v49 = vor.u32 %v2254_v44, %v2027_v43  ;;  %v1955_v50 = vld [vmem:[#allocation3 + $0x120] sm:$0xf] }
  0x38   : > { %1000 = vmatpush.bf16.msrb.mxu0 %v1988_v58  ;;  %v634_v31 = vadd.f32 %v632_v23, %v616_v17  ;;  %v635_v32 = vadd.f32 %v633_v24, %v617_v18  ;;  %v2236_v51 = vld [vmem:[#allocation3 + $0x124] sm:$0xf0]  ;;  %v2235_v52 = vld [vmem:[#allocation3 + $0x124] sm:$0xf]  ;;  %v2032_v53 = vor.u32 %v2253_v45, %v2029_v46  ;;  %v1957_v54 = vld [vmem:[#allocation3 + $0x128] sm:$0xf0] }
  0x39   : > { %1014 = vmatpush.bf16.msrb.mxu1 %v1992_v0  ;;  %v2019_v55 = vld [vmem:[#allocation3 + $0x1a0] sm:$0xf]  ;;  %v2252_v56 = vld [vmem:[#allocation3 + $0x1a4] sm:$0xf0]  ;;  %v2251_v57 = vld [vmem:[#allocation3 + $0x1a4] sm:$0xf]  ;;  %v1956_v58 = vor.u32 %v2236_v51, %v1955_v50  ;;  %v1960_v62 = vor.u32 %v2235_v52, %v1957_v54 }
  0x3a   : > { %1132 = vmatpush.bf16.msrb.mxu2 %v2052_v1  ;;  %1146 = vmatpush.bf16.msrb.mxu3 %v2056_v5  ;;  %v2564_v37 = vmax.f32 %v634_v31, 0.0  ;;  %v2566_v38 = vmax.f32 %v635_v32, 0.0  ;;  %v2021_v59 = vld [vmem:[#allocation3 + $0x1a8] sm:$0xf0]  ;;  %v1947_v60 = vld [vmem:[#allocation3 + $0x110] sm:$0xf]  ;;  %v2020_v63 = vor.u32 %v2252_v56, %v2019_v55 }
  0x3b   : > { %v2234_v61 = vld [vmem:[#allocation3 + $0x114] sm:$0xf0]  ;;  %v2233_v0 = vld [vmem:[#allocation3 + $0x114] sm:$0xf]  ;;  %v1949_v1 = vld [vmem:[#allocation3 + $0x118] sm:$0xf0]  ;;  %v2024_v10 = vor.u32 %v2251_v57, %v2021_v59 }
  0x3c   : > { %1001 = vmatpush.bf16.msrb.mxu0 %v1980_v15  ;;  %640 = vst [vmem:[#allocation2 + $0x2] sm:$0xff] %v2564_v37  ;;  %v2011_v2 = vld [vmem:[#allocation3 + $0x190] sm:$0xf]  ;;  %v2250_v5 = vld [vmem:[#allocation3 + $0x194] sm:$0xf0]  ;;  %v1948_v11 = vor.u32 %v2234_v61, %v1947_v60  ;;  %v1952_v15 = vor.u32 %v2233_v0, %v1949_v1 }
  0x3d   : > { %1015 = vmatpush.bf16.msrb.mxu1 %v1984_v16  ;;  %641 = vst [vmem:[#allocation2 + $0xa] sm:$0xff] %v2566_v38  ;;  %v2249_v12 = vld [vmem:[#allocation3 + $0x194] sm:$0xf]  ;;  %v2013_v13 = vld [vmem:[#allocation3 + $0x198] sm:$0xf0]  ;;  %v2012_v16 = vor.u32 %v2250_v5, %v2011_v2 }
  0x3e   : > { %1133 = vmatpush.bf16.msrb.mxu2 %v2044_v19  ;;  %1147 = vmatpush.bf16.msrb.mxu3 %v2048_v25  ;;  %v1939_v14 = vld [vmem:[#allocation3 + $0x100] sm:$0xf]  ;;  %v2232_v17 = vld [vmem:[#allocation3 + $0x104] sm:$0xf0]  ;;  %v2231_v18 = vld [vmem:[#allocation3 + $0x104] sm:$0xf]  ;;  %v2016_v26 = vor.u32 %v2249_v12, %v2013_v13 }
  0x3f   : > { %v1941_v19 = vld [vmem:[#allocation3 + $0x108] sm:$0xf0]  ;;  %v2003_v20 = vld [vmem:[#allocation3 + $0x180] sm:$0xf]  ;;  %v2248_v21 = vld [vmem:[#allocation3 + $0x184] sm:$0xf0]  ;;  %v1940_v27 = vor.u32 %v2232_v17, %v1939_v14 }
  0x40   : > { %1002 = vmatpush.bf16.msrb.mxu0 %v1972_v33  ;;  %v2123_v22 = vld [vmem:[#allocation3 + $0x270] sm:$0xf]  ;;  %v2278_v23 = vld [vmem:[#allocation3 + $0x274] sm:$0xf0]  ;;  %v2277_v24 = vld [vmem:[#allocation3 + $0x274] sm:$0xf]  ;;  %v1944_v30 = vor.u32 %v2231_v18, %v1941_v19  ;;  %v2004_v31 = vor.u32 %v2248_v21, %v2003_v20 }
  0x41   : > { %1016 = vmatpush.bf16.msrb.mxu1 %v1976_v35  ;;  %v2125_v25 = vld [vmem:[#allocation3 + $0x278] sm:$0xf0]  ;;  %v2187_v28 = vld [vmem:[#allocation5 + $0x70] sm:$0xf]  ;;  %v2294_v29 = vld [vmem:[#allocation5 + $0x74] sm:$0xf0]  ;;  %v2124_v34 = vor.u32 %v2278_v23, %v2123_v22 }
  0x42   : > { %1134 = vmatpush.bf16.msrb.mxu2 %v2036_v36  ;;  %1148 = vmatpush.bf16.msrb.mxu3 %v2040_v41  ;;  %v2247_v32 = vld [vmem:[#allocation3 + $0x184] sm:$0xf]  ;;  %v2005_v33 = vld [vmem:[#allocation3 + $0x188] sm:$0xf0]  ;;  %v2128_v35 = vor.u32 %v2277_v24, %v2125_v25  ;;  %v2293_v36 = vld [vmem:[#allocation5 + $0x74] sm:$0xf]  ;;  %v2188_v41 = vor.u32 %v2294_v29, %v2187_v28 }
  0x43   : > { %v663_v3 = vld [vmem:[#allocation2 + $0x1] sm:$0xff]  ;;  %v2189_v39 = vld [vmem:[#allocation5 + $0x78] sm:$0xf0]  ;;  %v2115_v40 = vld [vmem:[#allocation3 + $0x260] sm:$0xf]  ;;  %v2008_v45 = vor.u32 %v2247_v32, %v2005_v33 }
  0x44   : > { %1003 = vmatpush.bf16.msrb.mxu0 %v1964_v47  ;;  %v644_v4 = vld [vmem:[#allocation2] sm:$0xff]  ;;  %v664_v6 = vld [vmem:[#allocation2 + $0x9] sm:$0xff]  ;;  %v2275_v43 = vld [vmem:[#allocation3 + $0x264] sm:$0xf] }
  0x45   : > { %1017 = vmatpush.bf16.msrb.mxu1 %v1968_v48  ;;  %v645_v7 = vld [vmem:[#allocation2 + $0x8] sm:$0xff]  ;;  %v665_v8 = vpack.c.bf16 %v664_v6, %v663_v3  ;;  %v2276_v42 = vld [vmem:[#allocation3 + $0x264] sm:$0xf0]  ;;  %v2117_v44 = vld [vmem:[#allocation3 + $0x268] sm:$0xf0]  ;;  %v2192_v48 = vor.u32 %v2293_v36, %v2189_v39 }
  0x46   : > { %1135 = vmatpush.bf16.msrb.mxu2 %v2028_v49  ;;  %1149 = vmatpush.bf16.msrb.mxu3 %v2032_v53  ;;  %v646_v9 = vpack.c.bf16 %v645_v7, %v644_v4  ;;  %v2179_v46 = vld [vmem:[#allocation5 + $0x60] sm:$0xf]  ;;  %v2292_v47 = vld [vmem:[#allocation5 + $0x64] sm:$0xf0]  ;;  %v2116_v49 = vor.u32 %v2276_v42, %v2115_v40  ;;  %v2120_v50 = vor.u32 %v2275_v43, %v2117_v44  ;;  %v2291_v51 = vld [vmem:[#allocation5 + $0x64] sm:$0xf] }
  0x47   : > { %771 = vmatmul.bf16.vlgmr.msra.gmra.mxu0 %v665_v8  ;;  %785 = vmatmul.bf16.vlgmr.msra.gmra.mxu1 %v665_v8  ;;  %v2181_v52 = vld [vmem:[#allocation5 + $0x68] sm:$0xf0]  ;;  %v2180_v54 = vor.u32 %v2292_v47, %v2179_v46  ;;  %v1032_v55 = vld [vmem:[#allocation2 + $0xb] sm:$0xff]  ;;  %v2109_v60 = vld [vmem:[#allocation3 + $0x258] sm:$0xf0] }
  0x48   : > { %1004 = vmatpush.bf16.msrb.mxu0 %v1956_v58  ;;  %879 = vmatmul.bf16.vlgmr.msra.gmra.mxu2 %v646_v9  ;;  %v1031_v53 = vld [vmem:[#allocation2 + $0x3] sm:$0xff]  ;;  %v2274_v57 = vld [vmem:[#allocation3 + $0x254] sm:$0xf0]  ;;  %v2184_v58 = vor.u32 %v2291_v51, %v2181_v52  ;;  %v2273_v59 = vld [vmem:[#allocation3 + $0x254] sm:$0xf] }
  0x49   : > { %1018 = vmatpush.bf16.msrb.mxu1 %v1960_v62  ;;  %893 = vmatmul.bf16.vlgmr.msra.gmra.mxu3 %v646_v9  ;;  %v2107_v56 = vld [vmem:[#allocation3 + $0x250] sm:$0xf]  ;;  %v901_v62 = vpack.c.bf16 %v2566_v38, %v2564_v37  ;;  %v2289_v0 = vld [vmem:[#allocation5 + $0x54] sm:$0xf]  ;;  %v2173_v1 = vld [vmem:[#allocation5 + $0x58] sm:$0xf0]  ;;  %v1033_v2 = vpack.c.bf16 %v1032_v55, %v1031_v53  ;;  %v2112_v4 = vor.u32 %v2273_v59, %v2109_v60 }
  0x4a   : > { %1136 = vmatpush.bf16.msrb.mxu2 %v2020_v63  ;;  %1150 = vmatpush.bf16.msrb.mxu3 %v2024_v10  ;;  %v2171_v61 = vld [vmem:[#allocation5 + $0x50] sm:$0xf]  ;;  %v2290_v63 = vld [vmem:[#allocation5 + $0x54] sm:$0xf0]  ;;  %v2108_v3 = vor.u32 %v2274_v57, %v2107_v56  ;;  %v2099_v5 = vld [vmem:[#allocation3 + $0x240] sm:$0xf]  ;;  %v2176_v8 = vor.u32 %v2289_v0, %v2173_v1  ;;  %v638_v53 = vpack.c.bf16 %v2564_v37, %v2564_v37 }
  0x4b   : > { %v2272_v6 = vld [vmem:[#allocation3 + $0x244] sm:$0xf0]  ;;  %v2172_v7 = vor.u32 %v2290_v63, %v2171_v61  ;;  %v2271_v9 = vld [vmem:[#allocation3 + $0x244] sm:$0xf]  ;;  %v2101_v10 = vld [vmem:[#allocation3 + $0x248] sm:$0xf0] }
  0x4c   : > { %1005 = vmatpush.bf16.msrb.mxu0 %v1948_v11  ;;  %v2163_v11 = vld [vmem:[#allocation5 + $0x40] sm:$0xf]  ;;  %v2288_v12 = vld [vmem:[#allocation5 + $0x44] sm:$0xf0]  ;;  %v2287_v13 = vld [vmem:[#allocation5 + $0x44] sm:$0xf] }
  0x4d   : > { %1019 = vmatpush.bf16.msrb.mxu1 %v1952_v15  ;;  %v2165_v14 = vld [vmem:[#allocation5 + $0x48] sm:$0xf0]  ;;  %v2100_v15 = vor.u32 %v2272_v6, %v2099_v5  ;;  %v2091_v17 = vld [vmem:[#allocation3 + $0x230] sm:$0xf]  ;;  %v2270_v18 = vld [vmem:[#allocation3 + $0x234] sm:$0xf0]  ;;  %v2164_v19 = vor.u32 %v2288_v12, %v2163_v11  ;;  %v1382_v6 = vunpack.c.l.b16 %v638_v53 }
  0x4e   : > { %1137 = vmatpush.bf16.msrb.mxu2 %v2012_v16  ;;  %1151 = vmatpush.bf16.msrb.mxu3 %v2016_v26  ;;  %v2104_v16 = vor.u32 %v2271_v9, %v2101_v10  ;;  %v2168_v20 = vor.u32 %v2287_v13, %v2165_v14  ;;  %v2269_v21 = vld [vmem:[#allocation3 + $0x234] sm:$0xf]  ;;  %v2093_v22 = vld [vmem:[#allocation3 + $0x238] sm:$0xf0]  ;;  %v2155_v23 = vld [vmem:[#allocation5 + $0x30] sm:$0xf] }
  0x4f   : > { %v2286_v24 = vld [vmem:[#allocation5 + $0x34] sm:$0xf0]  ;;  %v2285_v25 = vld [vmem:[#allocation5 + $0x34] sm:$0xf]  ;;  %v2157_v26 = vld [vmem:[#allocation5 + $0x38] sm:$0xf0]  ;;  %v2096_v28 = vor.u32 %v2269_v21, %v2093_v22 }
  0x50   : > { %1006 = vmatpush.bf16.msrb.mxu0 %v1940_v27  ;;  %v2092_v27 = vor.u32 %v2270_v18, %v2091_v17  ;;  %v2083_v29 = vld [vmem:[#allocation3 + $0x220] sm:$0xf]  ;;  %v2160_v32 = vor.u32 %v2285_v25, %v2157_v26  ;;  %v2267_v33 = vld [vmem:[#allocation3 + $0x224] sm:$0xf]  ;;  %v2284_v36 = vld [vmem:[#allocation5 + $0x24] sm:$0xf0] }
  0x51   : > { %1020 = vmatpush.bf16.msrb.mxu1 %v1944_v30  ;;  %v2268_v30 = vld [vmem:[#allocation3 + $0x224] sm:$0xf0]  ;;  %v2283_v39 = vld [vmem:[#allocation5 + $0x24] sm:$0xf]  ;;  %v2149_v40 = vld [vmem:[#allocation5 + $0x28] sm:$0xf0] }
  0x52   : > { %1138 = vmatpush.bf16.msrb.mxu2 %v2004_v31  ;;  %1152 = vmatpush.bf16.msrb.mxu3 %v2008_v45  ;;  %v2156_v31 = vor.u32 %v2286_v24, %v2155_v23  ;;  %v2075_v43 = vld [vmem:[#allocation3 + $0x210] sm:$0xf]  ;;  %v2266_v44 = vld [vmem:[#allocation3 + $0x214] sm:$0xf0]  ;;  %v2152_v46 = vor.u32 %v2283_v39, %v2149_v40  ;;  %v2265_v47 = vld [vmem:[#allocation3 + $0x214] sm:$0xf] }
  0x53   : > { %v2281_v51 = vld [vmem:[#allocation5 + $0x14] sm:$0xf]  ;;  %v2141_v52 = vld [vmem:[#allocation5 + $0x18] sm:$0xf0]  ;;  %v2067_v56 = vld [vmem:[#allocation3 + $0x200] sm:$0xf] }
  0x54   : > { %1263 = vmatpush.bf16.msra.mxu0 %v2124_v34  ;;  %v2085_v34 = vld [vmem:[#allocation3 + $0x228] sm:$0xf0]  ;;  %v2264_v57 = vld [vmem:[#allocation3 + $0x204] sm:$0xf0]  ;;  %v2144_v60 = vor.u32 %v2281_v51, %v2141_v52  ;;  %v2263_v61 = vld [vmem:[#allocation3 + $0x204] sm:$0xf] }
  0x55   : > { %1277 = vmatpush.bf16.msra.mxu1 %v2128_v35  ;;  %v2147_v35 = vld [vmem:[#allocation5 + $0x20] sm:$0xf]  ;;  %v2088_v42 = vor.u32 %v2267_v33, %v2085_v34  ;;  %v2280_v0 = vld [vmem:[#allocation5 + $0x4] sm:$0xf0]  ;;  %v2279_v1 = vld [vmem:[#allocation5 + $0x4] sm:$0xf]  ;;  %v2068_v37 = vor.u32 %v2264_v57, %v2067_v56 }
  0x56   : > { %1466 = vmatpush.bf16.msra.mxu2 %v2188_v41  ;;  %1480 = vmatpush.bf16.msra.mxu3 %v2192_v48  ;;  %v2084_v41 = vor.u32 %v2268_v30, %v2083_v29  ;;  %v2148_v45 = vor.u32 %v2284_v36, %v2147_v35  ;;  %v2077_v48 = vld [vmem:[#allocation3 + $0x218] sm:$0xf0]  ;;  %v2131_v63 = vld [vmem:[#allocation5] sm:$0xf]  ;;  %v1164_v5 = vld [vmem:[#allocation2 + $0xc] sm:$0xff] }
  0x57   : > { %1007 = vmatmul.bf16.vlgmr.msrb.gmra.mxu0 %v901_v62  ;;  %1021 = vmatmul.bf16.vlgmr.msrb.gmra.mxu1 %v901_v62  ;;  %v2080_v55 = vor.u32 %v2265_v47, %v2077_v48  ;;  %v2069_v62 = vld [vmem:[#allocation3 + $0x208] sm:$0xf0]  ;;  %v1295_v29 = vld [vmem:[%s2642_s7] sm:$0x3] }
  0x58   : > { %1264 = vmatpush.bf16.msra.mxu0 %v2116_v49  ;;  %1139 = vmatmul.bf16.vlgmr.msrb.gmra.mxu2 %v1033_v2  ;;  %v2139_v49 = vld [vmem:[#allocation5 + $0x10] sm:$0xf]  ;;  %v1297_v34 = vperm.slane %v1295_v29, 0  ;;  %v1298_v35 = vperm.slane %v1295_v29, 1 }
  0x59   : > { %1278 = vmatpush.bf16.msra.mxu1 %v2120_v50  ;;  %1153 = vmatmul.bf16.vlgmr.msrb.gmra.mxu3 %v1033_v2  ;;  %v2282_v50 = vld [vmem:[#allocation5 + $0x14] sm:$0xf0]  ;;  %v2133_v2 = vld [vmem:[#allocation5 + $0x8] sm:$0xf0] }
  0x5a   : > { %1467 = vmatpush.bf16.msra.mxu2 %v2180_v54  ;;  %1481 = vmatpush.bf16.msra.mxu3 %v2184_v58  ;;  %v2076_v54 = vor.u32 %v2266_v44, %v2075_v43  ;;  %v639_v58 = vpack.c.bf16 %v2566_v38, %v2566_v38  ;;  %v2140_v59 = vor.u32 %v2282_v50, %v2139_v49 }
  0x5b   : > { %v2132_v38 = vor.u32 %v2280_v0, %v2131_v63 }
  0x5c   : > { %1265 = vmatpush.bf16.msra.mxu0 %v2108_v3  ;;  %v2072_v3 = vor.u32 %v2263_v61, %v2069_v62 }
  0x5d   : > { %1279 = vmatpush.bf16.msra.mxu1 %v2112_v4  ;;  %v1163_v4 = vld [vmem:[#allocation2 + $0x4] sm:$0xff] }
  0x5e   : > { %1468 = vmatpush.bf16.msra.mxu2 %v2172_v7  ;;  %1482 = vmatpush.bf16.msra.mxu3 %v2176_v8  ;;  %v1383_v7 = vunpack.c.l.b16 %v639_v58  ;;  %v2136_v8 = vor.u32 %v2279_v1, %v2133_v2  ;;  %v1165_v9 = vpack.c.bf16 %v1164_v5, %v1163_v4 }
  0x60   : > { %1266 = vmatpush.bf16.msra.mxu0 %v2100_v15  ;;  %v1384_v10 = vpack.c.b16 %v1383_v7, %v1382_v6 }
  0x61   : > { %1280 = vmatpush.bf16.msra.mxu1 %v2104_v16 }
  0x62   : > { %1469 = vmatpush.bf16.msra.mxu2 %v2164_v19  ;;  %1483 = vmatpush.bf16.msra.mxu3 %v2168_v20 }
  0x64   : > { %1267 = vmatpush.bf16.msra.mxu0 %v2092_v27 }
  0x65   : > { %1281 = vmatpush.bf16.msra.mxu1 %v2096_v28 }
  0x66   : > { %1470 = vmatpush.bf16.msra.mxu2 %v2156_v31  ;;  %1484 = vmatpush.bf16.msra.mxu3 %v2160_v32 }
  0x68   : > { %1268 = vmatpush.bf16.msra.mxu0 %v2084_v41 }
  0x69   : > { %1282 = vmatpush.bf16.msra.mxu1 %v2088_v42  ;;  %v1374_v42 = vld [vmem:[%s2644_s9] sm:$0x3] }
  0x6a   : > { %1471 = vmatpush.bf16.msra.mxu2 %v2148_v45  ;;  %1485 = vmatpush.bf16.msra.mxu3 %v2152_v46  ;;  %v1376_v47 = vperm.slane %v1374_v42, 0  ;;  %v1377_v48 = vperm.slane %v1374_v42, 1 }
  0x6c   : > { %1269 = vmatpush.bf16.msra.mxu0 %v2076_v54 }
  0x6d   : > { %1283 = vmatpush.bf16.msra.mxu1 %v2080_v55 }
  0x6e   : > { %1472 = vmatpush.bf16.msra.mxu2 %v2140_v59  ;;  %1486 = vmatpush.bf16.msra.mxu3 %v2144_v60 }
  0x70   : > { %1270 = vmatpush.bf16.msra.mxu0 %v2068_v37 }
  0x71   : > { %1284 = vmatpush.bf16.msra.mxu1 %v2072_v3 }
  0x72   : > { %1473 = vmatpush.bf16.msra.mxu2 %v2132_v38  ;;  %1487 = vmatpush.bf16.msra.mxu3 %v2136_v8 }
  0x73   : > { %1271 = vmatmul.bf16.vlgmr.msra.gmra.mxu0 %v1165_v9 }
  0x74   : > { %1285 = vmatmul.bf16.vlgmr.msra.gmra.mxu1 %v1165_v9  ;;  %v1347_v9 = vlaneseq }
  0x75   : > { %1474 = vmatmul.bf16.vlgmr.msra.gmra.mxu2 %v1384_v10  ;;  %1488 = vmatmul.bf16.vlgmr.msra.gmra.mxu3 %v1384_v10 }
  0x76   : > { %vm2604_vm1 = vcmp.lt.s32.totalorder %v1347_v9, 256 }
  0xc4   : > { %v772_v11 = vpop.f32.mrf.mxu0  ;;  %v786_v12 = vpop.f32.mrf.mxu1 }
  0xcb   : > { %v880_v13 = vpop.f32.mrf.mxu2 }
  0xcc   : > { %v894_v14 = vpop.f32.mrf.mxu3  ;;  %v774_v15 = vpop.f32.mrf.mxu0  ;;  %v881_v23 = vadd.f32 %v880_v13, %v772_v11 }
  0xcd   : > { %v788_v16 = vpop.f32.mrf.mxu1  ;;  %v895_v24 = vadd.f32 %v894_v14, %v786_v12 }
  0xd3   : > { %v882_v17 = vpop.f32.mrf.mxu2 }
  0xd4   : > { %v896_v18 = vpop.f32.mrf.mxu3  ;;  %v1008_v19 = vpop.f32.mrf.mxu0  ;;  %v883_v43 = vadd.f32 %v882_v17, %v774_v15 }
  0xd5   : > { %v1022_v20 = vpop.f32.mrf.mxu1  ;;  %v1027_v27 = vadd.f32 %v1008_v19, %v881_v23  ;;  %v897_v44 = vadd.f32 %v896_v18, %v788_v16 }
  0xd6   : > { %v1028_v28 = vadd.f32 %v1022_v20, %v895_v24 }
  0xdb   : > { %v1140_v21 = vpop.f32.mrf.mxu2 }
  0xdc   : > { %v1154_v22 = vpop.f32.mrf.mxu3  ;;  %v1010_v25 = vpop.f32.mrf.mxu0  ;;  %v1159_v30 = vadd.f32 %v1140_v21, %v1027_v27 }
  0xdd   : > { %v1024_v26 = vpop.f32.mrf.mxu1  ;;  %v1160_v31 = vadd.f32 %v1154_v22, %v1028_v28  ;;  %v1029_v49 = vadd.f32 %v1010_v25, %v883_v43 }
  0xde   : > { %v1030_v50 = vadd.f32 %v1024_v26, %v897_v44 }
  0xe3   : > { %v1142_v32 = vpop.f32.mrf.mxu2 }
  0xe4   : > { %v1156_v33 = vpop.f32.mrf.mxu3  ;;  %v1161_v52 = vadd.f32 %v1142_v32, %v1029_v49 }
  0xe5   : > { %v1162_v53 = vadd.f32 %v1156_v33, %v1030_v50 }
  0xf0   : > { %v1272_v36 = vpop.f32.mrf.mxu0 }
  0xf1   : > { %v1286_v39 = vpop.f32.mrf.mxu1  ;;  %v1291_v40 = vadd.f32 %v1272_v36, %v1159_v30 }
  0xf2   : > { %v1292_v41 = vadd.f32 %v1286_v39, %v1160_v31 }
  0xf3   : > { %v1301_v45 = vadd.f32 %v1297_v34, %v1291_v40 }
  0xf4   : > { %v1302_v46 = vadd.f32 %v1298_v35, %v1292_v41 }
  0xf5   : > { %v1323_v1 = vmul.f32 %v1301_v45, %v1301_v45 }
  0xf6   : > { %v1305_v51 = vpack.c.bf16 %v1302_v46, %v1301_v45  ;;  %v1324_v5 = vmul.f32 %v1302_v46, %v1302_v46 }
  0xf8   : > { %1307 = vst [vmem:[%s2586_s29] sm:$0xff] %v1305_v51  ;;  %v1475_v54 = vpop.f32.mrf.mxu2  ;;  %v1489_v55 = vpop.f32.mrf.mxu3 }
  0xf9   : > { %v1476_v56 = vadd.f32 %v1475_v54, %v1376_v47  ;;  %v1490_v57 = vadd.f32 %v1489_v55, %v1377_v48  ;;  %v1274_v58 = vpop.f32.mrf.mxu0  ;;  %v1288_v59 = vpop.f32.mrf.mxu1 }
  0xfa   : > { %v1293_v60 = vadd.f32 %v1274_v58, %v1161_v52  ;;  %v1294_v61 = vadd.f32 %v1288_v59, %v1162_v53 }
  0xfb   : > { %v1494_v62 = vpack.c.bf16 %v1490_v57, %v1476_v56  ;;  %v1518_v12 = vmul.f32 %v1476_v56, %v1476_v56  ;;  %v1519_v16 = vmul.f32 %v1490_v57, %v1490_v57 }
  0xfc   : > { %v1303_v63 = vadd.f32 %v1297_v34, %v1293_v60  ;;  %v1304_v0 = vadd.f32 %v1298_v35, %v1294_v61 }
  0xfd   : > { %1496 = vst [vmem:[%s2592_s17] sm:$0xff] %v1494_v62 }
  0xfe   : > { %v1309_v2 = vadd.f32 %v1303_v63, %v1301_v45  ;;  %v1325_v37 = vmul.f32 %v1303_v63, %v1303_v63  ;;  %v1306_v3 = vpack.c.bf16 %v1304_v0, %v1303_v63  ;;  %v1316_v4 = vadd.f32 %v1304_v0, %v1302_v46 }
  0xff   : > { %v1326_v6 = vmul.f32 %v1304_v0, %v1304_v0 }
 0x100   : > { %v1310_v7 = vrot.slane %v1309_v2, 4  ;;  %v1327_v38 = vadd.f32 %v1325_v37, %v1323_v1  ;;  %1308 = vst [vmem:[%s2586_s29 + $0x8] sm:$0xff] %v1306_v3  ;;  %v1317_v8 = vrot.slane %v1316_v4, 4  ;;  %v1477_v10 = vpop.f32.mrf.mxu2  ;;  %v1491_v11 = vpop.f32.mrf.mxu3 }
 0x101   : > { %v1334_v13 = vadd.f32 %v1326_v6, %v1324_v5  ;;  %v1478_v14 = vadd.f32 %v1477_v10, %v1376_v47  ;;  %v1492_v15 = vadd.f32 %v1491_v11, %v1377_v48 }
 0x102   : > { %v1311_v17 = vadd.f32 %v1310_v7, %v1309_v2  ;;  %v1328_v18 = vrot.slane %v1327_v38, 4  ;;  %v1318_v19 = vadd.f32 %v1317_v8, %v1316_v4 }
 0x103   : > { %v1335_v20 = vrot.slane %v1334_v13, 4  ;;  %v1498_v21 = vadd.f32 %v1478_v14, %v1476_v56  ;;  %v1520_v22 = vmul.f32 %v1478_v14, %v1478_v14  ;;  %v1495_v23 = vpack.c.bf16 %v1492_v15, %v1478_v14 }
 0x104   : > { %v1312_v24 = vrot.slane %v1311_v17, 2  ;;  %v1329_v25 = vadd.f32 %v1328_v18, %v1327_v38  ;;  %v1319_v26 = vrot.slane %v1318_v19, 2  ;;  %v1505_v27 = vadd.f32 %v1492_v15, %v1490_v57 }
 0x105   : > { %v1336_v28 = vadd.f32 %v1335_v20, %v1334_v13  ;;  %v1499_v29 = vrot.slane %v1498_v21, 4  ;;  %v1522_v30 = vadd.f32 %v1520_v22, %v1518_v12  ;;  %1497 = vst [vmem:[%s2592_s17 + $0x8] sm:$0xff] %v1495_v23  ;;  %v1521_v31 = vmul.f32 %v1492_v15, %v1492_v15 }
 0x106   : > { %v1313_v32 = vadd.f32 %v1312_v24, %v1311_v17  ;;  %v1330_v33 = vrot.slane %v1329_v25, 2  ;;  %v1320_v34 = vadd.f32 %v1319_v26, %v1318_v19  ;;  %v1506_v35 = vrot.slane %v1505_v27, 4 }
 0x107   : > { %v1337_v36 = vrot.slane %v1336_v28, 2  ;;  %v1500_v39 = vadd.f32 %v1499_v29, %v1498_v21  ;;  %v1523_v40 = vrot.slane %v1522_v30, 4  ;;  %v1529_v41 = vadd.f32 %v1521_v31, %v1519_v16 }
 0x108   : > { %v1314_v42 = vrot.slane %v1313_v32, 1  ;;  %v1331_v43 = vadd.f32 %v1330_v33, %v1329_v25  ;;  %v1321_v44 = vrot.slane %v1320_v34, 1  ;;  %v1507_v45 = vadd.f32 %v1506_v35, %v1505_v27 }
 0x109   : > { %v1338_v46 = vadd.f32 %v1337_v36, %v1336_v28  ;;  %v1501_v47 = vrot.slane %v1500_v39, 2  ;;  %v1524_v48 = vadd.f32 %v1523_v40, %v1522_v30  ;;  %v1530_v49 = vrot.slane %v1529_v41, 4 }
 0x10a   : > { %v1332_v50 = vrot.slane %v1331_v43, 1  ;;  %v1322_v51 = vadd.f32 %v1321_v44, %v1320_v34  ;;  %v1508_v52 = vrot.slane %v1507_v45, 2  ;;  %v1315_v57 = vadd.f32 %v1314_v42, %v1313_v32 }
 0x10b   : > { %v1339_v53 = vrot.slane %v1338_v46, 1  ;;  %v1502_v54 = vadd.f32 %v1501_v47, %v1500_v39  ;;  %v1525_v55 = vrot.slane %v1524_v48, 2  ;;  %v1531_v56 = vadd.f32 %v1530_v49, %v1529_v41 }
 0x10c   : > { %v1343_v58 = vrot.slane %v1322_v51, 7  ;;  %v1509_v60 = vadd.f32 %v1508_v52, %v1507_v45  ;;  %v1333_v37 = vadd.f32 %v1332_v50, %v1331_v43 }
 0x10d   : > { %v1340_v61 = vadd.f32 %v1339_v53, %v1338_v46  ;;  %v1526_v62 = vadd.f32 %v1525_v55, %v1524_v48  ;;  %v1532_v63 = vrot.slane %v1531_v56, 2  ;;  %v1503_v1 = vrot.slane %v1502_v54, 1 }
 0x10e   : > { %v1345_v0 = vsel %vm1344_vm0, %v1315_v57, %v1343_v58  ;;  %v1510_v2 = vrot.slane %v1509_v60, 1 }
 0x10f   : > { %1351 = vst.msk [vmem:[%s584_s22] sm:$0x3] %vm2604_vm1, %v1345_v0  ;;  %v1354_v3 = vrot.slane %v1340_v61, 7  ;;  %v1533_v4 = vadd.f32 %v1532_v63, %v1531_v56  ;;  %v1527_v7 = vrot.slane %v1526_v62, 1  ;;  %v1504_v8 = vadd.f32 %v1503_v1, %v1502_v54 }
 0x110   : > { %v1511_v5 = vadd.f32 %v1510_v2, %v1509_v60 }
 0x111   : > { %v1355_v6 = vsel %vm1344_vm0, %v1333_v37, %v1354_v3  ;;  %v1534_v38 = vrot.slane %v1533_v4, 1  ;;  %v1528_v12 = vadd.f32 %v1527_v7, %v1526_v62 }
 0x112   : > { %1357 = vst.msk [vmem:[%s588_s25] sm:$0x3] %vm2604_vm1, %v1355_v6  ;;  %v1514_v9 = vrot.slane %v1511_v5, 7 }
 0x113   : > { %v1535_v10 = vadd.f32 %v1534_v38, %v1533_v4 }
 0x114   : > { %v1515_v11 = vsel %vm1344_vm0, %v1504_v8, %v1514_v9 }
 0x115   : > { %1517 = vst.msk [vmem:[%s597_s28] sm:$0x3] %vm2604_vm1, %v1515_v11  ;;  %v1538_v13 = vrot.slane %v1535_v10, 7 }
 0x117   : > { %v1539_v14 = vsel %vm1344_vm0, %v1528_v12, %v1538_v13 }
 0x118   : > { %1541 = vst.msk [vmem:[%s601_s16] sm:$0x3] %vm2604_vm1, %v1539_v14 }
 0x119 PF: > { %s28_s18 = sadd.s32 1, %s2413_s18  }
 0x11a   : > { %p25_p7 = scmp.ge.s32.totalorder %s28_s18, 4  }
 0x11c   :  { %27 = sbr.rel (!%p25_p7) target bundleno = 2 (0x2), region = 166 }
 0x121   :  { %1635 = vsyncpa [#allocation4], 1 }
 0x122   :  { %1637 = vsyncpa [#allocation4 + $0x1], 1 }
 0x123   :  { %1638 = vsyncpa [#allocation6], 1 }

// kernel: model_forward.12
= control target key start
LH: loop header
LB: loop body
LE: loop exit
PB: predicated region body
PF: predicated region fallthrough
CT: control target
= control target key end

     0   :  { %13 = vsyncpa [#allocation4], 0  ;;  %s982_s24 = smov 0   ;;  %s1026_s0 = inlined_call_operand.vmem [shape: bf16[2,16,128], index: 0, kind: input, shape index: {}]   ;;  %s1027_s1 = inlined_call_operand.vmem [shape: f32[1,128], index: 1, kind: input, shape index: {}]   ;;  %s1028_s2 = inlined_call_operand.vmem [shape: f32[1,128], index: 2, kind: input, shape index: {}]   ;;  %s1029_s3 = inlined_call_operand.hbm [shape: bf16[3,128,128], index: 3, kind: input, shape index: {}]   ;;  %s1030_s4 = inlined_call_operand.vmem [shape: f32[1,128], index: 4, kind: input, shape index: {}]   ;;  %s1031_s5 = inlined_call_operand.vmem [shape: bf16[2,16,128], index: 5, kind: output, shape index: {0}]   ;;  %s1032_s6 = inlined_call_operand.vmem [shape: f32[2,1,128], index: 6, kind: output, shape index: {1}]   ;;  %s1033_s7 = inlined_call_operand.vmem [shape: f32[2,1,128], index: 7, kind: output, shape index: {2}]  }
   0x1 LB: > { %s229_s27 = sshll.u32 %s1029_s3, 4  ;;  %s727_s28 = sadd.s32 4294967295, %s936_s24   ;;  %s936_s24 = sphi %s982_s24, %s19_s24   ;;  %s230_s27 = int_to_ptr.hbm [resolvable:$true] %s229_s27 }
   0x2   : > { %p729_p0 = scmp.ge.s32.totalorder %s936_s24, 1  ;;  %p212_p1 = scmp.lt.s32.totalorder %s936_s24, 3 }
   0x3   : > { %p879_p2 = scmp.eq.s32.totalorder %s727_s28, 0  ;;  %s938_s29 = smov [#allocation3]  }
   0x4   : > { %p213_p3 = pnand %p729_p0, %p212_p1  ;;  %s231_s30 = sshll.u32 %s938_s29, 4  ;;  %s232_s30 = int_to_ptr.vmem [resolvable:$true] %s231_s30 }
   0x5   : > { %s939_s8 = smov 64   ;;  %s940_s9 = smov 4  }
   0x6   : > { %p875_p4 = pneg %p213_p3  ;;  %258 = sbr.rel (%p213_p3) target bundleno = 207 (0xcf), region = 40 }
   0x8   : > { %p876_p5 = pnand %p879_p2, %p875_p4 }
   0xa   : > { %878 = dma.hbm_to_vmem [thread:$0]  (!%p876_p5), %s230_s27, 3072, %s232_s30, [#allocation4], %s939_s8, %s939_s8, %s940_s9  }
   0xb   : > { %931 = dma.done.wait (%p879_p2), [#allocation4], 3072  }
   0xc   : > { %933 = vsyncadd (%p879_p2), [#allocation4], 4294964224  ;;  %p297_p6 = scmp.lt.s32.totalorder %s727_s28, 1  ;;  %v941_v0 = vmov 0.0   ;;  %v853_v1 = vld [vmem:[#allocation3 + $0x78] sm:$0xff]  ;;  %v852_v4 = vld [vmem:[#allocation3 + $0x70] sm:$0xff] }
   0xd   : > { %333 = vst [vmem:[#allocation2] sm:$0x1] %v941_v0  ;;  %v845_v2 = vld [vmem:[#allocation3 + $0x38] sm:$0xff]  ;;  %422 = vmatpush.bf16.msra.mxu0 %v853_v1  ;;  %v844_v5 = vld [vmem:[#allocation3 + $0x30] sm:$0xff]  ;;  %v851_v7 = vld [vmem:[#allocation3 + $0x68] sm:$0xff] }
   0xe   : > { %334 = vst [vmem:[#allocation2 + $0x11] sm:$0x1] %v941_v0  ;;  %s1035_s28 = smov (!%p297_p6, %s727_s28), 1  ;;  %v861_v3 = vld [vmem:[#allocation3 + $0xb8] sm:$0xff]  ;;  %484 = vmatpush.bf16.msra.mxu1 %v845_v2  ;;  %v860_v6 = vld [vmem:[#allocation3 + $0xb0] sm:$0xff]  ;;  %v843_v8 = vld [vmem:[#allocation3 + $0x28] sm:$0xff] }
   0xf   : > { %s836_s10 = sshll.u32 %s1035_s28, 3  ;;  %566 = vmatpush.bf16.msra.mxu2 %v861_v3  ;;  %v859_v9 = vld [vmem:[#allocation3 + $0xa8] sm:$0xff]  ;;  %v850_v15 = vld [vmem:[#allocation3 + $0x60] sm:$0xff]  ;;  %v849_v22 = vld [vmem:[#allocation3 + $0x58] sm:$0xff]  ;;  %s309_s26 = scalar_lea.vmem %s1032_s6, %s1035_s28 }
  0x10   : > { %s301_s13 = scalar_lea.vmem %s1026_s0, %s836_s10  ;;  %v893_v11 = vld [vmem:[%s1027_s1] ss:$0 sm:$0xff]  ;;  %v842_v16 = vld [vmem:[#allocation3 + $0x20] sm:$0xff]  ;;  %v841_v23 = vld [vmem:[#allocation3 + $0x18] sm:$0xff]  ;;  %s306_s22 = scalar_lea.vmem %s1031_s5, %s836_s10 }
  0x11   : > { %423 = vmatpush.bf16.msra.mxu0 %v852_v4  ;;  %v863_v10 = vld [vmem:[%s301_s13] sm:$0xff]   ;;  %v858_v17 = vld [vmem:[#allocation3 + $0xa0] sm:$0xff]  ;;  %v857_v24 = vld [vmem:[#allocation3 + $0x98] sm:$0xff]  ;;  %s312_s30 = scalar_lea.vmem %s1033_s7, %s1035_s28 }
  0x12   : > { %485 = vmatpush.bf16.msra.mxu1 %v844_v5  ;;  %v864_v12 = vunpack.c.l.bf16 %v863_v10  ;;  %v865_v13 = vunpack.c.h.bf16 %v863_v10  ;;  %v894_v14 = vld [vmem:[%s1028_s2] ss:$0 sm:$0xff]  ;;  %v848_v27 = vld [vmem:[#allocation3 + $0x50] sm:$0xff]  ;;  %v846_v33 = vld [vmem:[#allocation3 + $0x40] sm:$0xff] }
  0x13   : > { %567 = vmatpush.bf16.msra.mxu2 %v860_v6  ;;  %v840_v28 = vld [vmem:[#allocation3 + $0x10] sm:$0xff]  ;;  %v847_v30 = vld [vmem:[#allocation3 + $0x48] sm:$0xff]  ;;  %v838_v34 = vld [vmem:[#allocation3] sm:$0xff] }
  0x14   : > { %v321_v18 = vmul.f32 %v893_v11, %v864_v12  ;;  %v322_v19 = vmul.f32 %v893_v11, %v865_v13  ;;  %v856_v29 = vld [vmem:[#allocation3 + $0x90] sm:$0xff]  ;;  %v839_v31 = vld [vmem:[#allocation3 + $0x8] sm:$0xff]  ;;  %v854_v37 = vld [vmem:[#allocation3 + $0x80] sm:$0xff] }
  0x15   : > { %424 = vmatpush.bf16.msra.mxu0 %v851_v7  ;;  %v855_v32 = vld [vmem:[#allocation3 + $0x88] sm:$0xff] }
  0x16   : > { %486 = vmatpush.bf16.msra.mxu1 %v843_v8  ;;  %v327_v20 = vadd.f32 %v894_v14, %v321_v18  ;;  %v328_v21 = vadd.f32 %v894_v14, %v322_v19  ;;  %v895_v50 = vld [vmem:[%s1030_s4] ss:$0 sm:$0xff] }
  0x17   : > { %568 = vmatpush.bf16.msra.mxu2 %v859_v9 }
  0x18   : > { %v329_v25 = vmax.f32 %v327_v20, 0.0  ;;  %v330_v26 = vmax.f32 %v328_v21, 0.0 }
  0x19   : > { %425 = vmatpush.bf16.msra.mxu0 %v850_v15 }
  0x1a   : > { %487 = vmatpush.bf16.msra.mxu1 %v842_v16  ;;  %331 = vst [vmem:[#allocation2 + $0x1] sm:$0xff] %v329_v25  ;;  %v356_v40 = vpack.c.bf16 %v330_v26, %v329_v25 }
  0x1b   : > { %569 = vmatpush.bf16.msra.mxu2 %v858_v17  ;;  %332 = vst [vmem:[#allocation2 + $0x9] sm:$0xff] %v330_v26 }
  0x1d   : > { %426 = vmatpush.bf16.msra.mxu0 %v849_v22 }
  0x1e   : > { %488 = vmatpush.bf16.msra.mxu1 %v841_v23 }
  0x1f   : > { %570 = vmatpush.bf16.msra.mxu2 %v857_v24 }
  0x21   : > { %427 = vmatpush.bf16.msra.mxu0 %v848_v27  ;;  %v335_v35 = vld [vmem:[#allocation2] sm:$0xff] }
  0x22   : > { %489 = vmatpush.bf16.msra.mxu1 %v840_v28  ;;  %v336_v36 = vld [vmem:[#allocation2 + $0x8] sm:$0xff] }
  0x23   : > { %571 = vmatpush.bf16.msra.mxu2 %v856_v29  ;;  %v498_v38 = vld [vmem:[#allocation2 + $0x2] sm:$0xff]  ;;  %v499_v39 = vld [vmem:[#allocation2 + $0xa] sm:$0xff]  ;;  %v337_v41 = vpack.c.bf16 %v336_v36, %v335_v35 }
  0x24   : > { %v500_v42 = vpack.c.bf16 %v499_v39, %v498_v38 }
  0x25   : > { %428 = vmatpush.bf16.msra.mxu0 %v847_v30 }
  0x26   : > { %490 = vmatpush.bf16.msra.mxu1 %v839_v31 }
  0x27   : > { %572 = vmatpush.bf16.msra.mxu2 %v855_v32 }
  0x29   : > { %429 = vmatpush.bf16.msra.mxu0 %v846_v33 }
  0x2a   : > { %491 = vmatpush.bf16.msra.mxu1 %v838_v34 }
  0x2b   : > { %573 = vmatpush.bf16.msra.mxu2 %v854_v37 }
  0x2c   : > { %430 = vmatmul.bf16.vlgmr.msra.gmra.mxu0 %v356_v40 }
  0x2d   : > { %492 = vmatmul.bf16.vlgmr.msra.gmra.mxu1 %v337_v41 }
  0x2e   : > { %574 = vmatmul.bf16.vlgmr.msra.gmra.mxu2 %v500_v42 }
  0xa9   : > { %v431_v43 = vpop.f32.mrf.mxu0 }
  0xaa   : > { %v493_v44 = vpop.f32.mrf.mxu1 }
  0xab   : > { %v494_v46 = vadd.f32 %v493_v44, %v431_v43 }
  0xb1   : > { %v575_v45 = vpop.f32.mrf.mxu2  ;;  %v433_v47 = vpop.f32.mrf.mxu0 }
  0xb2   : > { %v495_v48 = vpop.f32.mrf.mxu1  ;;  %v580_v49 = vadd.f32 %v575_v45, %v494_v46 }
  0xb3   : > { %v496_v51 = vadd.f32 %v495_v48, %v433_v47 }
  0xb4   : > { %v586_v53 = vadd.f32 %v895_v50, %v580_v49 }
  0xb6   : > { %v599_v56 = vmul.f32 %v586_v53, %v586_v53 }
  0xb9   : > { %v577_v52 = vpop.f32.mrf.mxu2 }
  0xba   : > { %v581_v54 = vadd.f32 %v577_v52, %v496_v51 }
  0xbc   : > { %v587_v55 = vadd.f32 %v895_v50, %v581_v54 }
  0xbe   : > { %v869_v57 = vpack.c.bf16 %v587_v55, %v586_v53  ;;  %v592_v58 = vadd.f32 %v587_v55, %v586_v53  ;;  %v600_v59 = vmul.f32 %v587_v55, %v587_v55 }
  0xc0   : > { %870 = vst [vmem:[%s306_s22] sm:$0xff] %v869_v57   ;;  %v593_v60 = vrot.slane %v592_v58, 4  ;;  %v601_v61 = vadd.f32 %v600_v59, %v599_v56 }
  0xc2   : > { %v594_v62 = vadd.f32 %v593_v60, %v592_v58  ;;  %v602_v63 = vrot.slane %v601_v61, 4 }
  0xc4   : > { %v595_v0 = vrot.slane %v594_v62, 2  ;;  %v603_v1 = vadd.f32 %v602_v63, %v601_v61 }
  0xc6   : > { %v596_v2 = vadd.f32 %v595_v0, %v594_v62  ;;  %v604_v3 = vrot.slane %v603_v1, 2 }
  0xc8   : > { %v597_v4 = vrot.slane %v596_v2, 1  ;;  %v605_v5 = vadd.f32 %v604_v3, %v603_v1 }
  0xca   : > { %v598_v6 = vadd.f32 %v597_v4, %v596_v2  ;;  %v606_v7 = vrot.slane %v605_v5, 1 }
  0xcc   : > { %v607_v8 = vadd.f32 %v606_v7, %v605_v5  ;;  %608 = vst [vmem:[%s309_s26] sm:$0x1] %v598_v6 }
  0xce   : > { %609 = vst [vmem:[%s312_s30] sm:$0x1] %v607_v8 }
  0xcf PF: > { %s19_s24 = sadd.s32 1, %s936_s24  }
  0xd0   : > { %p16_p7 = scmp.ge.s32.totalorder %s19_s24, 4  }
  0xd2   :  { %18 = sbr.rel (!%p16_p7) target bundleno = 1 (0x1), region = 101 }
  0xd7   :  { %655 = vsyncpa [#allocation4], 1 }
  0xd8   :  { %657 = vsyncpa [#allocation4 + $0x1], 1 }

// kernel: model_forward.13
= control target key start
LH: loop header
LB: loop body
LE: loop exit
PB: predicated region body
PF: predicated region fallthrough
CT: control target
= control target key end

     0   :  { %s459_s21 = smov 0   ;;  %s495_s0 = inlined_call_operand.vmem [shape: bf16[2,16,128], index: 0, kind: input, shape index: {}]   ;;  %s496_s1 = inlined_call_operand.vmem [shape: f32[1,128], index: 1, kind: input, shape index: {}]   ;;  %s497_s2 = inlined_call_operand.vmem [shape: f32[1,128], index: 2, kind: input, shape index: {}]   ;;  %s498_s3 = inlined_call_operand.vmem [shape: bf16[2,16,128], index: 3, kind: input, shape index: {}]   ;;  %s499_s4 = inlined_call_operand.vmem [shape: f32[1,128], index: 4, kind: input, shape index: {}]   ;;  %s500_s5 = inlined_call_operand.vmem [shape: f32[1,128], index: 5, kind: input, shape index: {}]   ;;  %s501_s6 = inlined_call_operand.vmem [shape: f32[2,1,128], index: 6, kind: output, shape index: {}]  }
   0x1 LB: > { %s379_s22 = sadd.s32 4294967295, %s421_s21   ;;  %p383_p0 = scmp.ge.s32.totalorder %s421_s21, 1  ;;  %s421_s21 = sphi %s459_s21, %s16_s21  }
   0x2   : > { %p222_p1 = scmp.lt.s32.totalorder %s421_s21, 3 }
   0x4   : > { %p223_p2 = pnand %p383_p0, %p222_p1 }
   0x5   : > { %p255_p3 = scmp.lt.s32.totalorder (!%p223_p2), %s379_s22, 1 }
   0x6   : > { %226 = sbr.rel (%p223_p2) target bundleno = 43 (0x2b), region = 44 }
   0xb   : > { %s503_s22 = smov (!%p255_p3, %s379_s22), 1  ;;  %v423_v0 = vmov 16.0   ;;  %v409_v1 = vld [vmem:[%s496_s1] ss:$0 sm:$0xff] }
   0xc   : > { %413 = vrcp.f32 %v423_v0  ;;  %s390_s23 = sshll.u32 %s503_s22, 3  ;;  %v411_v2 = vld [vmem:[%s499_s4] ss:$0 sm:$0xff]  ;;  %s267_s16 = scalar_lea.vmem %s501_s6, %s503_s22 }
   0xd   : > { %s259_s26 = scalar_lea.vmem %s495_s0, %s390_s23  ;;  %s264_s29 = scalar_lea.vmem %s498_s3, %s390_s23  ;;  %v410_v7 = vld [vmem:[%s497_s2] ss:$0 sm:$0xff] }
   0xe   : > { %v393_v3 = vld [vmem:[%s259_s26] sm:$0xff]  }
   0xf   : > { %v397_v4 = vld [vmem:[%s264_s29] sm:$0xff]   ;;  %v394_v5 = vunpack.c.l.bf16 %v393_v3  ;;  %v395_v6 = vunpack.c.h.bf16 %v393_v3 }
  0x10   : > { %v398_v8 = vunpack.c.l.bf16 %v397_v4  ;;  %v399_v9 = vunpack.c.h.bf16 %v397_v4  ;;  %v412_v10 = vld [vmem:[%s500_s5] ss:$0 sm:$0xff] }
  0x11   : > { %v276_v12 = vmul.f32 %v409_v1, %v394_v5  ;;  %v277_v13 = vmul.f32 %v409_v1, %v395_v6 }
  0x12   : > { %v414_v11 = vpop.eup %413  ;;  %v292_v14 = vmul.f32 %v411_v2, %v398_v8  ;;  %v293_v15 = vmul.f32 %v411_v2, %v399_v9 }
  0x13   : > { %v282_v16 = vadd.f32 %v410_v7, %v276_v12  ;;  %v283_v17 = vadd.f32 %v410_v7, %v277_v13  ;;  %v312_v20 = vmul.f32 16.0, %v414_v11  ;;  %vm316_vm0 = vweird.f32 %v414_v11 }
  0x14   : > { %v298_v18 = vadd.f32 %v412_v10, %v292_v14  ;;  %v299_v19 = vadd.f32 %v412_v10, %v293_v15 }
  0x15   : > { %v313_v25 = vsub.f32 1.0, %v312_v20 }
  0x16   : > { %v300_v21 = vadd.f32 %v298_v18, %v282_v16  ;;  %v301_v22 = vadd.f32 %v299_v19, %v283_v17 }
  0x17   : > { %v314_v28 = vmul.f32 %v414_v11, %v313_v25 }
  0x18   : > { %v302_v23 = vmax.f32 %v300_v21, 0.0  ;;  %v303_v24 = vmax.f32 %v301_v22, 0.0 }
  0x19   : > { %v315_v31 = vadd.f32 %v414_v11, %v314_v28 }
  0x1a   : > { %v304_v26 = vadd.f32 %v303_v24, %v302_v23 }
  0x1b   : > { %v317_v34 = vsel %vm316_vm0, %v414_v11, %v315_v31 }
  0x1c   : > { %v305_v27 = vrot.slane %v304_v26, 4 }
  0x1e   : > { %v306_v29 = vadd.f32 %v305_v27, %v304_v26 }
  0x20   : > { %v307_v30 = vrot.slane %v306_v29, 2 }
  0x22   : > { %v308_v32 = vadd.f32 %v307_v30, %v306_v29 }
  0x24   : > { %v309_v33 = vrot.slane %v308_v32, 1 }
  0x26   : > { %v310_v35 = vadd.f32 %v309_v33, %v308_v32 }
  0x28   : > { %v318_v36 = vmul.f32 %v317_v34, %v310_v35 }
  0x2a   : > { %319 = vst [vmem:[%s267_s16] sm:$0x1] %v318_v36 }
  0x2b PF: > { %s16_s21 = sadd.s32 1, %s421_s21  }
  0x2c   : > { %p13_p4 = scmp.ge.s32.totalorder %s16_s21, 4  }
  0x2e   :  { %15 = sbr.rel (!%p13_p4) target bundleno = 1 (0x1), region = 77 }

// kernel: model_forward.11
= control target key start
LH: loop header
LB: loop body
LE: loop exit
PB: predicated region body
PF: predicated region fallthrough
CT: control target
= control target key end

     0   :  { %21 = vsyncpa [#allocation4], 0  ;;  %s2348_s0 = inlined_call_operand.vmem [shape: bf16[2,16,256], index: 0, kind: input, shape index: {}]   ;;  %s2349_s1 = inlined_call_operand.vmem [shape: bf16[2,16,256], index: 1, kind: input, shape index: {}]   ;;  %s2350_s2 = inlined_call_operand.vmem [shape: f32[1,256], index: 2, kind: input, shape index: {}]   ;;  %s2351_s3 = inlined_call_operand.vmem [shape: f32[1,256], index: 3, kind: input, shape index: {}]   ;;  %s2352_s4 = inlined_call_operand.vmem [shape: f32[1,256], index: 4, kind: input, shape index: {}]   ;;  %s2353_s5 = inlined_call_operand.vmem [shape: f32[1,256], index: 5, kind: input, shape index: {}]   ;;  %s2354_s6 = inlined_call_operand.hbm [shape: bf16[3,256,128], index: 6, kind: input, shape index: {}]   ;;  %s2355_s7 = inlined_call_operand.vmem [shape: f32[1,128], index: 7, kind: input, shape index: {}]   ;;  %s2356_s8 = inlined_call_operand.hbm [shape: bf16[256,128], index: 8, kind: input, shape index: {}]   ;;  %s2357_s9 = inlined_call_operand.vmem [shape: f32[1,128], index: 9, kind: input, shape index: {}]   ;;  %s2358_s10 = inlined_call_operand.vmem [shape: bf16[2,16,128], index: 10, kind: output, shape index: {0}]   ;;  %s2359_s11 = inlined_call_operand.vmem [shape: f32[2,1,128], index: 11, kind: output, shape index: {1}]   ;;  %s2360_s12 = inlined_call_operand.vmem [shape: f32[2,1,128], index: 12, kind: output, shape index: {2}]   ;;  %s2361_s13 = inlined_call_operand.vmem [shape: bf16[2,16,128], index: 13, kind: output, shape index: {3}]   ;;  %s2362_s14 = inlined_call_operand.vmem [shape: f32[2,1,128], index: 14, kind: output, shape index: {4}]   ;;  %s2363_s15 = inlined_call_operand.vmem [shape: f32[2,1,128], index: 15, kind: output, shape index: {5}]  }
   0x1   :  { %22 = vsyncpa [#allocation6], 0  ;;  %s2212_s18 = smov 0  }
   0x2 LB: > { %s432_s21 = sshll.u32 %s2354_s6, 4  ;;  %s2221_s22 = sadd.s32 4294967295, %s2125_s18   ;;  %s2125_s18 = sphi %s2212_s18, %s28_s18   ;;  %s433_s21 = int_to_ptr.hbm [resolvable:$true] %s432_s21 }
   0x3   : > { %p1666_p0 = scmp.ge.s32.totalorder %s2125_s18, 1  ;;  %p409_p1 = scmp.lt.s32.totalorder %s2125_s18, 3 }
   0x4   : > { %p2032_p2 = scmp.eq.s32.totalorder %s2221_s22, 0  ;;  %s2127_s24 = smov [#allocation3]  }
   0x5   : > { %p2226_p3 = pnand %p1666_p0, %p409_p1  ;;  %s434_s25 = sshll.u32 %s2127_s24, 4  ;;  %s435_s25 = int_to_ptr.vmem [resolvable:$true] %s434_s25 }
   0x6   : > { %s449_s28 = sshll.u32 %s2356_s8, 4  ;;  %s2128_s29 = smov [#allocation5]   ;;  %s450_s28 = int_to_ptr.hbm [resolvable:$true] %s449_s28 }
   0x7   : > { %p2025_p4 = pneg %p2226_p3  ;;  %s451_s30 = sshll.u32 %s2128_s29, 4  ;;  %s452_s30 = int_to_ptr.vmem [resolvable:$true] %s451_s30 }
   0x8   : > { %s2129_s16 = smov 64   ;;  %s2130_s17 = smov 4  }
   0x9   : > { %p2026_p5 = pnand %p2032_p2, %p2025_p4  ;;  %486 = sbr.rel (%p2226_p3) target bundleno = 244 (0xf4), region = 60 }
   0xb   : > { %2028 = dma.hbm_to_vmem [thread:$0]  (!%p2026_p5), %s433_s21, 6144, %s435_s25, [#allocation4], %s2129_s16, %s2129_s16, %s2130_s17  }
   0xc   : > { %2031 = dma.hbm_to_vmem [thread:$0]  (!%p2026_p5), %s450_s28, 2048, %s452_s30, [#allocation6], %s2129_s16, %s2129_s16, %s2130_s17  }
   0xe   : > { %2116 = dma.done.wait (%p2032_p2), [#allocation4], 6144  }
   0xf   : > { %2118 = vsyncadd (%p2032_p2), [#allocation4], 4294961152 }
  0x10   : > { %2120 = dma.done.wait (%p2032_p2), [#allocation6], 2048  }
  0x11   : > { %2122 = vsyncadd (%p2032_p2), [#allocation6], 4294965248  ;;  %v679_v0 = vlaneseq  ;;  %p562_p6 = scmp.lt.s32.totalorder %s2221_s22, 1  ;;  %v2131_v1 = vmov 0.0   ;;  %v1966_v2 = vld [vmem:[#allocation3 + $0xb8] sm:$0xff]  ;;  %v1965_v6 = vld [vmem:[#allocation3 + $0xb0] sm:$0xff] }
  0x12   : > { %v1974_v3 = vld [vmem:[#allocation3 + $0xf8] sm:$0xff]  ;;  %890 = vmatpush.bf16.msra.mxu0 %v1966_v2  ;;  %v1973_v7 = vld [vmem:[#allocation3 + $0xf0] sm:$0xff]  ;;  %v1964_v10 = vld [vmem:[#allocation3 + $0xa8] sm:$0xff]  ;;  %vm660_vm1 = vcmask 1040384   ;;  %vm767_vm2 = vsmask.f32 7424 }
  0x13   : > { %vm681_vm0 = vcmp.lt.s32.totalorder %v679_v0, 256  ;;  %v1950_v4 = vld [vmem:[#allocation3 + $0x38] sm:$0xff]  ;;  %904 = vmatpush.bf16.msra.mxu1 %v1974_v3  ;;  %v1949_v8 = vld [vmem:[#allocation3 + $0x30] sm:$0xff]  ;;  %s2366_s22 = smov (!%p562_p6, %s2221_s22), 1  ;;  %v1972_v11 = vld [vmem:[#allocation3 + $0xe8] sm:$0xff]  ;;  %vm1087_vm3 = vcmask 1046528  }
  0x14   : > { %683 = vst.msk [vmem:[#allocation2] ss:$8 sm:$0x3] %vm681_vm0, %v2131_v1  ;;  %v1958_v5 = vld [vmem:[#allocation3 + $0x78] sm:$0xff]  ;;  %1014 = vmatpush.bf16.msra.mxu2 %v1950_v4  ;;  %v1957_v9 = vld [vmem:[#allocation3 + $0x70] sm:$0xff]  ;;  %v1948_v12 = vld [vmem:[#allocation3 + $0x28] sm:$0xff]  ;;  %s579_s21 = scalar_lea.vmem %s2359_s11, %s2366_s22  ;;  %s582_s25 = scalar_lea.vmem %s2360_s12, %s2366_s22 }
  0x15   : > { %686 = vst.msk [vmem:[#allocation2 + $0x21] ss:$8 sm:$0x3] %vm681_vm0, %v2131_v1  ;;  %1028 = vmatpush.bf16.msra.mxu3 %v1958_v5  ;;  %v1956_v13 = vld [vmem:[#allocation3 + $0x68] sm:$0xff]  ;;  %s1939_s19 = sshll.u32 %s2366_s22, 4  ;;  %v1963_v14 = vld [vmem:[#allocation3 + $0xa0] sm:$0xff]  ;;  %s590_s28 = scalar_lea.vmem %s2362_s14, %s2366_s22 }
  0x16   : > { %891 = vmatpush.bf16.msra.mxu0 %v1965_v6  ;;  %v1971_v15 = vld [vmem:[#allocation3 + $0xe0] sm:$0xff]  ;;  %s566_s23 = scalar_lea.vmem %s2348_s0, %s1939_s19  ;;  %s571_s26 = scalar_lea.vmem %s2349_s1, %s1939_s19  ;;  %v1962_v18 = vld [vmem:[#allocation3 + $0x98] sm:$0xff]  ;;  %v600_v25 = vld [vmem:[%s2350_s2] sm:$0x3] }
  0x17   : > { %905 = vmatpush.bf16.msra.mxu1 %v1973_v7  ;;  %v1947_v16 = vld [vmem:[#allocation3 + $0x20] sm:$0xff]  ;;  %v1970_v19 = vld [vmem:[#allocation3 + $0xd8] sm:$0xff]  ;;  %v594_v21 = vld [vmem:[%s566_s23] sm:$0xff]  ;;  %v602_v31 = vperm.slane %v600_v25, 0  ;;  %v603_v40 = vperm.slane %v600_v25, 1  ;;  %s593_s16 = scalar_lea.vmem %s2363_s15, %s2366_s22 }
  0x18   : > { %1015 = vmatpush.bf16.msra.mxu2 %v1949_v8  ;;  %v1955_v17 = vld [vmem:[#allocation3 + $0x60] sm:$0xff]  ;;  %v1946_v20 = vld [vmem:[#allocation3 + $0x18] sm:$0xff]  ;;  %v596_v23 = vunpack.c.l.bf16 %v594_v21  ;;  %v610_v26 = vld [vmem:[%s2351_s3] sm:$0x3]  ;;  %v597_v28 = vunpack.c.h.bf16 %v594_v21 }
  0x19   : > { %1029 = vmatpush.bf16.msra.mxu3 %v1957_v9  ;;  %v595_v22 = vld [vmem:[%s566_s23 + $0x8] sm:$0xff]  ;;  %v620_v27 = vld [vmem:[%s571_s26] sm:$0xff]  ;;  %v612_v32 = vperm.slane %v610_v26, 0  ;;  %v613_v45 = vperm.slane %v610_v26, 1  ;;  %v1960_v0 = vld [vmem:[#allocation3 + $0x88] sm:$0xff] }
  0x1a   : > { %892 = vmatpush.bf16.msra.mxu0 %v1964_v10  ;;  %v598_v24 = vunpack.c.l.bf16 %v595_v22  ;;  %v599_v29 = vunpack.c.h.bf16 %v595_v22  ;;  %v1954_v30 = vld [vmem:[#allocation3 + $0x58] sm:$0xff]  ;;  %v622_v34 = vunpack.c.l.bf16 %v620_v27  ;;  %v626_v35 = vld [vmem:[%s2352_s4] sm:$0x3]  ;;  %v623_v36 = vunpack.c.h.bf16 %v620_v27  ;;  %v1968_v1 = vld [vmem:[#allocation3 + $0xc8] sm:$0xff] }
  0x1b   : > { %906 = vmatpush.bf16.msra.mxu1 %v1972_v11  ;;  %v621_v33 = vld [vmem:[%s571_s26 + $0x8] sm:$0xff]  ;;  %v628_v38 = vperm.slane %v626_v35, 0  ;;  %v636_v39 = vld [vmem:[%s2353_s5] sm:$0x3]  ;;  %v606_v42 = vmul.f32 %v602_v31, %v596_v23  ;;  %v607_v50 = vmul.f32 %v603_v40, %v597_v28  ;;  %v629_v51 = vperm.slane %v626_v35, 1  ;;  %v1944_v5 = vld [vmem:[#allocation3 + $0x8] sm:$0xff] }
  0x1c   : > { %1016 = vmatpush.bf16.msra.mxu2 %v1948_v12  ;;  %v624_v37 = vunpack.c.l.bf16 %v621_v33  ;;  %v625_v41 = vunpack.c.h.bf16 %v621_v33  ;;  %v608_v43 = vmul.f32 %v602_v31, %v598_v24  ;;  %v638_v44 = vperm.slane %v636_v39, 0  ;;  %v1961_v46 = vld [vmem:[#allocation3 + $0x90] sm:$0xff]  ;;  %v1952_v6 = vld [vmem:[#allocation3 + $0x48] sm:$0xff]  ;;  %v1959_v12 = vld [vmem:[#allocation3 + $0x80] sm:$0xff]  ;;  %s1941_s26 = sshll.u32 %s2366_s22, 3 }
  0x1d   : > { %1030 = vmatpush.bf16.msra.mxu3 %v1956_v13  ;;  %v1969_v47 = vld [vmem:[#allocation3 + $0xd0] sm:$0xff]  ;;  %v632_v48 = vmul.f32 %v628_v38, %v622_v34  ;;  %v616_v54 = vadd.f32 %v612_v32, %v606_v42  ;;  %v609_v56 = vmul.f32 %v603_v40, %v599_v29  ;;  %v639_v57 = vperm.slane %v636_v39, 1  ;;  %v1967_v13 = vld [vmem:[#allocation3 + $0xc0] sm:$0xff]  ;;  %v1990_v21 = vld [vmem:[#allocation3 + $0x178] sm:$0xff]  ;;  %s576_s29 = scalar_lea.vmem %s2358_s10, %s1941_s26  ;;  %s587_s17 = scalar_lea.vmem %s2361_s13, %s1941_s26 }
  0x1e   : > { %893 = vmatpush.bf16.msra.mxu0 %v1963_v14  ;;  %v634_v49 = vmul.f32 %v628_v38, %v624_v37  ;;  %v1945_v52 = vld [vmem:[#allocation3 + $0x10] sm:$0xff]  ;;  %v618_v55 = vadd.f32 %v612_v32, %v608_v43  ;;  %v617_v60 = vadd.f32 %v613_v45, %v607_v50  ;;  %v633_v61 = vmul.f32 %v629_v51, %v623_v36  ;;  %v1998_v24 = vld [vmem:[#allocation5 + $0x38] sm:$0xff]  ;;  %v1980_v36 = vld [vmem:[#allocation3 + $0x128] sm:$0xff] }
  0x1f   : > { %907 = vmatpush.bf16.msra.mxu1 %v1971_v15  ;;  %v1953_v53 = vld [vmem:[#allocation3 + $0x50] sm:$0xff]  ;;  %v642_v58 = vadd.f32 %v638_v44, %v632_v48  ;;  %v619_v62 = vadd.f32 %v613_v45, %v609_v56  ;;  %v635_v63 = vmul.f32 %v629_v51, %v625_v41  ;;  %v2006_v25 = vld [vmem:[#allocation5 + $0x78] sm:$0xff]  ;;  %v1988_v37 = vld [vmem:[#allocation3 + $0x168] sm:$0xff] }
  0x20   : > { %1017 = vmatpush.bf16.msra.mxu2 %v1947_v16  ;;  %v644_v59 = vadd.f32 %v638_v44, %v634_v49  ;;  %v643_v4 = vadd.f32 %v639_v57, %v633_v61  ;;  %v1981_v28 = vld [vmem:[#allocation3 + $0x130] sm:$0xff]  ;;  %v1996_v38 = vld [vmem:[#allocation5 + $0x28] sm:$0xff]  ;;  %v1979_v50 = vld [vmem:[#allocation3 + $0x120] sm:$0xff] }
  0x21   : > { %1031 = vmatpush.bf16.msra.mxu3 %v1955_v17  ;;  %v2272_v2 = vadd.f32 %v642_v58, %v616_v54  ;;  %v645_v7 = vadd.f32 %v639_v57, %v635_v63  ;;  %v1943_v17 = vld [vmem:[#allocation3] sm:$0xff]  ;;  %v1989_v29 = vld [vmem:[#allocation3 + $0x170] sm:$0xff]  ;;  %v2004_v39 = vld [vmem:[#allocation5 + $0x68] sm:$0xff] }
  0x22   : > { %894 = vmatpush.bf16.msra.mxu0 %v1962_v18  ;;  %v2274_v3 = vadd.f32 %v644_v59, %v618_v55  ;;  %v2278_v10 = vadd.f32 %v643_v4, %v617_v60  ;;  %v1951_v18 = vld [vmem:[#allocation3 + $0x40] sm:$0xff]  ;;  %v2005_v31 = vld [vmem:[#allocation5 + $0x70] sm:$0xff]  ;;  %v1986_v4 = vld [vmem:[#allocation3 + $0x158] sm:$0xff] }
  0x23   : > { %908 = vmatpush.bf16.msra.mxu1 %v1970_v19  ;;  %v650_v8 = vmax.f32 %v2272_v2, 0.0  ;;  %v2280_v11 = vadd.f32 %v645_v7, %v619_v62  ;;  %v1987_v51 = vld [vmem:[#allocation3 + $0x160] sm:$0xff]  ;;  %v1978_v62 = vld [vmem:[#allocation3 + $0x118] sm:$0xff] }
  0x24   : > { %1018 = vmatpush.bf16.msra.mxu2 %v1946_v20  ;;  %v652_v9 = vmax.f32 %v2274_v3, 0.0  ;;  %v651_v16 = vmax.f32 %v2278_v10, 0.0  ;;  %v1982_v20 = vld [vmem:[#allocation3 + $0x138] sm:$0xff]  ;;  %v1995_v56 = vld [vmem:[#allocation5 + $0x20] sm:$0xff] }
  0x25   : > { %1032 = vmatpush.bf16.msra.mxu3 %v1954_v30  ;;  %v661_v14 = vrot.slane %v650_v8, 7  ;;  %v653_v19 = vmax.f32 %v2280_v11, 0.0  ;;  %v1997_v30 = vld [vmem:[#allocation5 + $0x30] sm:$0xff]  ;;  %v2003_v57 = vld [vmem:[#allocation5 + $0x60] sm:$0xff] }
  0x26   : > { %895 = vmatpush.bf16.msra.mxu0 %v1961_v46  ;;  %v663_v15 = vrot.slane %v652_v9, 7  ;;  %v662_v23 = vrot.slane %v651_v16, 7  ;;  %v1975_v2 = vld [vmem:[#allocation3 + $0x100] sm:$0xff] }
  0x27   : > { %909 = vmatpush.bf16.msra.mxu1 %v1969_v47  ;;  %673 = vst [vmem:[#allocation2] sm:$0xfe] %v661_v14  ;;  %v665_v26 = vrot.slane %v653_v19, 7  ;;  %v1983_v3 = vld [vmem:[#allocation3 + $0x140] sm:$0xff] }
  0x28   : > { %1019 = vmatpush.bf16.msra.mxu2 %v1945_v52  ;;  %v2289_v22 = vsel %vm660_vm1, %v661_v14, %v663_v15  ;;  %677 = vst [vmem:[#allocation2 + $0x20] sm:$0x1] %v663_v15  ;;  %v1993_v15 = vld [vmem:[#allocation5 + $0x10] sm:$0xff] }
  0x29   : > { %1033 = vmatpush.bf16.msra.mxu3 %v1953_v53  ;;  %v2296_v27 = vsel %vm660_vm1, %v662_v23, %v665_v26  ;;  %674 = vst [vmem:[#allocation2 + $0x8] sm:$0xfe] %v662_v23 }
  0x2a   : > { %896 = vmatpush.bf16.msra.mxu0 %v1960_v0  ;;  %678 = vst [vmem:[#allocation2 + $0x28] sm:$0x1] %v665_v26  ;;  %v654_v26 = vpack.c.bf16 %v651_v16, %v650_v8 }
  0x2b   : > { %910 = vmatpush.bf16.msra.mxu1 %v1968_v1 }
  0x2c   : > { %1020 = vmatpush.bf16.msra.mxu2 %v1944_v5  ;;  %v1994_v5 = vld [vmem:[#allocation5 + $0x18] sm:$0xff]  ;;  %v1288_v8 = vunpack.c.l.b16 %v654_v26 }
  0x2d   : > { %1034 = vmatpush.bf16.msra.mxu3 %v1952_v6  ;;  %v2002_v6 = vld [vmem:[#allocation5 + $0x58] sm:$0xff] }
  0x2e   : > { %897 = vmatpush.bf16.msra.mxu0 %v1959_v12  ;;  %v688_v32 = vld [vmem:[#allocation2] sm:$0xff] }
  0x2f   : > { %911 = vmatpush.bf16.msra.mxu1 %v1967_v13  ;;  %v726_v33 = vld [vmem:[#allocation2] sm:$0xfe]  ;;  %v692_v34 = vpack.c.bf16 %v2289_v22, %v688_v32  ;;  %v728_v40 = vld [vmem:[#allocation2 + $0x20] sm:$0x1]  ;;  %v2000_v32 = vld [vmem:[#allocation5 + $0x48] sm:$0xff] }
  0x30   : > { %1021 = vmatpush.bf16.msra.mxu2 %v1943_v17  ;;  %v730_v35 = vpack.c.bf16 %v2289_v22, %v726_v33  ;;  %v689_v41 = vld [vmem:[#allocation2 + $0x8] sm:$0xff]  ;;  %v732_v43 = vpack.c.bf16 %v728_v40, %v728_v40  ;;  %v1977_v12 = vld [vmem:[#allocation3 + $0x110] sm:$0xff] }
  0x31   : > { %1035 = vmatpush.bf16.msra.mxu3 %v1951_v18  ;;  %v727_v42 = vld [vmem:[#allocation2 + $0x8] sm:$0xfe]  ;;  %v693_v44 = vpack.c.bf16 %v2296_v27, %v689_v41  ;;  %v729_v49 = vld [vmem:[#allocation2 + $0x28] sm:$0x1]  ;;  %v1985_v13 = vld [vmem:[#allocation3 + $0x150] sm:$0xff] }
  0x32   : > { %1192 = vmatpush.bf16.msrb.mxu0 %v1982_v20  ;;  %v731_v45 = vpack.c.bf16 %v2296_v27, %v727_v42  ;;  %v769_v46 = vshrl.u32 %v730_v35, 16  ;;  %v771_v47 = vshll.u32 %v730_v35, 16  ;;  %v776_v48 = vshll.u32 %v732_v43, 16  ;;  %v1042_v14 = vld [vmem:[#allocation2] sm:$0xfc]  ;;  %v1999_v35 = vld [vmem:[#allocation5 + $0x40] sm:$0xff] }
  0x33   : > { %1206 = vmatpush.bf16.msrb.mxu1 %v1990_v21  ;;  %1022 = vmatmul.bf16.vlgmr.msra.gmra.mxu2 %v692_v34  ;;  %v733_v53 = vpack.c.bf16 %v729_v49, %v729_v49  ;;  %v1044_v17 = vld [vmem:[#allocation2 + $0x20] sm:$0x3]  ;;  %v1043_v18 = vld [vmem:[#allocation2 + $0x8] sm:$0xfc]  ;;  %v1045_v21 = vld [vmem:[#allocation2 + $0x28] sm:$0x3]  ;;  %v1046_v23 = vpack.c.bf16 %v2289_v22, %v1042_v14 }
  0x34   : > { %1392 = vmatpush.bf16.msrb.mxu2 %v1998_v24  ;;  %v773_v52 = vrot.slane %v771_v47, 1  ;;  %v781_v54 = vshrl.u32 %v731_v45, 16  ;;  %v783_v55 = vshll.u32 %v731_v45, 16  ;;  %1036 = vmatmul.bf16.vlgmr.msra.gmra.mxu3 %v693_v44  ;;  %v778_v58 = vrot.slane %v776_v48, 1  ;;  %v2001_v20 = vld [vmem:[#allocation5 + $0x50] sm:$0xff]  ;;  %v1976_v24 = vld [vmem:[#allocation3 + $0x108] sm:$0xff] }
  0x35   : > { %1406 = vmatpush.bf16.msrb.mxu3 %v2006_v25  ;;  %v788_v61 = vshll.u32 %v733_v53, 16  ;;  %v1048_v25 = vpack.c.bf16 %v1044_v17, %v1044_v17  ;;  %v1049_v22 = vpack.c.bf16 %v1045_v21, %v1045_v21  ;;  %v1088_v33 = vrot.slane %v1046_v23, 1 }
  0x36   : > { %1193 = vmatpush.bf16.msrb.mxu0 %v1981_v28  ;;  %v774_v59 = vor.u32 %v773_v52, %v769_v46  ;;  %v785_v60 = vrot.slane %v783_v55, 1  ;;  %v655_v28 = vpack.c.bf16 %v653_v19, %v652_v9  ;;  %v1991_v9 = vld [vmem:[#allocation5] sm:$0xff] }
  0x37   : > { %1207 = vmatpush.bf16.msrb.mxu1 %v1989_v29  ;;  %v790_v1 = vrot.slane %v788_v61, 1  ;;  %v1047_v29 = vpack.c.bf16 %v2296_v27, %v1043_v18  ;;  %v1089_v10 = vrot.slane %v1048_v25, 1  ;;  %v1092_v19 = vrot.slane %v1049_v22, 1  ;;  %v2050_v61 = vld [vmem:[%s2357_s9] ss:$0 sm:$0xff] }
  0x38   : > { %1393 = vmatpush.bf16.msrb.mxu2 %v1997_v30  ;;  %v779_v63 = vsel %vm767_vm2, %v774_v59, %v778_v58  ;;  %v786_v0 = vor.u32 %v785_v60, %v781_v54  ;;  %v1984_v30 = vld [vmem:[#allocation3 + $0x148] sm:$0xff]  ;;  %v1290_v16 = vunpack.c.l.b16 %v655_v28  ;;  %v1289_v27 = vunpack.c.h.b16 %v654_v26 }
  0x39   : > { %1407 = vmatpush.bf16.msrb.mxu3 %v2005_v31  ;;  %898 = vmatmul.bf16.vlgmr.msra.gmra.mxu0 %v779_v63  ;;  %v1992_v31 = vld [vmem:[#allocation5 + $0x8] sm:$0xff]  ;;  %v1091_v11 = vrot.slane %v1047_v29, 1  ;;  %v1291_v34 = vunpack.c.h.b16 %v655_v28 }
  0x3a   : > { %1194 = vmatpush.bf16.msrb.mxu0 %v1980_v36  ;;  %v791_v7 = vsel %vm767_vm2, %v786_v0, %v790_v1  ;;  %v1090_v36 = vsel %vm1087_vm3, %v1088_v33, %v1089_v10 }
  0x3b   : > { %1208 = vmatpush.bf16.msrb.mxu1 %v1988_v37  ;;  %v1292_v37 = vpack.c.b16 %v1290_v16, %v1288_v8 }
  0x3c   : > { %1394 = vmatpush.bf16.msrb.mxu2 %v1996_v38  ;;  %912 = vmatmul.bf16.vlgmr.msra.gmra.mxu1 %v791_v7  ;;  %v1093_v38 = vsel %vm1087_vm3, %v1091_v11, %v1092_v19 }
  0x3d   : > { %1408 = vmatpush.bf16.msrb.mxu3 %v2004_v39  ;;  %v1293_v39 = vpack.c.b16 %v1291_v34, %v1289_v27 }
  0x3e   : > { %1195 = vmatpush.bf16.msrb.mxu0 %v1979_v50 }
  0x3f   : > { %1209 = vmatpush.bf16.msrb.mxu1 %v1987_v51 }
  0x40   : > { %1395 = vmatpush.bf16.msrb.mxu2 %v1995_v56 }
  0x41   : > { %1409 = vmatpush.bf16.msrb.mxu3 %v2003_v57  ;;  %v2049_v57 = vld [vmem:[%s2355_s7] ss:$0 sm:$0xff] }
  0x42   : > { %1196 = vmatpush.bf16.msrb.mxu0 %v1978_v62 }
  0x43   : > { %1210 = vmatpush.bf16.msrb.mxu1 %v1986_v4 }
  0x44   : > { %1396 = vmatpush.bf16.msrb.mxu2 %v1994_v5 }
  0x45   : > { %1410 = vmatpush.bf16.msrb.mxu3 %v2002_v6 }
  0x46   : > { %1197 = vmatpush.bf16.msrb.mxu0 %v1977_v12 }
  0x47   : > { %1211 = vmatpush.bf16.msrb.mxu1 %v1985_v13 }
  0x48   : > { %1397 = vmatpush.bf16.msrb.mxu2 %v1993_v15 }
  0x49   : > { %1411 = vmatpush.bf16.msrb.mxu3 %v2001_v20 }
  0x4a   : > { %1198 = vmatpush.bf16.msrb.mxu0 %v1976_v24 }
  0x4b   : > { %1212 = vmatpush.bf16.msrb.mxu1 %v1984_v30 }
  0x4c   : > { %1398 = vmatpush.bf16.msrb.mxu2 %v1992_v31 }
  0x4d   : > { %1412 = vmatpush.bf16.msrb.mxu3 %v2000_v32 }
  0x4e   : > { %1199 = vmatpush.bf16.msrb.mxu0 %v1975_v2 }
  0x4f   : > { %1213 = vmatpush.bf16.msrb.mxu1 %v1983_v3 }
  0x50   : > { %1399 = vmatpush.bf16.msrb.mxu2 %v1991_v9 }
  0x51   : > { %1413 = vmatpush.bf16.msrb.mxu3 %v1999_v35  ;;  %1200 = vmatmul.bf16.vlgmr.msrb.gmra.mxu0 %v1090_v36 }
  0x52   : > { %1214 = vmatmul.bf16.vlgmr.msrb.gmra.mxu1 %v1093_v38 }
  0x53   : > { %1400 = vmatmul.bf16.vlgmr.msrb.gmra.mxu2 %v1292_v37 }
  0x54   : > { %1414 = vmatmul.bf16.vlgmr.msrb.gmra.mxu3 %v1293_v39 }
  0xb6   : > { %v899_v40 = vpop.f32.mrf.mxu0  ;;  %v1023_v42 = vpop.f32.mrf.mxu2 }
  0xb7   : > { %v1037_v43 = vpop.f32.mrf.mxu3 }
  0xb9   : > { %v913_v41 = vpop.f32.mrf.mxu1 }
  0xba   : > { %v914_v46 = vadd.f32 %v913_v41, %v899_v40 }
  0xbc   : > { %v1024_v50 = vadd.f32 %v1023_v42, %v914_v46 }
  0xbe   : > { %v901_v44 = vpop.f32.mrf.mxu0  ;;  %v1025_v47 = vpop.f32.mrf.mxu2  ;;  %v1038_v54 = vadd.f32 %v1037_v43, %v1024_v50 }
  0xbf   : > { %v1039_v48 = vpop.f32.mrf.mxu3 }
  0xc1   : > { %v915_v45 = vpop.f32.mrf.mxu1 }
  0xc2   : > { %v916_v52 = vadd.f32 %v915_v45, %v901_v44 }
  0xc4   : > { %v1026_v55 = vadd.f32 %v1025_v47, %v916_v52 }
  0xc6   : > { %v1040_v63 = vadd.f32 %v1039_v48, %v1026_v55 }
  0xce   : > { %v1201_v49 = vpop.f32.mrf.mxu0 }
  0xcf   : > { %v1215_v51 = vpop.f32.mrf.mxu1 }
  0xd0   : > { %v1216_v53 = vadd.f32 %v1215_v51, %v1201_v49 }
  0xd2   : > { %v1220_v56 = vadd.f32 %v1216_v53, %v1038_v54 }
  0xd4   : > { %v1226_v1 = vadd.f32 %v2049_v57, %v1220_v56 }
  0xd6   : > { %v1401_v58 = vpop.f32.mrf.mxu2  ;;  %v1203_v60 = vpop.f32.mrf.mxu0  ;;  %v1239_v7 = vmul.f32 %v1226_v1, %v1226_v1 }
  0xd7   : > { %v1415_v59 = vpop.f32.mrf.mxu3  ;;  %v1217_v62 = vpop.f32.mrf.mxu1  ;;  %v1402_v5 = vadd.f32 %v2050_v61, %v1401_v58 }
  0xd8   : > { %v1218_v0 = vadd.f32 %v1217_v62, %v1203_v60 }
  0xd9   : > { %v1416_v18 = vadd.f32 %v1415_v59, %v1402_v5 }
  0xda   : > { %v1221_v4 = vadd.f32 %v1218_v0, %v1040_v63 }
  0xdb   : > { %v1432_v30 = vmul.f32 %v1416_v18, %v1416_v18 }
  0xdc   : > { %v1227_v6 = vadd.f32 %v2049_v57, %v1221_v4 }
  0xde   : > { %v1403_v12 = vpop.f32.mrf.mxu2  ;;  %v2010_v13 = vpack.c.bf16 %v1227_v6, %v1226_v1  ;;  %v1232_v14 = vadd.f32 %v1227_v6, %v1226_v1  ;;  %v1240_v15 = vmul.f32 %v1227_v6, %v1227_v6 }
  0xdf   : > { %v1404_v17 = vadd.f32 %v2050_v61, %v1403_v12  ;;  %v1417_v20 = vpop.f32.mrf.mxu3 }
  0xe0   : > { %v1233_v21 = vrot.slane %v1232_v14, 4  ;;  %v1241_v23 = vadd.f32 %v1240_v15, %v1239_v7  ;;  %2011 = vst [vmem:[%s576_s29] sm:$0xff] %v2010_v13  }
  0xe1   : > { %v1418_v24 = vadd.f32 %v1417_v20, %v1404_v17 }
  0xe2   : > { %v1234_v25 = vadd.f32 %v1233_v21, %v1232_v14  ;;  %v1242_v26 = vrot.slane %v1241_v23, 4 }
  0xe3   : > { %v2015_v28 = vpack.c.bf16 %v1418_v24, %v1416_v18  ;;  %v1424_v29 = vadd.f32 %v1418_v24, %v1416_v18  ;;  %v1433_v31 = vmul.f32 %v1418_v24, %v1418_v24 }
  0xe4   : > { %v1235_v22 = vrot.slane %v1234_v25, 2  ;;  %v1243_v32 = vadd.f32 %v1242_v26, %v1241_v23 }
  0xe5   : > { %2016 = vst [vmem:[%s587_s17] sm:$0xff] %v2015_v28   ;;  %v1425_v2 = vrot.slane %v1424_v29, 4  ;;  %v1434_v33 = vadd.f32 %v1433_v31, %v1432_v30 }
  0xe6   : > { %v1236_v10 = vadd.f32 %v1235_v22, %v1234_v25  ;;  %v1244_v8 = vrot.slane %v1243_v32, 2 }
  0xe7   : > { %v1426_v16 = vadd.f32 %v1425_v2, %v1424_v29  ;;  %v1435_v3 = vrot.slane %v1434_v33, 4 }
  0xe8   : > { %v1237_v9 = vrot.slane %v1236_v10, 1  ;;  %v1245_v11 = vadd.f32 %v1244_v8, %v1243_v32 }
  0xe9   : > { %v1427_v19 = vrot.slane %v1426_v16, 2  ;;  %v1436_v27 = vadd.f32 %v1435_v3, %v1434_v33 }
  0xea   : > { %v1238_v34 = vadd.f32 %v1237_v9, %v1236_v10  ;;  %v1246_v35 = vrot.slane %v1245_v11, 1 }
  0xeb   : > { %v1428_v36 = vadd.f32 %v1427_v19, %v1426_v16  ;;  %v1437_v37 = vrot.slane %v1436_v27, 2 }
  0xec   : > { %v1247_v38 = vadd.f32 %v1246_v35, %v1245_v11  ;;  %1248 = vst [vmem:[%s579_s21] sm:$0x1] %v1238_v34 }
  0xed   : > { %v1429_v39 = vrot.slane %v1428_v36, 1  ;;  %v1438_v40 = vadd.f32 %v1437_v37, %v1436_v27 }
  0xee   : > { %1249 = vst [vmem:[%s582_s25] sm:$0x1] %v1247_v38 }
  0xef   : > { %v1430_v41 = vadd.f32 %v1429_v39, %v1428_v36  ;;  %v1439_v42 = vrot.slane %v1438_v40, 1 }
  0xf1   : > { %1431 = vst [vmem:[%s590_s28] sm:$0x1] %v1430_v41  ;;  %v1440_v43 = vadd.f32 %v1439_v42, %v1438_v40 }
  0xf3   : > { %1441 = vst [vmem:[%s593_s16] sm:$0x1] %v1440_v43 }
  0xf4 PF: > { %s28_s18 = sadd.s32 1, %s2125_s18  }
  0xf5   : > { %p25_p7 = scmp.ge.s32.totalorder %s28_s18, 4  }
  0xf7   :  { %27 = sbr.rel (!%p25_p7) target bundleno = 2 (0x2), region = 165 }
  0xfc   :  { %1527 = vsyncpa [#allocation4], 1 }
  0xfd   :  { %1529 = vsyncpa [#allocation4 + $0x1], 1 }
  0xfe   :  { %1530 = vsyncpa [#allocation6], 1 }

</bundles_post_ra>
